<compile_context>
chip_gen: v7x
topology: tpu7x:2x2x1
jax: 0.10.0
libtpu: 0.0.40
codegen_flags: <defaults>
</compile_context>

<pallas_src>
import jax
import jax.numpy as jnp
import numpy as np
from jax.experimental import pallas as pl
from jax.experimental.pallas import tpu as pltpu

LANE = 128
ALIGN_M = 16       # sublane alignment that also covers bf16 packing


def _round_up(x, m):
    return (x + m - 1) // m * m


def _dot(a, b):
    # f32 operands -> force the accurate multi-pass MXU algorithm; bf16
    # operands -> native single-pass bf16 matmul with f32 accumulation.
    prec = (jax.lax.Precision.HIGHEST if a.dtype == jnp.float32
            else jax.lax.Precision.DEFAULT)
    return jnp.dot(a, b, preferred_element_type=jnp.float32, precision=prec)


# ----------------------------------------------------------------------------
# Pallas kernels
# ----------------------------------------------------------------------------
def _conv_pool_kernel(p_ref, w_ref, b_ref, o_ref):
    """Fused conv(matmul) + bias + ReLU + 2x2 max-pool.

    p_ref: (4, TM, Kpad) im2col patches, one slab per pool offset.
    w_ref: (Kpad, 128)   zero-padded conv weight (real cols = OC).
    b_ref: (1, 128)      f32 zero-padded bias.
    o_ref: (TM, 128)     pooled output (lane-dense store).
    """
    tm = o_ref.shape[0]
    kpd = p_ref.shape[2]
    # Leading-dim collapse (TM is a multiple of 16 -> layout-trivial reshape):
    # one MXU matmul covers all four pool offsets with a single RHS push.
    p = p_ref[...].reshape(4 * tm, kpd)
    y = _dot(p, w_ref[...]) + b_ref[...]
    y = jnp.maximum(y, 0.0)
    # 2x2 max-pool = elementwise max of the four sublane-aligned row groups.
    pooled = jnp.maximum(jnp.maximum(y[:tm], y[tm:2 * tm]),
                         jnp.maximum(y[2 * tm:3 * tm], y[3 * tm:]))
    o_ref[...] = pooled.astype(o_ref.dtype)


def _fc_stack_kernel(x_ref, w1_ref, b1_ref, w2_ref, b2_ref, w3_ref, b3_ref, o_ref):
    """fc1 -> ReLU -> fc2 -> ReLU -> fc3 fused; intermediates stay in VMEM."""
    h = jnp.maximum(_dot(x_ref[...], w1_ref[...]) + b1_ref[...], 0.0)
    # Intentional: hidden activations re-cast to the weight dtype (bf16 when
    # compute dtype is bf16; no-op for the f32 path).
    h = jnp.maximum(_dot(h.astype(w2_ref.dtype), w2_ref[...]) + b2_ref[...], 0.0)
    out = _dot(h.astype(w3_ref.dtype), w3_ref[...]) + b3_ref[...]
    o_ref[...] = out.astype(o_ref.dtype)


# ----------------------------------------------------------------------------
# Wrappers
# ----------------------------------------------------------------------------
def conv_relu_pool_pallas(x, w_pad, b_pad, oc, *, kh=5, kw=5, tile_m=512):
    """x: (N,H,W,C) f32 NHWC; w_pad: (Kpad, 128); b_pad: (1, 128) f32.
    Returns (N, (H-kh+1)//2, (W-kw+1)//2, oc) f32."""
    compute_dtype = w_pad.dtype
    n, h, wd, c = x.shape
    kpad, ocpad = w_pad.shape
    k = kh * kw * c
    assert kpad == _round_up(k, LANE) and ocpad == LANE
    oh, ow = h - kh + 1, wd - kw + 1
    h2, w2 = oh // 2, ow // 2
    rows = n * h2 * w2
    rows_pad = _round_up(rows, ALIGN_M)                   # only sublane padding
    tile = min(_round_up(tile_m, ALIGN_M), rows_pad)
    grid_m = pl.cdiv(rows_pad, tile)

    # TODO(synk): this HBM-materialized im2col (plus the stack/pad/cast glue)
    # is ~25x the activation bytes; a fully in-kernel conv would remove it.
    def make_patch(di, dj):
        taps = [x[:, di + a: di + a + 2 * h2: 2, dj + bb: dj + bb + 2 * w2: 2, :]
                for a in range(kh) for bb in range(kw)]
        pt = jnp.stack(taps, axis=3).reshape(rows, k)
        return jnp.pad(pt, ((0, rows_pad - rows), (0, kpad - k)))

    patches = jnp.stack([make_patch(di, dj) for di in (0, 1) for dj in (0, 1)],
                        axis=0).astype(compute_dtype)     # (4, rows_pad, Kpad)

    out = pl.pallas_call(
        _conv_pool_kernel,
        out_shape=jax.ShapeDtypeStruct((rows_pad, LANE), jnp.float32),
        grid_spec=pltpu.PrefetchScalarGridSpec(
            num_scalar_prefetch=0,
            grid=(grid_m,),
            in_specs=[pl.BlockSpec((4, tile, kpad), lambda i: (0, i, 0)),
                      pl.BlockSpec((kpad, LANE), lambda i: (0, 0)),
                      pl.BlockSpec((1, LANE), lambda i: (0, 0))],
            out_specs=pl.BlockSpec((tile, LANE), lambda i: (i, 0)),
        ),
        compiler_params=pltpu.CompilerParams(dimension_semantics=("parallel",)),
    )(patches, w_pad, b_pad)
    return out[:rows, :oc].reshape(n, h2, w2, oc)


def fc_stack_pallas(flat, fp, *, tile_m=512):
    """flat: (M, 400) NHWC-flattened conv2 output. Returns (M, 10) logits."""
    compute_dtype = fp["f1_w"].dtype
    m, k = flat.shape
    kpad, h1 = fp["f1_w"].shape
    h2o = fp["f2_w"].shape[1]
    noutpad = fp["f3_w"].shape[1]                         # 128 (10 real)
    m_pad = _round_up(m, ALIGN_M)
    tile = min(_round_up(tile_m, ALIGN_M), m_pad)
    grid_m = pl.cdiv(m_pad, tile)
    x = jnp.pad(flat, ((0, m_pad - m), (0, kpad - k))).astype(compute_dtype)

    out = pl.pallas_call(
        _fc_stack_kernel,
        out_shape=jax.ShapeDtypeStruct((m_pad, noutpad), jnp.float32),
        grid_spec=pltpu.PrefetchScalarGridSpec(
            num_scalar_prefetch=0,
            grid=(grid_m,),
            in_specs=[
                pl.BlockSpec((tile, kpad), lambda i: (i, 0)),
                pl.BlockSpec((kpad, h1), lambda i: (0, 0)),
                pl.BlockSpec((1, h1), lambda i: (0, 0)),
                pl.BlockSpec((h1, h2o), lambda i: (0, 0)),
                pl.BlockSpec((1, h2o), lambda i: (0, 0)),
                pl.BlockSpec((h2o, noutpad), lambda i: (0, 0)),
                pl.BlockSpec((1, noutpad), lambda i: (0, 0)),
            ],
            out_specs=pl.BlockSpec((tile, noutpad), lambda i: (i, 0)),
        ),
        compiler_params=pltpu.CompilerParams(dimension_semantics=("parallel",)),
    )(x, fp["f1_w"], fp["f1_b"], fp["f2_w"], fp["f2_b"], fp["f3_w"], fp["f3_b"])
    return out[:m, :10]


# ----------------------------------------------------------------------------
# Parameters: PyTorch-layout init + one-time TPU-friendly preparation
# ----------------------------------------------------------------------------
def init_params_torch(key):
    """Deterministic PyTorch-layout params, uniform(-1/sqrt(fan_in), +)."""
    def uni(k, shape, fan_in):
        bound = 1.0 / np.sqrt(fan_in)
        return jax.random.uniform(k, shape, jnp.float32, -bound, bound)

    ks = jax.random.split(key, 10)
    return {
        "conv1_w": uni(ks[0], (6, 3, 5, 5), 3 * 25),
        "conv1_b": uni(ks[1], (6,), 3 * 25),
        "conv2_w": uni(ks[2], (16, 6, 5, 5), 6 * 25),
        "conv2_b": uni(ks[3], (16,), 6 * 25),
        "fc1_w": uni(ks[4], (120, 400), 400),
        "fc1_b": uni(ks[5], (120,), 400),
        "fc2_w": uni(ks[6], (84, 120), 120),
        "fc2_b": uni(ks[7], (84,), 120),
        "fc3_w": uni(ks[8], (10, 84), 84),
        "fc3_b": uni(ks[9], (10,), 84),
    }


def prepare_params(tp, compute_dtype=jnp.bfloat16):
    """One-time layout prep: conv weights -> (Kpad, 128); FC weights
    transposed and zero-padded to lane-friendly dims (fc3 out 10->128); the
    PyTorch NCHW flatten folded into fc1's rows.  Biases stay f32."""
    fp = {}
    for name, wk, bk in (("c1", "conv1_w", "conv1_b"), ("c2", "conv2_w", "conv2_b")):
        w = tp[wk]                                   # (OC, IC, KH, KW)
        oc, ic, kh, kw = w.shape
        wf = jnp.transpose(w, (2, 3, 1, 0)).reshape(kh * kw * ic, oc)   # (K, OC)
        kpad = _round_up(kh * kw * ic, LANE)
        fp[name + "_w"] = jnp.pad(wf, ((0, kpad - wf.shape[0]),
                                       (0, LANE - oc))).astype(compute_dtype)
        fp[name + "_b"] = jnp.pad(tp[bk], (0, LANE - oc)).reshape(1, LANE).astype(jnp.float32)
        fp[name + "_oc"] = oc

    # fc1: fold PyTorch's NCHW flatten (row index c*25+h*5+w) into the NHWC
    # flatten order (row index h*80+w*16+c); pad 400->512, 120->128.
    w1 = tp["fc1_w"].T                               # (400, 120) NCHW row order
    w1 = w1.reshape(16, 5, 5, 120).transpose(1, 2, 0, 3).reshape(400, 120)
    fp["f1_w"] = jnp.pad(w1, ((0, 512 - 400), (0, 128 - 120))).astype(compute_dtype)
    fp["f1_b"] = jnp.pad(tp["fc1_b"], (0, 128 - 120)).reshape(1, 128).astype(jnp.float32)

    w2 = tp["fc2_w"].T                               # (120, 84)
    fp["f2_w"] = jnp.pad(w2, ((0, 128 - 120), (0, 128 - 84))).astype(compute_dtype)
    fp["f2_b"] = jnp.pad(tp["fc2_b"], (0, 128 - 84)).reshape(1, 128).astype(jnp.float32)

    w3 = tp["fc3_w"].T                               # (84, 10) -> (128, 128)
    fp["f3_w"] = jnp.pad(w3, ((0, 128 - 84), (0, 128 - 10))).astype(compute_dtype)
    fp["f3_b"] = jnp.pad(tp["fc3_b"], (0, 128 - 10)).reshape(1, 128).astype(jnp.float32)
    return fp


# ----------------------------------------------------------------------------
# Forward pass (matches PyTorch Net.forward)
# ----------------------------------------------------------------------------
def net_forward(x_nchw, fp, *, conv_tile_m=512, fc_tile_m=512):
    n = x_nchw.shape[0]
    x = jnp.transpose(x_nchw, (0, 2, 3, 1))                         # NHWC (N,32,32,3)
    y = conv_relu_pool_pallas(x, fp["c1_w"], fp["c1_b"], fp["c1_oc"],
                              tile_m=conv_tile_m)                   # (N,14,14,6)
    y = conv_relu_pool_pallas(y, fp["c2_w"], fp["c2_b"], fp["c2_oc"],
                              tile_m=conv_tile_m)                   # (N,5,5,16)
    flat = y.reshape(n, 400)    # NHWC flatten; NCHW permutation folded into f1_w
    return fc_stack_pallas(flat, fp, tile_m=fc_tile_m)              # (N,10)


# Pure-jnp reference mirroring the PyTorch module exactly (NCHW flatten,
# un-padded / un-folded PyTorch-layout weights).
def net_forward_ref(x_nchw, tp):
    n = x_nchw.shape[0]
    x = jnp.transpose(x_nchw, (0, 2, 3, 1))

    def im2col(x, kh, kw):
        N, H, W, C = x.shape
        oh, ow = H - kh + 1, W - kw + 1
        cols = [x[:, i:i + oh, j:j + ow, :] for i in range(kh) for j in range(kw)]
        return jnp.stack(cols, axis=3).reshape(N * oh * ow, kh * kw * C)

    def conv_relu_pool(x, w_oihw, b):
        oc, ic, kh, kw = w_oihw.shape
        oh, ow = x.shape[1] - kh + 1, x.shape[2] - kw + 1
        w = jnp.transpose(w_oihw, (2, 3, 1, 0)).reshape(kh * kw * ic, oc)
        y = jnp.maximum(im2col(x, kh, kw) @ w + b, 0.0).reshape(n, oh, ow, oc)
        return jnp.max(y.reshape(n, oh // 2, 2, ow // 2, 2, oc), axis=(2, 4))

    y = conv_relu_pool(x, tp["conv1_w"], tp["conv1_b"])
    y = conv_relu_pool(y, tp["conv2_w"], tp["conv2_b"])
    flat = jnp.transpose(y, (0, 3, 1, 2)).reshape(n, 400)   # PyTorch x.view(-1, 400)
    h = jnp.maximum(flat @ tp["fc1_w"].T + tp["fc1_b"], 0.0)
    h = jnp.maximum(h @ tp["fc2_w"].T + tp["fc2_b"], 0.0)
    return h @ tp["fc3_w"].T + tp["fc3_b"]


if __name__ == "__main__":
    key = jax.random.PRNGKey(0)
    k_x, k_p = jax.random.split(key)
    # Input consistent with the module: conv arithmetic requires 3x32x32.
    x = jax.random.normal(k_x, (2, 3, 32, 32), jnp.float32)
    torch_params = init_params_torch(k_p)

    with jax.default_matmul_precision("highest"):
        ref = jax.block_until_ready(net_forward_ref(x, torch_params))

    # f32 path (tight correctness check).
    fp32 = prepare_params(torch_params, jnp.float32)
    out32 = jax.block_until_ready(net_forward(x, fp32))
    assert out32.shape == (2, 10), out32.shape
    np.testing.assert_allclose(np.asarray(out32), np.asarray(ref), atol=5e-3, rtol=5e-3)

    # bf16-operand / f32-accumulate default path (MXU-rate operands, halved
    # patch/weight DMA bytes); intentionally looser tolerance.
    fpbf16 = prepare_params(torch_params, jnp.bfloat16)
    outbf = jax.block_until_ready(net_forward(x, fpbf16))
    assert outbf.shape == (2, 10), outbf.shape
    np.testing.assert_allclose(np.asarray(outbf), np.asarray(ref), atol=5e-2, rtol=5e-2)

    print("KERNEL_OK")
</pallas_src>

<mosaic_0001>
module attributes {stable_mosaic.version = 11 : i64} {
  func.func @_conv_pool_kernel(%arg0: i32, %arg1: memref<4x400x128xf32, #tpu.memory_space<vmem>>, %arg2: memref<128x128xf32, #tpu.memory_space<vmem>>, %arg3: memref<1x128xf32, #tpu.memory_space<vmem>>, %arg4: memref<400x128xf32, #tpu.memory_space<vmem>>) attributes {dimension_semantics = [#tpu.dimension_semantics<parallel>], iteration_bounds = array<i64: 1>, scalar_prefetch = 0 : i64, scratch_operands = 0 : i64, tpu.core_type = #tpu.core_type<tc>, window_params = [{transform_indices = @transform_0, window_bounds = array<i64: 4, 400, 128>}, {pipeline_mode = #tpu.pipeline_mode<synchronous>, transform_indices = @transform_1, window_bounds = array<i64: 128, 128>}, {pipeline_mode = #tpu.pipeline_mode<synchronous>, transform_indices = @transform_2, window_bounds = array<i64: 1, 128>}, {transform_indices = @transform_3, window_bounds = array<i64: 400, 128>}]} {
    %c0 = arith.constant 0 : index
    %c0_0 = arith.constant 0 : index
    %c0_1 = arith.constant 0 : index
    %0 = vector.load %arg1[%c0, %c0_0, %c0_1] : memref<4x400x128xf32, #tpu.memory_space<vmem>>, vector<4x400x128xf32>
    %1 = vector.shape_cast %0 : vector<4x400x128xf32> to vector<1600x128xf32>
    %c0_2 = arith.constant 0 : index
    %c0_3 = arith.constant 0 : index
    %2 = vector.load %arg2[%c0_2, %c0_3] : memref<128x128xf32, #tpu.memory_space<vmem>>, vector<128x128xf32>
    %cst = arith.constant dense<0.000000e+00> : vector<1600x128xf32>
    %3 = tpu.matmul %1, %2, %cst {dimension_numbers = #tpu.dot_dimension_numbers<[1], [0], [0], [1], [0, 0, 1, 1], [], []>, precision = #tpu.contract_precision<fp32>} : vector<1600x128xf32>, vector<128x128xf32>, vector<1600x128xf32> -> vector<1600x128xf32>
    %c0_4 = arith.constant 0 : index
    %c0_5 = arith.constant 0 : index
    %4 = vector.load %arg3[%c0_4, %c0_5] : memref<1x128xf32, #tpu.memory_space<vmem>>, vector<1x128xf32>
    %5 = vector.broadcast %4 : vector<1x128xf32> to vector<1600x128xf32>
    %6 = arith.addf %3, %5 : vector<1600x128xf32>
    %cst_6 = arith.constant 0.000000e+00 : f32
    %7 = vector.broadcast %cst_6 : f32 to vector<1600x128xf32>
    %8 = arith.maximumf %6, %7 : vector<1600x128xf32>
    %9 = vector.extract_strided_slice %8 {offsets = [0, 0], sizes = [400, 128], strides = [1, 1]} : vector<1600x128xf32> to vector<400x128xf32>
    %10 = vector.extract_strided_slice %8 {offsets = [400, 0], sizes = [400, 128], strides = [1, 1]} : vector<1600x128xf32> to vector<400x128xf32>
    %11 = arith.maximumf %9, %10 : vector<400x128xf32>
    %12 = vector.extract_strided_slice %8 {offsets = [800, 0], sizes = [400, 128], strides = [1, 1]} : vector<1600x128xf32> to vector<400x128xf32>
    %13 = vector.extract_strided_slice %8 {offsets = [1200, 0], sizes = [400, 128], strides = [1, 1]} : vector<1600x128xf32> to vector<400x128xf32>
    %14 = arith.maximumf %12, %13 : vector<400x128xf32>
    %15 = arith.maximumf %11, %14 : vector<400x128xf32>
    %c0_7 = arith.constant 0 : index
    %c0_8 = arith.constant 0 : index
    %16 = vector.load %arg4[%c0_7, %c0_8] : memref<400x128xf32, #tpu.memory_space<vmem>>, vector<400x128xf32>
    tpu.vector_store %arg4[%c0_7, %c0_8], %15 {strides = array<i32>} : memref<400x128xf32, #tpu.memory_space<vmem>>, vector<400x128xf32>,
    return
  }
  func.func @transform_0(%arg0: i32) -> (i32, i32, i32) {
    %c0_i32 = arith.constant 0 : i32
    %c0_i32_0 = arith.constant 0 : i32
    %c0_i32_1 = arith.constant 0 : i32
    return %c0_i32, %arg0, %c0_i32_0 : i32, i32, i32
  }
  func.func @transform_1(%arg0: i32) -> (i32, i32) {
    %c0_i32 = arith.constant 0 : i32
    %c0_i32_0 = arith.constant 0 : i32
    %c0_i32_1 = arith.constant 0 : i32
    return %c0_i32, %c0_i32_0 : i32, i32
  }
  func.func @transform_2(%arg0: i32) -> (i32, i32) {
    %c0_i32 = arith.constant 0 : i32
    %c0_i32_0 = arith.constant 0 : i32
    %c0_i32_1 = arith.constant 0 : i32
    return %c0_i32, %c0_i32_0 : i32, i32
  }
  func.func @transform_3(%arg0: i32) -> (i32, i32) {
    %c0_i32 = arith.constant 0 : i32
    %c0_i32_0 = arith.constant 0 : i32
    return %arg0, %c0_i32 : i32, i32
  }
}

</mosaic_0001>

<bundles_post_ra>
// kernel: tpu_custom_call.1
= control target key start
LH: loop header
LB: loop body
LE: loop exit
PB: predicated region body
PF: predicated region fallthrough
CT: control target
= control target key end

     0   :  { %8 = vsyncpa [#allocation3], 0  ;;  %s17885_s0 = inlined_call_operand.hbm [shape: f32[4,400,128], index: 0, kind: input, shape index: {}]   ;;  %s17886_s1 = inlined_call_operand.hbm [shape: f32[128,128], index: 1, kind: input, shape index: {}]   ;;  %s17887_s2 = inlined_call_operand.vmem [shape: f32[1,128], index: 2, kind: input, shape index: {}]   ;;  %s17888_s3 = inlined_call_operand.hbm [shape: f32[400,128], index: 3, kind: output, shape index: {}]  }
   0x1   :  { %9 = vsyncpa [#allocation6], 0 }
   0x2   :  { %10 = vsyncpa [#allocation4], 0  ;;  %s14650_s12 = smov [#allocation2]   ;;  %s14578_s16 = scalar_lea.hbm %s17885_s0, 25600 }
   0x3   :  { %s16_s13 = sshll.u32 %s14650_s12, 4  ;;  %p14579_p0 = scmp.ne.s32.totalorder %s17885_s0, %s14578_s16  ;;  %s17_s13 = int_to_ptr.vmem [resolvable:$true] %s16_s13 }
   0x4   :  { %p14582_p1 = scmp.lt.u32.totalorder %s14578_s16, %s17885_s0 }
   0x6   :  { %p14584_p2 = pnand %p14582_p1, %p14579_p0 }
   0x8   :  { %14587 = shalt.err (!%p14584_p2)
}
   0x9   :  { %s14588_s21 = scalar_lea.vmem %s17_s13, 25600  ;;  %p14593_p4 = scmp.lt.s32.totalorder %s17_s13, %s17_s13 }
   0xa   :  { %p14589_p3 = scmp.ne.s32.totalorder %s17_s13, %s14588_s21  ;;  %p14594_p5 = scmp.lt.s32.totalorder %s14588_s21, %s14588_s21 }
   0xc   :  { %p14595_p6 = por %p14594_p5, %p14593_p4 }
   0xe   :  { %p14596_p7 = pnand %p14595_p6, %p14589_p3 }
  0x10   :  { %14599 = shalt.err (!%p14596_p7)
}
  0x11   :  { %s14651_s22 = smov 128   ;;  %s14652_s23 = smov 8  }
  0x12   :  { %22 = dma.hbm_to_vmem [thread:$0]  %s17885_s0, 25600, %s17_s13, [#allocation3], %s14651_s22, %s14651_s22, %s14652_s23  }
  0x13   :  { %s14653_s26 = smov [#allocation5]   ;;  %s14600_s30 = scalar_lea.hbm %s17886_s1, 2048 }
  0x14   :  { %s28_s27 = sshll.u32 %s14653_s26, 4  ;;  %p14601_p8 = scmp.ne.s32.totalorder %s17886_s1, %s14600_s30  ;;  %s29_s27 = int_to_ptr.vmem [resolvable:$true] %s28_s27 }
  0x15   :  { %p14604_p9 = scmp.lt.u32.totalorder %s14600_s30, %s17886_s1 }
  0x17   :  { %p14606_p10 = pnand %p14604_p9, %p14601_p8 }
  0x19   :  { %14609 = shalt.err (!%p14606_p10)
}
  0x1a   :  { %s14610_s8 = scalar_lea.vmem %s29_s27, 2048  ;;  %p14615_p12 = scmp.lt.s32.totalorder %s29_s27, %s29_s27 }
  0x1b   :  { %p14611_p11 = scmp.ne.s32.totalorder %s29_s27, %s14610_s8  ;;  %p14616_p13 = scmp.lt.s32.totalorder %s14610_s8, %s14610_s8 }
  0x1d   :  { %p14617_p0 = por %p14616_p13, %p14615_p12 }
  0x1f   :  { %p14618_p1 = pnand %p14617_p0, %p14611_p11 }
  0x21   :  { %14621 = shalt.err (!%p14618_p1)
}
  0x22   :  { %34 = dma.hbm_to_vmem [thread:$0]  %s17886_s1, 2048, %s29_s27, [#allocation6], %s14651_s22, %s14651_s22, %s14652_s23  }
  0x23   :  { %14644 = dma.done.wait [#allocation3], 25600  }
  0x24   :  { %14645 = vsyncadd [#allocation3], 4294941696 }
  0x25   :  { %14646 = dma.done.wait [#allocation6], 2048  }
  0x26   :  { %14647 = vsyncadd [#allocation6], 4294965248  ;;  %v243_v0 = vld [vmem:[#allocation5] sm:$0xff]  ;;  %v244_v1 = vld [vmem:[#allocation5 + $0x8] sm:$0xff] }
  0x27   :  { %v14705_v2 = vld [vmem:[#allocation5 + $0x10] sm:$0xff]  ;;  %v267_v3 = vand.u32 4294901760, %v243_v0  ;;  %v270_v4 = vand.u32 4294901760, %v244_v1  ;;  %v14707_v5 = vld [vmem:[#allocation5 + $0x18] sm:$0xff]  ;;  %v14710_v7 = vld [vmem:[#allocation5 + $0x20] sm:$0xff] }
  0x28   :  { %v17902_v6 = vand.u32 4294901760, %v14705_v2  ;;  %v14712_v8 = vld [vmem:[#allocation5 + $0x28] sm:$0xff]  ;;  %v17901_v9 = vand.u32 4294901760, %v14707_v5  ;;  %v17900_v11 = vand.u32 4294901760, %v14710_v7  ;;  %v14725_v14 = vld [vmem:[#allocation5 + $0x30] sm:$0xff]  ;;  %v14727_v15 = vld [vmem:[#allocation5 + $0x38] sm:$0xff] }
  0x29   :  { %v14715_v10 = vpack.c.bf16 %v270_v4, %v267_v3  ;;  %v17899_v12 = vand.u32 4294901760, %v14712_v8  ;;  %v43_v16 = vld [vmem:[#allocation2] sm:$0xff]  ;;  %v17898_v19 = vand.u32 4294901760, %v14725_v14  ;;  %v17897_v20 = vand.u32 4294901760, %v14727_v15  ;;  %v14747_v22 = vld [vmem:[#allocation5 + $0x48] sm:$0xff]  ;;  %v14765_v28 = vld [vmem:[#allocation5 + $0x50] sm:$0xff] }
  0x2a   :  { %v14723_v13 = vpack.c.bf16 %v17901_v9, %v17902_v6  ;;  %v14733_v17 = vand.u32 4294901760, %v43_v16  ;;  %v14745_v21 = vld [vmem:[#allocation5 + $0x40] sm:$0xff]  ;;  %v17895_v27 = vand.u32 4294901760, %v14747_v22  ;;  %v14767_v29 = vld [vmem:[#allocation5 + $0x58] sm:$0xff]  ;;  %v44_v31 = vld [vmem:[#allocation2 + $0x8] sm:$0xff]  ;;  %v17894_v32 = vand.u32 4294901760, %v14765_v28 }
  0x2b   :  { %13172 = vmatprep.subr.bf16.mxu1 %v14715_v10  ;;  %13268 = vmatprep.subr.bf16.mxu0 %v14715_v10  ;;  %v14741_v18 = vpack.c.bf16 %v17899_v12, %v17900_v11  ;;  %v14761_v25 = vpack.c.bf16 %v17897_v20, %v17898_v19  ;;  %v17896_v26 = vand.u32 4294901760, %v14745_v21  ;;  %v17891_v35 = vand.u32 4294901760, %v14767_v29  ;;  %v14782_v36 = vld [vmem:[#allocation5 + $0x60] sm:$0xff]  ;;  %v45_v39 = vld [vmem:[#allocation2 + $0x10] sm:$0xff]  ;;  %v14788_v40 = vld [vmem:[#allocation5 + $0x68] sm:$0xff] }
  0x2c   :  { %13174 = vmatpush3.bf16.msra.mxu1 %v14715_v10  ;;  %13270 = vmatpush3.bf16.msra.mxu0 %v14715_v10  ;;  %v14750_v23 = vsub.f32 %v43_v16, %v14733_v17  ;;  %v14784_v37 = vsub.f32 %v243_v0, %v267_v3  ;;  %v14786_v38 = vsub.f32 %v244_v1, %v270_v4  ;;  %v14790_v41 = vand.u32 4294901760, %v44_v31  ;;  %v46_v44 = vld [vmem:[#allocation2 + $0x18] sm:$0xff]  ;;  %v14806_v47 = vld [vmem:[#allocation5 + $0x70] sm:$0xff]  ;;  %v47_v50 = vld [vmem:[#allocation2 + $0x20] sm:$0xff] }
  0x2d   :  { %13176 = vmatprep.subr.bf16.mxu1 %v14723_v13  ;;  %13272 = vmatprep.subr.bf16.mxu0 %v14723_v13  ;;  %v14779_v34 = vpack.c.bf16 %v17895_v27, %v17896_v26  ;;  %v17890_v42 = vand.u32 4294901760, %v14782_v36  ;;  %v14795_v43 = vand.u32 4294901760, %v45_v39  ;;  %v14803_v45 = vpack.c.bf16 %v17891_v35, %v17894_v32  ;;  %v14810_v51 = vld [vmem:[#allocation5 + $0x78] sm:$0xff]  ;;  %v48_v57 = vld [vmem:[#allocation2 + $0x28] sm:$0xff]  ;;  %v49_v62 = vld [vmem:[#allocation2 + $0x30] sm:$0xff] }
  0x2e   :  { %18608 = vst [vmem:[#allocation11_spill] sm:$0xff] %v14750_v23  ;;  %v349_v24 = vand.u32 4294901760, %v14750_v23  ;;  %v17889_v46 = vand.u32 4294901760, %v14788_v40  ;;  %v2350_v48 = vand.u32 4294901760, %v14784_v37  ;;  %v2357_v49 = vand.u32 4294901760, %v14786_v38  ;;  %v50_v3 = vld [vmem:[#allocation2 + $0x38] sm:$0xff] }
  0x2f   :  { %18609 = vst [vmem:[#allocation12_spill] sm:$0xff] %v14779_v34  ;;  %18610 = vst [vmem:[#allocation13_spill] sm:$0xff] %v14803_v45  ;;  %v14813_v52 = vsub.f32 %v44_v31, %v14790_v41  ;;  %v14815_v53 = vand.u32 4294901760, %v46_v44  ;;  %v17893_v54 = vand.u32 4294901760, %v14806_v47  ;;  %v14821_v55 = vsub.f32 %v45_v39, %v14795_v43  ;;  %v51_v39 = vld [vmem:[#allocation2 + $0x40] sm:$0xff]  ;;  %v53_v32 = vld [vmem:[#allocation2 + $0x50] sm:$0xff] }
  0x30   :  { %13178 = vmatpush3.bf16.msra.mxu1 %v14723_v13  ;;  %13274 = vmatpush3.bf16.msra.mxu0 %v14723_v13  ;;  %v350_v30 = vsub.f32 %v14750_v23, %v349_v24  ;;  %v14823_v56 = vand.u32 4294901760, %v47_v50  ;;  %v14831_v58 = vpack.c.bf16 %v17889_v46, %v17890_v42  ;;  %v17892_v59 = vand.u32 4294901760, %v14810_v51  ;;  %v54_v19 = vld [vmem:[#allocation2 + $0x58] sm:$0xff]  ;;  %v55_v6 = vld [vmem:[#allocation2 + $0x60] sm:$0xff] }
  0x31   :  { %13180 = vmatprep.subr.bf16.mxu1 %v14741_v18  ;;  %13276 = vmatprep.subr.bf16.mxu0 %v14741_v18  ;;  %18611 = vst [vmem:[#allocation14_spill] sm:$0xff] %v14813_v52  ;;  %18612 = vst [vmem:[#allocation15_spill] sm:$0xff] %v14821_v55  ;;  %v2351_v60 = vsub.f32 %v14784_v37, %v2350_v48  ;;  %v2358_v61 = vsub.f32 %v14786_v38, %v2357_v49  ;;  %v359_v63 = vand.u32 4294901760, %v14813_v52 }
  0x32   :  { %12207 = vmatprep.mubr.f32.mxu0 %v349_v24  ;;  %v351_v33 = vand.u32 4294901760, %v350_v30  ;;  %18613 = vst [vmem:[#allocation16_spill] sm:$0xff] %v14831_v58  ;;  %v14838_v0 = vsub.f32 %v46_v44, %v14815_v53  ;;  %v14840_v1 = vand.u32 4294901760, %v48_v57  ;;  %v369_v4 = vand.u32 4294901760, %v14821_v55 }
  0x33   :  { %v14846_v16 = vsub.f32 %v47_v50, %v14823_v56  ;;  %v14848_v24 = vand.u32 4294901760, %v49_v62  ;;  %v14856_v30 = vpack.c.bf16 %v17892_v59, %v17893_v54  ;;  %v2352_v31 = vand.u32 4294901760, %v2351_v60  ;;  %v52_v54 = vld [vmem:[#allocation2 + $0x48] sm:$0xff] }
  0x34   :  { %13182 = vmatpush3.bf16.msra.mxu1 %v14741_v18  ;;  %13278 = vmatpush3.bf16.msra.mxu0 %v14741_v18  ;;  %18614 = vst [vmem:[#allocation17_spill] sm:$0xff] %v14838_v0  ;;  %v360_v44 = vsub.f32 %v14813_v52, %v359_v63  ;;  %v14859_v46 = vand.u32 4294901760, %v50_v3  ;;  %v379_v50 = vand.u32 4294901760, %v14838_v0  ;;  %v14863_v42 = vsub.f32 %v48_v57, %v14840_v1 }
  0x35   :  { %13184 = vmatprep.subr.bf16.mxu1 %v14761_v25  ;;  %13280 = vmatprep.subr.bf16.mxu0 %v14761_v25  ;;  %18615 = vst [vmem:[#allocation18_spill] sm:$0xff] %v14846_v16  ;;  %18616 = vst [vmem:[#allocation19_spill] sm:$0xff] %v14856_v30  ;;  %v370_v35 = vsub.f32 %v14821_v55, %v369_v4  ;;  %v389_v59 = vand.u32 4294901760, %v14846_v16  ;;  %v14870_v60 = vsub.f32 %v49_v62, %v14848_v24 }
  0x36   :  { %11211 = vmatprep.mubr.f32.mxu1 %v351_v33  ;;  %v2359_v33 = vand.u32 4294901760, %v2358_v61  ;;  %18617 = vst [vmem:[#allocation20_spill] sm:$0xff] %v14863_v42  ;;  %v14872_v61 = vand.u32 4294901760, %v51_v39  ;;  %v13299_v27 = vpack.c.bf16 %v2357_v49, %v2350_v48  ;;  %v361_v26 = vand.u32 4294901760, %v360_v44 }
  0x37   :  { %18618 = vst [vmem:[#allocation21_spill] sm:$0xff] %v14870_v60  ;;  %v14877_v20 = vsub.f32 %v50_v3, %v14859_v46  ;;  %v380_v12 = vsub.f32 %v14838_v0, %v379_v50  ;;  %v399_v62 = vand.u32 4294901760, %v14863_v42  ;;  %v14881_v11 = vand.u32 4294901760, %v52_v54 }
  0x38   :  { %13186 = vmatpush3.bf16.msra.mxu1 %v14761_v25  ;;  %13282 = vmatpush3.bf16.msra.mxu0 %v14761_v25  ;;  %v13203_v57 = vpack.c.bf16 %v2359_v33, %v2352_v31  ;;  %v14883_v9 = vand.u32 4294901760, %v53_v32  ;;  %v371_v31 = vand.u32 4294901760, %v370_v35  ;;  %v390_v48 = vsub.f32 %v14846_v16, %v389_v59 }
  0x39   :  { %13188 = vmatprep.subr.bf16.mxu1 %v14779_v34  ;;  %13284 = vmatprep.subr.bf16.mxu0 %v14779_v34  ;;  %18619 = vst [vmem:[#allocation22_spill] sm:$0xff] %v14877_v20  ;;  %18620 = vst [vmem:[#allocation23_spill] sm:$0xff] %v14881_v11  ;;  %v409_v49 = vand.u32 4294901760, %v14870_v60  ;;  %v14890_v3 = vsub.f32 %v51_v39, %v14872_v61  ;;  %v14892_v33 = vand.u32 4294901760, %v54_v19  ;;  %v14895_v0 = vand.u32 4294901760, %v55_v6  ;;  %v56_v39 = vld [vmem:[#allocation2 + $0x68] sm:$0xff] }
  0x3a   :  { %18621 = vst [vmem:[#allocation24_spill] sm:$0xff] %v14883_v9  ;;  %v381_v55 = vand.u32 4294901760, %v380_v12  ;;  %v400_v35 = vsub.f32 %v14863_v42, %v399_v62  ;;  %v14899_v16 = vsub.f32 %v52_v54, %v14881_v11  ;;  %v14902_v52 = vsub.f32 %v53_v32, %v14883_v9  ;;  %v57_v32 = vld [vmem:[#allocation2 + $0x70] sm:$0xff]  ;;  %v58_v42 = vld [vmem:[#allocation2 + $0x78] sm:$0xff] }
  0x3b   :  { %18622 = vst [vmem:[#allocation25_spill] sm:$0xff] %v14890_v3  ;;  %18623 = vst [vmem:[#allocation26_spill] sm:$0xff] %v14892_v33  ;;  %v391_v23 = vand.u32 4294901760, %v390_v48  ;;  %v429_v44 = vand.u32 4294901760, %v14890_v3  ;;  %v14912_v54 = vsub.f32 %v54_v19, %v14892_v33 }
  0x3c   :  { %13190 = vmatpush3.bf16.msra.mxu1 %v14779_v34  ;;  %13286 = vmatpush3.bf16.msra.mxu0 %v14779_v34  ;;  %18624 = vst [vmem:[#allocation27_spill] sm:$0xff] %v14895_v0  ;;  %18625 = vst [vmem:[#allocation28_spill] sm:$0xff] %v14899_v16  ;;  %v401_v19 = vand.u32 4294901760, %v400_v35 }
  0x3d   :  { %13192 = vmatprep.subr.bf16.mxu1 %v14803_v45  ;;  %13288 = vmatprep.subr.bf16.mxu0 %v14803_v45  ;;  %18626 = vst [vmem:[#allocation29_spill] sm:$0xff] %v14902_v52  ;;  %18628 = vst [vmem:[#allocation30_spill] sm:$0xff] %v14912_v54 }
  0x40   :  { %13194 = vmatpush3.bf16.msra.mxu1 %v14803_v45  ;;  %13290 = vmatpush3.bf16.msra.mxu0 %v14803_v45 }
  0x41   :  { %13196 = vmatprep.subr.bf16.mxu1 %v14831_v58  ;;  %13292 = vmatprep.subr.bf16.mxu0 %v14831_v58 }
  0x44   :  { %13198 = vmatpush3.bf16.msra.mxu1 %v14831_v58  ;;  %13294 = vmatpush3.bf16.msra.mxu0 %v14831_v58 }
  0x45   :  { %13200 = vmatprep.subr.bf16.mxu1 %v14856_v30  ;;  %13296 = vmatprep.subr.bf16.mxu0 %v14856_v30 }
  0x48   :  { %13202 = vmatpush3.bf16.msra.mxu1 %v14856_v30  ;;  %13298 = vmatpush3.bf16.msra.mxu0 %v14856_v30  ;;  %v410_v30 = vsub.f32 %v14870_v60, %v409_v49  ;;  %v14923_v60 = vsub.f32 %v55_v6, %v14895_v0  ;;  %v14932_v6 = vand.u32 4294901760, %v57_v32 }
  0x49   :  { %13204 = vmatprep.subr.bf16.mxu1 %v13203_v57  ;;  %13300 = vmatprep.subr.bf16.mxu0 %v13299_v27 }
  0x4a   :  { %18631 = vst [vmem:[#allocation31_spill] sm:$0xff] %v14923_v60  ;;  %18632 = vst [vmem:[#allocation32_spill] sm:$0xff] %v14932_v6 }
  0x4b   :  { %11212 = vmatmul.mubr.f32.vlgmr.msra.gmra.mrb[0].mxu1 %v361_v26  ;;  %12208 = vmatmul.mubr.f32.vlgmr.msra.gmra.mrb[0].mxu0 %v359_v63  ;;  %v18627_v26 = vand.u32 4294901760, %v14705_v2  ;;  %v18629_v63 = vand.u32 4294901760, %v14707_v5 }
  0x4c   :  { %13206 = vmatpush3.bf16.msra.mxu1 %v13203_v57  ;;  %11214 = vmatprep.mubr.f32.mxu1 %v371_v31  ;;  %v18630_v31 = vand.u32 4294901760, %v14877_v20 }
  0x4d   :  { %v14909_v12 = vsub.f32 %v14705_v2, %v18627_v26  ;;  %12210 = vmatprep.mubr.f32.mxu0 %v369_v4  ;;  %13302 = vmatpush3.bf16.msra.mxu0 %v13299_v27  ;;  %v14917_v57 = vsub.f32 %v14707_v5, %v18629_v63  ;;  %v14925_v2 = vand.u32 4294901760, %v56_v39  ;;  %v439_v4 = vand.u32 4294901760, %v14899_v16 }
  0x4e   :  { %v420_v48 = vsub.f32 %v14877_v20, %v18630_v31  ;;  %v449_v26 = vand.u32 4294901760, %v14902_v52  ;;  %v411_v63 = vand.u32 4294901760, %v410_v30  ;;  %v430_v31 = vsub.f32 %v14890_v3, %v429_v44 }
  0x4f   :  { %v2364_v27 = vand.u32 4294901760, %v14909_v12  ;;  %11215 = vmatmul.mubr.f32.gmra.mrb[2].mxu1 %v381_v55  ;;  %12211 = vmatmul.mubr.f32.gmra.mrb[2].mxu0 %v379_v50  ;;  %v2371_v5 = vand.u32 4294901760, %v14917_v57  ;;  %v459_v55 = vand.u32 4294901760, %v14912_v54  ;;  %v59_v50 = vld [vmem:[#allocation2 + $0x80] sm:$0xff]  ;;  %v14939_v45 = vsub.f32 %v56_v39, %v14925_v2  ;;  %v60_v39 = vld [vmem:[#allocation2 + $0x88] sm:$0xff] }
  0x50   :  { %11217 = vmatprep.mubr.f32.mxu1 %v391_v23  ;;  %12213 = vmatprep.mubr.f32.mxu0 %v389_v59  ;;  %v421_v0 = vand.u32 4294901760, %v420_v48  ;;  %v440_v59 = vsub.f32 %v14899_v16, %v439_v4  ;;  %v14942_v30 = vand.u32 4294901760, %v58_v42  ;;  %v431_v11 = vand.u32 4294901760, %v430_v31 }
  0x51   :  { %v2365_v58 = vsub.f32 %v14909_v12, %v2364_v27  ;;  %v2372_v35 = vsub.f32 %v14917_v57, %v2371_v5  ;;  %18633 = vst [vmem:[#allocation33_spill] sm:$0xff] %v14939_v45  ;;  %v13303_v9 = vpack.c.bf16 %v2371_v5, %v2364_v27  ;;  %v450_v34 = vsub.f32 %v14902_v52, %v449_v26 }
  0x52   :  { %18634 = vst [vmem:[#allocation34_spill] sm:$0xff] %v14942_v30  ;;  %v14946_v48 = vsub.f32 %v57_v32, %v14932_v6  ;;  %v14948_v33 = vand.u32 4294901760, %v59_v50  ;;  %v479_v16 = vand.u32 4294901760, %v14939_v45  ;;  %v441_v27 = vand.u32 4294901760, %v440_v59  ;;  %v63_v59 = vld [vmem:[#allocation2 + $0xa0] sm:$0xff] }
  0x53   :  { %v2366_v23 = vand.u32 4294901760, %v2365_v58  ;;  %11218 = vmatmul.mubr.f32.gmra.mrb[4].mxu1 %v401_v19  ;;  %12214 = vmatmul.mubr.f32.gmra.mrb[4].mxu0 %v399_v62  ;;  %v2373_v3 = vand.u32 4294901760, %v2372_v35  ;;  %v61_v58 = vld [vmem:[#allocation2 + $0x90] sm:$0xff]  ;;  %v460_v62 = vsub.f32 %v14912_v54, %v459_v55  ;;  %v18638_v5 = vand.u32 4294901760, %v14923_v60 }
  0x54   :  { %11220 = vmatprep.mubr.f32.mxu1 %v411_v63  ;;  %12216 = vmatprep.mubr.f32.mxu0 %v409_v49  ;;  %18635 = vst [vmem:[#allocation35_spill] sm:$0xff] %v14946_v48  ;;  %18636 = vst [vmem:[#allocation36_spill] sm:$0xff] %v14948_v33  ;;  %v18637_v49 = vand.u32 4294901760, %v14877_v20  ;;  %v14958_v63 = vsub.f32 %v58_v42, %v14942_v30  ;;  %v14960_v31 = vand.u32 4294901760, %v60_v39  ;;  %v451_v35 = vand.u32 4294901760, %v450_v34 }
  0x55   :  { %v13207_v19 = vpack.c.bf16 %v2373_v3, %v2366_v23  ;;  %13304 = vmatprep.subr.bf16.mxu0 %v13303_v9  ;;  %v470_v32 = vsub.f32 %v14923_v60, %v18638_v5  ;;  %v62_v3 = vld [vmem:[#allocation2 + $0x98] sm:$0xff]  ;;  %v14966_v23 = vand.u32 4294901760, %v61_v58  ;;  %v461_v42 = vand.u32 4294901760, %v460_v62 }
  0x56   :  { %13306 = vmatpush3.bf16.msra.mxu0 %v13303_v9  ;;  %18639 = vst [vmem:[#allocation37_spill] sm:$0xff] %v14958_v63  ;;  %18640 = vst [vmem:[#allocation38_spill] sm:$0xff] %v14960_v31  ;;  %v489_v9 = vand.u32 4294901760, %v14946_v48  ;;  %v14969_v5 = vand.u32 4294901760, %v62_v3  ;;  %v14973_v34 = vsub.f32 %v60_v39, %v14960_v31 }
  0x57   :  { %11221 = vmatmul.mubr.f32.gmra.mrb[6].mxu1 %v421_v0  ;;  %12217 = vmatmul.mubr.f32.gmra.mrb[6].mxu0 %v18637_v49  ;;  %v14964_v0 = vsub.f32 %v59_v50, %v14948_v33  ;;  %18642 = vst [vmem:[#allocation40_spill] sm:$0xff] %v14966_v23  ;;  %v480_v49 = vsub.f32 %v14939_v45, %v479_v16  ;;  %v471_v50 = vand.u32 4294901760, %v470_v32 }
  0x58   :  { %11223 = vmatprep.mubr.f32.mxu1 %v431_v11  ;;  %12219 = vmatprep.mubr.f32.mxu0 %v429_v44  ;;  %18643 = vst [vmem:[#allocation41_spill] sm:$0xff] %v14969_v5  ;;  %v499_v11 = vand.u32 4294901760, %v14958_v63  ;;  %18644 = vst [vmem:[#allocation42_spill] sm:$0xff] %v14973_v34  ;;  %v14975_v44 = vand.u32 4294901760, %v63_v59  ;;  %v490_v54 = vsub.f32 %v14946_v48, %v489_v9  ;;  %v66_v48 = vld [vmem:[#allocation2 + $0xb8] sm:$0xff] }
  0x59   :  { %18641 = vst [vmem:[#allocation39_spill] sm:$0xff] %v14964_v0  ;;  %13208 = vmatprep.subr.bf16.mxu1 %v13207_v19  ;;  %v509_v45 = vand.u32 4294901760, %v14964_v0  ;;  %v14980_v52 = vsub.f32 %v61_v58, %v14966_v23  ;;  %v481_v62 = vand.u32 4294901760, %v480_v49  ;;  %v18650_v58 = vand.u32 4294901760, %v14923_v60 }
  0x5a   :  { %13210 = vmatpush3.bf16.msra.mxu1 %v13207_v19  ;;  %18645 = vst [vmem:[#allocation43_spill] sm:$0xff] %v14975_v44  ;;  %v64_v19 = vld [vmem:[#allocation2 + $0xa8] sm:$0xff]  ;;  %v500_v39 = vsub.f32 %v14958_v63, %v499_v11  ;;  %v14988_v32 = vsub.f32 %v63_v59, %v14975_v44  ;;  %v491_v49 = vand.u32 4294901760, %v490_v54  ;;  %v67_v63 = vld [vmem:[#allocation2 + $0xc0] sm:$0xff]  ;;  %v69_v44 = vld [vmem:[#allocation2 + $0xd0] sm:$0xff] }
  0x5b   :  { %11224 = vmatmul.mubr.f32.gmra.mrb[8].mxu1 %v441_v27  ;;  %12220 = vmatmul.mubr.f32.gmra.mrb[8].mxu0 %v439_v4  ;;  %18646 = vst [vmem:[#allocation44_spill] sm:$0xff] %v14980_v52  ;;  %v65_v4 = vld [vmem:[#allocation2 + $0xb0] sm:$0xff]  ;;  %v14983_v27 = vsub.f32 %v62_v3, %v14969_v5  ;;  %v510_v3 = vsub.f32 %v14964_v0, %v509_v45  ;;  %v14999_v5 = vand.u32 4294901760, %v66_v48  ;;  %v68_v59 = vld [vmem:[#allocation2 + $0xc8] sm:$0xff] }
  0x5c   :  { %11226 = vmatprep.mubr.f32.mxu1 %v451_v35  ;;  %12222 = vmatprep.mubr.f32.mxu0 %v449_v26  ;;  %v519_v26 = vand.u32 4294901760, %v14973_v34  ;;  %18648 = vst [vmem:[#allocation46_spill] sm:$0xff] %v14988_v32  ;;  %v14990_v35 = vand.u32 4294901760, %v64_v19  ;;  %v549_v31 = vand.u32 4294901760, %v14988_v32 }
  0x5d   :  { %18647 = vst [vmem:[#allocation45_spill] sm:$0xff] %v14983_v27  ;;  %v539_v20 = vand.u32 4294901760, %v14983_v27  ;;  %18652 = vst [vmem:[#allocation49_spill] sm:$0xff] %v14999_v5  ;;  %v511_v0 = vand.u32 4294901760, %v510_v3 }
  0x5e   :  { %18649 = vst [vmem:[#allocation47_spill] sm:$0xff] %v14990_v35  ;;  %v520_v60 = vsub.f32 %v14973_v34, %v519_v26  ;;  %v15003_v54 = vsub.f32 %v64_v19, %v14990_v35 }
  0x5f   :  { %11227 = vmatmul.mubr.f32.gmra.mrb[10].mxu1 %v461_v42  ;;  %12223 = vmatmul.mubr.f32.gmra.mrb[10].mxu0 %v459_v55  ;;  %v529_v42 = vand.u32 4294901760, %v14980_v52  ;;  %v14996_v55 = vand.u32 4294901760, %v65_v4 }
  0x60   :  { %11229 = vmatprep.mubr.f32.mxu1 %v471_v50  ;;  %12225 = vmatprep.mubr.f32.mxu0 %v18650_v58  ;;  %v501_v50 = vand.u32 4294901760, %v500_v39  ;;  %18653 = vst [vmem:[#allocation50_spill] sm:$0xff] %v15003_v54  ;;  %v15005_v58 = vand.u32 4294901760, %v67_v63  ;;  %v15017_v39 = vsub.f32 %v66_v48, %v14999_v5  ;;  %v521_v19 = vand.u32 4294901760, %v520_v60 }
  0x61   :  { %18651 = vst [vmem:[#allocation48_spill] sm:$0xff] %v14996_v55  ;;  %v530_v23 = vsub.f32 %v14980_v52, %v529_v42  ;;  %v15010_v33 = vsub.f32 %v65_v4, %v14996_v55  ;;  %v550_v52 = vsub.f32 %v14988_v32, %v549_v31  ;;  %v70_v55 = vld [vmem:[#allocation2 + $0xd8] sm:$0xff] }
  0x62   :  { %18654 = vst [vmem:[#allocation51_spill] sm:$0xff] %v15005_v58  ;;  %18658 = vst [vmem:[#allocation55_spill] sm:$0xff] %v15017_v39  ;;  %v15022_v3 = vsub.f32 %v67_v63, %v15005_v58 }
  0x63   :  { %11230 = vmatmul.mubr.f32.gmra.mrb[12].mxu1 %v481_v62  ;;  %12226 = vmatmul.mubr.f32.gmra.mrb[12].mxu0 %v479_v16  ;;  %18655 = vst [vmem:[#allocation52_spill] sm:$0xff] %v15010_v33  ;;  %v15012_v62 = vand.u32 4294901760, %v68_v59  ;;  %v15014_v16 = vand.u32 4294901760, %v69_v44  ;;  %v531_v4 = vand.u32 4294901760, %v530_v23  ;;  %v569_v34 = vand.u32 4294901760, %v15010_v33 }
  0x64   :  { %11232 = vmatprep.mubr.f32.mxu1 %v491_v49  ;;  %12228 = vmatprep.mubr.f32.mxu0 %v489_v9  ;;  %v540_v9 = vsub.f32 %v14983_v27, %v539_v20  ;;  %v559_v49 = vand.u32 4294901760, %v15003_v54  ;;  %18659 = vst [vmem:[#allocation56_spill] sm:$0xff] %v15022_v3  ;;  %v15035_v23 = vand.u32 4294901760, %v70_v55  ;;  %v551_v32 = vand.u32 4294901760, %v550_v52 }
  0x65   :  { %18656 = vst [vmem:[#allocation53_spill] sm:$0xff] %v15012_v62  ;;  %18657 = vst [vmem:[#allocation54_spill] sm:$0xff] %v15014_v16  ;;  %v15027_v48 = vsub.f32 %v68_v59, %v15012_v62  ;;  %v15030_v60 = vsub.f32 %v69_v44, %v15014_v16  ;;  %v570_v59 = vsub.f32 %v15010_v33, %v569_v34  ;;  %v72_v44 = vld [vmem:[#allocation2 + $0xe8] sm:$0xff] }
  0x66   :  { %v541_v63 = vand.u32 4294901760, %v540_v9  ;;  %18662 = vst [vmem:[#allocation59_spill] sm:$0xff] %v15035_v23  ;;  %v15045_v52 = vsub.f32 %v70_v55, %v15035_v23 }
  0x67   :  { %11233 = vmatmul.mubr.f32.gmra.mrb[14].mxu1 %v501_v50  ;;  %12229 = vmatmul.mubr.f32.gmra.mrb[14].mxu0 %v499_v11  ;;  %18660 = vst [vmem:[#allocation57_spill] sm:$0xff] %v15027_v48  ;;  %18661 = vst [vmem:[#allocation58_spill] sm:$0xff] %v15030_v60  ;;  %v71_v11 = vld [vmem:[#allocation2 + $0xe0] sm:$0xff]  ;;  %v579_v50 = vand.u32 4294901760, %v15017_v39  ;;  %v571_v33 = vand.u32 4294901760, %v570_v59 }
  0x68   :  { %11235 = vmatprep.mubr.f32.mxu1 %v511_v0  ;;  %12231 = vmatprep.mubr.f32.mxu0 %v509_v45  ;;  %v560_v45 = vsub.f32 %v15003_v54, %v559_v49  ;;  %v589_v0 = vand.u32 4294901760, %v15022_v3  ;;  %v15038_v27 = vand.u32 4294901760, %v71_v11  ;;  %v74_v54 = vld [vmem:[#allocation2 + $0xf8] sm:$0xff]  ;;  %18664 = vst [vmem:[#allocation61_spill] sm:$0xff] %v15045_v52 }
  0x69   :  { %v580_v9 = vsub.f32 %v15017_v39, %v579_v50  ;;  %v75_v39 = vld [vmem:[#allocation2 + $0x100] sm:$0xff] }
  0x6a   :  { %18663 = vst [vmem:[#allocation60_spill] sm:$0xff] %v15038_v27  ;;  %v561_v62 = vand.u32 4294901760, %v560_v45  ;;  %v15050_v16 = vsub.f32 %v71_v11, %v15038_v27  ;;  %v18669_v45 = vand.u32 4294901760, %v15030_v60  ;;  %v18672_v11 = vand.u32 4294901760, %v14712_v8 }
  0x6b   :  { %11236 = vmatmul.mubr.f32.gmra.mrb[16].mxu1 %v521_v19  ;;  %12232 = vmatmul.mubr.f32.gmra.mrb[16].mxu0 %v519_v26  ;;  %v73_v26 = vld [vmem:[#allocation2 + $0xf0] sm:$0xff]  ;;  %v581_v23 = vand.u32 4294901760, %v580_v9  ;;  %v619_v27 = vand.u32 4294901760, %v15045_v52  ;;  %v15076_v58 = vand.u32 4294901760, %v75_v39  ;;  %v76_v9 = vld [vmem:[#allocation2 + $0x108] sm:$0xff] }
  0x6c   :  { %11238 = vmatprep.mubr.f32.mxu1 %v531_v4  ;;  %12234 = vmatprep.mubr.f32.mxu0 %v529_v42  ;;  %v590_v4 = vsub.f32 %v15022_v3, %v589_v0  ;;  %v15047_v42 = vand.u32 4294901760, %v72_v44  ;;  %18666 = vst [vmem:[#allocation63_spill] sm:$0xff] %v15050_v16  ;;  %v15052_v19 = vand.u32 4294901760, %v73_v26  ;;  %v610_v55 = vsub.f32 %v15030_v60, %v18669_v45 }
  0x6d   :  { %v15060_v3 = vand.u32 4294901760, %v74_v54  ;;  %v15070_v59 = vsub.f32 %v14712_v8, %v18672_v11  ;;  %18674 = vst [vmem:[#allocation67_spill] sm:$0xff] %v15076_v58  ;;  %v77_v8 = vld [vmem:[#allocation2 + $0x110] sm:$0xff]  ;;  %v15094_v35 = vsub.f32 %v75_v39, %v15076_v58 }
  0x6e   :  { %18665 = vst [vmem:[#allocation62_spill] sm:$0xff] %v15047_v42  ;;  %18667 = vst [vmem:[#allocation64_spill] sm:$0xff] %v15052_v19  ;;  %v15074_v45 = vsub.f32 %v72_v44, %v15047_v42  ;;  %v611_v11 = vand.u32 4294901760, %v610_v55  ;;  %v15087_v42 = vand.u32 4294901760, %v76_v9 }
  0x6f   :  { %11239 = vmatmul.mubr.f32.gmra.mrb[18].mxu1 %v541_v63  ;;  %12235 = vmatmul.mubr.f32.gmra.mrb[18].mxu0 %v539_v20  ;;  %v18668_v63 = vand.u32 4294901760, %v15027_v48  ;;  %18670 = vst [vmem:[#allocation65_spill] sm:$0xff] %v15060_v3  ;;  %v15085_v44 = vsub.f32 %v74_v54, %v15060_v3  ;;  %18678 = vst [vmem:[#allocation71_spill] sm:$0xff] %v15094_v35  ;;  %v78_v3 = vld [vmem:[#allocation2 + $0x118] sm:$0xff] }
  0x70   :  { %11241 = vmatprep.mubr.f32.mxu1 %v551_v32  ;;  %12237 = vmatprep.mubr.f32.mxu0 %v549_v31  ;;  %v18671_v31 = vand.u32 4294901760, %v14710_v7  ;;  %18673 = vst [vmem:[#allocation66_spill] sm:$0xff] %v15074_v45  ;;  %18677 = vst [vmem:[#allocation70_spill] sm:$0xff] %v15087_v42 }
  0x71   :  { %v600_v20 = vsub.f32 %v15027_v48, %v18668_v63  ;;  %v591_v63 = vand.u32 4294901760, %v590_v4  ;;  %18676 = vst [vmem:[#allocation69_spill] sm:$0xff] %v15085_v44 }
  0x72   :  { %v15065_v32 = vsub.f32 %v14710_v7, %v18671_v31  ;;  %v629_v7 = vand.u32 4294901760, %v15050_v16  ;;  %v15080_v31 = vsub.f32 %v73_v26, %v15052_v19  ;;  %v620_v26 = vsub.f32 %v15045_v52, %v619_v27 }
  0x73   :  { %11242 = vmatmul.mubr.f32.gmra.mrb[20].mxu1 %v561_v62  ;;  %12238 = vmatmul.mubr.f32.gmra.mrb[20].mxu0 %v559_v49  ;;  %v2385_v49 = vand.u32 4294901760, %v15070_v59  ;;  %v601_v4 = vand.u32 4294901760, %v600_v20  ;;  %v639_v19 = vand.u32 4294901760, %v15074_v45  ;;  %v15096_v20 = vand.u32 4294901760, %v77_v8 }
  0x74   :  { %11244 = vmatprep.mubr.f32.mxu1 %v571_v33  ;;  %12240 = vmatprep.mubr.f32.mxu0 %v569_v34  ;;  %18675 = vst [vmem:[#allocation68_spill] sm:$0xff] %v15080_v31  ;;  %v2378_v62 = vand.u32 4294901760, %v15065_v32  ;;  %v630_v54 = vsub.f32 %v15050_v16, %v629_v7  ;;  %v649_v55 = vand.u32 4294901760, %v15080_v31 }
  0x75   :  { %v2386_v34 = vsub.f32 %v15070_v59, %v2385_v49  ;;  %18679 = vst [vmem:[#allocation72_spill] sm:$0xff] %v15096_v20  ;;  %v640_v16 = vsub.f32 %v15074_v45, %v639_v19  ;;  %v15108_v52 = vsub.f32 %v77_v8, %v15096_v20  ;;  %v82_v45 = vld [vmem:[#allocation2 + $0x138] sm:$0xff]  ;;  %v84_v20 = vld [vmem:[#allocation2 + $0x148] sm:$0xff] }
  0x76   :  { %v2379_v33 = vsub.f32 %v15065_v32, %v2378_v62  ;;  %v13307_v5 = vpack.c.bf16 %v2385_v49, %v2378_v62  ;;  %v15102_v49 = vsub.f32 %v76_v9, %v15087_v42  ;;  %v631_v9 = vand.u32 4294901760, %v630_v54 }
  0x77   :  { %11245 = vmatmul.mubr.f32.gmra.mrb[22].mxu1 %v581_v23  ;;  %12241 = vmatmul.mubr.f32.gmra.mrb[22].mxu0 %v579_v50  ;;  %v2387_v62 = vand.u32 4294901760, %v2386_v34  ;;  %v79_v23 = vld [vmem:[#allocation2 + $0x120] sm:$0xff]  ;;  %v659_v50 = vand.u32 4294901760, %v15085_v44  ;;  %18682 = vst [vmem:[#allocation74_spill] sm:$0xff] %v15108_v52  ;;  %v18684_v34 = vand.u32 4294901760, %v15030_v60 }
  0x78   :  { %11247 = vmatprep.mubr.f32.mxu1 %v591_v63  ;;  %12243 = vmatprep.mubr.f32.mxu0 %v589_v0  ;;  %v2380_v30 = vand.u32 4294901760, %v2379_v33  ;;  %18680 = vst [vmem:[#allocation73_spill] sm:$0xff] %v15102_v49  ;;  %v18681_v63 = vand.u32 4294901760, %v15027_v48  ;;  %v621_v0 = vand.u32 4294901760, %v620_v26  ;;  %v15110_v33 = vand.u32 4294901760, %v78_v3  ;;  %v81_v26 = vld [vmem:[#allocation2 + $0x130] sm:$0xff] }
  0x79   :  { %13308 = vmatprep.subr.bf16.mxu0 %v13307_v5  ;;  %v679_v8 = vand.u32 4294901760, %v15102_v49 }
  0x7a   :  { %v13211_v39 = vpack.c.bf16 %v2387_v62, %v2380_v30  ;;  %13310 = vmatpush3.bf16.msra.mxu0 %v13307_v5  ;;  %18683 = vst [vmem:[#allocation75_spill] sm:$0xff] %v15110_v33  ;;  %v650_v30 = vsub.f32 %v15080_v31, %v649_v55  ;;  %v669_v5 = vand.u32 4294901760, %v15094_v35  ;;  %v80_v62 = vld [vmem:[#allocation2 + $0x128] sm:$0xff]  ;;  %v15122_v54 = vsub.f32 %v78_v3, %v15110_v33 }
  0x7b   :  { %11248 = vmatmul.mubr.f32.gmra.mrb[24].mxu1 %v601_v4  ;;  %12244 = vmatmul.mubr.f32.gmra.mrb[24].mxu0 %v18681_v63  ;;  %v15116_v4 = vand.u32 4294901760, %v79_v23  ;;  %v660_v63 = vsub.f32 %v15085_v44, %v659_v50  ;;  %v15124_v31 = vand.u32 4294901760, %v80_v62  ;;  %v680_v3 = vsub.f32 %v15102_v49, %v679_v8  ;;  %v86_v49 = vld [vmem:[#allocation2 + $0x158] sm:$0xff] }
  0x7c   :  { %11250 = vmatprep.mubr.f32.mxu1 %v611_v11  ;;  %12246 = vmatprep.mubr.f32.mxu0 %v18684_v34  ;;  %v641_v11 = vand.u32 4294901760, %v640_v16  ;;  %v689_v34 = vand.u32 4294901760, %v15108_v52  ;;  %18686 = vst [vmem:[#allocation77_spill] sm:$0xff] %v15122_v54  ;;  %v651_v60 = vand.u32 4294901760, %v650_v30  ;;  %v670_v48 = vsub.f32 %v15094_v35, %v669_v5 }
  0x7d   :  { %18685 = vst [vmem:[#allocation76_spill] sm:$0xff] %v15116_v4  ;;  %13212 = vmatprep.subr.bf16.mxu1 %v13211_v39  ;;  %18687 = vst [vmem:[#allocation78_spill] sm:$0xff] %v15124_v31  ;;  %v15128_v44 = vsub.f32 %v79_v23, %v15116_v4  ;;  %v661_v16 = vand.u32 4294901760, %v660_v63  ;;  %v15138_v30 = vsub.f32 %v80_v62, %v15124_v31  ;;  %v681_v62 = vand.u32 4294901760, %v680_v3 }
  0x7e   :  { %13214 = vmatpush3.bf16.msra.mxu1 %v13211_v39  ;;  %v15130_v39 = vand.u32 4294901760, %v81_v26  ;;  %v671_v23 = vand.u32 4294901760, %v670_v48 }
  0x7f   :  { %11251 = vmatmul.mubr.f32.gmra.mrb[26].mxu1 %v621_v0  ;;  %12247 = vmatmul.mubr.f32.gmra.mrb[26].mxu0 %v619_v27  ;;  %18688 = vst [vmem:[#allocation79_spill] sm:$0xff] %v15128_v44  ;;  %v83_v27 = vld [vmem:[#allocation2 + $0x140] sm:$0xff]  ;;  %v15132_v0 = vand.u32 4294901760, %v82_v45  ;;  %18691 = vst [vmem:[#allocation82_spill] sm:$0xff] %v15138_v30  ;;  %v709_v35 = vand.u32 4294901760, %v15128_v44  ;;  %v719_v48 = vand.u32 4294901760, %v15138_v30 }
  0x80   :  { %11253 = vmatprep.mubr.f32.mxu1 %v631_v9  ;;  %12249 = vmatprep.mubr.f32.mxu0 %v629_v7  ;;  %18689 = vst [vmem:[#allocation80_spill] sm:$0xff] %v15130_v39  ;;  %v690_v9 = vsub.f32 %v15108_v52, %v689_v34  ;;  %v699_v7 = vand.u32 4294901760, %v15122_v54  ;;  %v15142_v63 = vsub.f32 %v81_v26, %v15130_v39  ;;  %v15144_v4 = vand.u32 4294901760, %v83_v27 }
  0x81   :  { %18690 = vst [vmem:[#allocation81_spill] sm:$0xff] %v15132_v0  ;;  %v15149_v52 = vsub.f32 %v82_v45, %v15132_v0  ;;  %v710_v39 = vsub.f32 %v15128_v44, %v709_v35 }
  0x82   :  { %18692 = vst [vmem:[#allocation83_spill] sm:$0xff] %v15142_v63  ;;  %18693 = vst [vmem:[#allocation84_spill] sm:$0xff] %v15144_v4  ;;  %v691_v26 = vand.u32 4294901760, %v690_v9  ;;  %v729_v31 = vand.u32 4294901760, %v15142_v63  ;;  %v15158_v45 = vsub.f32 %v83_v27, %v15144_v4  ;;  %v88_v4 = vld [vmem:[#allocation2 + $0x168] sm:$0xff] }
  0x83   :  { %11254 = vmatmul.mubr.f32.gmra.mrb[28].mxu1 %v641_v11  ;;  %12250 = vmatmul.mubr.f32.gmra.mrb[28].mxu0 %v639_v19  ;;  %v85_v19 = vld [vmem:[#allocation2 + $0x150] sm:$0xff]  ;;  %v15146_v11 = vand.u32 4294901760, %v84_v20  ;;  %18695 = vst [vmem:[#allocation86_spill] sm:$0xff] %v15149_v52  ;;  %v739_v3 = vand.u32 4294901760, %v15149_v52  ;;  %v711_v27 = vand.u32 4294901760, %v710_v39  ;;  %v15180_v39 = vand.u32 4294901760, %v88_v4 }
  0x84   :  { %11256 = vmatprep.mubr.f32.mxu1 %v651_v60  ;;  %12252 = vmatprep.mubr.f32.mxu0 %v649_v55  ;;  %v700_v60 = vsub.f32 %v15122_v54, %v699_v7  ;;  %v15153_v55 = vand.u32 4294901760, %v85_v19  ;;  %18697 = vst [vmem:[#allocation88_spill] sm:$0xff] %v15158_v45  ;;  %v15164_v54 = vand.u32 4294901760, %v86_v49  ;;  %v730_v44 = vsub.f32 %v15142_v63, %v729_v31 }
  0x85   :  { %18694 = vst [vmem:[#allocation85_spill] sm:$0xff] %v15146_v11  ;;  %18703 = vst [vmem:[#allocation94_spill] sm:$0xff] %v15180_v39 }
  0x86   :  { %18696 = vst [vmem:[#allocation87_spill] sm:$0xff] %v15153_v55  ;;  %18699 = vst [vmem:[#allocation90_spill] sm:$0xff] %v15164_v54  ;;  %v15168_v9 = vsub.f32 %v85_v19, %v15153_v55  ;;  %v731_v63 = vand.u32 4294901760, %v730_v44  ;;  %v92_v55 = vld [vmem:[#allocation2 + $0x188] sm:$0xff] }
  0x87   :  { %11257 = vmatmul.mubr.f32.gmra.mrb[30].mxu1 %v661_v16  ;;  %12253 = vmatmul.mubr.f32.gmra.mrb[30].mxu0 %v659_v50  ;;  %v15161_v50 = vsub.f32 %v84_v20, %v15146_v11  ;;  %v87_v16 = vld [vmem:[#allocation2 + $0x160] sm:$0xff]  ;;  %v749_v20 = vand.u32 4294901760, %v15158_v45 }
  0x88   :  { %11259 = vmatprep.mubr.f32.mxu1 %v671_v23  ;;  %12255 = vmatprep.mubr.f32.mxu0 %v669_v5  ;;  %v701_v23 = vand.u32 4294901760, %v700_v60  ;;  %v720_v5 = vsub.f32 %v15138_v30, %v719_v48  ;;  %18700 = vst [vmem:[#allocation91_spill] sm:$0xff] %v15168_v9  ;;  %v15172_v11 = vand.u32 4294901760, %v87_v16  ;;  %v15177_v60 = vsub.f32 %v86_v49, %v15164_v54 }
  0x89   :  { %18698 = vst [vmem:[#allocation89_spill] sm:$0xff] %v15161_v50  ;;  %v750_v30 = vsub.f32 %v15158_v45, %v749_v20  ;;  %v18706_v49 = vand.u32 4294901760, %v15161_v50 }
  0x8a   :  { %18701 = vst [vmem:[#allocation92_spill] sm:$0xff] %v15172_v11  ;;  %18702 = vst [vmem:[#allocation93_spill] sm:$0xff] %v15177_v60  ;;  %v721_v19 = vand.u32 4294901760, %v720_v5  ;;  %v15184_v0 = vsub.f32 %v87_v16, %v15172_v11  ;;  %v18707_v5 = vand.u32 4294901760, %v14725_v14  ;;  %v779_v16 = vand.u32 4294901760, %v15177_v60 }
  0x8b   :  { %11260 = vmatmul.mubr.f32.gmra.mrb[32].mxu1 %v681_v62  ;;  %12256 = vmatmul.mubr.f32.gmra.mrb[32].mxu0 %v679_v8  ;;  %v89_v62 = vld [vmem:[#allocation2 + $0x170] sm:$0xff]  ;;  %v740_v8 = vsub.f32 %v15149_v52, %v739_v3  ;;  %v15206_v11 = vsub.f32 %v88_v4, %v15180_v39 }
  0x8c   :  { %11262 = vmatprep.mubr.f32.mxu1 %v691_v26  ;;  %12258 = vmatprep.mubr.f32.mxu0 %v689_v34  ;;  %v769_v34 = vand.u32 4294901760, %v15168_v9  ;;  %v90_v26 = vld [vmem:[#allocation2 + $0x178] sm:$0xff]  ;;  %18704 = vst [vmem:[#allocation95_spill] sm:$0xff] %v15184_v0  ;;  %v15186_v52 = vand.u32 4294901760, %v89_v62  ;;  %v15194_v54 = vsub.f32 %v14725_v14, %v18707_v5  ;;  %v780_v33 = vsub.f32 %v15177_v60, %v779_v16 }
  0x8d   :  { %v15202_v45 = vand.u32 4294901760, %v90_v26  ;;  %18710 = vst [vmem:[#allocation98_spill] sm:$0xff] %v15206_v11 }
  0x8e   :  { %18705 = vst [vmem:[#allocation96_spill] sm:$0xff] %v15186_v52  ;;  %v2392_v14 = vand.u32 4294901760, %v15194_v54 }
  0x8f   :  { %11263 = vmatmul.mubr.f32.gmra.mrb[34].mxu1 %v701_v23  ;;  %12259 = vmatmul.mubr.f32.gmra.mrb[34].mxu0 %v699_v7  ;;  %v760_v7 = vsub.f32 %v15161_v50, %v18706_v49  ;;  %v91_v23 = vld [vmem:[#allocation2 + $0x180] sm:$0xff]  ;;  %18709 = vst [vmem:[#allocation97_spill] sm:$0xff] %v15202_v45  ;;  %v770_v49 = vsub.f32 %v15168_v9, %v769_v34 }
  0x90   :  { %11265 = vmatprep.mubr.f32.mxu1 %v711_v27  ;;  %12261 = vmatprep.mubr.f32.mxu0 %v709_v35  ;;  %v18708_v35 = vand.u32 4294901760, %v14727_v15  ;;  %v741_v27 = vand.u32 4294901760, %v740_v8  ;;  %v789_v8 = vand.u32 4294901760, %v15184_v0  ;;  %v2393_v4 = vsub.f32 %v15194_v54, %v2392_v14 }
  0x91   :  { %v761_v9 = vand.u32 4294901760, %v760_v7  ;;  %v15220_v42 = vsub.f32 %v90_v26, %v15202_v45  ;;  %v771_v6 = vand.u32 4294901760, %v770_v49 }
  0x92   :  { %v15199_v44 = vsub.f32 %v14727_v15, %v18708_v35  ;;  %v751_v15 = vand.u32 4294901760, %v750_v30  ;;  %v15212_v35 = vsub.f32 %v89_v62, %v15186_v52  ;;  %v94_v52 = vld [vmem:[#allocation2 + $0x198] sm:$0xff]  ;;  %v2394_v7 = vand.u32 4294901760, %v2393_v4 }
  0x93   :  { %11266 = vmatmul.mubr.f32.gmra.mrb[36].mxu1 %v721_v19  ;;  %12262 = vmatmul.mubr.f32.gmra.mrb[36].mxu0 %v719_v48  ;;  %v15214_v19 = vand.u32 4294901760, %v91_v23  ;;  %v93_v48 = vld [vmem:[#allocation2 + $0x190] sm:$0xff]  ;;  %18713 = vst [vmem:[#allocation101_spill] sm:$0xff] %v15220_v42  ;;  %v790_v60 = vsub.f32 %v15184_v0, %v789_v8 }
  0x94   :  { %v2399_v5 = vand.u32 4294901760, %v15199_v44  ;;  %11268 = vmatprep.mubr.f32.mxu1 %v731_v63  ;;  %12264 = vmatprep.mubr.f32.mxu0 %v729_v31  ;;  %18711 = vst [vmem:[#allocation99_spill] sm:$0xff] %v15212_v35  ;;  %v15222_v31 = vand.u32 4294901760, %v92_v55  ;;  %v799_v63 = vand.u32 4294901760, %v15206_v11  ;;  %v15225_v62 = vand.u32 4294901760, %v93_v48 }
  0x95   :  { %18712 = vst [vmem:[#allocation100_spill] sm:$0xff] %v15214_v19  ;;  %v809_v26 = vand.u32 4294901760, %v15212_v35  ;;  %v15230_v45 = vsub.f32 %v91_v23, %v15214_v19 }
  0x96   :  { %v2400_v39 = vsub.f32 %v15199_v44, %v2399_v5  ;;  %18714 = vst [vmem:[#allocation102_spill] sm:$0xff] %v15222_v31  ;;  %v13311_v30 = vpack.c.bf16 %v2399_v5, %v2392_v14  ;;  %18715 = vst [vmem:[#allocation103_spill] sm:$0xff] %v15225_v62  ;;  %v95_v14 = vld [vmem:[#allocation2 + $0x1a0] sm:$0xff]  ;;  %v15233_v5 = vand.u32 4294901760, %v94_v52  ;;  %v800_v49 = vsub.f32 %v15206_v11, %v799_v63 }
  0x97   :  { %11269 = vmatmul.mubr.f32.gmra.mrb[38].mxu1 %v741_v27  ;;  %12265 = vmatmul.mubr.f32.gmra.mrb[38].mxu0 %v739_v3  ;;  %18716 = vst [vmem:[#allocation104_spill] sm:$0xff] %v15230_v45  ;;  %v819_v3 = vand.u32 4294901760, %v15220_v42  ;;  %v15242_v23 = vsub.f32 %v93_v48, %v15225_v62  ;;  %v810_v4 = vsub.f32 %v15212_v35, %v809_v26  ;;  %v98_v35 = vld [vmem:[#allocation2 + $0x1b8] sm:$0xff] }
  0x98   :  { %v2401_v58 = vand.u32 4294901760, %v2400_v39  ;;  %11271 = vmatprep.mubr.f32.mxu1 %v751_v15  ;;  %12267 = vmatprep.mubr.f32.mxu0 %v749_v20  ;;  %18717 = vst [vmem:[#allocation105_spill] sm:$0xff] %v15233_v5  ;;  %v18718_v39 = vand.u32 4294901760, %v15161_v50  ;;  %v781_v20 = vand.u32 4294901760, %v780_v33  ;;  %v15239_v15 = vsub.f32 %v92_v55, %v15222_v31 }
  0x99   :  { %13312 = vmatprep.subr.bf16.mxu0 %v13311_v30  ;;  %18720 = vst [vmem:[#allocation107_spill] sm:$0xff] %v15242_v23  ;;  %v820_v33 = vsub.f32 %v15220_v42, %v819_v3  ;;  %v15250_v55 = vsub.f32 %v94_v52, %v15233_v5  ;;  %v811_v11 = vand.u32 4294901760, %v810_v4 }
  0x9a   :  { %v13215_v27 = vpack.c.bf16 %v2401_v58, %v2394_v7  ;;  %13314 = vmatpush3.bf16.msra.mxu0 %v13311_v30  ;;  %18719 = vst [vmem:[#allocation106_spill] sm:$0xff] %v15239_v15  ;;  %v791_v58 = vand.u32 4294901760, %v790_v60  ;;  %v829_v30 = vand.u32 4294901760, %v15230_v45  ;;  %v96_v7 = vld [vmem:[#allocation2 + $0x1a8] sm:$0xff]  ;;  %v839_v60 = vand.u32 4294901760, %v15239_v15 }
  0x9b   :  { %11272 = vmatmul.mubr.f32.gmra.mrb[40].mxu1 %v761_v9  ;;  %12268 = vmatmul.mubr.f32.gmra.mrb[40].mxu0 %v18718_v39  ;;  %v15246_v9 = vand.u32 4294901760, %v95_v14  ;;  %v97_v39 = vld [vmem:[#allocation2 + $0x1b0] sm:$0xff]  ;;  %18722 = vst [vmem:[#allocation109_spill] sm:$0xff] %v15250_v55  ;;  %v15254_v48 = vand.u32 4294901760, %v96_v7 }
  0x9c   :  { %11274 = vmatprep.mubr.f32.mxu1 %v771_v6  ;;  %12270 = vmatprep.mubr.f32.mxu0 %v769_v34  ;;  %v801_v6 = vand.u32 4294901760, %v800_v49  ;;  %v849_v34 = vand.u32 4294901760, %v15242_v23  ;;  %v830_v0 = vsub.f32 %v15230_v45, %v829_v30  ;;  %v15260_v52 = vand.u32 4294901760, %v97_v39 }
  0x9d   :  { %18721 = vst [vmem:[#allocation108_spill] sm:$0xff] %v15246_v9  ;;  %13216 = vmatprep.subr.bf16.mxu1 %v13215_v27  ;;  %18723 = vst [vmem:[#allocation110_spill] sm:$0xff] %v15254_v48  ;;  %v15258_v42 = vsub.f32 %v95_v14, %v15246_v9  ;;  %v821_v49 = vand.u32 4294901760, %v820_v33  ;;  %v840_v50 = vsub.f32 %v15239_v15, %v839_v60 }
  0x9e   :  { %13218 = vmatpush3.bf16.msra.mxu1 %v13215_v27  ;;  %18725 = vst [vmem:[#allocation112_spill] sm:$0xff] %v15260_v52  ;;  %v99_v27 = vld [vmem:[#allocation2 + $0x1c0] sm:$0xff]  ;;  %v831_v14 = vand.u32 4294901760, %v830_v0  ;;  %v15272_v45 = vsub.f32 %v97_v39, %v15260_v52 }
  0x9f   :  { %11275 = vmatmul.mubr.f32.gmra.mrb[42].mxu1 %v781_v20  ;;  %12271 = vmatmul.mubr.f32.gmra.mrb[42].mxu0 %v779_v16  ;;  %18724 = vst [vmem:[#allocation111_spill] sm:$0xff] %v15258_v42  ;;  %v859_v16 = vand.u32 4294901760, %v15250_v55  ;;  %v15263_v20 = vand.u32 4294901760, %v98_v35  ;;  %v869_v4 = vand.u32 4294901760, %v15258_v42  ;;  %v15274_v9 = vand.u32 4294901760, %v99_v27 }
  0xa0   :  { %11277 = vmatprep.mubr.f32.mxu1 %v791_v58  ;;  %12273 = vmatprep.mubr.f32.mxu0 %v789_v8  ;;  %v850_v8 = vsub.f32 %v15242_v23, %v849_v34  ;;  %v15268_v58 = vsub.f32 %v96_v7, %v15254_v48  ;;  %18728 = vst [vmem:[#allocation115_spill] sm:$0xff] %v15272_v45  ;;  %v841_v7 = vand.u32 4294901760, %v840_v50  ;;  %v889_v23 = vand.u32 4294901760, %v15272_v45 }
  0xa1   :  { %18726 = vst [vmem:[#allocation113_spill] sm:$0xff] %v15263_v20  ;;  %18729 = vst [vmem:[#allocation116_spill] sm:$0xff] %v15274_v9  ;;  %v860_v33 = vsub.f32 %v15250_v55, %v859_v16  ;;  %v15278_v15 = vsub.f32 %v98_v35, %v15263_v20  ;;  %v870_v39 = vsub.f32 %v15258_v42, %v869_v4  ;;  %v102_v35 = vld [vmem:[#allocation2 + $0x1d8] sm:$0xff] }
  0xa2   :  { %18727 = vst [vmem:[#allocation114_spill] sm:$0xff] %v15268_v58  ;;  %v879_v0 = vand.u32 4294901760, %v15268_v58  ;;  %v15286_v52 = vsub.f32 %v99_v27, %v15274_v9  ;;  %v15295_v42 = vand.u32 4294901760, %v102_v35  ;;  %v890_v9 = vsub.f32 %v15272_v45, %v889_v23 }
  0xa3   :  { %11278 = vmatmul.mubr.f32.gmra.mrb[44].mxu1 %v801_v6  ;;  %12274 = vmatmul.mubr.f32.gmra.mrb[44].mxu0 %v799_v63  ;;  %v100_v6 = vld [vmem:[#allocation2 + $0x1c8] sm:$0xff]  ;;  %v101_v63 = vld [vmem:[#allocation2 + $0x1d0] sm:$0xff]  ;;  %18730 = vst [vmem:[#allocation117_spill] sm:$0xff] %v15278_v15  ;;  %v899_v50 = vand.u32 4294901760, %v15278_v15  ;;  %v871_v27 = vand.u32 4294901760, %v870_v39 }
  0xa4   :  { %11280 = vmatprep.mubr.f32.mxu1 %v811_v11  ;;  %12276 = vmatprep.mubr.f32.mxu0 %v809_v26  ;;  %v851_v11 = vand.u32 4294901760, %v850_v8  ;;  %v15281_v26 = vand.u32 4294901760, %v100_v6  ;;  %18732 = vst [vmem:[#allocation119_spill] sm:$0xff] %v15286_v52  ;;  %v15288_v55 = vand.u32 4294901760, %v101_v63  ;;  %v104_v8 = vld [vmem:[#allocation2 + $0x1e8] sm:$0xff]  ;;  %18735 = vst [vmem:[#allocation122_spill] sm:$0xff] %v15295_v42 }
  0xa6   :  { %18731 = vst [vmem:[#allocation118_spill] sm:$0xff] %v15281_v26  ;;  %18733 = vst [vmem:[#allocation120_spill] sm:$0xff] %v15288_v55  ;;  %v15302_v48 = vsub.f32 %v101_v63, %v15288_v55  ;;  %v891_v63 = vand.u32 4294901760, %v890_v9 }
  0xa7   :  { %11281 = vmatmul.mubr.f32.gmra.mrb[46].mxu1 %v821_v49  ;;  %12277 = vmatmul.mubr.f32.gmra.mrb[46].mxu0 %v819_v3  ;;  %v103_v49 = vld [vmem:[#allocation2 + $0x1e0] sm:$0xff]  ;;  %v861_v3 = vand.u32 4294901760, %v860_v33  ;;  %v909_v33 = vand.u32 4294901760, %v15286_v52 }
  0xa8   :  { %11283 = vmatprep.mubr.f32.mxu1 %v831_v14  ;;  %12279 = vmatprep.mubr.f32.mxu0 %v829_v30  ;;  %v880_v14 = vsub.f32 %v15268_v58, %v879_v0  ;;  %v15293_v30 = vsub.f32 %v100_v6, %v15281_v26  ;;  %v15297_v20 = vand.u32 4294901760, %v103_v49  ;;  %18737 = vst [vmem:[#allocation124_spill] sm:$0xff] %v15302_v48  ;;  %v106_v58 = vld [vmem:[#allocation2 + $0x1f8] sm:$0xff]  ;;  %v929_v55 = vand.u32 4294901760, %v15302_v48 }
  0xa9   :  { %v900_v6 = vsub.f32 %v15278_v15, %v899_v50  ;;  %v910_v45 = vsub.f32 %v15286_v52, %v909_v33 }
  0xaa   :  { %18734 = vst [vmem:[#allocation121_spill] sm:$0xff] %v15293_v30  ;;  %18736 = vst [vmem:[#allocation123_spill] sm:$0xff] %v15297_v20  ;;  %v881_v26 = vand.u32 4294901760, %v880_v14  ;;  %v15312_v39 = vsub.f32 %v103_v49, %v15297_v20  ;;  %v15321_v14 = vand.u32 4294901760, %v106_v58  ;;  %v18744_v49 = vand.u32 4294901760, %v14745_v21 }
  0xab   :  { %11284 = vmatmul.mubr.f32.gmra.mrb[48].mxu1 %v841_v7  ;;  %12280 = vmatmul.mubr.f32.gmra.mrb[48].mxu0 %v839_v60  ;;  %v15304_v60 = vand.u32 4294901760, %v104_v8  ;;  %v105_v7 = vld [vmem:[#allocation2 + $0x1f0] sm:$0xff] }
  0xac   :  { %11286 = vmatprep.mubr.f32.mxu1 %v851_v11  ;;  %12282 = vmatprep.mubr.f32.mxu0 %v849_v34  ;;  %v919_v11 = vand.u32 4294901760, %v15293_v30  ;;  %v15309_v34 = vsub.f32 %v102_v35, %v15295_v42  ;;  %18740 = vst [vmem:[#allocation127_spill] sm:$0xff] %v15312_v39  ;;  %v15316_v15 = vand.u32 4294901760, %v105_v7  ;;  %18743 = vst [vmem:[#allocation130_spill] sm:$0xff] %v15321_v14  ;;  %v901_v35 = vand.u32 4294901760, %v900_v6  ;;  %v14568_v42 = vld [vmem:[#allocation5 + $0x40] sm:$0xff] }
  0xad   :  { %18738 = vst [vmem:[#allocation125_spill] sm:$0xff] %v15304_v60  ;;  %v15325_v20 = vsub.f32 %v14568_v42, %v18744_v49  ;;  %v930_v6 = vsub.f32 %v15302_v48, %v929_v55  ;;  %v109_v49 = vld [vmem:[#allocation2 + $0x210] sm:$0xff] }
  0xae   :  { %18739 = vst [vmem:[#allocation126_spill] sm:$0xff] %v15309_v34  ;;  %18741 = vst [vmem:[#allocation128_spill] sm:$0xff] %v15316_v15  ;;  %v920_v9 = vsub.f32 %v15293_v30, %v919_v11  ;;  %v15334_v21 = vsub.f32 %v105_v7, %v15316_v15  ;;  %v15354_v62 = vand.u32 4294901760, %v109_v49 }
  0xaf   :  { %11287 = vmatmul.mubr.f32.gmra.mrb[50].mxu1 %v861_v3  ;;  %12283 = vmatmul.mubr.f32.gmra.mrb[50].mxu0 %v859_v16  ;;  %v107_v3 = vld [vmem:[#allocation2 + $0x200] sm:$0xff]  ;;  %v15319_v16 = vsub.f32 %v104_v8, %v15304_v60  ;;  %v108_v8 = vld [vmem:[#allocation2 + $0x208] sm:$0xff]  ;;  %v911_v60 = vand.u32 4294901760, %v910_v45  ;;  %v2406_v42 = vand.u32 4294901760, %v15325_v20  ;;  %v18749_v45 = vand.u32 4294901760, %v14747_v22  ;;  %v110_v22 = vld [vmem:[#allocation2 + $0x218] sm:$0xff] }
  0xb0   :  { %11289 = vmatprep.mubr.f32.mxu1 %v871_v27  ;;  %12285 = vmatprep.mubr.f32.mxu0 %v869_v4  ;;  %v939_v4 = vand.u32 4294901760, %v15309_v34  ;;  %v949_v27 = vand.u32 4294901760, %v15312_v39  ;;  %v15330_v52 = vand.u32 4294901760, %v107_v3  ;;  %18746 = vst [vmem:[#allocation132_spill] sm:$0xff] %v15334_v21  ;;  %v15341_v30 = vand.u32 4294901760, %v108_v8  ;;  %18751 = vst [vmem:[#allocation136_spill] sm:$0xff] %v15354_v62 }
  0xb1   :  { %18742 = vst [vmem:[#allocation129_spill] sm:$0xff] %v15319_v16  ;;  %v2407_v5 = vsub.f32 %v15325_v20, %v2406_v42  ;;  %v921_v7 = vand.u32 4294901760, %v920_v9  ;;  %v969_v15 = vand.u32 4294901760, %v15334_v21  ;;  %v15366_v31 = vand.u32 4294901760, %v110_v22 }
  0xb2   :  { %18745 = vst [vmem:[#allocation131_spill] sm:$0xff] %v15330_v52  ;;  %18748 = vst [vmem:[#allocation134_spill] sm:$0xff] %v15341_v30  ;;  %v940_v48 = vsub.f32 %v15309_v34, %v939_v4  ;;  %v15370_v19 = vsub.f32 %v109_v49, %v15354_v62 }
  0xb3   :  { %11290 = vmatmul.mubr.f32.gmra.mrb[52].mxu1 %v881_v26  ;;  %12286 = vmatmul.mubr.f32.gmra.mrb[52].mxu0 %v879_v0  ;;  %v15339_v26 = vsub.f32 %v106_v58, %v15321_v14  ;;  %v950_v0 = vsub.f32 %v15312_v39, %v949_v27  ;;  %v15351_v58 = vsub.f32 %v107_v3, %v15330_v52  ;;  %v931_v14 = vand.u32 4294901760, %v930_v6 }
  0xb4   :  { %11292 = vmatprep.mubr.f32.mxu1 %v891_v63  ;;  %12288 = vmatprep.mubr.f32.mxu0 %v889_v23  ;;  %v14569_v63 = vld [vmem:[#allocation5 + $0x48] sm:$0xff]  ;;  %v15362_v3 = vsub.f32 %v108_v8, %v15341_v30  ;;  %v941_v39 = vand.u32 4294901760, %v940_v48  ;;  %18754 = vst [vmem:[#allocation138_spill] sm:$0xff] %v15366_v31  ;;  %18755 = vst [vmem:[#allocation139_spill] sm:$0xff] %v15370_v19  ;;  %v15378_v49 = vsub.f32 %v110_v22, %v15366_v31 }
  0xb5   :  { %18747 = vst [vmem:[#allocation133_spill] sm:$0xff] %v15339_v26  ;;  %v15346_v23 = vsub.f32 %v14569_v63, %v18749_v45  ;;  %18750 = vst [vmem:[#allocation135_spill] sm:$0xff] %v15351_v58  ;;  %v979_v9 = vand.u32 4294901760, %v15339_v26  ;;  %v111_v45 = vld [vmem:[#allocation2 + $0x220] sm:$0xff]  ;;  %v951_v34 = vand.u32 4294901760, %v950_v0  ;;  %v989_v52 = vand.u32 4294901760, %v15351_v58 }
  0xb6   :  { %18753 = vst [vmem:[#allocation137_spill] sm:$0xff] %v15362_v3  ;;  %v15372_v8 = vand.u32 4294901760, %v111_v45  ;;  %18757 = vst [vmem:[#allocation141_spill] sm:$0xff] %v15378_v49  ;;  %v116_v22 = vld [vmem:[#allocation2 + $0x248] sm:$0xff] }
  0xb7   :  { %11293 = vmatmul.mubr.f32.gmra.mrb[54].mxu1 %v901_v35  ;;  %12289 = vmatmul.mubr.f32.gmra.mrb[54].mxu0 %v899_v50  ;;  %v2413_v63 = vand.u32 4294901760, %v15346_v23  ;;  %v18752_v50 = vand.u32 4294901760, %v15319_v16  ;;  %v980_v48 = vsub.f32 %v15339_v26, %v979_v9 }
  0xb8   :  { %11295 = vmatprep.mubr.f32.mxu1 %v911_v60  ;;  %12291 = vmatprep.mubr.f32.mxu0 %v909_v33  ;;  %v2408_v60 = vand.u32 4294901760, %v2407_v5  ;;  %18756 = vst [vmem:[#allocation140_spill] sm:$0xff] %v15372_v8  ;;  %v112_v5 = vld [vmem:[#allocation2 + $0x228] sm:$0xff]  ;;  %v15384_v26 = vsub.f32 %v111_v45, %v15372_v8 }
  0xb9   :  { %v960_v35 = vsub.f32 %v15319_v16, %v18752_v50  ;;  %v2414_v33 = vsub.f32 %v15346_v23, %v2413_v63  ;;  %v13315_v6 = vpack.c.bf16 %v2413_v63, %v2406_v42  ;;  %v970_v50 = vsub.f32 %v15334_v21, %v969_v15  ;;  %v113_v42 = vld [vmem:[#allocation2 + $0x230] sm:$0xff] }
  0xba   :  { %18759 = vst [vmem:[#allocation143_spill] sm:$0xff] %v15384_v26 }
  0xbb   :  { %11296 = vmatmul.mubr.f32.gmra.mrb[56].mxu1 %v921_v7  ;;  %12292 = vmatmul.mubr.f32.gmra.mrb[56].mxu0 %v919_v11  ;;  %v2415_v30 = vand.u32 4294901760, %v2414_v33  ;;  %v999_v11 = vand.u32 4294901760, %v15362_v3  ;;  %v15380_v7 = vand.u32 4294901760, %v112_v5  ;;  %v971_v63 = vand.u32 4294901760, %v970_v50 }
  0xbc   :  { %11298 = vmatprep.mubr.f32.mxu1 %v931_v14  ;;  %12294 = vmatprep.mubr.f32.mxu0 %v929_v55  ;;  %v961_v55 = vand.u32 4294901760, %v960_v35  ;;  %v990_v14 = vsub.f32 %v15351_v58, %v989_v52  ;;  %v1009_v33 = vand.u32 4294901760, %v15370_v19  ;;  %v981_v35 = vand.u32 4294901760, %v980_v48  ;;  %v117_v58 = vld [vmem:[#allocation2 + $0x250] sm:$0xff] }
  0xbd   :  { %13316 = vmatprep.subr.bf16.mxu0 %v13315_v6  ;;  %v13219_v0 = vpack.c.bf16 %v2415_v30, %v2408_v60  ;;  %18758 = vst [vmem:[#allocation142_spill] sm:$0xff] %v15380_v7  ;;  %v15386_v30 = vand.u32 4294901760, %v113_v42  ;;  %v1000_v60 = vsub.f32 %v15362_v3, %v999_v11 }
  0xbe   :  { %13318 = vmatpush3.bf16.msra.mxu0 %v13315_v6  ;;  %v15393_v6 = vsub.f32 %v112_v5, %v15380_v7  ;;  %v991_v48 = vand.u32 4294901760, %v990_v14  ;;  %v1010_v3 = vsub.f32 %v15370_v19, %v1009_v33  ;;  %v15406_v5 = vand.u32 4294901760, %v117_v58  ;;  %v118_v19 = vld [vmem:[#allocation2 + $0x258] sm:$0xff] }
  0xbf   :  { %11299 = vmatmul.mubr.f32.gmra.mrb[58].mxu1 %v941_v39  ;;  %12295 = vmatmul.mubr.f32.gmra.mrb[58].mxu0 %v939_v4  ;;  %18760 = vst [vmem:[#allocation144_spill] sm:$0xff] %v15386_v30  ;;  %v114_v39 = vld [vmem:[#allocation2 + $0x238] sm:$0xff]  ;;  %v115_v4 = vld [vmem:[#allocation2 + $0x240] sm:$0xff]  ;;  %v1001_v21 = vand.u32 4294901760, %v1000_v60 }
  0xc0   :  { %11301 = vmatprep.mubr.f32.mxu1 %v951_v34  ;;  %12297 = vmatprep.mubr.f32.mxu0 %v949_v27  ;;  %v18761_v34 = vand.u32 4294901760, %v15319_v16  ;;  %v1019_v27 = vand.u32 4294901760, %v15378_v49  ;;  %18762 = vst [vmem:[#allocation145_spill] sm:$0xff] %v15393_v6  ;;  %v15395_v45 = vand.u32 4294901760, %v114_v39  ;;  %v15397_v50 = vand.u32 4294901760, %v115_v4  ;;  %18767 = vst [vmem:[#allocation150_spill] sm:$0xff] %v15406_v5 }
  0xc1   :  { %13220 = vmatprep.subr.bf16.mxu1 %v13219_v0 }
  0xc2   :  { %13222 = vmatpush3.bf16.msra.mxu1 %v13219_v0  ;;  %18763 = vst [vmem:[#allocation146_spill] sm:$0xff] %v15395_v45  ;;  %18764 = vst [vmem:[#allocation147_spill] sm:$0xff] %v15397_v50  ;;  %v1029_v0 = vand.u32 4294901760, %v15384_v26  ;;  %v1020_v16 = vsub.f32 %v15378_v49, %v1019_v27  ;;  %v15414_v14 = vsub.f32 %v115_v4, %v15397_v50  ;;  %v121_v50 = vld [vmem:[#allocation2 + $0x270] sm:$0xff] }
  0xc3   :  { %11302 = vmatmul.mubr.f32.gmra.mrb[60].mxu1 %v961_v55  ;;  %12298 = vmatmul.mubr.f32.gmra.mrb[60].mxu0 %v18761_v34  ;;  %v15402_v55 = vsub.f32 %v113_v42, %v15386_v30  ;;  %v15404_v34 = vand.u32 4294901760, %v116_v22  ;;  %v1011_v42 = vand.u32 4294901760, %v1010_v3  ;;  %v15422_v49 = vsub.f32 %v117_v58, %v15406_v5  ;;  %v120_v58 = vld [vmem:[#allocation2 + $0x268] sm:$0xff] }
  0xc4   :  { %11304 = vmatprep.mubr.f32.mxu1 %v971_v63  ;;  %12300 = vmatprep.mubr.f32.mxu0 %v969_v15  ;;  %v1039_v63 = vand.u32 4294901760, %v15393_v6  ;;  %v15411_v15 = vsub.f32 %v114_v39, %v15395_v45  ;;  %18769 = vst [vmem:[#allocation152_spill] sm:$0xff] %v15414_v14  ;;  %v1030_v60 = vsub.f32 %v15384_v26, %v1029_v0  ;;  %v15424_v39 = vand.u32 4294901760, %v118_v19 }
  0xc5   :  { %18765 = vst [vmem:[#allocation148_spill] sm:$0xff] %v15402_v55  ;;  %18766 = vst [vmem:[#allocation149_spill] sm:$0xff] %v15404_v34  ;;  %v1049_v30 = vand.u32 4294901760, %v15402_v55  ;;  %v1021_v4 = vand.u32 4294901760, %v1020_v16  ;;  %v1069_v3 = vand.u32 4294901760, %v15414_v14  ;;  %v15444_v45 = vand.u32 4294901760, %v121_v50 }
  0xc6   :  { %18768 = vst [vmem:[#allocation151_spill] sm:$0xff] %v15411_v15  ;;  %18771 = vst [vmem:[#allocation154_spill] sm:$0xff] %v15422_v49  ;;  %v1031_v26 = vand.u32 4294901760, %v1030_v60  ;;  %v15435_v16 = vsub.f32 %v118_v19, %v15424_v39  ;;  %v15439_v60 = vand.u32 4294901760, %v120_v58 }
  0xc7   :  { %11305 = vmatmul.mubr.f32.gmra.mrb[62].mxu1 %v981_v35  ;;  %12301 = vmatmul.mubr.f32.gmra.mrb[62].mxu0 %v979_v9  ;;  %v15419_v9 = vsub.f32 %v116_v22, %v15404_v34  ;;  %v119_v35 = vld [vmem:[#allocation2 + $0x260] sm:$0xff]  ;;  %18772 = vst [vmem:[#allocation155_spill] sm:$0xff] %v15424_v39  ;;  %v1050_v22 = vsub.f32 %v15402_v55, %v1049_v30  ;;  %18777 = vst [vmem:[#allocation160_spill] sm:$0xff] %v15444_v45  ;;  %v125_v39 = vld [vmem:[#allocation2 + $0x290] sm:$0xff] }
  0xc8   :  { %11307 = vmatprep.mubr.f32.mxu1 %v991_v48  ;;  %12303 = vmatprep.mubr.f32.mxu0 %v989_v52  ;;  %v1040_v48 = vsub.f32 %v15393_v6, %v1039_v63  ;;  %v1059_v52 = vand.u32 4294901760, %v15411_v15  ;;  %v15430_v34 = vand.u32 4294901760, %v119_v35  ;;  %18774 = vst [vmem:[#allocation157_spill] sm:$0xff] %v15435_v16  ;;  %18775 = vst [vmem:[#allocation158_spill] sm:$0xff] %v15439_v60 }
  0xc9   :  { %18770 = vst [vmem:[#allocation153_spill] sm:$0xff] %v15419_v9  ;;  %v1079_v5 = vand.u32 4294901760, %v15419_v9  ;;  %v1051_v55 = vand.u32 4294901760, %v1050_v22  ;;  %v15452_v22 = vsub.f32 %v120_v58, %v15439_v60  ;;  %v18784_v60 = vand.u32 4294901760, %v14767_v29 }
  0xca   :  { %18773 = vst [vmem:[#allocation156_spill] sm:$0xff] %v15430_v34  ;;  %v15442_v6 = vsub.f32 %v119_v35, %v15430_v34  ;;  %v15458_v34 = vsub.f32 %v121_v50, %v15444_v45 }
  0xcb   :  { %11308 = vmatmul.mubr.f32.gmra.mrb[64].mxu1 %v1001_v21  ;;  %12304 = vmatmul.mubr.f32.gmra.mrb[64].mxu0 %v999_v11  ;;  %v1041_v11 = vand.u32 4294901760, %v1040_v48  ;;  %v122_v21 = vld [vmem:[#allocation2 + $0x278] sm:$0xff]  ;;  %v1080_v19 = vsub.f32 %v15419_v9, %v1079_v5  ;;  %18779 = vst [vmem:[#allocation161_spill] sm:$0xff] %v15452_v22  ;;  %v1119_v45 = vand.u32 4294901760, %v15452_v22 }
  0xcc   :  { %11310 = vmatprep.mubr.f32.mxu1 %v1011_v42  ;;  %12306 = vmatprep.mubr.f32.mxu0 %v1009_v33  ;;  %v1060_v42 = vsub.f32 %v15411_v15, %v1059_v52  ;;  %v1070_v33 = vsub.f32 %v15414_v14, %v1069_v3  ;;  %18776 = vst [vmem:[#allocation159_spill] sm:$0xff] %v15442_v6  ;;  %v1099_v14 = vand.u32 4294901760, %v15435_v16  ;;  %v15454_v35 = vand.u32 4294901760, %v122_v21  ;;  %v124_v15 = vld [vmem:[#allocation2 + $0x288] sm:$0xff] }
  0xcd   :  { %v1109_v9 = vand.u32 4294901760, %v15442_v6  ;;  %18781 = vst [vmem:[#allocation163_spill] sm:$0xff] %v15458_v34  ;;  %v1081_v58 = vand.u32 4294901760, %v1080_v19  ;;  %v15471_v8 = vand.u32 4294901760, %v124_v15  ;;  %v15478_v19 = vand.u32 4294901760, %v125_v39 }
  0xce   :  { %18780 = vst [vmem:[#allocation162_spill] sm:$0xff] %v15454_v35 }
  0xcf   :  { %11311 = vmatmul.mubr.f32.gmra.mrb[66].mxu1 %v1021_v4  ;;  %12307 = vmatmul.mubr.f32.gmra.mrb[66].mxu0 %v1019_v27  ;;  %v123_v4 = vld [vmem:[#allocation2 + $0x280] sm:$0xff]  ;;  %v18778_v27 = vand.u32 4294901760, %v15422_v49  ;;  %18785 = vst [vmem:[#allocation165_spill] sm:$0xff] %v15471_v8  ;;  %18787 = vst [vmem:[#allocation167_spill] sm:$0xff] %v15478_v19 }
  0xd0   :  { %11313 = vmatprep.mubr.f32.mxu1 %v1031_v26  ;;  %12309 = vmatprep.mubr.f32.mxu0 %v1029_v0  ;;  %v1061_v26 = vand.u32 4294901760, %v1060_v42  ;;  %v1071_v0 = vand.u32 4294901760, %v1070_v33  ;;  %v14571_v33 = vld [vmem:[#allocation5 + $0x58] sm:$0xff] }
  0xd1   :  { %v1090_v48 = vsub.f32 %v15422_v49, %v18778_v27  ;;  %v15460_v27 = vand.u32 4294901760, %v123_v4  ;;  %v15468_v7 = vsub.f32 %v14571_v33, %v18784_v60  ;;  %v1110_v60 = vsub.f32 %v15442_v6, %v1109_v9 }
  0xd2   :  { %v15496_v6 = vsub.f32 %v125_v39, %v15478_v19 }
  0xd3   :  { %11314 = vmatmul.mubr.f32.gmra.mrb[68].mxu1 %v1041_v11  ;;  %12310 = vmatmul.mubr.f32.gmra.mrb[68].mxu0 %v1039_v63  ;;  %18782 = vst [vmem:[#allocation164_spill] sm:$0xff] %v15460_v27  ;;  %v14570_v11 = vld [vmem:[#allocation5 + $0x50] sm:$0xff]  ;;  %v18783_v63 = vand.u32 4294901760, %v14765_v28  ;;  %v15476_v28 = vsub.f32 %v122_v21, %v15454_v35  ;;  %v2427_v29 = vand.u32 4294901760, %v15468_v7  ;;  %v15489_v35 = vsub.f32 %v124_v15, %v15471_v8 }
  0xd4   :  { %11316 = vmatprep.mubr.f32.mxu1 %v1051_v55  ;;  %12312 = vmatprep.mubr.f32.mxu0 %v1049_v30  ;;  %v1091_v30 = vand.u32 4294901760, %v1090_v48  ;;  %v1100_v55 = vsub.f32 %v15435_v16, %v1099_v14  ;;  %v1129_v48 = vand.u32 4294901760, %v15458_v34  ;;  %18791 = vst [vmem:[#allocation171_spill] sm:$0xff] %v15496_v6 }
  0xd5   :  { %v15464_v42 = vsub.f32 %v14570_v11, %v18783_v63  ;;  %18786 = vst [vmem:[#allocation166_spill] sm:$0xff] %v15476_v28  ;;  %v126_v11 = vld [vmem:[#allocation2 + $0x298] sm:$0xff]  ;;  %v15484_v63 = vsub.f32 %v123_v4, %v15460_v27  ;;  %v2428_v21 = vsub.f32 %v15468_v7, %v2427_v29  ;;  %18789 = vst [vmem:[#allocation169_spill] sm:$0xff] %v15489_v35  ;;  %v1139_v4 = vand.u32 4294901760, %v15476_v28 }
  0xd6   :  { %v1101_v16 = vand.u32 4294901760, %v1100_v55  ;;  %v15491_v31 = vand.u32 4294901760, %v126_v11  ;;  %v1111_v55 = vand.u32 4294901760, %v1110_v60  ;;  %v1130_v15 = vsub.f32 %v15458_v34, %v1129_v48 }
  0xd7   :  { %v2420_v50 = vand.u32 4294901760, %v15464_v42  ;;  %11317 = vmatmul.mubr.f32.gmra.mrb[70].mxu1 %v1061_v26  ;;  %12313 = vmatmul.mubr.f32.gmra.mrb[70].mxu0 %v1059_v52  ;;  %18788 = vst [vmem:[#allocation168_spill] sm:$0xff] %v15484_v63  ;;  %v127_v26 = vld [vmem:[#allocation2 + $0x2a0] sm:$0xff]  ;;  %v2429_v27 = vand.u32 4294901760, %v2428_v21  ;;  %v1159_v8 = vand.u32 4294901760, %v15489_v35  ;;  %v1140_v60 = vsub.f32 %v15476_v28, %v1139_v4 }
  0xd8   :  { %11319 = vmatprep.mubr.f32.mxu1 %v1071_v0  ;;  %12315 = vmatprep.mubr.f32.mxu0 %v1069_v3  ;;  %18790 = vst [vmem:[#allocation170_spill] sm:$0xff] %v15491_v31  ;;  %v1120_v0 = vsub.f32 %v15452_v22, %v1119_v45  ;;  %v15506_v39 = vsub.f32 %v126_v11, %v15491_v31  ;;  %v1169_v21 = vand.u32 4294901760, %v15496_v6  ;;  %v1131_v34 = vand.u32 4294901760, %v1130_v15 }
  0xd9   :  { %v2421_v52 = vsub.f32 %v15464_v42, %v2420_v50  ;;  %v13319_v33 = vpack.c.bf16 %v2427_v29, %v2420_v50  ;;  %v18792_v50 = vand.u32 4294901760, %v15422_v49  ;;  %v1149_v29 = vand.u32 4294901760, %v15484_v63 }
  0xda   :  { %18794 = vst [vmem:[#allocation173_spill] sm:$0xff] %v15506_v39 }
  0xdb   :  { %v2422_v3 = vand.u32 4294901760, %v2421_v52  ;;  %11320 = vmatmul.mubr.f32.gmra.mrb[72].mxu1 %v1081_v58  ;;  %12316 = vmatmul.mubr.f32.gmra.mrb[72].mxu0 %v1079_v5  ;;  %v15502_v52 = vand.u32 4294901760, %v127_v26  ;;  %v128_v5 = vld [vmem:[#allocation2 + $0x2a8] sm:$0xff]  ;;  %v129_v58 = vld [vmem:[#allocation2 + $0x2b0] sm:$0xff] }
  0xdc   :  { %11322 = vmatprep.mubr.f32.mxu1 %v1091_v30  ;;  %12318 = vmatprep.mubr.f32.mxu0 %v18792_v50  ;;  %v1121_v30 = vand.u32 4294901760, %v1120_v0  ;;  %v15510_v50 = vand.u32 4294901760, %v128_v5  ;;  %v15516_v11 = vand.u32 4294901760, %v129_v58  ;;  %v1179_v0 = vand.u32 4294901760, %v15506_v39 }
  0xdd   :  { %18793 = vst [vmem:[#allocation172_spill] sm:$0xff] %v15502_v52  ;;  %v13223_v22 = vpack.c.bf16 %v2429_v27, %v2422_v3  ;;  %13320 = vmatprep.subr.bf16.mxu0 %v13319_v33  ;;  %v1150_v27 = vsub.f32 %v15484_v63, %v1149_v29  ;;  %v15514_v3 = vsub.f32 %v127_v26, %v15502_v52 }
  0xde   :  { %13322 = vmatpush3.bf16.msra.mxu0 %v13319_v33  ;;  %18795 = vst [vmem:[#allocation174_spill] sm:$0xff] %v15510_v50  ;;  %18797 = vst [vmem:[#allocation176_spill] sm:$0xff] %v15516_v11  ;;  %v130_v33 = vld [vmem:[#allocation2 + $0x2b8] sm:$0xff]  ;;  %v15522_v15 = vsub.f32 %v128_v5, %v15510_v50  ;;  %v136_v50 = vld [vmem:[#allocation2 + $0x2e8] sm:$0xff] }
  0xdf   :  { %11323 = vmatmul.mubr.f32.gmra.mrb[74].mxu1 %v1101_v16  ;;  %12319 = vmatmul.mubr.f32.gmra.mrb[74].mxu0 %v1099_v14  ;;  %18796 = vst [vmem:[#allocation175_spill] sm:$0xff] %v15514_v3  ;;  %v131_v16 = vld [vmem:[#allocation2 + $0x2c0] sm:$0xff]  ;;  %v1160_v14 = vsub.f32 %v15489_v35, %v1159_v8  ;;  %v15524_v26 = vand.u32 4294901760, %v130_v33  ;;  %v1151_v63 = vand.u32 4294901760, %v1150_v27  ;;  %v1189_v28 = vand.u32 4294901760, %v15514_v3 }
  0xe0   :  { %11325 = vmatprep.mubr.f32.mxu1 %v1111_v55  ;;  %12321 = vmatprep.mubr.f32.mxu0 %v1109_v9  ;;  %v1141_v55 = vand.u32 4294901760, %v1140_v60  ;;  %v1170_v9 = vsub.f32 %v15496_v6, %v1169_v21  ;;  %18798 = vst [vmem:[#allocation177_spill] sm:$0xff] %v15522_v15  ;;  %v15528_v35 = vsub.f32 %v129_v58, %v15516_v11  ;;  %v15530_v49 = vand.u32 4294901760, %v131_v16  ;;  %v134_v6 = vld [vmem:[#allocation2 + $0x2d8] sm:$0xff] }
  0xe1   :  { %13224 = vmatprep.subr.bf16.mxu1 %v13223_v22  ;;  %18799 = vst [vmem:[#allocation178_spill] sm:$0xff] %v15524_v26  ;;  %v1180_v60 = vsub.f32 %v15506_v39, %v1179_v0  ;;  %v1190_v58 = vsub.f32 %v15514_v3, %v1189_v28 }
  0xe2   :  { %13226 = vmatpush3.bf16.msra.mxu1 %v13223_v22  ;;  %18800 = vst [vmem:[#allocation179_spill] sm:$0xff] %v15528_v35  ;;  %18801 = vst [vmem:[#allocation180_spill] sm:$0xff] %v15530_v49  ;;  %v132_v22 = vld [vmem:[#allocation2 + $0x2c8] sm:$0xff]  ;;  %v1171_v5 = vand.u32 4294901760, %v1170_v9  ;;  %v1209_v11 = vand.u32 4294901760, %v15528_v35 }
  0xe3   :  { %11326 = vmatmul.mubr.f32.gmra.mrb[76].mxu1 %v1121_v30  ;;  %12322 = vmatmul.mubr.f32.gmra.mrb[76].mxu0 %v1119_v45  ;;  %v133_v45 = vld [vmem:[#allocation2 + $0x2d0] sm:$0xff]  ;;  %v1161_v30 = vand.u32 4294901760, %v1160_v14  ;;  %v15537_v27 = vand.u32 4294901760, %v132_v22  ;;  %v15542_v14 = vsub.f32 %v131_v16, %v15530_v49  ;;  %v1181_v9 = vand.u32 4294901760, %v1180_v60 }
  0xe4   :  { %11328 = vmatprep.mubr.f32.mxu1 %v1131_v34  ;;  %12324 = vmatprep.mubr.f32.mxu0 %v1129_v48  ;;  %v1199_v34 = vand.u32 4294901760, %v15522_v15  ;;  %v15535_v48 = vsub.f32 %v130_v33, %v15524_v26  ;;  %v15544_v39 = vand.u32 4294901760, %v133_v45  ;;  %v137_v16 = vld [vmem:[#allocation2 + $0x2f0] sm:$0xff]  ;;  %v1191_v49 = vand.u32 4294901760, %v1190_v58 }
  0xe5   :  { %18803 = vst [vmem:[#allocation182_spill] sm:$0xff] %v15537_v27  ;;  %18804 = vst [vmem:[#allocation183_spill] sm:$0xff] %v15542_v14  ;;  %v1210_v26 = vsub.f32 %v15528_v35, %v1209_v11  ;;  %v1229_v60 = vand.u32 4294901760, %v15542_v14 }
  0xe6   :  { %18802 = vst [vmem:[#allocation181_spill] sm:$0xff] %v15535_v48  ;;  %18805 = vst [vmem:[#allocation184_spill] sm:$0xff] %v15544_v39  ;;  %v1200_v33 = vsub.f32 %v15522_v15, %v1199_v34  ;;  %v15563_v15 = vand.u32 4294901760, %v136_v50 }
  0xe7   :  { %11329 = vmatmul.mubr.f32.gmra.mrb[78].mxu1 %v1141_v55  ;;  %12325 = vmatmul.mubr.f32.gmra.mrb[78].mxu0 %v1139_v4  ;;  %v135_v4 = vld [vmem:[#allocation2 + $0x2e0] sm:$0xff]  ;;  %v15546_v55 = vand.u32 4294901760, %v134_v6 }
  0xe8   :  { %11331 = vmatprep.mubr.f32.mxu1 %v1151_v63  ;;  %12327 = vmatprep.mubr.f32.mxu0 %v1149_v29  ;;  %v1219_v63 = vand.u32 4294901760, %v15535_v48  ;;  %v15551_v29 = vsub.f32 %v132_v22, %v15537_v27  ;;  %v15553_v3 = vand.u32 4294901760, %v135_v4  ;;  %18811 = vst [vmem:[#allocation190_spill] sm:$0xff] %v15563_v15  ;;  %v15565_v22 = vand.u32 4294901760, %v137_v16 }
  0xe9   :  { %18806 = vst [vmem:[#allocation185_spill] sm:$0xff] %v15546_v55  ;;  %v1201_v27 = vand.u32 4294901760, %v1200_v33 }
  0xea   :  { %18807 = vst [vmem:[#allocation186_spill] sm:$0xff] %v15551_v29  ;;  %18808 = vst [vmem:[#allocation187_spill] sm:$0xff] %v15553_v3  ;;  %v15570_v58 = vsub.f32 %v135_v4, %v15553_v3  ;;  %v15579_v33 = vsub.f32 %v137_v16, %v15565_v22  ;;  %v18821_v3 = vand.u32 4294901760, %v14782_v36 }
  0xeb   :  { %11332 = vmatmul.mubr.f32.gmra.mrb[80].mxu1 %v1161_v30  ;;  %12328 = vmatmul.mubr.f32.gmra.mrb[80].mxu0 %v1159_v8  ;;  %v15558_v30 = vsub.f32 %v133_v45, %v15544_v39  ;;  %v15561_v8 = vsub.f32 %v134_v6, %v15546_v55  ;;  %18812 = vst [vmem:[#allocation191_spill] sm:$0xff] %v15565_v22  ;;  %v1211_v45 = vand.u32 4294901760, %v1210_v26  ;;  %v138_v55 = vld [vmem:[#allocation2 + $0x2f8] sm:$0xff] }
  0xec   :  { %11334 = vmatprep.mubr.f32.mxu1 %v1171_v5  ;;  %12330 = vmatprep.mubr.f32.mxu0 %v1169_v21  ;;  %v1220_v21 = vsub.f32 %v15535_v48, %v1219_v63  ;;  %v1239_v5 = vand.u32 4294901760, %v15551_v29  ;;  %18813 = vst [vmem:[#allocation192_spill] sm:$0xff] %v15570_v58  ;;  %v1230_v6 = vsub.f32 %v15542_v14, %v1229_v60  ;;  %18815 = vst [vmem:[#allocation194_spill] sm:$0xff] %v15579_v33  ;;  %v140_v14 = vld [vmem:[#allocation2 + $0x308] sm:$0xff] }
  0xed   :  { %18809 = vst [vmem:[#allocation188_spill] sm:$0xff] %v15558_v30  ;;  %18810 = vst [vmem:[#allocation189_spill] sm:$0xff] %v15561_v8  ;;  %v1249_v35 = vand.u32 4294901760, %v15558_v30  ;;  %v15583_v26 = vand.u32 4294901760, %v138_v55  ;;  %v18818_v16 = vand.u32 4294901760, %v15561_v8  ;;  %v15593_v22 = vand.u32 4294901760, %v140_v14 }
  0xee   :  { %v1221_v4 = vand.u32 4294901760, %v1220_v21  ;;  %v1231_v39 = vand.u32 4294901760, %v1230_v6  ;;  %v141_v21 = vld [vmem:[#allocation2 + $0x310] sm:$0xff] }
  0xef   :  { %11335 = vmatmul.mubr.f32.gmra.mrb[82].mxu1 %v1181_v9  ;;  %12331 = vmatmul.mubr.f32.gmra.mrb[82].mxu0 %v1179_v0  ;;  %v15576_v0 = vsub.f32 %v136_v50, %v15563_v15  ;;  %v139_v9 = vld [vmem:[#allocation2 + $0x300] sm:$0xff]  ;;  %18816 = vst [vmem:[#allocation195_spill] sm:$0xff] %v15583_v26  ;;  %v1250_v50 = vsub.f32 %v15558_v30, %v1249_v35  ;;  %18819 = vst [vmem:[#allocation197_spill] sm:$0xff] %v15593_v22  ;;  %v142_v30 = vld [vmem:[#allocation2 + $0x318] sm:$0xff] }
  0xf0   :  { %11337 = vmatprep.mubr.f32.mxu1 %v1191_v49  ;;  %12333 = vmatprep.mubr.f32.mxu0 %v1189_v28  ;;  %v1240_v49 = vsub.f32 %v15551_v29, %v1239_v5  ;;  %v1269_v28 = vand.u32 4294901760, %v15570_v58  ;;  %v15586_v48 = vand.u32 4294901760, %v139_v9  ;;  %v15597_v6 = vsub.f32 %v138_v55, %v15583_v26  ;;  %v14572_v15 = vld [vmem:[#allocation5 + $0x60] sm:$0xff] }
  0xf1   :  { %18814 = vst [vmem:[#allocation193_spill] sm:$0xff] %v15576_v0  ;;  %v18826_v52 = vand.u32 4294901760, %v15576_v0 }
  0xf2   :  { %18817 = vst [vmem:[#allocation196_spill] sm:$0xff] %v15586_v48  ;;  %18820 = vst [vmem:[#allocation198_spill] sm:$0xff] %v15597_v6  ;;  %v15604_v29 = vsub.f32 %v139_v9, %v15586_v48  ;;  %v15622_v9 = vand.u32 4294901760, %v142_v30 }
  0xf3   :  { %11338 = vmatmul.mubr.f32.gmra.mrb[84].mxu1 %v1201_v27  ;;  %12334 = vmatmul.mubr.f32.gmra.mrb[84].mxu0 %v1199_v34  ;;  %v1260_v27 = vsub.f32 %v15561_v8, %v18818_v16  ;;  %v15601_v16 = vsub.f32 %v14572_v15, %v18821_v3  ;;  %v1251_v34 = vand.u32 4294901760, %v1250_v50  ;;  %v1280_v36 = vsub.f32 %v15576_v0, %v18826_v52 }
  0xf4   :  { %11340 = vmatprep.mubr.f32.mxu1 %v1211_v45  ;;  %12336 = vmatprep.mubr.f32.mxu0 %v1209_v11  ;;  %v1241_v45 = vand.u32 4294901760, %v1240_v49  ;;  %v1270_v11 = vsub.f32 %v15570_v58, %v1269_v28  ;;  %18823 = vst [vmem:[#allocation200_spill] sm:$0xff] %v15604_v29  ;;  %v14573_v49 = vld [vmem:[#allocation5 + $0x68] sm:$0xff]  ;;  %v18825_v58 = vand.u32 4294901760, %v14788_v40  ;;  %v18827_v3 = vand.u32 4294901760, %v15579_v33  ;;  %18829 = vst [vmem:[#allocation203_spill] sm:$0xff] %v15622_v9 }
  0xf5   :  { %18822 = vst [vmem:[#allocation199_spill] sm:$0xff] %v15601_v16  ;;  %v1261_v26 = vand.u32 4294901760, %v1260_v27  ;;  %v1299_v50 = vand.u32 4294901760, %v15597_v6  ;;  %v15636_v19 = vsub.f32 %v142_v30, %v15622_v9 }
  0xf6   :  { %v15610_v55 = vsub.f32 %v14573_v49, %v18825_v58  ;;  %v1290_v15 = vsub.f32 %v15579_v33, %v18827_v3  ;;  %v1271_v58 = vand.u32 4294901760, %v1270_v11  ;;  %v1309_v49 = vand.u32 4294901760, %v15604_v29  ;;  %v144_v3 = vld [vmem:[#allocation2 + $0x328] sm:$0xff] }
  0xf7   :  { %11341 = vmatmul.mubr.f32.gmra.mrb[86].mxu1 %v1221_v4  ;;  %12337 = vmatmul.mubr.f32.gmra.mrb[86].mxu0 %v1219_v63  ;;  %v15606_v4 = vand.u32 4294901760, %v141_v21  ;;  %v143_v63 = vld [vmem:[#allocation2 + $0x320] sm:$0xff]  ;;  %v1281_v11 = vand.u32 4294901760, %v1280_v36  ;;  %18832 = vst [vmem:[#allocation206_spill] sm:$0xff] %v15636_v19 }
  0xf8   :  { %11343 = vmatprep.mubr.f32.mxu1 %v1231_v39  ;;  %12339 = vmatprep.mubr.f32.mxu0 %v1229_v60  ;;  %v2434_v39 = vand.u32 4294901760, %v15601_v16  ;;  %v15620_v60 = vsub.f32 %v140_v14, %v15593_v22  ;;  %v2441_v40 = vand.u32 4294901760, %v15610_v55  ;;  %v15626_v27 = vand.u32 4294901760, %v143_v63 }
  0xf9   :  { %18824 = vst [vmem:[#allocation201_spill] sm:$0xff] %v15606_v4  ;;  %v15631_v14 = vsub.f32 %v141_v21, %v15606_v4  ;;  %v1300_v21 = vsub.f32 %v15597_v6, %v1299_v50  ;;  %v1310_v36 = vsub.f32 %v15604_v29, %v1309_v49 }
  0xfa   :  { %18828 = vst [vmem:[#allocation202_spill] sm:$0xff] %v15620_v60  ;;  %18830 = vst [vmem:[#allocation204_spill] sm:$0xff] %v15626_v27  ;;  %v2435_v52 = vsub.f32 %v15601_v16, %v2434_v39  ;;  %v2442_v22 = vsub.f32 %v15610_v55, %v2441_v40  ;;  %v13323_v48 = vpack.c.bf16 %v2441_v40, %v2434_v39  ;;  %v1319_v31 = vand.u32 4294901760, %v15620_v60 }
  0xfb   :  { %11344 = vmatmul.mubr.f32.gmra.mrb[88].mxu1 %v1241_v45  ;;  %12340 = vmatmul.mubr.f32.gmra.mrb[88].mxu0 %v1239_v5  ;;  %18831 = vst [vmem:[#allocation205_spill] sm:$0xff] %v15631_v14  ;;  %v145_v45 = vld [vmem:[#allocation2 + $0x330] sm:$0xff]  ;;  %v15642_v4 = vsub.f32 %v143_v63, %v15626_v27  ;;  %v15644_v39 = vand.u32 4294901760, %v144_v3  ;;  %v1329_v30 = vand.u32 4294901760, %v15631_v14  ;;  %v18837_v63 = vand.u32 4294901760, %v15576_v0 }
  0xfc   :  { %11346 = vmatprep.mubr.f32.mxu1 %v1251_v34  ;;  %12342 = vmatprep.mubr.f32.mxu0 %v1249_v35  ;;  %v2436_v5 = vand.u32 4294901760, %v2435_v52  ;;  %v2443_v16 = vand.u32 4294901760, %v2442_v22  ;;  %v18833_v35 = vand.u32 4294901760, %v15561_v8  ;;  %v1291_v34 = vand.u32 4294901760, %v1290_v15  ;;  %v147_v52 = vld [vmem:[#allocation2 + $0x340] sm:$0xff] }
  0xfd   :  { %13324 = vmatprep.subr.bf16.mxu0 %v13323_v48  ;;  %18834 = vst [vmem:[#allocation207_spill] sm:$0xff] %v15642_v4  ;;  %18835 = vst [vmem:[#allocation208_spill] sm:$0xff] %v15644_v39  ;;  %v15648_v22 = vand.u32 4294901760, %v145_v45  ;;  %v1320_v15 = vsub.f32 %v15620_v60, %v1319_v31  ;;  %v15656_v29 = vsub.f32 %v144_v3, %v15644_v39 }
  0xfe   :  { %v13227_v40 = vpack.c.bf16 %v2443_v16, %v2436_v5  ;;  %13326 = vmatpush3.bf16.msra.mxu0 %v13323_v48  ;;  %v148_v16 = vld [vmem:[#allocation2 + $0x348] sm:$0xff]  ;;  %v18840_v48 = vand.u32 4294901760, %v15579_v33  ;;  %v1311_v5 = vand.u32 4294901760, %v1310_v36  ;;  %v1330_v60 = vsub.f32 %v15631_v14, %v1329_v30 }
  0xff   :  { %11347 = vmatmul.mubr.f32.gmra.mrb[90].mxu1 %v1261_v26  ;;  %12343 = vmatmul.mubr.f32.gmra.mrb[90].mxu0 %v18833_v35  ;;  %18836 = vst [vmem:[#allocation209_spill] sm:$0xff] %v15648_v22  ;;  %v146_v26 = vld [vmem:[#allocation2 + $0x338] sm:$0xff]  ;;  %v1339_v35 = vand.u32 4294901760, %v15636_v19  ;;  %18838 = vst [vmem:[#allocation210_spill] sm:$0xff] %v15656_v29  ;;  %v1321_v0 = vand.u32 4294901760, %v1320_v15  ;;  %v15668_v3 = vand.u32 4294901760, %v148_v16 }
 0x100   :  { %11349 = vmatprep.mubr.f32.mxu1 %v1271_v58  ;;  %12345 = vmatprep.mubr.f32.mxu0 %v1269_v28  ;;  %v1301_v28 = vand.u32 4294901760, %v1300_v21  ;;  %v1349_v58 = vand.u32 4294901760, %v15642_v4  ;;  %v15658_v6 = vand.u32 4294901760, %v146_v26  ;;  %v149_v21 = vld [vmem:[#allocation2 + $0x350] sm:$0xff]  ;;  %v1359_v36 = vand.u32 4294901760, %v15656_v29 }
 0x101   :  { %13228 = vmatprep.subr.bf16.mxu1 %v13227_v40  ;;  %18843 = vst [vmem:[#allocation214_spill] sm:$0xff] %v15668_v3  ;;  %v1331_v14 = vand.u32 4294901760, %v1330_v60 }
 0x102   :  { %18839 = vst [vmem:[#allocation211_spill] sm:$0xff] %v15658_v6  ;;  %13230 = vmatpush3.bf16.msra.mxu1 %v13227_v40  ;;  %v1350_v33 = vsub.f32 %v15642_v4, %v1349_v58 }
 0x103   :  { %11350 = vmatmul.mubr.f32.gmra.mrb[92].mxu1 %v1281_v11  ;;  %12346 = vmatmul.mubr.f32.gmra.mrb[92].mxu0 %v18837_v63  ;;  %v15664_v11 = vsub.f32 %v145_v45, %v15648_v22  ;;  %v15666_v63 = vand.u32 4294901760, %v147_v52  ;;  %v150_v45 = vld [vmem:[#allocation2 + $0x358] sm:$0xff] }
 0x104   :  { %11352 = vmatprep.mubr.f32.mxu1 %v1291_v34  ;;  %12348 = vmatprep.mubr.f32.mxu0 %v18840_v48  ;;  %v1340_v34 = vsub.f32 %v15636_v19, %v1339_v35  ;;  %v15674_v48 = vsub.f32 %v146_v26, %v15658_v6  ;;  %v15683_v19 = vsub.f32 %v148_v16, %v15668_v3  ;;  %v15685_v4 = vand.u32 4294901760, %v150_v45  ;;  %v152_v3 = vld [vmem:[#allocation2 + $0x368] sm:$0xff] }
 0x105   :  { %18841 = vst [vmem:[#allocation212_spill] sm:$0xff] %v15664_v11  ;;  %18842 = vst [vmem:[#allocation213_spill] sm:$0xff] %v15666_v63  ;;  %v1369_v40 = vand.u32 4294901760, %v15664_v11  ;;  %v15678_v15 = vsub.f32 %v147_v52, %v15666_v63  ;;  %v1351_v8 = vand.u32 4294901760, %v1350_v33 }
 0x106   :  { %18844 = vst [vmem:[#allocation215_spill] sm:$0xff] %v15674_v48  ;;  %18847 = vst [vmem:[#allocation218_spill] sm:$0xff] %v15683_v19  ;;  %v1341_v26 = vand.u32 4294901760, %v1340_v34  ;;  %v1379_v60 = vand.u32 4294901760, %v15674_v48  ;;  %v15698_v33 = vsub.f32 %v150_v45, %v15685_v4  ;;  %v15701_v34 = vand.u32 4294901760, %v152_v3  ;;  %v154_v45 = vld [vmem:[#allocation2 + $0x378] sm:$0xff] }
 0x107   :  { %11353 = vmatmul.mubr.f32.gmra.mrb[94].mxu1 %v1301_v28  ;;  %12349 = vmatmul.mubr.f32.gmra.mrb[94].mxu0 %v1299_v50  ;;  %18845 = vst [vmem:[#allocation216_spill] sm:$0xff] %v15678_v15  ;;  %v15680_v28 = vand.u32 4294901760, %v149_v21  ;;  %v151_v50 = vld [vmem:[#allocation2 + $0x360] sm:$0xff]  ;;  %18848 = vst [vmem:[#allocation219_spill] sm:$0xff] %v15685_v4  ;;  %v1370_v52 = vsub.f32 %v15664_v11, %v1369_v40 }
 0x108   :  { %11355 = vmatprep.mubr.f32.mxu1 %v1311_v5  ;;  %12351 = vmatprep.mubr.f32.mxu0 %v1309_v49  ;;  %v1360_v49 = vsub.f32 %v15656_v29, %v1359_v36  ;;  %v1389_v5 = vand.u32 4294901760, %v15678_v15  ;;  %v15694_v16 = vand.u32 4294901760, %v151_v50  ;;  %18851 = vst [vmem:[#allocation222_spill] sm:$0xff] %v15698_v33  ;;  %18852 = vst [vmem:[#allocation223_spill] sm:$0xff] %v15701_v34 }
 0x109   :  { %18846 = vst [vmem:[#allocation217_spill] sm:$0xff] %v15680_v28  ;;  %v15692_v63 = vsub.f32 %v149_v21, %v15680_v28  ;;  %v1371_v21 = vand.u32 4294901760, %v1370_v52  ;;  %v15718_v52 = vand.u32 4294901760, %v154_v45 }
 0x10a   :  { %18850 = vst [vmem:[#allocation221_spill] sm:$0xff] %v15694_v16  ;;  %v1390_v29 = vsub.f32 %v15678_v15, %v1389_v5  ;;  %v15708_v6 = vsub.f32 %v151_v50, %v15694_v16 }
 0x10b   :  { %11356 = vmatmul.mubr.f32.gmra.mrb[96].mxu1 %v1321_v0  ;;  %12352 = vmatmul.mubr.f32.gmra.mrb[96].mxu0 %v1319_v31  ;;  %18849 = vst [vmem:[#allocation220_spill] sm:$0xff] %v15692_v63  ;;  %v153_v0 = vld [vmem:[#allocation2 + $0x370] sm:$0xff]  ;;  %v1399_v31 = vand.u32 4294901760, %v15683_v19  ;;  %v1409_v28 = vand.u32 4294901760, %v15692_v63  ;;  %18857 = vst [vmem:[#allocation228_spill] sm:$0xff] %v15718_v52 }
 0x10c   :  { %11358 = vmatprep.mubr.f32.mxu1 %v1331_v14  ;;  %12354 = vmatprep.mubr.f32.mxu0 %v1329_v30  ;;  %v1361_v14 = vand.u32 4294901760, %v1360_v49  ;;  %v1380_v30 = vsub.f32 %v15674_v48, %v1379_v60  ;;  %v15703_v11 = vand.u32 4294901760, %v153_v0  ;;  %18854 = vst [vmem:[#allocation225_spill] sm:$0xff] %v15708_v6  ;;  %v1419_v49 = vand.u32 4294901760, %v15698_v33 }
 0x10d   :  { %v1391_v50 = vand.u32 4294901760, %v1390_v29  ;;  %v1410_v15 = vsub.f32 %v15692_v63, %v1409_v28  ;;  %v15728_v29 = vsub.f32 %v154_v45, %v15718_v52 }
 0x10e   :  { %18853 = vst [vmem:[#allocation224_spill] sm:$0xff] %v15703_v11  ;;  %v1381_v48 = vand.u32 4294901760, %v1380_v30 }
 0x10f   :  { %11359 = vmatmul.mubr.f32.gmra.mrb[98].mxu1 %v1341_v26  ;;  %12355 = vmatmul.mubr.f32.gmra.mrb[98].mxu0 %v1339_v35  ;;  %v155_v26 = vld [vmem:[#allocation2 + $0x380] sm:$0xff]  ;;  %v1400_v35 = vsub.f32 %v15683_v19, %v1399_v31  ;;  %v1429_v19 = vand.u32 4294901760, %v15708_v6  ;;  %18859 = vst [vmem:[#allocation230_spill] sm:$0xff] %v15728_v29  ;;  %v1411_v63 = vand.u32 4294901760, %v1410_v15 }
 0x110   :  { %11361 = vmatprep.mubr.f32.mxu1 %v1351_v8  ;;  %12357 = vmatprep.mubr.f32.mxu0 %v1349_v58  ;;  %v15713_v8 = vsub.f32 %v152_v3, %v15701_v34  ;;  %v15716_v58 = vsub.f32 %v153_v0, %v15703_v11  ;;  %v15722_v16 = vand.u32 4294901760, %v155_v26  ;;  %v1420_v3 = vsub.f32 %v15698_v33, %v1419_v49  ;;  %v158_v34 = vld [vmem:[#allocation2 + $0x398] sm:$0xff] }
 0x111   :  { %v1401_v30 = vand.u32 4294901760, %v1400_v35  ;;  %v1430_v11 = vsub.f32 %v15708_v6, %v1429_v19 }
 0x112   :  { %18855 = vst [vmem:[#allocation226_spill] sm:$0xff] %v15713_v8  ;;  %18856 = vst [vmem:[#allocation227_spill] sm:$0xff] %v15716_v58  ;;  %v1439_v0 = vand.u32 4294901760, %v15713_v8  ;;  %v15734_v35 = vsub.f32 %v155_v26, %v15722_v16  ;;  %v1421_v4 = vand.u32 4294901760, %v1420_v3  ;;  %v161_v3 = vld [vmem:[#allocation2 + $0x3b0] sm:$0xff] }
 0x113   :  { %11362 = vmatmul.mubr.f32.gmra.mrb[100].mxu1 %v1361_v14  ;;  %12358 = vmatmul.mubr.f32.gmra.mrb[100].mxu0 %v1359_v36  ;;  %18858 = vst [vmem:[#allocation229_spill] sm:$0xff] %v15722_v16  ;;  %v156_v14 = vld [vmem:[#allocation2 + $0x388] sm:$0xff]  ;;  %v157_v36 = vld [vmem:[#allocation2 + $0x390] sm:$0xff]  ;;  %v1431_v26 = vand.u32 4294901760, %v1430_v11 }
 0x114   :  { %11364 = vmatprep.mubr.f32.mxu1 %v1371_v21  ;;  %12360 = vmatprep.mubr.f32.mxu0 %v1369_v40  ;;  %v1449_v21 = vand.u32 4294901760, %v15716_v58  ;;  %v15730_v40 = vand.u32 4294901760, %v156_v14  ;;  %18861 = vst [vmem:[#allocation232_spill] sm:$0xff] %v15734_v35  ;;  %v15736_v33 = vand.u32 4294901760, %v157_v36  ;;  %v1440_v45 = vsub.f32 %v15713_v8, %v1439_v0 }
 0x115   :  { %v1469_v6 = vand.u32 4294901760, %v15734_v35 }
 0x116   :  { %18860 = vst [vmem:[#allocation231_spill] sm:$0xff] %v15730_v40  ;;  %18862 = vst [vmem:[#allocation233_spill] sm:$0xff] %v15736_v33  ;;  %v1450_v52 = vsub.f32 %v15716_v58, %v1449_v21  ;;  %v15744_v15 = vsub.f32 %v156_v14, %v15730_v40  ;;  %v15748_v16 = vsub.f32 %v157_v36, %v15736_v33  ;;  %v1441_v14 = vand.u32 4294901760, %v1440_v45 }
 0x117   :  { %11365 = vmatmul.mubr.f32.gmra.mrb[102].mxu1 %v1381_v48  ;;  %12361 = vmatmul.mubr.f32.gmra.mrb[102].mxu0 %v1379_v60  ;;  %v15738_v48 = vand.u32 4294901760, %v158_v34  ;;  %v159_v60 = vld [vmem:[#allocation2 + $0x3a0] sm:$0xff]  ;;  %v1470_v36 = vsub.f32 %v15734_v35, %v1469_v6 }
 0x118   :  { %11367 = vmatprep.mubr.f32.mxu1 %v1391_v50  ;;  %12363 = vmatprep.mubr.f32.mxu0 %v1389_v5  ;;  %v1459_v5 = vand.u32 4294901760, %v15728_v29  ;;  %18864 = vst [vmem:[#allocation235_spill] sm:$0xff] %v15744_v15  ;;  %v160_v50 = vld [vmem:[#allocation2 + $0x3a8] sm:$0xff]  ;;  %18865 = vst [vmem:[#allocation236_spill] sm:$0xff] %v15748_v16  ;;  %v1451_v8 = vand.u32 4294901760, %v1450_v52  ;;  %v1479_v11 = vand.u32 4294901760, %v15744_v15 }
 0x119   :  { %18863 = vst [vmem:[#allocation234_spill] sm:$0xff] %v15738_v48  ;;  %v15755_v58 = vand.u32 4294901760, %v160_v50  ;;  %v1489_v33 = vand.u32 4294901760, %v15748_v16 }
 0x11b   :  { %11368 = vmatmul.mubr.f32.gmra.mrb[104].mxu1 %v1401_v30  ;;  %12364 = vmatmul.mubr.f32.gmra.mrb[104].mxu0 %v1399_v31  ;;  %v15750_v30 = vand.u32 4294901760, %v159_v60  ;;  %v15753_v31 = vsub.f32 %v158_v34, %v15738_v48  ;;  %18868 = vst [vmem:[#allocation239_spill] sm:$0xff] %v15755_v58  ;;  %v15764_v48 = vand.u32 4294901760, %v161_v3  ;;  %v15768_v52 = vsub.f32 %v160_v50, %v15755_v58 }
 0x11c   :  { %11370 = vmatprep.mubr.f32.mxu1 %v1411_v63  ;;  %12366 = vmatprep.mubr.f32.mxu0 %v1409_v28  ;;  %v1460_v63 = vsub.f32 %v15728_v29, %v1459_v5  ;;  %v162_v28 = vld [vmem:[#allocation2 + $0x3b8] sm:$0xff]  ;;  %v164_v29 = vld [vmem:[#allocation2 + $0x3c8] sm:$0xff] }
 0x11d   :  { %18866 = vst [vmem:[#allocation237_spill] sm:$0xff] %v15750_v30  ;;  %18867 = vst [vmem:[#allocation238_spill] sm:$0xff] %v15753_v31  ;;  %v15762_v34 = vsub.f32 %v159_v60, %v15750_v30  ;;  %v15770_v45 = vand.u32 4294901760, %v162_v28  ;;  %v1471_v60 = vand.u32 4294901760, %v1470_v36  ;;  %v1490_v30 = vsub.f32 %v15748_v16, %v1489_v33  ;;  %v14574_v16 = vld [vmem:[#allocation5 + $0x70] sm:$0xff] }
 0x11e   :  { %18870 = vst [vmem:[#allocation241_spill] sm:$0xff] %v15764_v48  ;;  %18871 = vst [vmem:[#allocation242_spill] sm:$0xff] %v15768_v52  ;;  %v15778_v50 = vsub.f32 %v161_v3, %v15764_v48  ;;  %v18875_v58 = vand.u32 4294901760, %v15753_v31  ;;  %v166_v3 = vld [vmem:[#allocation2 + $0x3d8] sm:$0xff]  ;;  %v18879_v48 = vand.u32 4294901760, %v14806_v47 }
 0x11f   :  { %11371 = vmatmul.mubr.f32.gmra.mrb[106].mxu1 %v1421_v4  ;;  %12367 = vmatmul.mubr.f32.gmra.mrb[106].mxu0 %v1419_v49  ;;  %18869 = vst [vmem:[#allocation240_spill] sm:$0xff] %v15762_v34  ;;  %v163_v4 = vld [vmem:[#allocation2 + $0x3c0] sm:$0xff]  ;;  %18872 = vst [vmem:[#allocation243_spill] sm:$0xff] %v15770_v45  ;;  %v1509_v49 = vand.u32 4294901760, %v15762_v34 }
 0x120   :  { %11373 = vmatprep.mubr.f32.mxu1 %v1431_v26  ;;  %12369 = vmatprep.mubr.f32.mxu0 %v1429_v19  ;;  %v1461_v19 = vand.u32 4294901760, %v1460_v63  ;;  %v1480_v26 = vsub.f32 %v15744_v15, %v1479_v11  ;;  %v15773_v35 = vand.u32 4294901760, %v163_v4  ;;  %18874 = vst [vmem:[#allocation245_spill] sm:$0xff] %v15778_v50  ;;  %v15785_v15 = vsub.f32 %v162_v28, %v15770_v45 }
 0x121   :  { %v15794_v40 = vsub.f32 %v14574_v16, %v18879_v48  ;;  %v18881_v63 = vand.u32 4294901760, %v14810_v51  ;;  %v1491_v28 = vand.u32 4294901760, %v1490_v30  ;;  %v18884_v48 = vand.u32 4294901760, %v15768_v52 }
 0x122   :  { %18873 = vst [vmem:[#allocation244_spill] sm:$0xff] %v15773_v35  ;;  %18876 = vst [vmem:[#allocation246_spill] sm:$0xff] %v15785_v15  ;;  %v15790_v36 = vsub.f32 %v163_v4, %v15773_v35  ;;  %v167_v35 = vld [vmem:[#allocation2 + $0x3e0] sm:$0xff]  ;;  %v15813_v30 = vand.u32 4294901760, %v166_v3 }
 0x123   :  { %11374 = vmatmul.mubr.f32.gmra.mrb[108].mxu1 %v1441_v14  ;;  %12370 = vmatmul.mubr.f32.gmra.mrb[108].mxu0 %v1439_v0  ;;  %v1500_v0 = vsub.f32 %v15753_v31, %v18875_v58  ;;  %v165_v14 = vld [vmem:[#allocation2 + $0x3d0] sm:$0xff]  ;;  %18880 = vst [vmem:[#allocation249_spill] sm:$0xff] %v15794_v40  ;;  %v14575_v58 = vld [vmem:[#allocation5 + $0x78] sm:$0xff]  ;;  %v2448_v47 = vand.u32 4294901760, %v15794_v40  ;;  %v1520_v51 = vsub.f32 %v15768_v52, %v18884_v48 }
 0x124   :  { %11376 = vmatprep.mubr.f32.mxu1 %v1451_v8  ;;  %12372 = vmatprep.mubr.f32.mxu0 %v1449_v21  ;;  %v15787_v8 = vand.u32 4294901760, %v164_v29  ;;  %v1481_v21 = vand.u32 4294901760, %v1480_v26  ;;  %18878 = vst [vmem:[#allocation248_spill] sm:$0xff] %v15790_v36  ;;  %v15798_v22 = vsub.f32 %v14575_v58, %v18881_v63  ;;  %v15802_v4 = vand.u32 4294901760, %v165_v14  ;;  %18886 = vst [vmem:[#allocation253_spill] sm:$0xff] %v15813_v30 }
 0x125   :  { %v1501_v26 = vand.u32 4294901760, %v1500_v0  ;;  %v1549_v0 = vand.u32 4294901760, %v15790_v36  ;;  %v2449_v63 = vsub.f32 %v15794_v40, %v2448_v47 }
 0x126   :  { %18877 = vst [vmem:[#allocation247_spill] sm:$0xff] %v15787_v8  ;;  %18882 = vst [vmem:[#allocation250_spill] sm:$0xff] %v15798_v22  ;;  %v2455_v16 = vand.u32 4294901760, %v15798_v22  ;;  %v15820_v39 = vsub.f32 %v165_v14, %v15802_v4  ;;  %v1521_v14 = vand.u32 4294901760, %v1520_v51 }
 0x127   :  { %11377 = vmatmul.mubr.f32.gmra.mrb[110].mxu1 %v1461_v19  ;;  %12373 = vmatmul.mubr.f32.gmra.mrb[110].mxu0 %v1459_v5  ;;  %v1510_v5 = vsub.f32 %v15762_v34, %v1509_v49  ;;  %v1529_v19 = vand.u32 4294901760, %v15778_v50  ;;  %18883 = vst [vmem:[#allocation251_spill] sm:$0xff] %v15802_v4 }
 0x128   :  { %11379 = vmatprep.mubr.f32.mxu1 %v1471_v60  ;;  %12375 = vmatprep.mubr.f32.mxu0 %v1469_v6  ;;  %v1539_v60 = vand.u32 4294901760, %v15785_v15  ;;  %v15811_v6 = vsub.f32 %v164_v29, %v15787_v8  ;;  %v2456_v58 = vsub.f32 %v15798_v22, %v2455_v16  ;;  %v13327_v34 = vpack.c.bf16 %v2455_v16, %v2448_v47  ;;  %v168_v8 = vld [vmem:[#allocation2 + $0x3e8] sm:$0xff] }
 0x129   :  { %v1511_v45 = vand.u32 4294901760, %v1510_v5  ;;  %v1530_v48 = vsub.f32 %v15778_v50, %v1529_v19  ;;  %18887 = vst [vmem:[#allocation254_spill] sm:$0xff] %v15820_v39  ;;  %v15822_v29 = vand.u32 4294901760, %v167_v35  ;;  %v1550_v5 = vsub.f32 %v15790_v36, %v1549_v0  ;;  %v174_v50 = vld [vmem:[#allocation2 + $0x418] sm:$0xff] }
 0x12a   :  { %18885 = vst [vmem:[#allocation252_spill] sm:$0xff] %v15811_v6  ;;  %v2457_v27 = vand.u32 4294901760, %v2456_v58  ;;  %13328 = vmatprep.subr.bf16.mxu0 %v13327_v34  ;;  %v1540_v40 = vsub.f32 %v15785_v15, %v1539_v60  ;;  %v1559_v22 = vand.u32 4294901760, %v15811_v6  ;;  %v15832_v47 = vand.u32 4294901760, %v168_v8 }
 0x12b   :  { %11380 = vmatmul.mubr.f32.gmra.mrb[112].mxu1 %v1481_v21  ;;  %12376 = vmatmul.mubr.f32.gmra.mrb[112].mxu0 %v1479_v11  ;;  %18888 = vst [vmem:[#allocation255_spill] sm:$0xff] %v15822_v29  ;;  %v169_v21 = vld [vmem:[#allocation2 + $0x3f0] sm:$0xff]  ;;  %v2450_v11 = vand.u32 4294901760, %v2449_v63  ;;  %v1531_v63 = vand.u32 4294901760, %v1530_v48  ;;  %v1569_v58 = vand.u32 4294901760, %v15820_v39  ;;  %v15836_v15 = vsub.f32 %v167_v35, %v15822_v29 }
 0x12c   :  { %11382 = vmatprep.mubr.f32.mxu1 %v1491_v28  ;;  %12378 = vmatprep.mubr.f32.mxu0 %v1489_v33  ;;  %v15827_v28 = vsub.f32 %v166_v3, %v15813_v30  ;;  %v18890_v33 = vand.u32 4294901760, %v15753_v31  ;;  %18891 = vst [vmem:[#allocation257_spill] sm:$0xff] %v15832_v47  ;;  %v15838_v3 = vand.u32 4294901760, %v169_v21  ;;  %v1541_v51 = vand.u32 4294901760, %v1540_v40 }
 0x12d   :  { %13330 = vmatpush3.bf16.msra.mxu0 %v13327_v34  ;;  %v13231_v16 = vpack.c.bf16 %v2457_v27, %v2450_v11  ;;  %18892 = vst [vmem:[#allocation258_spill] sm:$0xff] %v15836_v15  ;;  %v170_v34 = vld [vmem:[#allocation2 + $0x3f8] sm:$0xff]  ;;  %v18894_v27 = vand.u32 4294901760, %v15768_v52  ;;  %v15846_v35 = vsub.f32 %v168_v8, %v15832_v47  ;;  %v172_v11 = vld [vmem:[#allocation2 + $0x408] sm:$0xff]  ;;  %v1570_v40 = vsub.f32 %v15820_v39, %v1569_v58 }
 0x12e   :  { %18889 = vst [vmem:[#allocation256_spill] sm:$0xff] %v15827_v28  ;;  %18893 = vst [vmem:[#allocation259_spill] sm:$0xff] %v15838_v3  ;;  %13332 = vmatprep.subr.bf16.mxu0 %v14715_v10  ;;  %v15848_v48 = vand.u32 4294901760, %v170_v34  ;;  %v15857_v36 = vand.u32 4294901760, %v172_v11  ;;  %v15874_v31 = vand.u32 4294901760, %v174_v50 }
 0x12f   :  { %11383 = vmatmul.mubr.f32.gmra.mrb[114].mxu1 %v1501_v26  ;;  %12379 = vmatmul.mubr.f32.gmra.mrb[114].mxu0 %v18890_v33  ;;  %v171_v26 = vld [vmem:[#allocation2 + $0x400] sm:$0xff]  ;;  %v1560_v33 = vsub.f32 %v15811_v6, %v1559_v22  ;;  %18895 = vst [vmem:[#allocation260_spill] sm:$0xff] %v15846_v35  ;;  %v1589_v6 = vand.u32 4294901760, %v15836_v15 }
 0x130   :  { %11385 = vmatprep.mubr.f32.mxu1 %v1511_v45  ;;  %12381 = vmatprep.mubr.f32.mxu0 %v1509_v49  ;;  %v1551_v49 = vand.u32 4294901760, %v1550_v5  ;;  %v1579_v45 = vand.u32 4294901760, %v15827_v28  ;;  %18896 = vst [vmem:[#allocation261_spill] sm:$0xff] %v15848_v48  ;;  %v173_v5 = vld [vmem:[#allocation2 + $0x410] sm:$0xff]  ;;  %18899 = vst [vmem:[#allocation264_spill] sm:$0xff] %v15857_v36 }
 0x131   :  { %13232 = vmatprep.subr.bf16.mxu1 %v13231_v16  ;;  %v15864_v39 = vand.u32 4294901760, %v173_v5  ;;  %v1590_v52 = vsub.f32 %v15836_v15, %v1589_v6  ;;  %18904 = vst [vmem:[#allocation269_spill] sm:$0xff] %v15874_v31 }
 0x132   :  { %13234 = vmatpush3.bf16.msra.mxu1 %v13231_v16  ;;  %v15855_v16 = vand.u32 4294901760, %v171_v26  ;;  %v1580_v8 = vsub.f32 %v15827_v28, %v1579_v45  ;;  %v15872_v28 = vsub.f32 %v172_v11, %v15857_v36 }
 0x133   :  { %11386 = vmatmul.mubr.f32.gmra.mrb[116].mxu1 %v1521_v14  ;;  %12382 = vmatmul.mubr.f32.gmra.mrb[116].mxu0 %v18894_v27  ;;  %v15853_v14 = vsub.f32 %v169_v21, %v15838_v3  ;;  %v1561_v27 = vand.u32 4294901760, %v1560_v33  ;;  %18901 = vst [vmem:[#allocation266_spill] sm:$0xff] %v15864_v39  ;;  %v1571_v21 = vand.u32 4294901760, %v1570_v40  ;;  %v15879_v40 = vsub.f32 %v173_v5, %v15864_v39 }
 0x134   :  { %11388 = vmatprep.mubr.f32.mxu1 %v1531_v63  ;;  %12384 = vmatprep.mubr.f32.mxu0 %v1529_v19  ;;  %18898 = vst [vmem:[#allocation263_spill] sm:$0xff] %v15855_v16  ;;  %v1599_v63 = vand.u32 4294901760, %v15846_v35  ;;  %v15862_v19 = vsub.f32 %v170_v34, %v15848_v48  ;;  %18903 = vst [vmem:[#allocation268_spill] sm:$0xff] %v15872_v28  ;;  %v1581_v34 = vand.u32 4294901760, %v1580_v8 }
 0x135   :  { %18897 = vst [vmem:[#allocation262_spill] sm:$0xff] %v15853_v14  ;;  %v1609_v33 = vand.u32 4294901760, %v15853_v14  ;;  %18905 = vst [vmem:[#allocation270_spill] sm:$0xff] %v15879_v40  ;;  %v15887_v8 = vsub.f32 %v174_v50, %v15874_v31  ;;  %v178_v50 = vld [vmem:[#allocation2 + $0x438] sm:$0xff] }
 0x136   :  { %18900 = vst [vmem:[#allocation265_spill] sm:$0xff] %v15862_v19 }
 0x137   :  { %11389 = vmatmul.mubr.f32.gmra.mrb[118].mxu1 %v1541_v51  ;;  %12385 = vmatmul.mubr.f32.gmra.mrb[118].mxu0 %v1539_v60  ;;  %v15869_v51 = vsub.f32 %v171_v26, %v15855_v16  ;;  %v175_v60 = vld [vmem:[#allocation2 + $0x420] sm:$0xff]  ;;  %v1591_v26 = vand.u32 4294901760, %v1590_v52  ;;  %v1610_v15 = vsub.f32 %v15853_v14, %v1609_v33  ;;  %v176_v16 = vld [vmem:[#allocation2 + $0x428] sm:$0xff]  ;;  %18907 = vst [vmem:[#allocation272_spill] sm:$0xff] %v15887_v8  ;;  %v1649_v52 = vand.u32 4294901760, %v15879_v40 }
 0x138   :  { %11391 = vmatprep.mubr.f32.mxu1 %v1551_v49  ;;  %12387 = vmatprep.mubr.f32.mxu0 %v1549_v0  ;;  %v1600_v49 = vsub.f32 %v15846_v35, %v1599_v63  ;;  %v1619_v0 = vand.u32 4294901760, %v15862_v19  ;;  %v15883_v36 = vand.u32 4294901760, %v175_v60 }
 0x139   :  { %18902 = vst [vmem:[#allocation267_spill] sm:$0xff] %v15869_v51  ;;  %v1629_v11 = vand.u32 4294901760, %v15869_v51  ;;  %v1611_v14 = vand.u32 4294901760, %v1610_v15 }
 0x13a   :  { %18906 = vst [vmem:[#allocation271_spill] sm:$0xff] %v15883_v36  ;;  %v1601_v5 = vand.u32 4294901760, %v1600_v49  ;;  %v15895_v39 = vsub.f32 %v175_v60, %v15883_v36  ;;  %v1659_v49 = vand.u32 4294901760, %v15887_v8 }
 0x13b   :  { %11392 = vmatmul.mubr.f32.gmra.mrb[120].mxu1 %v1561_v27  ;;  %12388 = vmatmul.mubr.f32.gmra.mrb[120].mxu0 %v1559_v22  ;;  %v177_v27 = vld [vmem:[#allocation2 + $0x430] sm:$0xff]  ;;  %v1639_v22 = vand.u32 4294901760, %v15872_v28  ;;  %v1630_v35 = vsub.f32 %v15869_v51, %v1629_v11 }
 0x13c   :  { %11394 = vmatprep.mubr.f32.mxu1 %v1571_v21  ;;  %12390 = vmatprep.mubr.f32.mxu0 %v1569_v58  ;;  %v1620_v21 = vsub.f32 %v15862_v19, %v1619_v0  ;;  %v15891_v58 = vand.u32 4294901760, %v176_v16  ;;  %18909 = vst [vmem:[#allocation274_spill] sm:$0xff] %v15895_v39  ;;  %v15897_v48 = vand.u32 4294901760, %v177_v27  ;;  %v1669_v51 = vand.u32 4294901760, %v15895_v39 }
 0x13d   :  { %v1631_v60 = vand.u32 4294901760, %v1630_v35 }
 0x13e   :  { %18908 = vst [vmem:[#allocation273_spill] sm:$0xff] %v15891_v58  ;;  %18910 = vst [vmem:[#allocation275_spill] sm:$0xff] %v15897_v48  ;;  %v1621_v19 = vand.u32 4294901760, %v1620_v21  ;;  %v15903_v15 = vsub.f32 %v176_v16, %v15891_v58  ;;  %v15909_v36 = vsub.f32 %v177_v27, %v15897_v48  ;;  %v1670_v27 = vsub.f32 %v15895_v39, %v1669_v51 }
 0x13f   :  { %11395 = vmatmul.mubr.f32.gmra.mrb[122].mxu1 %v1581_v34  ;;  %12391 = vmatmul.mubr.f32.gmra.mrb[122].mxu0 %v1579_v45  ;;  %v179_v34 = vld [vmem:[#allocation2 + $0x440] sm:$0xff]  ;;  %v1640_v45 = vsub.f32 %v15872_v28, %v1639_v22 }
 0x140   :  { %11397 = vmatprep.mubr.f32.mxu1 %v1591_v26  ;;  %12393 = vmatprep.mubr.f32.mxu0 %v1589_v6  ;;  %v1650_v26 = vsub.f32 %v15879_v40, %v1649_v52  ;;  %18911 = vst [vmem:[#allocation276_spill] sm:$0xff] %v15903_v15  ;;  %v15905_v6 = vand.u32 4294901760, %v178_v50  ;;  %18913 = vst [vmem:[#allocation278_spill] sm:$0xff] %v15909_v36  ;;  %v15911_v28 = vand.u32 4294901760, %v179_v34  ;;  %v1679_v58 = vand.u32 4294901760, %v15903_v15 }
 0x141   :  { %v1641_v21 = vand.u32 4294901760, %v1640_v45  ;;  %v1660_v40 = vsub.f32 %v15887_v8, %v1659_v49  ;;  %v1689_v48 = vand.u32 4294901760, %v15909_v36 }
 0x142   :  { %18912 = vst [vmem:[#allocation277_spill] sm:$0xff] %v15905_v6  ;;  %18914 = vst [vmem:[#allocation279_spill] sm:$0xff] %v15911_v28  ;;  %v1651_v16 = vand.u32 4294901760, %v1650_v26  ;;  %v15923_v45 = vsub.f32 %v179_v34, %v15911_v28  ;;  %v1671_v34 = vand.u32 4294901760, %v1670_v27 }
 0x143   :  { %11398 = vmatmul.mubr.f32.gmra.mrb[124].mxu1 %v1601_v5  ;;  %12394 = vmatmul.mubr.f32.gmra.mrb[124].mxu0 %v1599_v63  ;;  %v180_v5 = vld [vmem:[#allocation2 + $0x448] sm:$0xff]  ;;  %v181_v63 = vld [vmem:[#allocation2 + $0x450] sm:$0xff]  ;;  %v1661_v26 = vand.u32 4294901760, %v1660_v40  ;;  %v1690_v28 = vsub.f32 %v15909_v36, %v1689_v48  ;;  %v186_v36 = vld [vmem:[#allocation2 + $0x478] sm:$0xff] }
 0x144   :  { %11400 = vmatprep.mubr.f32.mxu1 %v1611_v14  ;;  %12396 = vmatprep.mubr.f32.mxu0 %v1609_v33  ;;  %v15916_v14 = vsub.f32 %v178_v50, %v15905_v6  ;;  %v15918_v35 = vand.u32 4294901760, %v180_v5  ;;  %v182_v33 = vld [vmem:[#allocation2 + $0x458] sm:$0xff]  ;;  %18917 = vst [vmem:[#allocation282_spill] sm:$0xff] %v15923_v45  ;;  %v1680_v50 = vsub.f32 %v15903_v15, %v1679_v58  ;;  %v184_v6 = vld [vmem:[#allocation2 + $0x468] sm:$0xff]  ;;  %v1709_v40 = vand.u32 4294901760, %v15923_v45 }
 0x145   :  { %v15927_v8 = vand.u32 4294901760, %v182_v33  ;;  %v15944_v31 = vand.u32 4294901760, %v184_v6 }
 0x146   :  { %18915 = vst [vmem:[#allocation280_spill] sm:$0xff] %v15916_v14  ;;  %18916 = vst [vmem:[#allocation281_spill] sm:$0xff] %v15918_v35 }
 0x147   :  { %11401 = vmatmul.mubr.f32.gmra.mrb[126].mxu1 %v1621_v19  ;;  %12397 = vmatmul.mubr.f32.gmra.mrb[126].mxu0 %v1619_v0  ;;  %v15925_v19 = vand.u32 4294901760, %v181_v63  ;;  %v183_v0 = vld [vmem:[#allocation2 + $0x460] sm:$0xff]  ;;  %18919 = vst [vmem:[#allocation284_spill] sm:$0xff] %v15927_v8  ;;  %v15942_v15 = vsub.f32 %v182_v33, %v15927_v8  ;;  %18924 = vst [vmem:[#allocation289_spill] sm:$0xff] %v15944_v31 }
 0x148   :  { %11403 = vmatprep.mubr.f32.mxu1 %v1631_v60  ;;  %12399 = vmatprep.mubr.f32.mxu0 %v1629_v11  ;;  %v1699_v60 = vand.u32 4294901760, %v15916_v14  ;;  %v15932_v11 = vsub.f32 %v180_v5, %v15918_v35  ;;  %v15934_v39 = vand.u32 4294901760, %v183_v0  ;;  %v1681_v5 = vand.u32 4294901760, %v1680_v50 }
 0x149   :  { %18918 = vst [vmem:[#allocation283_spill] sm:$0xff] %v15925_v19  ;;  %18923 = vst [vmem:[#allocation288_spill] sm:$0xff] %v15942_v15  ;;  %v15957_v50 = vsub.f32 %v184_v6, %v15944_v31  ;;  %v188_v6 = vld [vmem:[#allocation2 + $0x488] sm:$0xff]  ;;  %v189_v31 = vld [vmem:[#allocation2 + $0x490] sm:$0xff] }
 0x14a   :  { %18920 = vst [vmem:[#allocation285_spill] sm:$0xff] %v15932_v11  ;;  %18921 = vst [vmem:[#allocation286_spill] sm:$0xff] %v15934_v39  ;;  %v15949_v27 = vsub.f32 %v183_v0, %v15934_v39 }
 0x14b   :  { %11404 = vmatmul.mubr.f32.gmra.mrb[128].mxu1 %v1641_v21  ;;  %12400 = vmatmul.mubr.f32.gmra.mrb[128].mxu0 %v1639_v22  ;;  %v15939_v21 = vsub.f32 %v181_v63, %v15925_v19  ;;  %v185_v22 = vld [vmem:[#allocation2 + $0x470] sm:$0xff]  ;;  %v1691_v63 = vand.u32 4294901760, %v1690_v28  ;;  %v1710_v19 = vsub.f32 %v15923_v45, %v1709_v40  ;;  %18927 = vst [vmem:[#allocation292_spill] sm:$0xff] %v15957_v50 }
 0x14c   :  { %11406 = vmatprep.mubr.f32.mxu1 %v1651_v16  ;;  %12402 = vmatprep.mubr.f32.mxu0 %v1649_v52  ;;  %v1700_v16 = vsub.f32 %v15916_v14, %v1699_v60  ;;  %v1719_v52 = vand.u32 4294901760, %v15932_v11  ;;  %18925 = vst [vmem:[#allocation290_spill] sm:$0xff] %v15949_v27  ;;  %v15953_v8 = vand.u32 4294901760, %v185_v22  ;;  %v15959_v14 = vand.u32 4294901760, %v186_v36 }
 0x14d   :  { %18922 = vst [vmem:[#allocation287_spill] sm:$0xff] %v15939_v21  ;;  %v1729_v33 = vand.u32 4294901760, %v15939_v21  ;;  %v1749_v28 = vand.u32 4294901760, %v15949_v27 }
 0x14e   :  { %18926 = vst [vmem:[#allocation291_spill] sm:$0xff] %v15953_v8  ;;  %18928 = vst [vmem:[#allocation293_spill] sm:$0xff] %v15959_v14  ;;  %v1701_v0 = vand.u32 4294901760, %v1700_v16  ;;  %v15965_v39 = vsub.f32 %v185_v22, %v15953_v8  ;;  %v15972_v16 = vsub.f32 %v186_v36, %v15959_v14  ;;  %v190_v8 = vld [vmem:[#allocation2 + $0x498] sm:$0xff]  ;;  %v191_v36 = vld [vmem:[#allocation2 + $0x4a0] sm:$0xff] }
 0x14f   :  { %11407 = vmatmul.mubr.f32.gmra.mrb[130].mxu1 %v1661_v26  ;;  %12403 = vmatmul.mubr.f32.gmra.mrb[130].mxu0 %v1659_v49  ;;  %v187_v26 = vld [vmem:[#allocation2 + $0x480] sm:$0xff]  ;;  %v1739_v49 = vand.u32 4294901760, %v15942_v15  ;;  %v1730_v45 = vsub.f32 %v15939_v21, %v1729_v33 }
 0x150   :  { %11409 = vmatprep.mubr.f32.mxu1 %v1671_v34  ;;  %12405 = vmatprep.mubr.f32.mxu0 %v1669_v51  ;;  %v1720_v51 = vsub.f32 %v15932_v11, %v1719_v52  ;;  %v1711_v34 = vand.u32 4294901760, %v1710_v19  ;;  %18929 = vst [vmem:[#allocation294_spill] sm:$0xff] %v15965_v39  ;;  %v15967_v35 = vand.u32 4294901760, %v187_v26  ;;  %18931 = vst [vmem:[#allocation296_spill] sm:$0xff] %v15972_v16  ;;  %v1769_v21 = vand.u32 4294901760, %v15965_v39 }
 0x151   :  { %v1750_v19 = vsub.f32 %v15949_v27, %v1749_v28  ;;  %v1731_v22 = vand.u32 4294901760, %v1730_v45  ;;  %v15988_v45 = vand.u32 4294901760, %v190_v8 }
 0x152   :  { %18930 = vst [vmem:[#allocation295_spill] sm:$0xff] %v15967_v35  ;;  %v15979_v11 = vsub.f32 %v187_v26, %v15967_v35  ;;  %v15992_v26 = vpack.c.bf16 %v14786_v38, %v14784_v37 }
 0x153   :  { %11410 = vmatmul.mubr.f32.gmra.mrb[132].mxu1 %v1681_v5  ;;  %12406 = vmatmul.mubr.f32.gmra.mrb[132].mxu0 %v1679_v58  ;;  %v1740_v5 = vsub.f32 %v15942_v15, %v1739_v49  ;;  %v1759_v58 = vand.u32 4294901760, %v15957_v50  ;;  %v15981_v15 = vand.u32 4294901760, %v189_v31  ;;  %18936 = vst [vmem:[#allocation301_spill] sm:$0xff] %v15988_v45 }
 0x154   :  { %11412 = vmatprep.mubr.f32.mxu1 %v1691_v63  ;;  %12408 = vmatprep.mubr.f32.mxu0 %v1689_v48  ;;  %v1721_v48 = vand.u32 4294901760, %v1720_v51  ;;  %v15975_v63 = vand.u32 4294901760, %v188_v6  ;;  %18933 = vst [vmem:[#allocation298_spill] sm:$0xff] %v15979_v11  ;;  %v1751_v51 = vand.u32 4294901760, %v1750_v19 }
 0x155   :  { %18934 = vst [vmem:[#allocation299_spill] sm:$0xff] %v15981_v15  ;;  %v1741_v14 = vand.u32 4294901760, %v1740_v5  ;;  %v1770_v5 = vsub.f32 %v15965_v39, %v1769_v21  ;;  %13236 = vmatprep.subr.bf16.mxu1 %v15992_v26 }
 0x156   :  { %18932 = vst [vmem:[#allocation297_spill] sm:$0xff] %v15975_v63 }
 0x157   :  { %11413 = vmatmul.mubr.f32.gmra.mrb[134].mxu1 %v1701_v0  ;;  %12409 = vmatmul.mubr.f32.gmra.mrb[134].mxu0 %v1699_v60  ;;  %v1760_v60 = vsub.f32 %v15957_v50, %v1759_v58  ;;  %v1779_v0 = vand.u32 4294901760, %v15972_v16  ;;  %v1789_v50 = vand.u32 4294901760, %v15979_v11  ;;  %v1771_v39 = vand.u32 4294901760, %v1770_v5 }
 0x158   :  { %11415 = vmatprep.mubr.f32.mxu1 %v1711_v34  ;;  %12411 = vmatprep.mubr.f32.mxu0 %v1709_v40  ;;  %v15986_v40 = vsub.f32 %v188_v6, %v15975_v63  ;;  %v192_v34 = vld [vmem:[#allocation2 + $0x4a8] sm:$0xff]  ;;  %v193_v6 = vld [vmem:[#allocation2 + $0x4b0] sm:$0xff] }
 0x159   :  { %v1761_v19 = vand.u32 4294901760, %v1760_v60  ;;  %v16002_v27 = vand.u32 4294901760, %v192_v34  ;;  %v1780_v37 = vsub.f32 %v15972_v16, %v1779_v0 }
 0x15a   :  { %18935 = vst [vmem:[#allocation300_spill] sm:$0xff] %v15986_v40  ;;  %v1799_v38 = vand.u32 4294901760, %v15986_v40 }
 0x15b   :  { %11416 = vmatmul.mubr.f32.gmra.mrb[136].mxu1 %v1721_v48  ;;  %12412 = vmatmul.mubr.f32.gmra.mrb[136].mxu0 %v1719_v52  ;;  %v15997_v48 = vsub.f32 %v189_v31, %v15981_v15  ;;  %v15999_v52 = vand.u32 4294901760, %v191_v36  ;;  %18939 = vst [vmem:[#allocation304_spill] sm:$0xff] %v16002_v27  ;;  %v194_v31 = vld [vmem:[#allocation2 + $0x4b8] sm:$0xff]  ;;  %v1790_v15 = vsub.f32 %v15979_v11, %v1789_v50 }
 0x15c   :  { %11418 = vmatprep.mubr.f32.mxu1 %v1731_v22  ;;  %12414 = vmatprep.mubr.f32.mxu0 %v1729_v33  ;;  %v16007_v33 = vsub.f32 %v190_v8, %v15988_v45  ;;  %v16009_v22 = vand.u32 4294901760, %v193_v6  ;;  %v16017_v16 = vsub.f32 %v192_v34, %v16002_v27  ;;  %v16019_v63 = vand.u32 4294901760, %v194_v31 }
 0x15d   :  { %18937 = vst [vmem:[#allocation302_spill] sm:$0xff] %v15997_v48  ;;  %18938 = vst [vmem:[#allocation303_spill] sm:$0xff] %v15999_v52  ;;  %v1809_v60 = vand.u32 4294901760, %v15997_v48  ;;  %v1781_v8 = vand.u32 4294901760, %v1780_v37 }
 0x15e   :  { %18940 = vst [vmem:[#allocation305_spill] sm:$0xff] %v16007_v33  ;;  %18941 = vst [vmem:[#allocation306_spill] sm:$0xff] %v16009_v22  ;;  %v16024_v5 = vsub.f32 %v193_v6, %v16009_v22  ;;  %v16032_v37 = vsub.f32 %v194_v31, %v16019_v63  ;;  %v198_v31 = vld [vmem:[#allocation2 + $0x4d8] sm:$0xff] }
 0x15f   :  { %11419 = vmatmul.mubr.f32.gmra.mrb[138].mxu1 %v1741_v14  ;;  %12415 = vmatmul.mubr.f32.gmra.mrb[138].mxu0 %v1739_v49  ;;  %v16014_v14 = vsub.f32 %v191_v36, %v15999_v52  ;;  %v195_v49 = vld [vmem:[#allocation2 + $0x4c0] sm:$0xff]  ;;  %18943 = vst [vmem:[#allocation308_spill] sm:$0xff] %v16017_v16  ;;  %18944 = vst [vmem:[#allocation309_spill] sm:$0xff] %v16019_v63  ;;  %v1791_v36 = vand.u32 4294901760, %v1790_v15  ;;  %v1810_v11 = vsub.f32 %v15997_v48, %v1809_v60  ;;  %v196_v52 = vld [vmem:[#allocation2 + $0x4c8] sm:$0xff] }
 0x160   :  { %11421 = vmatprep.mubr.f32.mxu1 %v1751_v51  ;;  %12417 = vmatprep.mubr.f32.mxu0 %v1749_v28  ;;  %v1800_v51 = vsub.f32 %v15986_v40, %v1799_v38  ;;  %v1819_v28 = vand.u32 4294901760, %v16007_v33  ;;  %18945 = vst [vmem:[#allocation310_spill] sm:$0xff] %v16024_v5  ;;  %v16028_v27 = vand.u32 4294901760, %v195_v49  ;;  %18947 = vst [vmem:[#allocation312_spill] sm:$0xff] %v16032_v37  ;;  %v1849_v15 = vand.u32 4294901760, %v16024_v5 }
 0x161   :  { %18942 = vst [vmem:[#allocation307_spill] sm:$0xff] %v16014_v14  ;;  %v1829_v34 = vand.u32 4294901760, %v16014_v14  ;;  %v1811_v48 = vand.u32 4294901760, %v1810_v11 }
 0x162   :  { %18946 = vst [vmem:[#allocation311_spill] sm:$0xff] %v16028_v27  ;;  %v1801_v6 = vand.u32 4294901760, %v1800_v51  ;;  %v16040_v22 = vsub.f32 %v195_v49, %v16028_v27  ;;  %v1859_v51 = vand.u32 4294901760, %v16032_v37 }
 0x163   :  { %11422 = vmatmul.mubr.f32.gmra.mrb[140].mxu1 %v1761_v19  ;;  %12418 = vmatmul.mubr.f32.gmra.mrb[140].mxu0 %v1759_v58  ;;  %v197_v19 = vld [vmem:[#allocation2 + $0x4d0] sm:$0xff]  ;;  %v1839_v58 = vand.u32 4294901760, %v16017_v16  ;;  %v1830_v40 = vsub.f32 %v16014_v14, %v1829_v34 }
 0x164   :  { %11424 = vmatprep.mubr.f32.mxu1 %v1771_v39  ;;  %12420 = vmatprep.mubr.f32.mxu0 %v1769_v21  ;;  %v1820_v39 = vsub.f32 %v16007_v33, %v1819_v28  ;;  %v16036_v21 = vand.u32 4294901760, %v196_v52  ;;  %18949 = vst [vmem:[#allocation314_spill] sm:$0xff] %v16040_v22  ;;  %v16042_v45 = vand.u32 4294901760, %v197_v19  ;;  %v1869_v14 = vand.u32 4294901760, %v16040_v22 }
 0x165   :  { %v1831_v49 = vand.u32 4294901760, %v1830_v40 }
 0x166   :  { %18948 = vst [vmem:[#allocation313_spill] sm:$0xff] %v16036_v21  ;;  %18950 = vst [vmem:[#allocation315_spill] sm:$0xff] %v16042_v45  ;;  %v1821_v33 = vand.u32 4294901760, %v1820_v39  ;;  %v16048_v11 = vsub.f32 %v196_v52, %v16036_v21  ;;  %v16054_v27 = vsub.f32 %v197_v19, %v16042_v45  ;;  %v1870_v19 = vsub.f32 %v16040_v22, %v1869_v14 }
 0x167   :  { %11425 = vmatmul.mubr.f32.gmra.mrb[142].mxu1 %v1781_v8  ;;  %12421 = vmatmul.mubr.f32.gmra.mrb[142].mxu0 %v1779_v0  ;;  %v199_v8 = vld [vmem:[#allocation2 + $0x4e0] sm:$0xff]  ;;  %v1840_v0 = vsub.f32 %v16017_v16, %v1839_v58 }
 0x168   :  { %11427 = vmatprep.mubr.f32.mxu1 %v1791_v36  ;;  %12423 = vmatprep.mubr.f32.mxu0 %v1789_v50  ;;  %v1850_v36 = vsub.f32 %v16024_v5, %v1849_v15  ;;  %18951 = vst [vmem:[#allocation316_spill] sm:$0xff] %v16048_v11  ;;  %v16050_v50 = vand.u32 4294901760, %v198_v31  ;;  %18953 = vst [vmem:[#allocation318_spill] sm:$0xff] %v16054_v27  ;;  %v16056_v16 = vand.u32 4294901760, %v199_v8  ;;  %v1879_v21 = vand.u32 4294901760, %v16048_v11 }
 0x169   :  { %v1841_v39 = vand.u32 4294901760, %v1840_v0  ;;  %v1860_v5 = vsub.f32 %v16032_v37, %v1859_v51  ;;  %v1889_v45 = vand.u32 4294901760, %v16054_v27 }
 0x16a   :  { %18952 = vst [vmem:[#allocation317_spill] sm:$0xff] %v16050_v50  ;;  %18954 = vst [vmem:[#allocation319_spill] sm:$0xff] %v16056_v16  ;;  %v1851_v52 = vand.u32 4294901760, %v1850_v36  ;;  %v16068_v0 = vsub.f32 %v199_v8, %v16056_v16  ;;  %v1871_v8 = vand.u32 4294901760, %v1870_v19 }
 0x16b   :  { %11428 = vmatmul.mubr.f32.gmra.mrb[144].mxu1 %v1801_v6  ;;  %12424 = vmatmul.mubr.f32.gmra.mrb[144].mxu0 %v1799_v38  ;;  %v200_v6 = vld [vmem:[#allocation2 + $0x4e8] sm:$0xff]  ;;  %v201_v38 = vld [vmem:[#allocation2 + $0x4f0] sm:$0xff]  ;;  %v1861_v36 = vand.u32 4294901760, %v1860_v5  ;;  %v1890_v16 = vsub.f32 %v16054_v27, %v1889_v45 }
 0x16c   :  { %11430 = vmatprep.mubr.f32.mxu1 %v1811_v48  ;;  %12426 = vmatprep.mubr.f32.mxu0 %v1809_v60  ;;  %v16061_v48 = vsub.f32 %v198_v31, %v16050_v50  ;;  %v16063_v40 = vand.u32 4294901760, %v200_v6  ;;  %v202_v60 = vld [vmem:[#allocation2 + $0x4f8] sm:$0xff]  ;;  %18957 = vst [vmem:[#allocation322_spill] sm:$0xff] %v16068_v0  ;;  %v1880_v31 = vsub.f32 %v16048_v11, %v1879_v21  ;;  %v204_v50 = vld [vmem:[#allocation2 + $0x508] sm:$0xff]  ;;  %v1909_v5 = vand.u32 4294901760, %v16068_v0 }
 0x16d   :  { %v16072_v37 = vand.u32 4294901760, %v202_v60  ;;  %v16089_v63 = vand.u32 4294901760, %v204_v50 }
 0x16e   :  { %18955 = vst [vmem:[#allocation320_spill] sm:$0xff] %v16061_v48  ;;  %18956 = vst [vmem:[#allocation321_spill] sm:$0xff] %v16063_v40  ;;  %v1910_v27 = vsub.f32 %v16068_v0, %v1909_v5 }
 0x16f   :  { %11431 = vmatmul.mubr.f32.gmra.mrb[146].mxu1 %v1821_v33  ;;  %12427 = vmatmul.mubr.f32.gmra.mrb[146].mxu0 %v1819_v28  ;;  %v16070_v33 = vand.u32 4294901760, %v201_v38  ;;  %v203_v28 = vld [vmem:[#allocation2 + $0x500] sm:$0xff]  ;;  %18959 = vst [vmem:[#allocation324_spill] sm:$0xff] %v16072_v37  ;;  %v16087_v11 = vsub.f32 %v202_v60, %v16072_v37  ;;  %18964 = vst [vmem:[#allocation329_spill] sm:$0xff] %v16089_v63 }
 0x170   :  { %11433 = vmatprep.mubr.f32.mxu1 %v1831_v49  ;;  %12429 = vmatprep.mubr.f32.mxu0 %v1829_v34  ;;  %v1899_v49 = vand.u32 4294901760, %v16061_v48  ;;  %v16077_v34 = vsub.f32 %v200_v6, %v16063_v40  ;;  %v16079_v22 = vand.u32 4294901760, %v203_v28  ;;  %v1881_v6 = vand.u32 4294901760, %v1880_v31 }
 0x171   :  { %18958 = vst [vmem:[#allocation323_spill] sm:$0xff] %v16070_v33  ;;  %18963 = vst [vmem:[#allocation328_spill] sm:$0xff] %v16087_v11  ;;  %v16102_v31 = vsub.f32 %v204_v50, %v16089_v63  ;;  %v1911_v0 = vand.u32 4294901760, %v1910_v27  ;;  %v208_v50 = vld [vmem:[#allocation2 + $0x528] sm:$0xff] }
 0x172   :  { %18960 = vst [vmem:[#allocation325_spill] sm:$0xff] %v16077_v34  ;;  %18961 = vst [vmem:[#allocation326_spill] sm:$0xff] %v16079_v22  ;;  %v16094_v19 = vsub.f32 %v203_v28, %v16079_v22 }
 0x173   :  { %11434 = vmatmul.mubr.f32.gmra.mrb[148].mxu1 %v1841_v39  ;;  %12430 = vmatmul.mubr.f32.gmra.mrb[148].mxu0 %v1839_v58  ;;  %v16084_v39 = vsub.f32 %v201_v38, %v16070_v33  ;;  %v205_v58 = vld [vmem:[#allocation2 + $0x510] sm:$0xff]  ;;  %v1891_v38 = vand.u32 4294901760, %v1890_v16  ;;  %v206_v33 = vld [vmem:[#allocation2 + $0x518] sm:$0xff]  ;;  %18967 = vst [vmem:[#allocation332_spill] sm:$0xff] %v16102_v31 }
 0x174   :  { %11436 = vmatprep.mubr.f32.mxu1 %v1851_v52  ;;  %12432 = vmatprep.mubr.f32.mxu0 %v1849_v15  ;;  %v1900_v52 = vsub.f32 %v16061_v48, %v1899_v49  ;;  %v1919_v15 = vand.u32 4294901760, %v16077_v34  ;;  %18965 = vst [vmem:[#allocation330_spill] sm:$0xff] %v16094_v19  ;;  %v16098_v37 = vand.u32 4294901760, %v205_v58  ;;  %v1949_v16 = vand.u32 4294901760, %v16094_v19 }
 0x175   :  { %18962 = vst [vmem:[#allocation327_spill] sm:$0xff] %v16084_v39  ;;  %v1929_v60 = vand.u32 4294901760, %v16084_v39 }
 0x176   :  { %18966 = vst [vmem:[#allocation331_spill] sm:$0xff] %v16098_v37  ;;  %v1901_v28 = vand.u32 4294901760, %v1900_v52  ;;  %v16110_v22 = vsub.f32 %v205_v58, %v16098_v37  ;;  %v1959_v52 = vand.u32 4294901760, %v16102_v31 }
 0x177   :  { %11437 = vmatmul.mubr.f32.gmra.mrb[150].mxu1 %v1861_v36  ;;  %12433 = vmatmul.mubr.f32.gmra.mrb[150].mxu0 %v1859_v51  ;;  %v207_v36 = vld [vmem:[#allocation2 + $0x520] sm:$0xff]  ;;  %v1939_v51 = vand.u32 4294901760, %v16087_v11  ;;  %v1930_v48 = vsub.f32 %v16084_v39, %v1929_v60 }
 0x178   :  { %11439 = vmatprep.mubr.f32.mxu1 %v1871_v8  ;;  %12435 = vmatprep.mubr.f32.mxu0 %v1869_v14  ;;  %v1920_v8 = vsub.f32 %v16077_v34, %v1919_v15  ;;  %v16106_v14 = vand.u32 4294901760, %v206_v33  ;;  %18969 = vst [vmem:[#allocation334_spill] sm:$0xff] %v16110_v22  ;;  %v16112_v40 = vand.u32 4294901760, %v207_v36  ;;  %v1969_v39 = vand.u32 4294901760, %v16110_v22 }
 0x179   :  { %v1931_v58 = vand.u32 4294901760, %v1930_v48 }
 0x17a   :  { %18968 = vst [vmem:[#allocation333_spill] sm:$0xff] %v16106_v14  ;;  %18970 = vst [vmem:[#allocation335_spill] sm:$0xff] %v16112_v40  ;;  %v1921_v34 = vand.u32 4294901760, %v1920_v8  ;;  %v16118_v27 = vsub.f32 %v206_v33, %v16106_v14  ;;  %v16124_v37 = vsub.f32 %v207_v36, %v16112_v40  ;;  %v1970_v36 = vsub.f32 %v16110_v22, %v1969_v39 }
 0x17b   :  { %11440 = vmatmul.mubr.f32.gmra.mrb[152].mxu1 %v1881_v6  ;;  %12436 = vmatmul.mubr.f32.gmra.mrb[152].mxu0 %v1879_v21  ;;  %v209_v6 = vld [vmem:[#allocation2 + $0x530] sm:$0xff]  ;;  %v1940_v21 = vsub.f32 %v16087_v11, %v1939_v51 }
 0x17c   :  { %11442 = vmatprep.mubr.f32.mxu1 %v1891_v38  ;;  %12438 = vmatprep.mubr.f32.mxu0 %v1889_v45  ;;  %v1950_v38 = vsub.f32 %v16094_v19, %v1949_v16  ;;  %18971 = vst [vmem:[#allocation336_spill] sm:$0xff] %v16118_v27  ;;  %v16120_v45 = vand.u32 4294901760, %v208_v50  ;;  %18973 = vst [vmem:[#allocation338_spill] sm:$0xff] %v16124_v37  ;;  %v16126_v11 = vand.u32 4294901760, %v209_v6  ;;  %v1979_v14 = vand.u32 4294901760, %v16118_v27 }
 0x17d   :  { %v1941_v8 = vand.u32 4294901760, %v1940_v21  ;;  %v1960_v19 = vsub.f32 %v16102_v31, %v1959_v52  ;;  %v1989_v40 = vand.u32 4294901760, %v16124_v37 }
 0x17e   :  { %18972 = vst [vmem:[#allocation337_spill] sm:$0xff] %v16120_v45  ;;  %18974 = vst [vmem:[#allocation339_spill] sm:$0xff] %v16126_v11  ;;  %v1951_v33 = vand.u32 4294901760, %v1950_v38  ;;  %v16138_v21 = vsub.f32 %v209_v6, %v16126_v11  ;;  %v1971_v6 = vand.u32 4294901760, %v1970_v36 }
 0x17f   :  { %11443 = vmatmul.mubr.f32.gmra.mrb[154].mxu1 %v1901_v28  ;;  %12439 = vmatmul.mubr.f32.gmra.mrb[154].mxu0 %v1899_v49  ;;  %v210_v28 = vld [vmem:[#allocation2 + $0x538] sm:$0xff]  ;;  %v211_v49 = vld [vmem:[#allocation2 + $0x540] sm:$0xff]  ;;  %v1961_v38 = vand.u32 4294901760, %v1960_v19  ;;  %v1990_v11 = vsub.f32 %v16124_v37, %v1989_v40 }
 0x180   :  { %11445 = vmatprep.mubr.f32.mxu1 %v1911_v0  ;;  %12441 = vmatprep.mubr.f32.mxu0 %v1909_v5  ;;  %v16131_v0 = vsub.f32 %v208_v50, %v16120_v45  ;;  %v16133_v48 = vand.u32 4294901760, %v210_v28  ;;  %v212_v5 = vld [vmem:[#allocation2 + $0x548] sm:$0xff]  ;;  %18977 = vst [vmem:[#allocation342_spill] sm:$0xff] %v16138_v21  ;;  %v1980_v50 = vsub.f32 %v16118_v27, %v1979_v14  ;;  %v214_v45 = vld [vmem:[#allocation2 + $0x558] sm:$0xff]  ;;  %v2009_v19 = vand.u32 4294901760, %v16138_v21 }
 0x181   :  { %v16142_v31 = vand.u32 4294901760, %v212_v5  ;;  %v16159_v63 = vand.u32 4294901760, %v214_v45 }
 0x182   :  { %18975 = vst [vmem:[#allocation340_spill] sm:$0xff] %v16131_v0  ;;  %18976 = vst [vmem:[#allocation341_spill] sm:$0xff] %v16133_v48  ;;  %v2010_v37 = vsub.f32 %v16138_v21, %v2009_v19 }
 0x183   :  { %11446 = vmatmul.mubr.f32.gmra.mrb[156].mxu1 %v1921_v34  ;;  %12442 = vmatmul.mubr.f32.gmra.mrb[156].mxu0 %v1919_v15  ;;  %v16140_v34 = vand.u32 4294901760, %v211_v49  ;;  %v213_v15 = vld [vmem:[#allocation2 + $0x550] sm:$0xff]  ;;  %18979 = vst [vmem:[#allocation344_spill] sm:$0xff] %v16142_v31  ;;  %v16157_v27 = vsub.f32 %v212_v5, %v16142_v31  ;;  %18984 = vst [vmem:[#allocation349_spill] sm:$0xff] %v16159_v63 }
 0x184   :  { %11448 = vmatprep.mubr.f32.mxu1 %v1931_v58  ;;  %12444 = vmatprep.mubr.f32.mxu0 %v1929_v60  ;;  %v1999_v58 = vand.u32 4294901760, %v16131_v0  ;;  %v16147_v60 = vsub.f32 %v210_v28, %v16133_v48  ;;  %v16149_v22 = vand.u32 4294901760, %v213_v15  ;;  %v1981_v28 = vand.u32 4294901760, %v1980_v50 }
 0x185   :  { %18978 = vst [vmem:[#allocation343_spill] sm:$0xff] %v16140_v34  ;;  %18983 = vst [vmem:[#allocation348_spill] sm:$0xff] %v16157_v27  ;;  %v16172_v50 = vsub.f32 %v214_v45, %v16159_v63  ;;  %v2011_v21 = vand.u32 4294901760, %v2010_v37  ;;  %v218_v45 = vld [vmem:[#allocation2 + $0x578] sm:$0xff] }
 0x186   :  { %18980 = vst [vmem:[#allocation345_spill] sm:$0xff] %v16147_v60  ;;  %18981 = vst [vmem:[#allocation346_spill] sm:$0xff] %v16149_v22  ;;  %v16164_v36 = vsub.f32 %v213_v15, %v16149_v22 }
 0x187   :  { %11449 = vmatmul.mubr.f32.gmra.mrb[158].mxu1 %v1941_v8  ;;  %12445 = vmatmul.mubr.f32.gmra.mrb[158].mxu0 %v1939_v51  ;;  %v16154_v8 = vsub.f32 %v211_v49, %v16140_v34  ;;  %v215_v51 = vld [vmem:[#allocation2 + $0x560] sm:$0xff]  ;;  %v1991_v49 = vand.u32 4294901760, %v1990_v11  ;;  %v216_v34 = vld [vmem:[#allocation2 + $0x568] sm:$0xff]  ;;  %18987 = vst [vmem:[#allocation352_spill] sm:$0xff] %v16172_v50 }
 0x188   :  { %11451 = vmatprep.mubr.f32.mxu1 %v1951_v33  ;;  %12447 = vmatprep.mubr.f32.mxu0 %v1949_v16  ;;  %v2000_v33 = vsub.f32 %v16131_v0, %v1999_v58  ;;  %v2019_v16 = vand.u32 4294901760, %v16147_v60  ;;  %18985 = vst [vmem:[#allocation350_spill] sm:$0xff] %v16164_v36  ;;  %v16168_v31 = vand.u32 4294901760, %v215_v51  ;;  %v2049_v11 = vand.u32 4294901760, %v16164_v36 }
 0x189   :  { %18982 = vst [vmem:[#allocation347_spill] sm:$0xff] %v16154_v8  ;;  %v2029_v5 = vand.u32 4294901760, %v16154_v8 }
 0x18a   :  { %18986 = vst [vmem:[#allocation351_spill] sm:$0xff] %v16168_v31  ;;  %v2001_v15 = vand.u32 4294901760, %v2000_v33  ;;  %v16180_v22 = vsub.f32 %v215_v51, %v16168_v31  ;;  %v2059_v33 = vand.u32 4294901760, %v16172_v50 }
 0x18b   :  { %11452 = vmatmul.mubr.f32.gmra.mrb[160].mxu1 %v1961_v38  ;;  %12448 = vmatmul.mubr.f32.gmra.mrb[160].mxu0 %v1959_v52  ;;  %v217_v38 = vld [vmem:[#allocation2 + $0x570] sm:$0xff]  ;;  %v2039_v52 = vand.u32 4294901760, %v16157_v27  ;;  %v2030_v0 = vsub.f32 %v16154_v8, %v2029_v5 }
 0x18c   :  { %11454 = vmatprep.mubr.f32.mxu1 %v1971_v6  ;;  %12450 = vmatprep.mubr.f32.mxu0 %v1969_v39  ;;  %v2020_v6 = vsub.f32 %v16147_v60, %v2019_v16  ;;  %v16176_v39 = vand.u32 4294901760, %v216_v34  ;;  %18989 = vst [vmem:[#allocation354_spill] sm:$0xff] %v16180_v22  ;;  %v16182_v48 = vand.u32 4294901760, %v217_v38  ;;  %v2069_v8 = vand.u32 4294901760, %v16180_v22 }
 0x18d   :  { %v2031_v51 = vand.u32 4294901760, %v2030_v0 }
 0x18e   :  { %18988 = vst [vmem:[#allocation353_spill] sm:$0xff] %v16176_v39  ;;  %18990 = vst [vmem:[#allocation355_spill] sm:$0xff] %v16182_v48  ;;  %v2021_v60 = vand.u32 4294901760, %v2020_v6  ;;  %v16188_v37 = vsub.f32 %v216_v34, %v16176_v39  ;;  %v16194_v31 = vsub.f32 %v217_v38, %v16182_v48  ;;  %v2070_v38 = vsub.f32 %v16180_v22, %v2069_v8 }
 0x18f   :  { %11455 = vmatmul.mubr.f32.gmra.mrb[162].mxu1 %v1981_v28  ;;  %12451 = vmatmul.mubr.f32.gmra.mrb[162].mxu0 %v1979_v14  ;;  %v219_v28 = vld [vmem:[#allocation2 + $0x580] sm:$0xff]  ;;  %v2040_v14 = vsub.f32 %v16157_v27, %v2039_v52 }
 0x190   :  { %11457 = vmatprep.mubr.f32.mxu1 %v1991_v49  ;;  %12453 = vmatprep.mubr.f32.mxu0 %v1989_v40  ;;  %v2050_v49 = vsub.f32 %v16164_v36, %v2049_v11  ;;  %18991 = vst [vmem:[#allocation356_spill] sm:$0xff] %v16188_v37  ;;  %v16190_v40 = vand.u32 4294901760, %v218_v45  ;;  %18993 = vst [vmem:[#allocation358_spill] sm:$0xff] %v16194_v31  ;;  %v16196_v27 = vand.u32 4294901760, %v219_v28  ;;  %v2079_v39 = vand.u32 4294901760, %v16188_v37 }
 0x191   :  { %v2041_v6 = vand.u32 4294901760, %v2040_v14  ;;  %v2060_v36 = vsub.f32 %v16172_v50, %v2059_v33  ;;  %v2089_v48 = vand.u32 4294901760, %v16194_v31 }
 0x192   :  { %18992 = vst [vmem:[#allocation357_spill] sm:$0xff] %v16190_v40  ;;  %18994 = vst [vmem:[#allocation359_spill] sm:$0xff] %v16196_v27  ;;  %v2051_v34 = vand.u32 4294901760, %v2050_v49  ;;  %v16208_v14 = vsub.f32 %v219_v28, %v16196_v27  ;;  %v2071_v28 = vand.u32 4294901760, %v2070_v38 }
 0x193   :  { %11458 = vmatmul.mubr.f32.gmra.mrb[164].mxu1 %v2001_v15  ;;  %12454 = vmatmul.mubr.f32.gmra.mrb[164].mxu0 %v1999_v58  ;;  %v220_v15 = vld [vmem:[#allocation2 + $0x588] sm:$0xff]  ;;  %v221_v58 = vld [vmem:[#allocation2 + $0x590] sm:$0xff]  ;;  %v2061_v49 = vand.u32 4294901760, %v2060_v36  ;;  %v2090_v27 = vsub.f32 %v16194_v31, %v2089_v48 }
 0x194   :  { %11460 = vmatprep.mubr.f32.mxu1 %v2011_v21  ;;  %12456 = vmatprep.mubr.f32.mxu0 %v2009_v19  ;;  %v16201_v21 = vsub.f32 %v218_v45, %v16190_v40  ;;  %v16203_v0 = vand.u32 4294901760, %v220_v15  ;;  %v222_v19 = vld [vmem:[#allocation2 + $0x598] sm:$0xff]  ;;  %18997 = vst [vmem:[#allocation362_spill] sm:$0xff] %v16208_v14  ;;  %v2080_v45 = vsub.f32 %v16188_v37, %v2079_v39  ;;  %v224_v40 = vld [vmem:[#allocation2 + $0x5a8] sm:$0xff]  ;;  %v2109_v36 = vand.u32 4294901760, %v16208_v14 }
 0x195   :  { %v16212_v50 = vand.u32 4294901760, %v222_v19  ;;  %v16229_v63 = vand.u32 4294901760, %v224_v40 }
 0x196   :  { %18995 = vst [vmem:[#allocation360_spill] sm:$0xff] %v16201_v21  ;;  %18996 = vst [vmem:[#allocation361_spill] sm:$0xff] %v16203_v0  ;;  %v2110_v31 = vsub.f32 %v16208_v14, %v2109_v36 }
 0x197   :  { %11461 = vmatmul.mubr.f32.gmra.mrb[166].mxu1 %v2021_v60  ;;  %12457 = vmatmul.mubr.f32.gmra.mrb[166].mxu0 %v2019_v16  ;;  %v16210_v60 = vand.u32 4294901760, %v221_v58  ;;  %v223_v16 = vld [vmem:[#allocation2 + $0x5a0] sm:$0xff]  ;;  %18999 = vst [vmem:[#allocation364_spill] sm:$0xff] %v16212_v50  ;;  %v16227_v37 = vsub.f32 %v222_v19, %v16212_v50  ;;  %19004 = vst [vmem:[#allocation369_spill] sm:$0xff] %v16229_v63 }
 0x198   :  { %11463 = vmatprep.mubr.f32.mxu1 %v2031_v51  ;;  %12459 = vmatprep.mubr.f32.mxu0 %v2029_v5  ;;  %v2099_v51 = vand.u32 4294901760, %v16201_v21  ;;  %v16217_v5 = vsub.f32 %v220_v15, %v16203_v0  ;;  %v16219_v22 = vand.u32 4294901760, %v223_v16  ;;  %v2081_v15 = vand.u32 4294901760, %v2080_v45 }
 0x199   :  { %18998 = vst [vmem:[#allocation363_spill] sm:$0xff] %v16210_v60  ;;  %19003 = vst [vmem:[#allocation368_spill] sm:$0xff] %v16227_v37  ;;  %v16242_v45 = vsub.f32 %v224_v40, %v16229_v63  ;;  %v2111_v14 = vand.u32 4294901760, %v2110_v31  ;;  %v228_v40 = vld [vmem:[#allocation2 + $0x5c8] sm:$0xff] }
 0x19a   :  { %19000 = vst [vmem:[#allocation365_spill] sm:$0xff] %v16217_v5  ;;  %19001 = vst [vmem:[#allocation366_spill] sm:$0xff] %v16219_v22  ;;  %v16234_v38 = vsub.f32 %v223_v16, %v16219_v22 }
 0x19b   :  { %11464 = vmatmul.mubr.f32.gmra.mrb[168].mxu1 %v2041_v6  ;;  %12460 = vmatmul.mubr.f32.gmra.mrb[168].mxu0 %v2039_v52  ;;  %v16224_v6 = vsub.f32 %v221_v58, %v16210_v60  ;;  %v225_v52 = vld [vmem:[#allocation2 + $0x5b0] sm:$0xff]  ;;  %v2091_v58 = vand.u32 4294901760, %v2090_v27  ;;  %v226_v60 = vld [vmem:[#allocation2 + $0x5b8] sm:$0xff]  ;;  %19007 = vst [vmem:[#allocation372_spill] sm:$0xff] %v16242_v45 }
 0x19c   :  { %11466 = vmatprep.mubr.f32.mxu1 %v2051_v34  ;;  %12462 = vmatprep.mubr.f32.mxu0 %v2049_v11  ;;  %v2100_v34 = vsub.f32 %v16201_v21, %v2099_v51  ;;  %v2119_v11 = vand.u32 4294901760, %v16217_v5  ;;  %19005 = vst [vmem:[#allocation370_spill] sm:$0xff] %v16234_v38  ;;  %v16238_v50 = vand.u32 4294901760, %v225_v52  ;;  %v2149_v27 = vand.u32 4294901760, %v16234_v38 }
 0x19d   :  { %19002 = vst [vmem:[#allocation367_spill] sm:$0xff] %v16224_v6  ;;  %v2129_v19 = vand.u32 4294901760, %v16224_v6 }
 0x19e   :  { %19006 = vst [vmem:[#allocation371_spill] sm:$0xff] %v16238_v50  ;;  %v2101_v16 = vand.u32 4294901760, %v2100_v34  ;;  %v16250_v22 = vsub.f32 %v225_v52, %v16238_v50  ;;  %v2159_v34 = vand.u32 4294901760, %v16242_v45 }
 0x19f   :  { %11467 = vmatmul.mubr.f32.gmra.mrb[170].mxu1 %v2061_v49  ;;  %12463 = vmatmul.mubr.f32.gmra.mrb[170].mxu0 %v2059_v33  ;;  %v227_v49 = vld [vmem:[#allocation2 + $0x5c0] sm:$0xff]  ;;  %v2139_v33 = vand.u32 4294901760, %v16227_v37  ;;  %v2130_v21 = vsub.f32 %v16224_v6, %v2129_v19 }
 0x1a0   :  { %11469 = vmatprep.mubr.f32.mxu1 %v2071_v28  ;;  %12465 = vmatprep.mubr.f32.mxu0 %v2069_v8  ;;  %v2120_v28 = vsub.f32 %v16217_v5, %v2119_v11  ;;  %v16246_v8 = vand.u32 4294901760, %v226_v60  ;;  %19009 = vst [vmem:[#allocation374_spill] sm:$0xff] %v16250_v22  ;;  %v16252_v0 = vand.u32 4294901760, %v227_v49  ;;  %v2169_v6 = vand.u32 4294901760, %v16250_v22 }
 0x1a1   :  { %v2131_v52 = vand.u32 4294901760, %v2130_v21 }
 0x1a2   :  { %19008 = vst [vmem:[#allocation373_spill] sm:$0xff] %v16246_v8  ;;  %19010 = vst [vmem:[#allocation375_spill] sm:$0xff] %v16252_v0  ;;  %v2121_v5 = vand.u32 4294901760, %v2120_v28  ;;  %v16258_v31 = vsub.f32 %v226_v60, %v16246_v8  ;;  %v16264_v50 = vsub.f32 %v227_v49, %v16252_v0  ;;  %v2170_v49 = vsub.f32 %v16250_v22, %v2169_v6 }
 0x1a3   :  { %11470 = vmatmul.mubr.f32.gmra.mrb[172].mxu1 %v2081_v15  ;;  %12466 = vmatmul.mubr.f32.gmra.mrb[172].mxu0 %v2079_v39  ;;  %v229_v15 = vld [vmem:[#allocation2 + $0x5d0] sm:$0xff]  ;;  %v2140_v39 = vsub.f32 %v16227_v37, %v2139_v33 }
 0x1a4   :  { %11472 = vmatprep.mubr.f32.mxu1 %v2091_v58  ;;  %12468 = vmatprep.mubr.f32.mxu0 %v2089_v48  ;;  %v2150_v58 = vsub.f32 %v16234_v38, %v2149_v27  ;;  %19011 = vst [vmem:[#allocation376_spill] sm:$0xff] %v16258_v31  ;;  %v16260_v48 = vand.u32 4294901760, %v228_v40  ;;  %19013 = vst [vmem:[#allocation378_spill] sm:$0xff] %v16264_v50  ;;  %v16266_v37 = vand.u32 4294901760, %v229_v15  ;;  %v2179_v8 = vand.u32 4294901760, %v16258_v31 }
 0x1a5   :  { %v2141_v28 = vand.u32 4294901760, %v2140_v39  ;;  %v2160_v38 = vsub.f32 %v16242_v45, %v2159_v34  ;;  %v2189_v0 = vand.u32 4294901760, %v16264_v50 }
 0x1a6   :  { %19012 = vst [vmem:[#allocation377_spill] sm:$0xff] %v16260_v48  ;;  %19014 = vst [vmem:[#allocation379_spill] sm:$0xff] %v16266_v37  ;;  %v2151_v60 = vand.u32 4294901760, %v2150_v58  ;;  %v16278_v39 = vsub.f32 %v229_v15, %v16266_v37  ;;  %v2171_v15 = vand.u32 4294901760, %v2170_v49 }
 0x1a7   :  { %11473 = vmatmul.mubr.f32.gmra.mrb[174].mxu1 %v2101_v16  ;;  %12469 = vmatmul.mubr.f32.gmra.mrb[174].mxu0 %v2099_v51  ;;  %v230_v16 = vld [vmem:[#allocation2 + $0x5d8] sm:$0xff]  ;;  %v231_v51 = vld [vmem:[#allocation2 + $0x5e0] sm:$0xff]  ;;  %v2161_v58 = vand.u32 4294901760, %v2160_v38  ;;  %v2190_v37 = vsub.f32 %v16264_v50, %v2189_v0 }
 0x1a8   :  { %11475 = vmatprep.mubr.f32.mxu1 %v2111_v14  ;;  %12471 = vmatprep.mubr.f32.mxu0 %v2109_v36  ;;  %v16271_v14 = vsub.f32 %v228_v40, %v16260_v48  ;;  %v16273_v21 = vand.u32 4294901760, %v230_v16  ;;  %v232_v36 = vld [vmem:[#allocation2 + $0x5e8] sm:$0xff]  ;;  %19017 = vst [vmem:[#allocation382_spill] sm:$0xff] %v16278_v39  ;;  %v2180_v40 = vsub.f32 %v16258_v31, %v2179_v8  ;;  %v234_v48 = vld [vmem:[#allocation2 + $0x5f8] sm:$0xff]  ;;  %v2209_v38 = vand.u32 4294901760, %v16278_v39 }
 0x1a9   :  { %v16282_v45 = vand.u32 4294901760, %v232_v36  ;;  %v16299_v63 = vand.u32 4294901760, %v234_v48 }
 0x1aa   :  { %19015 = vst [vmem:[#allocation380_spill] sm:$0xff] %v16271_v14  ;;  %19016 = vst [vmem:[#allocation381_spill] sm:$0xff] %v16273_v21  ;;  %v2210_v50 = vsub.f32 %v16278_v39, %v2209_v38 }
 0x1ab   :  { %11476 = vmatmul.mubr.f32.gmra.mrb[176].mxu1 %v2121_v5  ;;  %12472 = vmatmul.mubr.f32.gmra.mrb[176].mxu0 %v2119_v11  ;;  %v16280_v5 = vand.u32 4294901760, %v231_v51  ;;  %v233_v11 = vld [vmem:[#allocation2 + $0x5f0] sm:$0xff]  ;;  %19019 = vst [vmem:[#allocation384_spill] sm:$0xff] %v16282_v45  ;;  %v16297_v31 = vsub.f32 %v232_v36, %v16282_v45 }
 0x1ac   :  { %11478 = vmatprep.mubr.f32.mxu1 %v2131_v52  ;;  %12474 = vmatprep.mubr.f32.mxu0 %v2129_v19  ;;  %v2199_v52 = vand.u32 4294901760, %v16271_v14  ;;  %v16287_v19 = vsub.f32 %v230_v16, %v16273_v21  ;;  %v16289_v22 = vand.u32 4294901760, %v233_v11  ;;  %v2181_v16 = vand.u32 4294901760, %v2180_v40 }
 0x1ad   :  { %19018 = vst [vmem:[#allocation383_spill] sm:$0xff] %v16280_v5  ;;  %19023 = vst [vmem:[#allocation388_spill] sm:$0xff] %v16297_v31  ;;  %v16312_v40 = vsub.f32 %v234_v48, %v16299_v63  ;;  %v2211_v39 = vand.u32 4294901760, %v2210_v50  ;;  %v238_v48 = vld [vmem:[#allocation2 + $0x618] sm:$0xff] }
 0x1ae   :  { %19020 = vst [vmem:[#allocation385_spill] sm:$0xff] %v16287_v19  ;;  %19021 = vst [vmem:[#allocation386_spill] sm:$0xff] %v16289_v22  ;;  %v16304_v49 = vsub.f32 %v233_v11, %v16289_v22 }
 0x1af   :  { %11479 = vmatmul.mubr.f32.gmra.mrb[178].mxu1 %v2141_v28  ;;  %12475 = vmatmul.mubr.f32.gmra.mrb[178].mxu0 %v2139_v33  ;;  %v16294_v28 = vsub.f32 %v231_v51, %v16280_v5  ;;  %v235_v33 = vld [vmem:[#allocation2 + $0x600] sm:$0xff]  ;;  %v2191_v51 = vand.u32 4294901760, %v2190_v37  ;;  %v236_v5 = vld [vmem:[#allocation2 + $0x608] sm:$0xff]  ;;  %19026 = vst [vmem:[#allocation391_spill] sm:$0xff] %v16312_v40 }
 0x1b0   :  { %11481 = vmatprep.mubr.f32.mxu1 %v2151_v60  ;;  %12477 = vmatprep.mubr.f32.mxu0 %v2149_v27  ;;  %v2200_v60 = vsub.f32 %v16271_v14, %v2199_v52  ;;  %v2219_v27 = vand.u32 4294901760, %v16287_v19  ;;  %19024 = vst [vmem:[#allocation389_spill] sm:$0xff] %v16304_v49  ;;  %v16308_v45 = vand.u32 4294901760, %v235_v33  ;;  %v2249_v37 = vand.u32 4294901760, %v16304_v49 }
 0x1b1   :  { %19022 = vst [vmem:[#allocation387_spill] sm:$0xff] %v16294_v28  ;;  %v2229_v36 = vand.u32 4294901760, %v16294_v28 }
 0x1b2   :  { %19025 = vst [vmem:[#allocation390_spill] sm:$0xff] %v16308_v45  ;;  %v2201_v11 = vand.u32 4294901760, %v2200_v60  ;;  %v16320_v22 = vsub.f32 %v235_v33, %v16308_v45  ;;  %v2259_v60 = vand.u32 4294901760, %v16312_v40 }
 0x1b3   :  { %11482 = vmatmul.mubr.f32.gmra.mrb[180].mxu1 %v2161_v58  ;;  %12478 = vmatmul.mubr.f32.gmra.mrb[180].mxu0 %v2159_v34  ;;  %v237_v58 = vld [vmem:[#allocation2 + $0x610] sm:$0xff]  ;;  %v2239_v34 = vand.u32 4294901760, %v16297_v31  ;;  %v2230_v14 = vsub.f32 %v16294_v28, %v2229_v36 }
 0x1b4   :  { %11484 = vmatprep.mubr.f32.mxu1 %v2171_v15  ;;  %12480 = vmatprep.mubr.f32.mxu0 %v2169_v6  ;;  %v2220_v15 = vsub.f32 %v16287_v19, %v2219_v27  ;;  %v16316_v6 = vand.u32 4294901760, %v236_v5  ;;  %19028 = vst [vmem:[#allocation393_spill] sm:$0xff] %v16320_v22  ;;  %v16322_v21 = vand.u32 4294901760, %v237_v58  ;;  %v2269_v28 = vand.u32 4294901760, %v16320_v22 }
 0x1b5   :  { %v2231_v33 = vand.u32 4294901760, %v2230_v14 }
 0x1b6   :  { %19027 = vst [vmem:[#allocation392_spill] sm:$0xff] %v16316_v6  ;;  %19029 = vst [vmem:[#allocation394_spill] sm:$0xff] %v16322_v21  ;;  %v2221_v19 = vand.u32 4294901760, %v2220_v15  ;;  %v16328_v50 = vsub.f32 %v236_v5, %v16316_v6  ;;  %v16334_v45 = vsub.f32 %v237_v58, %v16322_v21 }
 0x1b7   :  { %11485 = vmatmul.mubr.f32.gmra.mrb[182].mxu1 %v2181_v16  ;;  %12481 = vmatmul.mubr.f32.gmra.mrb[182].mxu0 %v2179_v8  ;;  %v239_v16 = vld [vmem:[#allocation2 + $0x620] sm:$0xff]  ;;  %v2240_v8 = vsub.f32 %v16297_v31, %v2239_v34 }
 0x1b8   :  { %11487 = vmatprep.mubr.f32.mxu1 %v2191_v51  ;;  %12483 = vmatprep.mubr.f32.mxu0 %v2189_v0  ;;  %v2250_v51 = vsub.f32 %v16304_v49, %v2249_v37  ;;  %19030 = vst [vmem:[#allocation395_spill] sm:$0xff] %v16328_v50  ;;  %v16330_v0 = vand.u32 4294901760, %v238_v48  ;;  %19032 = vst [vmem:[#allocation397_spill] sm:$0xff] %v16334_v45  ;;  %v16336_v31 = vand.u32 4294901760, %v239_v16  ;;  %v2279_v6 = vand.u32 4294901760, %v16328_v50 }
 0x1b9   :  { %v2241_v15 = vand.u32 4294901760, %v2240_v8  ;;  %v2260_v49 = vsub.f32 %v16312_v40, %v2259_v60  ;;  %v2289_v58 = vand.u32 4294901760, %v16334_v45 }
 0x1ba   :  { %19031 = vst [vmem:[#allocation396_spill] sm:$0xff] %v16330_v0  ;;  %19033 = vst [vmem:[#allocation398_spill] sm:$0xff] %v16336_v31  ;;  %v2251_v5 = vand.u32 4294901760, %v2250_v51  ;;  %v16348_v8 = vsub.f32 %v239_v16, %v16336_v31 }
 0x1bb   :  { %11488 = vmatmul.mubr.f32.gmra.mrb[184].mxu1 %v2201_v11  ;;  %12484 = vmatmul.mubr.f32.gmra.mrb[184].mxu0 %v2199_v52  ;;  %v240_v11 = vld [vmem:[#allocation2 + $0x628] sm:$0xff]  ;;  %v241_v52 = vld [vmem:[#allocation2 + $0x630] sm:$0xff]  ;;  %v2290_v16 = vsub.f32 %v16334_v45, %v2289_v58  ;;  %v19082_v45 = vld [vmem:[#allocation96_spill] sm:$0xff] }
 0x1bc   :  { %11490 = vmatprep.mubr.f32.mxu1 %v2211_v39  ;;  %12486 = vmatprep.mubr.f32.mxu0 %v2209_v38  ;;  %v16341_v39 = vsub.f32 %v238_v48, %v16330_v0  ;;  %v16343_v14 = vand.u32 4294901760, %v240_v11  ;;  %v2270_v38 = vsub.f32 %v16320_v22, %v2269_v28  ;;  %19036 = vst [vmem:[#allocation401_spill] sm:$0xff] %v16348_v8  ;;  %v16350_v40 = vand.u32 4294901760, %v241_v52 }
 0x1bd   :  { %v2280_v48 = vsub.f32 %v16328_v50, %v2279_v6  ;;  %v2309_v31 = vand.u32 4294901760, %v16348_v8 }
 0x1be   :  { %19034 = vst [vmem:[#allocation399_spill] sm:$0xff] %v16341_v39  ;;  %19035 = vst [vmem:[#allocation400_spill] sm:$0xff] %v16343_v14  ;;  %v2299_v51 = vand.u32 4294901760, %v16341_v39  ;;  %v2271_v22 = vand.u32 4294901760, %v2270_v38 }
 0x1bf   :  { %11491 = vmatmul.mubr.f32.gmra.mrb[186].mxu1 %v2221_v19  ;;  %12487 = vmatmul.mubr.f32.gmra.mrb[186].mxu0 %v2219_v27  ;;  %19037 = vst [vmem:[#allocation402_spill] sm:$0xff] %v16350_v40  ;;  %v242_v19 = vld [vmem:[#allocation2 + $0x638] sm:$0xff]  ;;  %v2261_v27 = vand.u32 4294901760, %v2260_v49  ;;  %v16362_v49 = vsub.f32 %v241_v52, %v16350_v40 }
 0x1c0   :  { %11493 = vmatprep.mubr.f32.mxu1 %v2231_v33  ;;  %12489 = vmatprep.mubr.f32.mxu0 %v2229_v36  ;;  %v16355_v33 = vsub.f32 %v240_v11, %v16343_v14  ;;  %v16357_v36 = vand.u32 4294901760, %v242_v19 }
 0x1c1   :  { %19040 = vst [vmem:[#allocation405_spill] sm:$0xff] %v16362_v49  ;;  %v2329_v38 = vand.u32 4294901760, %v16362_v49 }
 0x1c2   :  { %19038 = vst [vmem:[#allocation403_spill] sm:$0xff] %v16355_v33  ;;  %19039 = vst [vmem:[#allocation404_spill] sm:$0xff] %v16357_v36  ;;  %v2319_v11 = vand.u32 4294901760, %v16355_v33  ;;  %v16367_v50 = vsub.f32 %v242_v19, %v16357_v36 }
 0x1c3   :  { %11494 = vmatmul.mubr.f32.gmra.mrb[188].mxu1 %v2241_v15  ;;  %12490 = vmatmul.mubr.f32.gmra.mrb[188].mxu0 %v2239_v34  ;;  %v2281_v34 = vand.u32 4294901760, %v2280_v48  ;;  %v2300_v15 = vsub.f32 %v16341_v39, %v2299_v51  ;;  %v2330_v19 = vsub.f32 %v16362_v49, %v2329_v38  ;;  %v19075_v49 = vld [vmem:[#allocation81_spill] sm:$0xff]  ;;  %v19078_v39 = vld [vmem:[#allocation87_spill] sm:$0xff] }
 0x1c4   :  { %11496 = vmatprep.mubr.f32.mxu1 %v2251_v5  ;;  %12492 = vmatprep.mubr.f32.mxu0 %v2249_v37  ;;  %19041 = vst [vmem:[#allocation406_spill] sm:$0xff] %v16367_v50  ;;  %v2291_v37 = vand.u32 4294901760, %v2290_v16  ;;  %v2310_v5 = vsub.f32 %v16348_v8, %v2309_v31  ;;  %v19077_v8 = vld [vmem:[#allocation85_spill] sm:$0xff] }
 0x1c5   :  { %v2301_v52 = vand.u32 4294901760, %v2300_v15  ;;  %v2331_v16 = vand.u32 4294901760, %v2330_v19  ;;  %v19054_v15 = vld [vmem:[#allocation40_spill] sm:$0xff]  ;;  %v19063_v19 = vld [vmem:[#allocation59_spill] sm:$0xff] }
 0x1c6   :  { %v2311_v48 = vand.u32 4294901760, %v2310_v5  ;;  %v19057_v5 = vld [vmem:[#allocation47_spill] sm:$0xff] }
 0x1c7   :  { %11497 = vmatmul.mubr.f32.gmra.mrb[190].mxu1 %v2261_v27  ;;  %12493 = vmatmul.mubr.f32.gmra.mrb[190].mxu0 %v2259_v60  ;;  %v2320_v60 = vsub.f32 %v16355_v33, %v2319_v11  ;;  %v2339_v27 = vand.u32 4294901760, %v16367_v50  ;;  %v19076_v33 = vld [vmem:[#allocation84_spill] sm:$0xff] }
 0x1c8   :  { %11499 = vmatprep.mubr.f32.mxu1 %v2271_v22  ;;  %12495 = vmatprep.mubr.f32.mxu0 %v2269_v28 }
 0x1c9   :  { %v2321_v22 = vand.u32 4294901760, %v2320_v60  ;;  %v2340_v28 = vsub.f32 %v16367_v50, %v2339_v27  ;;  %v19060_v60 = vld [vmem:[#allocation51_spill] sm:$0xff]  ;;  %v19074_v50 = vld [vmem:[#allocation80_spill] sm:$0xff] }
 0x1cb   :  { %11500 = vmatmul.mubr.f32.gmra.mrb[192].mxu1 %v2281_v34  ;;  %12496 = vmatmul.mubr.f32.gmra.mrb[192].mxu0 %v2279_v6  ;;  %v2341_v6 = vand.u32 4294901760, %v2340_v28  ;;  %v19053_v34 = vld [vmem:[#allocation38_spill] sm:$0xff] }
 0x1cc   :  { %11502 = vmatprep.mubr.f32.mxu1 %v2291_v37  ;;  %12498 = vmatprep.mubr.f32.mxu0 %v2289_v58  ;;  %v13239_v58 = vpack.c.bf16 %v14917_v57, %v14909_v12  ;;  %v19044_v12 = vld [vmem:[#allocation24_spill] sm:$0xff]  ;;  %v19046_v57 = vld [vmem:[#allocation26_spill] sm:$0xff]  ;;  %v19056_v37 = vld [vmem:[#allocation43_spill] sm:$0xff] }
 0x1cd   :  { %v19065_v28 = vld [vmem:[#allocation62_spill] sm:$0xff] }
 0x1cf   :  { %11503 = vmatmul.mubr.f32.gmra.mrb[194].mxu1 %v2301_v52  ;;  %12499 = vmatmul.mubr.f32.gmra.mrb[194].mxu0 %v2299_v51  ;;  %v19052_v51 = vld [vmem:[#allocation36_spill] sm:$0xff]  ;;  %v19059_v52 = vld [vmem:[#allocation49_spill] sm:$0xff] }
 0x1d0   :  { %11505 = vmatprep.mubr.f32.mxu1 %v2311_v48  ;;  %12501 = vmatprep.mubr.f32.mxu0 %v2309_v31  ;;  %v13243_v31 = vpack.c.bf16 %v15070_v59, %v15065_v32  ;;  %v19047_v32 = vld [vmem:[#allocation27_spill] sm:$0xff]  ;;  %v19048_v59 = vld [vmem:[#allocation16_spill] sm:$0xff]  ;;  %v19062_v48 = vld [vmem:[#allocation54_spill] sm:$0xff] }
 0x1d3   :  { %11506 = vmatmul.mubr.f32.gmra.mrb[196].mxu1 %v2321_v22  ;;  %12502 = vmatmul.mubr.f32.gmra.mrb[196].mxu0 %v2319_v11  ;;  %v19055_v11 = vld [vmem:[#allocation41_spill] sm:$0xff]  ;;  %v19064_v22 = vld [vmem:[#allocation60_spill] sm:$0xff] }
 0x1d4   :  { %11508 = vmatprep.mubr.f32.mxu1 %v2331_v16  ;;  %12504 = vmatprep.mubr.f32.mxu0 %v2329_v38  ;;  %v19058_v38 = vld [vmem:[#allocation48_spill] sm:$0xff] }
 0x1d5   :  { %v19066_v16 = vld [vmem:[#allocation64_spill] sm:$0xff] }
 0x1d7   :  { %11509 = vmatmul.mubr.f32.gmra.mrb[198].mxu1 %v2341_v6  ;;  %12505 = vmatmul.mubr.f32.gmra.mrb[198].mxu0 %v2339_v27  ;;  %v19061_v27 = vld [vmem:[#allocation53_spill] sm:$0xff] }
 0x1d8   :  { %11543 = vmatprep.mubr.f32.mxu1 %v14733_v17  ;;  %12539 = vmatprep.mubr.f32.mxu0 %v14733_v17  ;;  %v19067_v6 = vld [vmem:[#allocation65_spill] sm:$0xff] }
 0x1db   :  { %11544 = vmatmul.mubr.f32.vlgmr.msra.gmra.mrb[0].mxu1 %v14790_v41  ;;  %12540 = vmatmul.mubr.f32.vlgmr.msra.gmra.mrb[0].mxu0 %v14790_v41 }
 0x1dc   :  { %13238 = vmatpush3.bf16.msra.mxu1 %v15992_v26  ;;  %11546 = vmatprep.mubr.f32.mxu1 %v14795_v43  ;;  %v19049_v26 = vld [vmem:[#allocation32_spill] sm:$0xff] }
 0x1dd   :  { %12542 = vmatprep.mubr.f32.mxu0 %v14795_v43  ;;  %13334 = vmatpush3.bf16.msra.mxu0 %v14715_v10  ;;  %v19042_v10 = vld [vmem:[#allocation12_spill] sm:$0xff] }
 0x1de   :  { %13240 = vmatprep.subr.bf16.mxu1 %v13239_v58  ;;  %13336 = vmatprep.subr.bf16.mxu0 %v14723_v13 }
 0x1df   :  { %11547 = vmatmul.mubr.f32.gmra.mrb[2].mxu1 %v14815_v53  ;;  %12543 = vmatmul.mubr.f32.gmra.mrb[2].mxu0 %v14815_v53 }
 0x1e0   :  { %11549 = vmatprep.mubr.f32.mxu1 %v14823_v56  ;;  %12545 = vmatprep.mubr.f32.mxu0 %v14823_v56 }
 0x1e1   :  { %13242 = vmatpush3.bf16.msra.mxu1 %v13239_v58  ;;  %13338 = vmatpush3.bf16.msra.mxu0 %v14723_v13  ;;  %v19043_v13 = vld [vmem:[#allocation23_spill] sm:$0xff] }
 0x1e2   :  { %13244 = vmatprep.subr.bf16.mxu1 %v13243_v31  ;;  %13340 = vmatprep.subr.bf16.mxu0 %v14741_v18  ;;  %v19068_v58 = vld [vmem:[#allocation67_spill] sm:$0xff] }
 0x1e3   :  { %11550 = vmatmul.mubr.f32.gmra.mrb[4].mxu1 %v14840_v1  ;;  %12546 = vmatmul.mubr.f32.gmra.mrb[4].mxu0 %v14840_v1 }
 0x1e4   :  { %11552 = vmatprep.mubr.f32.mxu1 %v14848_v24  ;;  %12548 = vmatprep.mubr.f32.mxu0 %v14848_v24 }
 0x1e5   :  { %13246 = vmatpush3.bf16.msra.mxu1 %v13243_v31  ;;  %13342 = vmatpush3.bf16.msra.mxu0 %v14741_v18  ;;  %v19045_v18 = vld [vmem:[#allocation13_spill] sm:$0xff]  ;;  %v19069_v31 = vld [vmem:[#allocation70_spill] sm:$0xff] }
 0x1e6   :  { %13344 = vmatprep.subr.bf16.mxu0 %v14761_v25 }
 0x1e7   :  { %11553 = vmatmul.mubr.f32.gmra.mrb[6].mxu1 %v14859_v46  ;;  %12549 = vmatmul.mubr.f32.gmra.mrb[6].mxu0 %v14859_v46 }
 0x1e8   :  { %11555 = vmatprep.mubr.f32.mxu1 %v14872_v61  ;;  %12551 = vmatprep.mubr.f32.mxu0 %v14872_v61 }
 0x1e9   :  { %13346 = vmatpush3.bf16.msra.mxu0 %v14761_v25  ;;  %v13247_v25 = vpack.c.bf16 %v15199_v44, %v15194_v54  ;;  %v19050_v54 = vld [vmem:[#allocation19_spill] sm:$0xff]  ;;  %v19051_v44 = vld [vmem:[#allocation34_spill] sm:$0xff] }
 0x1ea   :  { %13348 = vmatprep.subr.bf16.mxu0 %v19042_v10 }
 0x1eb   :  { %11556 = vmatmul.mubr.f32.gmra.mrb[8].mxu1 %v19043_v13  ;;  %12552 = vmatmul.mubr.f32.gmra.mrb[8].mxu0 %v19043_v13 }
 0x1ec   :  { %11558 = vmatprep.mubr.f32.mxu1 %v19044_v12  ;;  %12554 = vmatprep.mubr.f32.mxu0 %v19044_v12 }
 0x1ed   :  { %13350 = vmatpush3.bf16.msra.mxu0 %v19042_v10  ;;  %13248 = vmatprep.subr.bf16.mxu1 %v13247_v25  ;;  %v19070_v10 = vld [vmem:[#allocation72_spill] sm:$0xff] }
 0x1ee   :  { %13352 = vmatprep.subr.bf16.mxu0 %v19045_v18  ;;  %13250 = vmatpush3.bf16.msra.mxu1 %v13247_v25  ;;  %v19072_v25 = vld [vmem:[#allocation76_spill] sm:$0xff] }
 0x1ef   :  { %11559 = vmatmul.mubr.f32.gmra.mrb[10].mxu1 %v19046_v57  ;;  %12555 = vmatmul.mubr.f32.gmra.mrb[10].mxu0 %v19046_v57 }
 0x1f0   :  { %11561 = vmatprep.mubr.f32.mxu1 %v19047_v32  ;;  %12557 = vmatprep.mubr.f32.mxu0 %v19047_v32 }
 0x1f1   :  { %13354 = vmatpush3.bf16.msra.mxu0 %v19045_v18  ;;  %v19071_v18 = vld [vmem:[#allocation75_spill] sm:$0xff] }
 0x1f2   :  { %13356 = vmatprep.subr.bf16.mxu0 %v19048_v59 }
 0x1f3   :  { %11562 = vmatmul.mubr.f32.gmra.mrb[12].mxu1 %v14925_v2  ;;  %12558 = vmatmul.mubr.f32.gmra.mrb[12].mxu0 %v14925_v2 }
 0x1f4   :  { %11564 = vmatprep.mubr.f32.mxu1 %v19049_v26  ;;  %12560 = vmatprep.mubr.f32.mxu0 %v19049_v26 }
 0x1f5   :  { %13358 = vmatpush3.bf16.msra.mxu0 %v19048_v59  ;;  %v19073_v59 = vld [vmem:[#allocation78_spill] sm:$0xff] }
 0x1f6   :  { %13360 = vmatprep.subr.bf16.mxu0 %v19050_v54 }
 0x1f7   :  { %11565 = vmatmul.mubr.f32.gmra.mrb[14].mxu1 %v19051_v44  ;;  %12561 = vmatmul.mubr.f32.gmra.mrb[14].mxu0 %v19051_v44 }
 0x1f8   :  { %11567 = vmatprep.mubr.f32.mxu1 %v19052_v51  ;;  %12563 = vmatprep.mubr.f32.mxu0 %v19052_v51 }
 0x1f9   :  { %13362 = vmatpush3.bf16.msra.mxu0 %v19050_v54  ;;  %v13251_v54 = vpack.c.bf16 %v15346_v23, %v15325_v20  ;;  %v19079_v20 = vld [vmem:[#allocation90_spill] sm:$0xff]  ;;  %v19080_v23 = vld [vmem:[#allocation92_spill] sm:$0xff] }
 0x1fb   :  { %11568 = vmatmul.mubr.f32.gmra.mrb[16].mxu1 %v19053_v34  ;;  %12564 = vmatmul.mubr.f32.gmra.mrb[16].mxu0 %v19053_v34 }
 0x1fc   :  { %11570 = vmatprep.mubr.f32.mxu1 %v19054_v15  ;;  %12566 = vmatprep.mubr.f32.mxu0 %v19054_v15 }
 0x1fd   :  { %13252 = vmatprep.subr.bf16.mxu1 %v13251_v54 }
 0x1fe   :  { %13254 = vmatpush3.bf16.msra.mxu1 %v13251_v54  ;;  %v19081_v54 = vld [vmem:[#allocation94_spill] sm:$0xff] }
 0x1ff   :  { %11571 = vmatmul.mubr.f32.gmra.mrb[18].mxu1 %v19055_v11  ;;  %12567 = vmatmul.mubr.f32.gmra.mrb[18].mxu0 %v19055_v11 }
 0x200   :  { %11573 = vmatprep.mubr.f32.mxu1 %v19056_v37  ;;  %12569 = vmatprep.mubr.f32.mxu0 %v19056_v37 }
 0x203   :  { %11574 = vmatmul.mubr.f32.gmra.mrb[20].mxu1 %v19057_v5  ;;  %12570 = vmatmul.mubr.f32.gmra.mrb[20].mxu0 %v19057_v5 }
 0x204   :  { %11576 = vmatprep.mubr.f32.mxu1 %v19058_v38  ;;  %12572 = vmatprep.mubr.f32.mxu0 %v19058_v38 }
 0x207   :  { %11577 = vmatmul.mubr.f32.gmra.mrb[22].mxu1 %v19059_v52  ;;  %12573 = vmatmul.mubr.f32.gmra.mrb[22].mxu0 %v19059_v52 }
 0x208   :  { %11579 = vmatprep.mubr.f32.mxu1 %v19060_v60  ;;  %12575 = vmatprep.mubr.f32.mxu0 %v19060_v60 }
 0x20b   :  { %11580 = vmatmul.mubr.f32.gmra.mrb[24].mxu1 %v19061_v27  ;;  %12576 = vmatmul.mubr.f32.gmra.mrb[24].mxu0 %v19061_v27 }
 0x20c   :  { %11582 = vmatprep.mubr.f32.mxu1 %v19062_v48  ;;  %12578 = vmatprep.mubr.f32.mxu0 %v19062_v48 }
 0x20f   :  { %11583 = vmatmul.mubr.f32.gmra.mrb[26].mxu1 %v19063_v19  ;;  %12579 = vmatmul.mubr.f32.gmra.mrb[26].mxu0 %v19063_v19 }
 0x210   :  { %11585 = vmatprep.mubr.f32.mxu1 %v19064_v22  ;;  %12581 = vmatprep.mubr.f32.mxu0 %v19064_v22 }
 0x213   :  { %11586 = vmatmul.mubr.f32.gmra.mrb[28].mxu1 %v19065_v28  ;;  %12582 = vmatmul.mubr.f32.gmra.mrb[28].mxu0 %v19065_v28 }
 0x214   :  { %11588 = vmatprep.mubr.f32.mxu1 %v19066_v16  ;;  %12584 = vmatprep.mubr.f32.mxu0 %v19066_v16 }
 0x217   :  { %11589 = vmatmul.mubr.f32.gmra.mrb[30].mxu1 %v19067_v6  ;;  %12585 = vmatmul.mubr.f32.gmra.mrb[30].mxu0 %v19067_v6 }
 0x218   :  { %11591 = vmatprep.mubr.f32.mxu1 %v19068_v58  ;;  %12587 = vmatprep.mubr.f32.mxu0 %v19068_v58 }
 0x21b   :  { %11592 = vmatmul.mubr.f32.gmra.mrb[32].mxu1 %v19069_v31  ;;  %12588 = vmatmul.mubr.f32.gmra.mrb[32].mxu0 %v19069_v31 }
 0x21c   :  { %11594 = vmatprep.mubr.f32.mxu1 %v19070_v10  ;;  %12590 = vmatprep.mubr.f32.mxu0 %v19070_v10 }
 0x21f   :  { %11595 = vmatmul.mubr.f32.gmra.mrb[34].mxu1 %v19071_v18  ;;  %12591 = vmatmul.mubr.f32.gmra.mrb[34].mxu0 %v19071_v18 }
 0x220   :  { %11597 = vmatprep.mubr.f32.mxu1 %v19072_v25  ;;  %12593 = vmatprep.mubr.f32.mxu0 %v19072_v25 }
 0x223   :  { %11598 = vmatmul.mubr.f32.gmra.mrb[36].mxu1 %v19073_v59  ;;  %12594 = vmatmul.mubr.f32.gmra.mrb[36].mxu0 %v19073_v59 }
 0x224   :  { %11600 = vmatprep.mubr.f32.mxu1 %v19074_v50  ;;  %12596 = vmatprep.mubr.f32.mxu0 %v19074_v50 }
 0x227   :  { %11601 = vmatmul.mubr.f32.gmra.mrb[38].mxu1 %v19075_v49  ;;  %12597 = vmatmul.mubr.f32.gmra.mrb[38].mxu0 %v19075_v49 }
 0x228   :  { %11603 = vmatprep.mubr.f32.mxu1 %v19076_v33  ;;  %12599 = vmatprep.mubr.f32.mxu0 %v19076_v33 }
 0x22b   :  { %11604 = vmatmul.mubr.f32.gmra.mrb[40].mxu1 %v19077_v8  ;;  %12600 = vmatmul.mubr.f32.gmra.mrb[40].mxu0 %v19077_v8  ;;  %v19083_v8 = vld [vmem:[#allocation97_spill] sm:$0xff] }
 0x22c   :  { %11606 = vmatprep.mubr.f32.mxu1 %v19078_v39  ;;  %12602 = vmatprep.mubr.f32.mxu0 %v19078_v39  ;;  %v19084_v39 = vld [vmem:[#allocation100_spill] sm:$0xff] }
 0x22f   :  { %11607 = vmatmul.mubr.f32.gmra.mrb[42].mxu1 %v19079_v20  ;;  %12603 = vmatmul.mubr.f32.gmra.mrb[42].mxu0 %v19079_v20  ;;  %v19085_v20 = vld [vmem:[#allocation102_spill] sm:$0xff] }
 0x230   :  { %11609 = vmatprep.mubr.f32.mxu1 %v19080_v23  ;;  %12605 = vmatprep.mubr.f32.mxu0 %v19080_v23  ;;  %v19086_v23 = vld [vmem:[#allocation103_spill] sm:$0xff] }
 0x233   :  { %11610 = vmatmul.mubr.f32.gmra.mrb[44].mxu1 %v19081_v54  ;;  %12606 = vmatmul.mubr.f32.gmra.mrb[44].mxu0 %v19081_v54  ;;  %v19087_v54 = vld [vmem:[#allocation105_spill] sm:$0xff] }
 0x234   :  { %11612 = vmatprep.mubr.f32.mxu1 %v19082_v45  ;;  %12608 = vmatprep.mubr.f32.mxu0 %v19082_v45  ;;  %v19088_v45 = vld [vmem:[#allocation108_spill] sm:$0xff] }
 0x237   :  { %11613 = vmatmul.mubr.f32.gmra.mrb[46].mxu1 %v19083_v8  ;;  %12609 = vmatmul.mubr.f32.gmra.mrb[46].mxu0 %v19083_v8  ;;  %v19089_v8 = vld [vmem:[#allocation110_spill] sm:$0xff] }
 0x238   :  { %11615 = vmatprep.mubr.f32.mxu1 %v19084_v39  ;;  %12611 = vmatprep.mubr.f32.mxu0 %v19084_v39  ;;  %v19090_v39 = vld [vmem:[#allocation112_spill] sm:$0xff] }
 0x23b   :  { %11616 = vmatmul.mubr.f32.gmra.mrb[48].mxu1 %v19085_v20  ;;  %12612 = vmatmul.mubr.f32.gmra.mrb[48].mxu0 %v19085_v20  ;;  %v19091_v20 = vld [vmem:[#allocation113_spill] sm:$0xff] }
 0x23c   :  { %11618 = vmatprep.mubr.f32.mxu1 %v19086_v23  ;;  %12614 = vmatprep.mubr.f32.mxu0 %v19086_v23  ;;  %v19092_v23 = vld [vmem:[#allocation116_spill] sm:$0xff] }
 0x23f   :  { %11619 = vmatmul.mubr.f32.gmra.mrb[50].mxu1 %v19087_v54  ;;  %12615 = vmatmul.mubr.f32.gmra.mrb[50].mxu0 %v19087_v54  ;;  %v19093_v54 = vld [vmem:[#allocation118_spill] sm:$0xff] }
 0x240   :  { %11621 = vmatprep.mubr.f32.mxu1 %v19088_v45  ;;  %12617 = vmatprep.mubr.f32.mxu0 %v19088_v45  ;;  %v19094_v45 = vld [vmem:[#allocation120_spill] sm:$0xff] }
 0x243   :  { %11622 = vmatmul.mubr.f32.gmra.mrb[52].mxu1 %v19089_v8  ;;  %12618 = vmatmul.mubr.f32.gmra.mrb[52].mxu0 %v19089_v8  ;;  %v19095_v8 = vld [vmem:[#allocation122_spill] sm:$0xff] }
 0x244   :  { %11624 = vmatprep.mubr.f32.mxu1 %v19090_v39  ;;  %12620 = vmatprep.mubr.f32.mxu0 %v19090_v39  ;;  %v19096_v39 = vld [vmem:[#allocation123_spill] sm:$0xff] }
 0x247   :  { %11625 = vmatmul.mubr.f32.gmra.mrb[54].mxu1 %v19091_v20  ;;  %12621 = vmatmul.mubr.f32.gmra.mrb[54].mxu0 %v19091_v20  ;;  %v19097_v20 = vld [vmem:[#allocation125_spill] sm:$0xff] }
 0x248   :  { %11627 = vmatprep.mubr.f32.mxu1 %v19092_v23  ;;  %12623 = vmatprep.mubr.f32.mxu0 %v19092_v23  ;;  %v13255_v23 = vpack.c.bf16 %v15468_v7, %v15464_v42  ;;  %v19102_v7 = vld [vmem:[#allocation138_spill] sm:$0xff]  ;;  %v19103_v42 = vld [vmem:[#allocation140_spill] sm:$0xff] }
 0x24a   :  { %13256 = vmatprep.subr.bf16.mxu1 %v13255_v23 }
 0x24b   :  { %11628 = vmatmul.mubr.f32.gmra.mrb[56].mxu1 %v19093_v54  ;;  %12624 = vmatmul.mubr.f32.gmra.mrb[56].mxu0 %v19093_v54  ;;  %v19098_v54 = vld [vmem:[#allocation128_spill] sm:$0xff] }
 0x24c   :  { %11630 = vmatprep.mubr.f32.mxu1 %v19094_v45  ;;  %12626 = vmatprep.mubr.f32.mxu0 %v19094_v45  ;;  %v19099_v45 = vld [vmem:[#allocation130_spill] sm:$0xff] }
 0x24d   :  { %13258 = vmatpush3.bf16.msra.mxu1 %v13255_v23  ;;  %v19104_v23 = vld [vmem:[#allocation142_spill] sm:$0xff] }
 0x24f   :  { %11631 = vmatmul.mubr.f32.gmra.mrb[58].mxu1 %v19095_v8  ;;  %12627 = vmatmul.mubr.f32.gmra.mrb[58].mxu0 %v19095_v8  ;;  %v19100_v8 = vld [vmem:[#allocation131_spill] sm:$0xff] }
 0x250   :  { %11633 = vmatprep.mubr.f32.mxu1 %v19096_v39  ;;  %12629 = vmatprep.mubr.f32.mxu0 %v19096_v39  ;;  %v19101_v39 = vld [vmem:[#allocation134_spill] sm:$0xff] }
 0x253   :  { %11634 = vmatmul.mubr.f32.gmra.mrb[60].mxu1 %v19097_v20  ;;  %12630 = vmatmul.mubr.f32.gmra.mrb[60].mxu0 %v19097_v20 }
 0x254   :  { %11636 = vmatprep.mubr.f32.mxu1 %v19098_v54  ;;  %12632 = vmatprep.mubr.f32.mxu0 %v19098_v54 }
 0x257   :  { %11637 = vmatmul.mubr.f32.gmra.mrb[62].mxu1 %v19099_v45  ;;  %12633 = vmatmul.mubr.f32.gmra.mrb[62].mxu0 %v19099_v45 }
 0x258   :  { %11639 = vmatprep.mubr.f32.mxu1 %v19100_v8  ;;  %12635 = vmatprep.mubr.f32.mxu0 %v19100_v8  ;;  %v19105_v8 = vld [vmem:[#allocation144_spill] sm:$0xff] }
 0x25b   :  { %11640 = vmatmul.mubr.f32.gmra.mrb[64].mxu1 %v19101_v39  ;;  %12636 = vmatmul.mubr.f32.gmra.mrb[64].mxu0 %v19101_v39  ;;  %v19106_v39 = vld [vmem:[#allocation146_spill] sm:$0xff] }
 0x25c   :  { %11642 = vmatprep.mubr.f32.mxu1 %v15354_v62  ;;  %12638 = vmatprep.mubr.f32.mxu0 %v15354_v62  ;;  %v19107_v62 = vld [vmem:[#allocation147_spill] sm:$0xff] }
 0x25f   :  { %11643 = vmatmul.mubr.f32.gmra.mrb[66].mxu1 %v19102_v7  ;;  %12639 = vmatmul.mubr.f32.gmra.mrb[66].mxu0 %v19102_v7  ;;  %v19108_v7 = vld [vmem:[#allocation149_spill] sm:$0xff] }
 0x260   :  { %11645 = vmatprep.mubr.f32.mxu1 %v19103_v42  ;;  %12641 = vmatprep.mubr.f32.mxu0 %v19103_v42  ;;  %v19109_v42 = vld [vmem:[#allocation150_spill] sm:$0xff] }
 0x263   :  { %11646 = vmatmul.mubr.f32.gmra.mrb[68].mxu1 %v19104_v23  ;;  %12642 = vmatmul.mubr.f32.gmra.mrb[68].mxu0 %v19104_v23  ;;  %v19110_v23 = vld [vmem:[#allocation155_spill] sm:$0xff] }
 0x264   :  { %11648 = vmatprep.mubr.f32.mxu1 %v19105_v8  ;;  %12644 = vmatprep.mubr.f32.mxu0 %v19105_v8  ;;  %v19111_v8 = vld [vmem:[#allocation156_spill] sm:$0xff] }
 0x267   :  { %11649 = vmatmul.mubr.f32.gmra.mrb[70].mxu1 %v19106_v39  ;;  %12645 = vmatmul.mubr.f32.gmra.mrb[70].mxu0 %v19106_v39  ;;  %v19112_v39 = vld [vmem:[#allocation158_spill] sm:$0xff] }
 0x268   :  { %11651 = vmatprep.mubr.f32.mxu1 %v19107_v62  ;;  %12647 = vmatprep.mubr.f32.mxu0 %v19107_v62  ;;  %v19113_v62 = vld [vmem:[#allocation160_spill] sm:$0xff] }
 0x26b   :  { %11652 = vmatmul.mubr.f32.gmra.mrb[72].mxu1 %v19108_v7  ;;  %12648 = vmatmul.mubr.f32.gmra.mrb[72].mxu0 %v19108_v7  ;;  %v19114_v7 = vld [vmem:[#allocation162_spill] sm:$0xff] }
 0x26c   :  { %11654 = vmatprep.mubr.f32.mxu1 %v19109_v42  ;;  %12650 = vmatprep.mubr.f32.mxu0 %v19109_v42  ;;  %v19115_v42 = vld [vmem:[#allocation164_spill] sm:$0xff] }
 0x26f   :  { %11655 = vmatmul.mubr.f32.gmra.mrb[74].mxu1 %v19110_v23  ;;  %12651 = vmatmul.mubr.f32.gmra.mrb[74].mxu0 %v19110_v23  ;;  %v19116_v23 = vld [vmem:[#allocation165_spill] sm:$0xff] }
 0x270   :  { %11657 = vmatprep.mubr.f32.mxu1 %v19111_v8  ;;  %12653 = vmatprep.mubr.f32.mxu0 %v19111_v8  ;;  %v19117_v8 = vld [vmem:[#allocation167_spill] sm:$0xff] }
 0x273   :  { %11658 = vmatmul.mubr.f32.gmra.mrb[76].mxu1 %v19112_v39  ;;  %12654 = vmatmul.mubr.f32.gmra.mrb[76].mxu0 %v19112_v39  ;;  %v19118_v39 = vld [vmem:[#allocation170_spill] sm:$0xff] }
 0x274   :  { %11660 = vmatprep.mubr.f32.mxu1 %v19113_v62  ;;  %12656 = vmatprep.mubr.f32.mxu0 %v19113_v62  ;;  %v19119_v62 = vld [vmem:[#allocation172_spill] sm:$0xff] }
 0x277   :  { %11661 = vmatmul.mubr.f32.gmra.mrb[78].mxu1 %v19114_v7  ;;  %12657 = vmatmul.mubr.f32.gmra.mrb[78].mxu0 %v19114_v7  ;;  %v19120_v7 = vld [vmem:[#allocation174_spill] sm:$0xff] }
 0x278   :  { %11663 = vmatprep.mubr.f32.mxu1 %v19115_v42  ;;  %12659 = vmatprep.mubr.f32.mxu0 %v19115_v42  ;;  %v19121_v42 = vld [vmem:[#allocation176_spill] sm:$0xff] }
 0x27b   :  { %11664 = vmatmul.mubr.f32.gmra.mrb[80].mxu1 %v19116_v23  ;;  %12660 = vmatmul.mubr.f32.gmra.mrb[80].mxu0 %v19116_v23  ;;  %v19122_v23 = vld [vmem:[#allocation178_spill] sm:$0xff] }
 0x27c   :  { %11666 = vmatprep.mubr.f32.mxu1 %v19117_v8  ;;  %12662 = vmatprep.mubr.f32.mxu0 %v19117_v8  ;;  %v19123_v8 = vld [vmem:[#allocation199_spill] sm:$0xff] }
 0x27d   :  { %v13259_v45 = vpack.c.bf16 %v15610_v55, %v19123_v8  ;;  %v19129_v55 = vld [vmem:[#allocation190_spill] sm:$0xff]  ;;  %v19131_v8 = vld [vmem:[#allocation195_spill] sm:$0xff] }
 0x27f   :  { %11667 = vmatmul.mubr.f32.gmra.mrb[82].mxu1 %v19118_v39  ;;  %12663 = vmatmul.mubr.f32.gmra.mrb[82].mxu0 %v19118_v39  ;;  %v19124_v39 = vld [vmem:[#allocation180_spill] sm:$0xff] }
 0x280   :  { %11669 = vmatprep.mubr.f32.mxu1 %v19119_v62  ;;  %12665 = vmatprep.mubr.f32.mxu0 %v19119_v62  ;;  %v19125_v62 = vld [vmem:[#allocation182_spill] sm:$0xff] }
 0x281   :  { %13260 = vmatprep.subr.bf16.mxu1 %v13259_v45 }
 0x282   :  { %13262 = vmatpush3.bf16.msra.mxu1 %v13259_v45  ;;  %v19130_v45 = vld [vmem:[#allocation191_spill] sm:$0xff] }
 0x283   :  { %11670 = vmatmul.mubr.f32.gmra.mrb[84].mxu1 %v19120_v7  ;;  %12666 = vmatmul.mubr.f32.gmra.mrb[84].mxu0 %v19120_v7  ;;  %v19126_v7 = vld [vmem:[#allocation184_spill] sm:$0xff] }
 0x284   :  { %11672 = vmatprep.mubr.f32.mxu1 %v19121_v42  ;;  %12668 = vmatprep.mubr.f32.mxu0 %v19121_v42  ;;  %v19127_v42 = vld [vmem:[#allocation185_spill] sm:$0xff] }
 0x287   :  { %11673 = vmatmul.mubr.f32.gmra.mrb[86].mxu1 %v19122_v23  ;;  %12669 = vmatmul.mubr.f32.gmra.mrb[86].mxu0 %v19122_v23  ;;  %v19128_v23 = vld [vmem:[#allocation187_spill] sm:$0xff] }
 0x288   :  { %11675 = vmatprep.mubr.f32.mxu1 %v19124_v39  ;;  %12671 = vmatprep.mubr.f32.mxu0 %v19124_v39 }
 0x28b   :  { %11676 = vmatmul.mubr.f32.gmra.mrb[88].mxu1 %v19125_v62  ;;  %12672 = vmatmul.mubr.f32.gmra.mrb[88].mxu0 %v19125_v62 }
 0x28c   :  { %11678 = vmatprep.mubr.f32.mxu1 %v19126_v7  ;;  %12674 = vmatprep.mubr.f32.mxu0 %v19126_v7  ;;  %v19132_v7 = vld [vmem:[#allocation196_spill] sm:$0xff] }
 0x28f   :  { %11679 = vmatmul.mubr.f32.gmra.mrb[90].mxu1 %v19127_v42  ;;  %12675 = vmatmul.mubr.f32.gmra.mrb[90].mxu0 %v19127_v42  ;;  %v19133_v42 = vld [vmem:[#allocation197_spill] sm:$0xff] }
 0x290   :  { %11681 = vmatprep.mubr.f32.mxu1 %v19128_v23  ;;  %12677 = vmatprep.mubr.f32.mxu0 %v19128_v23  ;;  %v19134_v23 = vld [vmem:[#allocation201_spill] sm:$0xff] }
 0x293   :  { %11682 = vmatmul.mubr.f32.gmra.mrb[92].mxu1 %v19129_v55  ;;  %12678 = vmatmul.mubr.f32.gmra.mrb[92].mxu0 %v19129_v55  ;;  %v19148_v55 = vld [vmem:[#allocation250_spill] sm:$0xff] }
 0x294   :  { %11684 = vmatprep.mubr.f32.mxu1 %v19130_v45  ;;  %12680 = vmatprep.mubr.f32.mxu0 %v19130_v45  ;;  %v19135_v45 = vld [vmem:[#allocation204_spill] sm:$0xff] }
 0x297   :  { %11685 = vmatmul.mubr.f32.gmra.mrb[94].mxu1 %v19131_v8  ;;  %12681 = vmatmul.mubr.f32.gmra.mrb[94].mxu0 %v19131_v8  ;;  %v19136_v8 = vld [vmem:[#allocation208_spill] sm:$0xff] }
 0x298   :  { %11687 = vmatprep.mubr.f32.mxu1 %v19132_v7  ;;  %12683 = vmatprep.mubr.f32.mxu0 %v19132_v7  ;;  %v19137_v7 = vld [vmem:[#allocation209_spill] sm:$0xff] }
 0x29b   :  { %11688 = vmatmul.mubr.f32.gmra.mrb[96].mxu1 %v19133_v42  ;;  %12684 = vmatmul.mubr.f32.gmra.mrb[96].mxu0 %v19133_v42  ;;  %v19138_v42 = vld [vmem:[#allocation211_spill] sm:$0xff] }
 0x29c   :  { %11690 = vmatprep.mubr.f32.mxu1 %v19134_v23  ;;  %12686 = vmatprep.mubr.f32.mxu0 %v19134_v23  ;;  %v19139_v23 = vld [vmem:[#allocation213_spill] sm:$0xff] }
 0x29f   :  { %11691 = vmatmul.mubr.f32.gmra.mrb[98].mxu1 %v15622_v9  ;;  %12687 = vmatmul.mubr.f32.gmra.mrb[98].mxu0 %v15622_v9  ;;  %v19140_v9 = vld [vmem:[#allocation214_spill] sm:$0xff] }
 0x2a0   :  { %11693 = vmatprep.mubr.f32.mxu1 %v19135_v45  ;;  %12689 = vmatprep.mubr.f32.mxu0 %v19135_v45  ;;  %v19141_v45 = vld [vmem:[#allocation217_spill] sm:$0xff] }
 0x2a3   :  { %11694 = vmatmul.mubr.f32.gmra.mrb[100].mxu1 %v19136_v8  ;;  %12690 = vmatmul.mubr.f32.gmra.mrb[100].mxu0 %v19136_v8  ;;  %v19142_v8 = vld [vmem:[#allocation219_spill] sm:$0xff] }
 0x2a4   :  { %11696 = vmatprep.mubr.f32.mxu1 %v19137_v7  ;;  %12692 = vmatprep.mubr.f32.mxu0 %v19137_v7  ;;  %v19143_v7 = vld [vmem:[#allocation221_spill] sm:$0xff] }
 0x2a7   :  { %11697 = vmatmul.mubr.f32.gmra.mrb[102].mxu1 %v19138_v42  ;;  %12693 = vmatmul.mubr.f32.gmra.mrb[102].mxu0 %v19138_v42  ;;  %v19144_v42 = vld [vmem:[#allocation223_spill] sm:$0xff] }
 0x2a8   :  { %11699 = vmatprep.mubr.f32.mxu1 %v19139_v23  ;;  %12695 = vmatprep.mubr.f32.mxu0 %v19139_v23  ;;  %v19145_v23 = vld [vmem:[#allocation224_spill] sm:$0xff] }
 0x2ab   :  { %11700 = vmatmul.mubr.f32.gmra.mrb[104].mxu1 %v19140_v9  ;;  %12696 = vmatmul.mubr.f32.gmra.mrb[104].mxu0 %v19140_v9  ;;  %v19146_v9 = vld [vmem:[#allocation228_spill] sm:$0xff] }
 0x2ac   :  { %11702 = vmatprep.mubr.f32.mxu1 %v19141_v45  ;;  %12698 = vmatprep.mubr.f32.mxu0 %v19141_v45  ;;  %v19147_v45 = vld [vmem:[#allocation249_spill] sm:$0xff] }
 0x2ad   :  { %v13263_v62 = vpack.c.bf16 %v19148_v55, %v19147_v45  ;;  %v19154_v55 = vld [vmem:[#allocation239_spill] sm:$0xff] }
 0x2ae   :  { %v19156_v45 = vld [vmem:[#allocation243_spill] sm:$0xff] }
 0x2af   :  { %11703 = vmatmul.mubr.f32.gmra.mrb[106].mxu1 %v19142_v8  ;;  %12699 = vmatmul.mubr.f32.gmra.mrb[106].mxu0 %v19142_v8  ;;  %v19149_v8 = vld [vmem:[#allocation229_spill] sm:$0xff] }
 0x2b0   :  { %11705 = vmatprep.mubr.f32.mxu1 %v19143_v7  ;;  %12701 = vmatprep.mubr.f32.mxu0 %v19143_v7  ;;  %v19150_v7 = vld [vmem:[#allocation231_spill] sm:$0xff] }
 0x2b1   :  { %13264 = vmatprep.subr.bf16.mxu1 %v13263_v62 }
 0x2b2   :  { %13266 = vmatpush3.bf16.msra.mxu1 %v13263_v62  ;;  %v19155_v62 = vld [vmem:[#allocation241_spill] sm:$0xff] }
 0x2b3   :  { %11706 = vmatmul.mubr.f32.gmra.mrb[108].mxu1 %v19144_v42  ;;  %12702 = vmatmul.mubr.f32.gmra.mrb[108].mxu0 %v19144_v42  ;;  %v19151_v42 = vld [vmem:[#allocation233_spill] sm:$0xff] }
 0x2b4   :  { %11708 = vmatprep.mubr.f32.mxu1 %v19145_v23  ;;  %12704 = vmatprep.mubr.f32.mxu0 %v19145_v23  ;;  %v19152_v23 = vld [vmem:[#allocation234_spill] sm:$0xff] }
 0x2b7   :  { %11709 = vmatmul.mubr.f32.gmra.mrb[110].mxu1 %v19146_v9  ;;  %12705 = vmatmul.mubr.f32.gmra.mrb[110].mxu0 %v19146_v9  ;;  %v19153_v9 = vld [vmem:[#allocation237_spill] sm:$0xff] }
 0x2b8   :  { %11711 = vmatprep.mubr.f32.mxu1 %v19149_v8  ;;  %12707 = vmatprep.mubr.f32.mxu0 %v19149_v8 }
 0x2bb   :  { %11712 = vmatmul.mubr.f32.gmra.mrb[112].mxu1 %v19150_v7  ;;  %12708 = vmatmul.mubr.f32.gmra.mrb[112].mxu0 %v19150_v7 }
 0x2bc   :  { %11714 = vmatprep.mubr.f32.mxu1 %v19151_v42  ;;  %12710 = vmatprep.mubr.f32.mxu0 %v19151_v42  ;;  %v19157_v42 = vld [vmem:[#allocation244_spill] sm:$0xff] }
 0x2bf   :  { %11715 = vmatmul.mubr.f32.gmra.mrb[114].mxu1 %v19152_v23  ;;  %12711 = vmatmul.mubr.f32.gmra.mrb[114].mxu0 %v19152_v23  ;;  %v19158_v23 = vld [vmem:[#allocation247_spill] sm:$0xff] }
 0x2c0   :  { %11717 = vmatprep.mubr.f32.mxu1 %v19153_v9  ;;  %12713 = vmatprep.mubr.f32.mxu0 %v19153_v9 }
 0x2c3   :  { %11718 = vmatmul.mubr.f32.gmra.mrb[116].mxu1 %v19154_v55  ;;  %12714 = vmatmul.mubr.f32.gmra.mrb[116].mxu0 %v19154_v55 }
 0x2c4   :  { %11720 = vmatprep.mubr.f32.mxu1 %v19155_v62  ;;  %12716 = vmatprep.mubr.f32.mxu0 %v19155_v62 }
 0x2c7   :  { %11721 = vmatmul.mubr.f32.gmra.mrb[118].mxu1 %v19156_v45  ;;  %12717 = vmatmul.mubr.f32.gmra.mrb[118].mxu0 %v19156_v45 }
 0x2c8   :  { %11723 = vmatprep.mubr.f32.mxu1 %v19157_v42  ;;  %12719 = vmatprep.mubr.f32.mxu0 %v19157_v42 }
 0x2cb   :  { %11724 = vmatmul.mubr.f32.gmra.mrb[120].mxu1 %v19158_v23  ;;  %12720 = vmatmul.mubr.f32.gmra.mrb[120].mxu0 %v19158_v23  ;;  %v19159_v23 = vld [vmem:[#allocation261_spill] sm:$0xff] }
 0x2cc   :  { %11726 = vmatprep.mubr.f32.mxu1 %v15802_v4  ;;  %12722 = vmatprep.mubr.f32.mxu0 %v15802_v4  ;;  %v19160_v4 = vld [vmem:[#allocation263_spill] sm:$0xff] }
 0x2cf   :  { %11727 = vmatmul.mubr.f32.gmra.mrb[122].mxu1 %v15813_v30  ;;  %12723 = vmatmul.mubr.f32.gmra.mrb[122].mxu0 %v15813_v30  ;;  %v19161_v30 = vld [vmem:[#allocation264_spill] sm:$0xff] }
 0x2d0   :  { %11729 = vmatprep.mubr.f32.mxu1 %v15822_v29  ;;  %12725 = vmatprep.mubr.f32.mxu0 %v15822_v29  ;;  %v19162_v29 = vld [vmem:[#allocation266_spill] sm:$0xff] }
 0x2d3   :  { %11730 = vmatmul.mubr.f32.gmra.mrb[124].mxu1 %v15832_v47  ;;  %12726 = vmatmul.mubr.f32.gmra.mrb[124].mxu0 %v15832_v47  ;;  %v19163_v47 = vld [vmem:[#allocation269_spill] sm:$0xff] }
 0x2d4   :  { %11732 = vmatprep.mubr.f32.mxu1 %v15838_v3  ;;  %12728 = vmatprep.mubr.f32.mxu0 %v15838_v3  ;;  %v19164_v3 = vld [vmem:[#allocation271_spill] sm:$0xff] }
 0x2d7   :  { %11733 = vmatmul.mubr.f32.gmra.mrb[126].mxu1 %v19159_v23  ;;  %12729 = vmatmul.mubr.f32.gmra.mrb[126].mxu0 %v19159_v23  ;;  %v19165_v23 = vld [vmem:[#allocation273_spill] sm:$0xff] }
 0x2d8   :  { %11735 = vmatprep.mubr.f32.mxu1 %v19160_v4  ;;  %12731 = vmatprep.mubr.f32.mxu0 %v19160_v4  ;;  %v19166_v4 = vld [vmem:[#allocation275_spill] sm:$0xff] }
 0x2db   :  { %11736 = vmatmul.mubr.f32.gmra.mrb[128].mxu1 %v19161_v30  ;;  %12732 = vmatmul.mubr.f32.gmra.mrb[128].mxu0 %v19161_v30  ;;  %v19167_v30 = vld [vmem:[#allocation277_spill] sm:$0xff] }
 0x2dc   :  { %11738 = vmatprep.mubr.f32.mxu1 %v19162_v29  ;;  %12734 = vmatprep.mubr.f32.mxu0 %v19162_v29  ;;  %v19168_v29 = vld [vmem:[#allocation279_spill] sm:$0xff] }
 0x2df   :  { %11739 = vmatmul.mubr.f32.gmra.mrb[130].mxu1 %v19163_v47  ;;  %12735 = vmatmul.mubr.f32.gmra.mrb[130].mxu0 %v19163_v47  ;;  %v19169_v47 = vld [vmem:[#allocation281_spill] sm:$0xff] }
 0x2e0   :  { %11741 = vmatprep.mubr.f32.mxu1 %v19164_v3  ;;  %12737 = vmatprep.mubr.f32.mxu0 %v19164_v3  ;;  %v19170_v3 = vld [vmem:[#allocation283_spill] sm:$0xff] }
 0x2e3   :  { %11742 = vmatmul.mubr.f32.gmra.mrb[132].mxu1 %v19165_v23  ;;  %12738 = vmatmul.mubr.f32.gmra.mrb[132].mxu0 %v19165_v23  ;;  %v19171_v23 = vld [vmem:[#allocation284_spill] sm:$0xff] }
 0x2e4   :  { %11744 = vmatprep.mubr.f32.mxu1 %v19166_v4  ;;  %12740 = vmatprep.mubr.f32.mxu0 %v19166_v4  ;;  %v19172_v4 = vld [vmem:[#allocation286_spill] sm:$0xff] }
 0x2e7   :  { %11745 = vmatmul.mubr.f32.gmra.mrb[134].mxu1 %v19167_v30  ;;  %12741 = vmatmul.mubr.f32.gmra.mrb[134].mxu0 %v19167_v30  ;;  %v19173_v30 = vld [vmem:[#allocation289_spill] sm:$0xff] }
 0x2e8   :  { %11747 = vmatprep.mubr.f32.mxu1 %v19168_v29  ;;  %12743 = vmatprep.mubr.f32.mxu0 %v19168_v29  ;;  %v19174_v29 = vld [vmem:[#allocation291_spill] sm:$0xff] }
 0x2eb   :  { %11748 = vmatmul.mubr.f32.gmra.mrb[136].mxu1 %v19169_v47  ;;  %12744 = vmatmul.mubr.f32.gmra.mrb[136].mxu0 %v19169_v47  ;;  %v19175_v47 = vld [vmem:[#allocation293_spill] sm:$0xff] }
 0x2ec   :  { %11750 = vmatprep.mubr.f32.mxu1 %v19170_v3  ;;  %12746 = vmatprep.mubr.f32.mxu0 %v19170_v3 }
 0x2ef   :  { %11751 = vmatmul.mubr.f32.gmra.mrb[138].mxu1 %v19171_v23  ;;  %12747 = vmatmul.mubr.f32.gmra.mrb[138].mxu0 %v19171_v23  ;;  %v19176_v23 = vld [vmem:[#allocation297_spill] sm:$0xff] }
 0x2f0   :  { %11753 = vmatprep.mubr.f32.mxu1 %v19172_v4  ;;  %12749 = vmatprep.mubr.f32.mxu0 %v19172_v4  ;;  %v19177_v4 = vld [vmem:[#allocation299_spill] sm:$0xff] }
 0x2f3   :  { %11754 = vmatmul.mubr.f32.gmra.mrb[140].mxu1 %v19173_v30  ;;  %12750 = vmatmul.mubr.f32.gmra.mrb[140].mxu0 %v19173_v30  ;;  %v19178_v30 = vld [vmem:[#allocation301_spill] sm:$0xff] }
 0x2f4   :  { %11756 = vmatprep.mubr.f32.mxu1 %v19174_v29  ;;  %12752 = vmatprep.mubr.f32.mxu0 %v19174_v29  ;;  %v19179_v29 = vld [vmem:[#allocation303_spill] sm:$0xff] }
 0x2f7   :  { %11757 = vmatmul.mubr.f32.gmra.mrb[142].mxu1 %v19175_v47  ;;  %12753 = vmatmul.mubr.f32.gmra.mrb[142].mxu0 %v19175_v47  ;;  %v19180_v47 = vld [vmem:[#allocation304_spill] sm:$0xff] }
 0x2f8   :  { %11759 = vmatprep.mubr.f32.mxu1 %v15967_v35  ;;  %12755 = vmatprep.mubr.f32.mxu0 %v15967_v35  ;;  %v19181_v35 = vld [vmem:[#allocation306_spill] sm:$0xff] }
 0x2fb   :  { %11760 = vmatmul.mubr.f32.gmra.mrb[144].mxu1 %v19176_v23  ;;  %12756 = vmatmul.mubr.f32.gmra.mrb[144].mxu0 %v19176_v23  ;;  %v19182_v23 = vld [vmem:[#allocation309_spill] sm:$0xff] }
 0x2fc   :  { %11762 = vmatprep.mubr.f32.mxu1 %v19177_v4  ;;  %12758 = vmatprep.mubr.f32.mxu0 %v19177_v4  ;;  %v19183_v4 = vld [vmem:[#allocation311_spill] sm:$0xff] }
 0x2ff   :  { %11763 = vmatmul.mubr.f32.gmra.mrb[146].mxu1 %v19178_v30  ;;  %12759 = vmatmul.mubr.f32.gmra.mrb[146].mxu0 %v19178_v30  ;;  %v19184_v30 = vld [vmem:[#allocation313_spill] sm:$0xff] }
 0x300   :  { %11765 = vmatprep.mubr.f32.mxu1 %v19179_v29  ;;  %12761 = vmatprep.mubr.f32.mxu0 %v19179_v29  ;;  %v19185_v29 = vld [vmem:[#allocation315_spill] sm:$0xff] }
 0x303   :  { %11766 = vmatmul.mubr.f32.gmra.mrb[148].mxu1 %v19180_v47  ;;  %12762 = vmatmul.mubr.f32.gmra.mrb[148].mxu0 %v19180_v47  ;;  %v19186_v47 = vld [vmem:[#allocation317_spill] sm:$0xff] }
 0x304   :  { %11768 = vmatprep.mubr.f32.mxu1 %v19181_v35  ;;  %12764 = vmatprep.mubr.f32.mxu0 %v19181_v35  ;;  %v19187_v35 = vld [vmem:[#allocation319_spill] sm:$0xff] }
 0x307   :  { %11769 = vmatmul.mubr.f32.gmra.mrb[150].mxu1 %v19182_v23  ;;  %12765 = vmatmul.mubr.f32.gmra.mrb[150].mxu0 %v19182_v23  ;;  %v19188_v23 = vld [vmem:[#allocation321_spill] sm:$0xff] }
 0x308   :  { %11771 = vmatprep.mubr.f32.mxu1 %v19183_v4  ;;  %12767 = vmatprep.mubr.f32.mxu0 %v19183_v4  ;;  %v19189_v4 = vld [vmem:[#allocation323_spill] sm:$0xff] }
 0x30b   :  { %11772 = vmatmul.mubr.f32.gmra.mrb[152].mxu1 %v19184_v30  ;;  %12768 = vmatmul.mubr.f32.gmra.mrb[152].mxu0 %v19184_v30  ;;  %v19190_v30 = vld [vmem:[#allocation324_spill] sm:$0xff] }
 0x30c   :  { %11774 = vmatprep.mubr.f32.mxu1 %v19185_v29  ;;  %12770 = vmatprep.mubr.f32.mxu0 %v19185_v29  ;;  %v19191_v29 = vld [vmem:[#allocation326_spill] sm:$0xff] }
 0x30f   :  { %11775 = vmatmul.mubr.f32.gmra.mrb[154].mxu1 %v19186_v47  ;;  %12771 = vmatmul.mubr.f32.gmra.mrb[154].mxu0 %v19186_v47  ;;  %v19192_v47 = vld [vmem:[#allocation329_spill] sm:$0xff] }
 0x310   :  { %11777 = vmatprep.mubr.f32.mxu1 %v19187_v35  ;;  %12773 = vmatprep.mubr.f32.mxu0 %v19187_v35  ;;  %v19193_v35 = vld [vmem:[#allocation331_spill] sm:$0xff] }
 0x313   :  { %11778 = vmatmul.mubr.f32.gmra.mrb[156].mxu1 %v19188_v23  ;;  %12774 = vmatmul.mubr.f32.gmra.mrb[156].mxu0 %v19188_v23  ;;  %v19194_v23 = vld [vmem:[#allocation333_spill] sm:$0xff] }
 0x314   :  { %11780 = vmatprep.mubr.f32.mxu1 %v19189_v4  ;;  %12776 = vmatprep.mubr.f32.mxu0 %v19189_v4  ;;  %v19195_v4 = vld [vmem:[#allocation335_spill] sm:$0xff] }
 0x317   :  { %11781 = vmatmul.mubr.f32.gmra.mrb[158].mxu1 %v19190_v30  ;;  %12777 = vmatmul.mubr.f32.gmra.mrb[158].mxu0 %v19190_v30  ;;  %v19196_v30 = vld [vmem:[#allocation337_spill] sm:$0xff] }
 0x318   :  { %11783 = vmatprep.mubr.f32.mxu1 %v19191_v29  ;;  %12779 = vmatprep.mubr.f32.mxu0 %v19191_v29  ;;  %v19197_v29 = vld [vmem:[#allocation339_spill] sm:$0xff] }
 0x31b   :  { %11784 = vmatmul.mubr.f32.gmra.mrb[160].mxu1 %v19192_v47  ;;  %12780 = vmatmul.mubr.f32.gmra.mrb[160].mxu0 %v19192_v47  ;;  %v19198_v47 = vld [vmem:[#allocation341_spill] sm:$0xff] }
 0x31c   :  { %11786 = vmatprep.mubr.f32.mxu1 %v19193_v35  ;;  %12782 = vmatprep.mubr.f32.mxu0 %v19193_v35  ;;  %v19199_v35 = vld [vmem:[#allocation343_spill] sm:$0xff] }
 0x31f   :  { %11787 = vmatmul.mubr.f32.gmra.mrb[162].mxu1 %v19194_v23  ;;  %12783 = vmatmul.mubr.f32.gmra.mrb[162].mxu0 %v19194_v23  ;;  %v19200_v23 = vld [vmem:[#allocation344_spill] sm:$0xff] }
 0x320   :  { %11789 = vmatprep.mubr.f32.mxu1 %v19195_v4  ;;  %12785 = vmatprep.mubr.f32.mxu0 %v19195_v4  ;;  %v19201_v4 = vld [vmem:[#allocation346_spill] sm:$0xff] }
 0x323   :  { %11790 = vmatmul.mubr.f32.gmra.mrb[164].mxu1 %v19196_v30  ;;  %12786 = vmatmul.mubr.f32.gmra.mrb[164].mxu0 %v19196_v30  ;;  %v19202_v30 = vld [vmem:[#allocation349_spill] sm:$0xff] }
 0x324   :  { %11792 = vmatprep.mubr.f32.mxu1 %v19197_v29  ;;  %12788 = vmatprep.mubr.f32.mxu0 %v19197_v29  ;;  %v19203_v29 = vld [vmem:[#allocation351_spill] sm:$0xff] }
 0x327   :  { %11793 = vmatmul.mubr.f32.gmra.mrb[166].mxu1 %v19198_v47  ;;  %12789 = vmatmul.mubr.f32.gmra.mrb[166].mxu0 %v19198_v47  ;;  %v19204_v47 = vld [vmem:[#allocation353_spill] sm:$0xff] }
 0x328   :  { %11795 = vmatprep.mubr.f32.mxu1 %v19199_v35  ;;  %12791 = vmatprep.mubr.f32.mxu0 %v19199_v35  ;;  %v19205_v35 = vld [vmem:[#allocation355_spill] sm:$0xff] }
 0x32b   :  { %11796 = vmatmul.mubr.f32.gmra.mrb[168].mxu1 %v19200_v23  ;;  %12792 = vmatmul.mubr.f32.gmra.mrb[168].mxu0 %v19200_v23  ;;  %v19206_v23 = vld [vmem:[#allocation357_spill] sm:$0xff] }
 0x32c   :  { %11798 = vmatprep.mubr.f32.mxu1 %v19201_v4  ;;  %12794 = vmatprep.mubr.f32.mxu0 %v19201_v4  ;;  %v19207_v4 = vld [vmem:[#allocation359_spill] sm:$0xff] }
 0x32f   :  { %11799 = vmatmul.mubr.f32.gmra.mrb[170].mxu1 %v19202_v30  ;;  %12795 = vmatmul.mubr.f32.gmra.mrb[170].mxu0 %v19202_v30  ;;  %v19208_v30 = vld [vmem:[#allocation361_spill] sm:$0xff] }
 0x330   :  { %11801 = vmatprep.mubr.f32.mxu1 %v19203_v29  ;;  %12797 = vmatprep.mubr.f32.mxu0 %v19203_v29  ;;  %v19209_v29 = vld [vmem:[#allocation363_spill] sm:$0xff] }
 0x333   :  { %11802 = vmatmul.mubr.f32.gmra.mrb[172].mxu1 %v19204_v47  ;;  %12798 = vmatmul.mubr.f32.gmra.mrb[172].mxu0 %v19204_v47  ;;  %v19210_v47 = vld [vmem:[#allocation364_spill] sm:$0xff] }
 0x334   :  { %11804 = vmatprep.mubr.f32.mxu1 %v19205_v35  ;;  %12800 = vmatprep.mubr.f32.mxu0 %v19205_v35  ;;  %v19211_v35 = vld [vmem:[#allocation366_spill] sm:$0xff] }
 0x337   :  { %11805 = vmatmul.mubr.f32.gmra.mrb[174].mxu1 %v19206_v23  ;;  %12801 = vmatmul.mubr.f32.gmra.mrb[174].mxu0 %v19206_v23  ;;  %v19212_v23 = vld [vmem:[#allocation369_spill] sm:$0xff] }
 0x338   :  { %11807 = vmatprep.mubr.f32.mxu1 %v19207_v4  ;;  %12803 = vmatprep.mubr.f32.mxu0 %v19207_v4  ;;  %v19213_v4 = vld [vmem:[#allocation371_spill] sm:$0xff] }
 0x33b   :  { %11808 = vmatmul.mubr.f32.gmra.mrb[176].mxu1 %v19208_v30  ;;  %12804 = vmatmul.mubr.f32.gmra.mrb[176].mxu0 %v19208_v30  ;;  %v19214_v30 = vld [vmem:[#allocation373_spill] sm:$0xff] }
 0x33c   :  { %11810 = vmatprep.mubr.f32.mxu1 %v19209_v29  ;;  %12806 = vmatprep.mubr.f32.mxu0 %v19209_v29  ;;  %v19215_v29 = vld [vmem:[#allocation375_spill] sm:$0xff] }
 0x33f   :  { %11811 = vmatmul.mubr.f32.gmra.mrb[178].mxu1 %v19210_v47  ;;  %12807 = vmatmul.mubr.f32.gmra.mrb[178].mxu0 %v19210_v47  ;;  %v19216_v47 = vld [vmem:[#allocation377_spill] sm:$0xff] }
 0x340   :  { %11813 = vmatprep.mubr.f32.mxu1 %v19211_v35  ;;  %12809 = vmatprep.mubr.f32.mxu0 %v19211_v35  ;;  %v19217_v35 = vld [vmem:[#allocation379_spill] sm:$0xff] }
 0x343   :  { %11814 = vmatmul.mubr.f32.gmra.mrb[180].mxu1 %v19212_v23  ;;  %12810 = vmatmul.mubr.f32.gmra.mrb[180].mxu0 %v19212_v23  ;;  %v19218_v23 = vld [vmem:[#allocation381_spill] sm:$0xff] }
 0x344   :  { %11816 = vmatprep.mubr.f32.mxu1 %v19213_v4  ;;  %12812 = vmatprep.mubr.f32.mxu0 %v19213_v4  ;;  %v19219_v4 = vld [vmem:[#allocation383_spill] sm:$0xff] }
 0x347   :  { %11817 = vmatmul.mubr.f32.gmra.mrb[182].mxu1 %v19214_v30  ;;  %12813 = vmatmul.mubr.f32.gmra.mrb[182].mxu0 %v19214_v30  ;;  %v19220_v30 = vld [vmem:[#allocation384_spill] sm:$0xff] }
 0x348   :  { %11819 = vmatprep.mubr.f32.mxu1 %v19215_v29  ;;  %12815 = vmatprep.mubr.f32.mxu0 %v19215_v29  ;;  %v19221_v29 = vld [vmem:[#allocation386_spill] sm:$0xff] }
 0x34b   :  { %11820 = vmatmul.mubr.f32.gmra.mrb[184].mxu1 %v19216_v47  ;;  %12816 = vmatmul.mubr.f32.gmra.mrb[184].mxu0 %v19216_v47 }
 0x34c   :  { %11822 = vmatprep.mubr.f32.mxu1 %v19217_v35  ;;  %12818 = vmatprep.mubr.f32.mxu0 %v19217_v35  ;;  %v19222_v35 = vld [vmem:[#allocation390_spill] sm:$0xff] }
 0x34f   :  { %11823 = vmatmul.mubr.f32.gmra.mrb[186].mxu1 %v19218_v23  ;;  %12819 = vmatmul.mubr.f32.gmra.mrb[186].mxu0 %v19218_v23  ;;  %v19223_v23 = vld [vmem:[#allocation392_spill] sm:$0xff] }
 0x350   :  { %11825 = vmatprep.mubr.f32.mxu1 %v19219_v4  ;;  %12821 = vmatprep.mubr.f32.mxu0 %v19219_v4 }
 0x353   :  { %11826 = vmatmul.mubr.f32.gmra.mrb[188].mxu1 %v19220_v30  ;;  %12822 = vmatmul.mubr.f32.gmra.mrb[188].mxu0 %v19220_v30 }
 0x354   :  { %11828 = vmatprep.mubr.f32.mxu1 %v19221_v29  ;;  %12824 = vmatprep.mubr.f32.mxu0 %v19221_v29  ;;  %v19224_v29 = vld [vmem:[#allocation398_spill] sm:$0xff] }
 0x357   :  { %11829 = vmatmul.mubr.f32.gmra.mrb[190].mxu1 %v16299_v63  ;;  %12825 = vmatmul.mubr.f32.gmra.mrb[190].mxu0 %v16299_v63 }
 0x358   :  { %11831 = vmatprep.mubr.f32.mxu1 %v19222_v35  ;;  %12827 = vmatprep.mubr.f32.mxu0 %v19222_v35 }
 0x35b   :  { %11832 = vmatmul.mubr.f32.gmra.mrb[192].mxu1 %v19223_v23  ;;  %12828 = vmatmul.mubr.f32.gmra.mrb[192].mxu0 %v19223_v23 }
 0x35c   :  { %11834 = vmatprep.mubr.f32.mxu1 %v16322_v21  ;;  %12830 = vmatprep.mubr.f32.mxu0 %v16322_v21  ;;  %v19225_v21 = vld [vmem:[#allocation11_spill] sm:$0xff] }
 0x35f   :  { %11835 = vmatmul.mubr.f32.gmra.mrb[194].mxu1 %v16330_v0  ;;  %12831 = vmatmul.mubr.f32.gmra.mrb[194].mxu0 %v16330_v0  ;;  %v19226_v0 = vld [vmem:[#allocation14_spill] sm:$0xff] }
 0x360   :  { %11837 = vmatprep.mubr.f32.mxu1 %v19224_v29  ;;  %12833 = vmatprep.mubr.f32.mxu0 %v19224_v29  ;;  %v19227_v29 = vld [vmem:[#allocation15_spill] sm:$0xff] }
 0x363   :  { %11838 = vmatmul.mubr.f32.gmra.mrb[196].mxu1 %v16343_v14  ;;  %12834 = vmatmul.mubr.f32.gmra.mrb[196].mxu0 %v16343_v14  ;;  %v19228_v14 = vld [vmem:[#allocation17_spill] sm:$0xff] }
 0x364   :  { %11840 = vmatprep.mubr.f32.mxu1 %v16350_v40  ;;  %12836 = vmatprep.mubr.f32.mxu0 %v16350_v40  ;;  %v19229_v40 = vld [vmem:[#allocation18_spill] sm:$0xff] }
 0x367   :  { %11841 = vmatmul.mubr.f32.gmra.mrb[198].mxu1 %v16357_v36  ;;  %12837 = vmatmul.mubr.f32.gmra.mrb[198].mxu0 %v16357_v36  ;;  %v19230_v36 = vld [vmem:[#allocation20_spill] sm:$0xff] }
 0x368   :  { %11875 = vmatprep.mubr.f32.mxu1 %v19225_v21  ;;  %12871 = vmatprep.mubr.f32.mxu0 %v14733_v17  ;;  %v19231_v17 = vld [vmem:[#allocation21_spill] sm:$0xff]  ;;  %v19241_v21 = vld [vmem:[#allocation39_spill] sm:$0xff] }
 0x36b   :  { %11876 = vmatmul.mubr.f32.vlgmr.msra.gmra.mrb[0].mxu1 %v19226_v0  ;;  %12872 = vmatmul.mubr.f32.vlgmr.msra.gmra.mrb[0].mxu0 %v14790_v41  ;;  %v19232_v41 = vld [vmem:[#allocation22_spill] sm:$0xff]  ;;  %v19243_v0 = vld [vmem:[#allocation44_spill] sm:$0xff] }
 0x36c   :  { %11878 = vmatprep.mubr.f32.mxu1 %v19227_v29  ;;  %12874 = vmatprep.mubr.f32.mxu0 %v14795_v43  ;;  %v19233_v43 = vld [vmem:[#allocation25_spill] sm:$0xff] }
 0x36d   :  { %v19240_v29 = vld [vmem:[#allocation37_spill] sm:$0xff] }
 0x36f   :  { %11879 = vmatmul.mubr.f32.gmra.mrb[2].mxu1 %v19228_v14  ;;  %12875 = vmatmul.mubr.f32.gmra.mrb[2].mxu0 %v14815_v53  ;;  %v19234_v53 = vld [vmem:[#allocation28_spill] sm:$0xff]  ;;  %v19245_v14 = vld [vmem:[#allocation46_spill] sm:$0xff] }
 0x370   :  { %11881 = vmatprep.mubr.f32.mxu1 %v19229_v40  ;;  %12877 = vmatprep.mubr.f32.mxu0 %v14823_v56  ;;  %v19235_v56 = vld [vmem:[#allocation29_spill] sm:$0xff]  ;;  %v19242_v40 = vld [vmem:[#allocation42_spill] sm:$0xff] }
 0x373   :  { %11882 = vmatmul.mubr.f32.gmra.mrb[4].mxu1 %v19230_v36  ;;  %12878 = vmatmul.mubr.f32.gmra.mrb[4].mxu0 %v14840_v1  ;;  %v19236_v1 = vld [vmem:[#allocation30_spill] sm:$0xff] }
 0x374   :  { %11884 = vmatprep.mubr.f32.mxu1 %v19231_v17  ;;  %12880 = vmatprep.mubr.f32.mxu0 %v14848_v24  ;;  %v19237_v24 = vld [vmem:[#allocation31_spill] sm:$0xff]  ;;  %v19246_v36 = vld [vmem:[#allocation50_spill] sm:$0xff]  ;;  %v19278_v17 = vld [vmem:[#allocation101_spill] sm:$0xff] }
 0x377   :  { %11885 = vmatmul.mubr.f32.gmra.mrb[6].mxu1 %v19232_v41  ;;  %12881 = vmatmul.mubr.f32.gmra.mrb[6].mxu0 %v14859_v46  ;;  %v19238_v46 = vld [vmem:[#allocation33_spill] sm:$0xff] }
 0x378   :  { %11887 = vmatprep.mubr.f32.mxu1 %v19233_v43  ;;  %12883 = vmatprep.mubr.f32.mxu0 %v14872_v61  ;;  %v19239_v61 = vld [vmem:[#allocation35_spill] sm:$0xff]  ;;  %v19279_v41 = vld [vmem:[#allocation97_spill] sm:$0xff]  ;;  %v19280_v43 = vld [vmem:[#allocation104_spill] sm:$0xff] }
 0x37b   :  { %11888 = vmatmul.mubr.f32.gmra.mrb[8].mxu1 %v19234_v53  ;;  %12884 = vmatmul.mubr.f32.gmra.mrb[8].mxu0 %v19043_v13  ;;  %v19247_v13 = vld [vmem:[#allocation52_spill] sm:$0xff] }
 0x37c   :  { %11890 = vmatprep.mubr.f32.mxu1 %v19235_v56  ;;  %12886 = vmatprep.mubr.f32.mxu0 %v19044_v12  ;;  %v19248_v12 = vld [vmem:[#allocation55_spill] sm:$0xff]  ;;  %v19281_v53 = vld [vmem:[#allocation100_spill] sm:$0xff]  ;;  %v19282_v56 = vld [vmem:[#allocation106_spill] sm:$0xff] }
 0x37f   :  { %11891 = vmatmul.mubr.f32.gmra.mrb[10].mxu1 %v19236_v1  ;;  %12887 = vmatmul.mubr.f32.gmra.mrb[10].mxu0 %v19046_v57  ;;  %v19249_v57 = vld [vmem:[#allocation56_spill] sm:$0xff]  ;;  %v19283_v1 = vld [vmem:[#allocation102_spill] sm:$0xff] }
 0x380   :  { %11893 = vmatprep.mubr.f32.mxu1 %v19237_v24  ;;  %12889 = vmatprep.mubr.f32.mxu0 %v19047_v32  ;;  %v19250_v32 = vld [vmem:[#allocation57_spill] sm:$0xff]  ;;  %v19284_v24 = vld [vmem:[#allocation107_spill] sm:$0xff] }
 0x383   :  { %11894 = vmatmul.mubr.f32.gmra.mrb[12].mxu1 %v19238_v46  ;;  %12890 = vmatmul.mubr.f32.gmra.mrb[12].mxu0 %v14925_v2  ;;  %v19244_v2 = vld [vmem:[#allocation45_spill] sm:$0xff]  ;;  %v19285_v46 = vld [vmem:[#allocation103_spill] sm:$0xff] }
 0x384   :  { %11896 = vmatprep.mubr.f32.mxu1 %v19239_v61  ;;  %12892 = vmatprep.mubr.f32.mxu0 %v19049_v26  ;;  %v19251_v26 = vld [vmem:[#allocation58_spill] sm:$0xff]  ;;  %v19286_v61 = vld [vmem:[#allocation109_spill] sm:$0xff] }
 0x387   :  { %11897 = vmatmul.mubr.f32.gmra.mrb[14].mxu1 %v19240_v29  ;;  %12893 = vmatmul.mubr.f32.gmra.mrb[14].mxu0 %v19051_v44  ;;  %v19252_v44 = vld [vmem:[#allocation61_spill] sm:$0xff] }
 0x388   :  { %11899 = vmatprep.mubr.f32.mxu1 %v19241_v21  ;;  %12895 = vmatprep.mubr.f32.mxu0 %v19052_v51  ;;  %v19253_v51 = vld [vmem:[#allocation63_spill] sm:$0xff]  ;;  %v19287_v29 = vld [vmem:[#allocation105_spill] sm:$0xff] }
 0x389   :  { %v19288_v21 = vld [vmem:[#allocation111_spill] sm:$0xff] }
 0x38b   :  { %11900 = vmatmul.mubr.f32.gmra.mrb[16].mxu1 %v19242_v40  ;;  %12896 = vmatmul.mubr.f32.gmra.mrb[16].mxu0 %v19053_v34  ;;  %v19254_v34 = vld [vmem:[#allocation66_spill] sm:$0xff]  ;;  %v19289_v40 = vld [vmem:[#allocation108_spill] sm:$0xff] }
 0x38c   :  { %11902 = vmatprep.mubr.f32.mxu1 %v19243_v0  ;;  %12898 = vmatprep.mubr.f32.mxu0 %v19054_v15  ;;  %v19255_v15 = vld [vmem:[#allocation68_spill] sm:$0xff]  ;;  %v19290_v0 = vld [vmem:[#allocation114_spill] sm:$0xff] }
 0x38f   :  { %11903 = vmatmul.mubr.f32.gmra.mrb[18].mxu1 %v19244_v2  ;;  %12899 = vmatmul.mubr.f32.gmra.mrb[18].mxu0 %v19055_v11  ;;  %v19256_v11 = vld [vmem:[#allocation69_spill] sm:$0xff]  ;;  %v19291_v2 = vld [vmem:[#allocation110_spill] sm:$0xff] }
 0x390   :  { %11905 = vmatprep.mubr.f32.mxu1 %v19245_v14  ;;  %12901 = vmatprep.mubr.f32.mxu0 %v19056_v37  ;;  %v19257_v37 = vld [vmem:[#allocation71_spill] sm:$0xff] }
 0x391   :  { %v19292_v14 = vld [vmem:[#allocation115_spill] sm:$0xff] }
 0x393   :  { %11906 = vmatmul.mubr.f32.gmra.mrb[20].mxu1 %v19246_v36  ;;  %12902 = vmatmul.mubr.f32.gmra.mrb[20].mxu0 %v19057_v5  ;;  %v19258_v5 = vld [vmem:[#allocation73_spill] sm:$0xff]  ;;  %v19293_v36 = vld [vmem:[#allocation112_spill] sm:$0xff] }
 0x394   :  { %11908 = vmatprep.mubr.f32.mxu1 %v19247_v13  ;;  %12904 = vmatprep.mubr.f32.mxu0 %v19058_v38  ;;  %v19259_v38 = vld [vmem:[#allocation74_spill] sm:$0xff]  ;;  %v19294_v13 = vld [vmem:[#allocation117_spill] sm:$0xff] }
 0x397   :  { %11909 = vmatmul.mubr.f32.gmra.mrb[22].mxu1 %v19248_v12  ;;  %12905 = vmatmul.mubr.f32.gmra.mrb[22].mxu0 %v19059_v52  ;;  %v19260_v52 = vld [vmem:[#allocation77_spill] sm:$0xff] }
 0x398   :  { %11911 = vmatprep.mubr.f32.mxu1 %v19249_v57  ;;  %12907 = vmatprep.mubr.f32.mxu0 %v19060_v60  ;;  %v19261_v60 = vld [vmem:[#allocation79_spill] sm:$0xff]  ;;  %v19295_v12 = vld [vmem:[#allocation113_spill] sm:$0xff] }
 0x399   :  { %v19296_v57 = vld [vmem:[#allocation119_spill] sm:$0xff] }
 0x39b   :  { %11912 = vmatmul.mubr.f32.gmra.mrb[24].mxu1 %v19250_v32  ;;  %12908 = vmatmul.mubr.f32.gmra.mrb[24].mxu0 %v19061_v27  ;;  %v19262_v27 = vld [vmem:[#allocation82_spill] sm:$0xff]  ;;  %v19297_v32 = vld [vmem:[#allocation116_spill] sm:$0xff] }
 0x39c   :  { %11914 = vmatprep.mubr.f32.mxu1 %v19251_v26  ;;  %12910 = vmatprep.mubr.f32.mxu0 %v19062_v48  ;;  %v19263_v48 = vld [vmem:[#allocation83_spill] sm:$0xff]  ;;  %v19298_v26 = vld [vmem:[#allocation121_spill] sm:$0xff] }
 0x39f   :  { %11915 = vmatmul.mubr.f32.gmra.mrb[26].mxu1 %v19252_v44  ;;  %12911 = vmatmul.mubr.f32.gmra.mrb[26].mxu0 %v19063_v19  ;;  %v19264_v19 = vld [vmem:[#allocation86_spill] sm:$0xff] }
 0x3a0   :  { %11917 = vmatprep.mubr.f32.mxu1 %v19253_v51  ;;  %12913 = vmatprep.mubr.f32.mxu0 %v19064_v22  ;;  %v19265_v22 = vld [vmem:[#allocation88_spill] sm:$0xff]  ;;  %v19299_v44 = vld [vmem:[#allocation118_spill] sm:$0xff] }
 0x3a1   :  { %v19300_v51 = vld [vmem:[#allocation124_spill] sm:$0xff] }
 0x3a3   :  { %11918 = vmatmul.mubr.f32.gmra.mrb[28].mxu1 %v19254_v34  ;;  %12914 = vmatmul.mubr.f32.gmra.mrb[28].mxu0 %v19065_v28  ;;  %v19266_v28 = vld [vmem:[#allocation89_spill] sm:$0xff]  ;;  %v19301_v34 = vld [vmem:[#allocation120_spill] sm:$0xff] }
 0x3a4   :  { %11920 = vmatprep.mubr.f32.mxu1 %v19255_v15  ;;  %12916 = vmatprep.mubr.f32.mxu0 %v19066_v16  ;;  %v19267_v16 = vld [vmem:[#allocation85_spill] sm:$0xff]  ;;  %v19302_v15 = vld [vmem:[#allocation126_spill] sm:$0xff] }
 0x3a7   :  { %11921 = vmatmul.mubr.f32.gmra.mrb[30].mxu1 %v19256_v11  ;;  %12917 = vmatmul.mubr.f32.gmra.mrb[30].mxu0 %v19067_v6  ;;  %v19268_v6 = vld [vmem:[#allocation91_spill] sm:$0xff]  ;;  %v19303_v11 = vld [vmem:[#allocation122_spill] sm:$0xff] }
 0x3a8   :  { %11923 = vmatprep.mubr.f32.mxu1 %v19257_v37  ;;  %12919 = vmatprep.mubr.f32.mxu0 %v19068_v58  ;;  %v19269_v58 = vld [vmem:[#allocation87_spill] sm:$0xff] }
 0x3a9   :  { %v19304_v37 = vld [vmem:[#allocation127_spill] sm:$0xff] }
 0x3ab   :  { %11924 = vmatmul.mubr.f32.gmra.mrb[32].mxu1 %v19258_v5  ;;  %12920 = vmatmul.mubr.f32.gmra.mrb[32].mxu0 %v19069_v31  ;;  %v19270_v31 = vld [vmem:[#allocation93_spill] sm:$0xff]  ;;  %v19305_v5 = vld [vmem:[#allocation123_spill] sm:$0xff] }
 0x3ac   :  { %11926 = vmatprep.mubr.f32.mxu1 %v19259_v38  ;;  %12922 = vmatprep.mubr.f32.mxu0 %v19070_v10  ;;  %v19271_v10 = vld [vmem:[#allocation90_spill] sm:$0xff]  ;;  %v19306_v38 = vld [vmem:[#allocation129_spill] sm:$0xff] }
 0x3af   :  { %11927 = vmatmul.mubr.f32.gmra.mrb[34].mxu1 %v19260_v52  ;;  %12923 = vmatmul.mubr.f32.gmra.mrb[34].mxu0 %v19071_v18  ;;  %v19273_v18 = vld [vmem:[#allocation92_spill] sm:$0xff] }
 0x3b0   :  { %11929 = vmatprep.mubr.f32.mxu1 %v19261_v60  ;;  %12925 = vmatprep.mubr.f32.mxu0 %v19072_v25  ;;  %v19275_v25 = vld [vmem:[#allocation94_spill] sm:$0xff]  ;;  %v19307_v52 = vld [vmem:[#allocation132_spill] sm:$0xff]  ;;  %v19308_v60 = vld [vmem:[#allocation133_spill] sm:$0xff] }
 0x3b3   :  { %11930 = vmatmul.mubr.f32.gmra.mrb[36].mxu1 %v19262_v27  ;;  %12926 = vmatmul.mubr.f32.gmra.mrb[36].mxu0 %v19073_v59  ;;  %v19277_v59 = vld [vmem:[#allocation96_spill] sm:$0xff]  ;;  %v19309_v27 = vld [vmem:[#allocation130_spill] sm:$0xff] }
 0x3b4   :  { %11932 = vmatprep.mubr.f32.mxu1 %v19263_v48  ;;  %12928 = vmatprep.mubr.f32.mxu0 %v19074_v50  ;;  %v19272_v50 = vld [vmem:[#allocation95_spill] sm:$0xff] }
 0x3b5   :  { %v19310_v48 = vld [vmem:[#allocation135_spill] sm:$0xff] }
 0x3b7   :  { %11933 = vmatmul.mubr.f32.gmra.mrb[38].mxu1 %v19264_v19  ;;  %12929 = vmatmul.mubr.f32.gmra.mrb[38].mxu0 %v19075_v49  ;;  %v19274_v49 = vld [vmem:[#allocation98_spill] sm:$0xff]  ;;  %v19311_v19 = vld [vmem:[#allocation131_spill] sm:$0xff] }
 0x3b8   :  { %11935 = vmatprep.mubr.f32.mxu1 %v19265_v22  ;;  %12931 = vmatprep.mubr.f32.mxu0 %v19076_v33  ;;  %v19276_v33 = vld [vmem:[#allocation99_spill] sm:$0xff]  ;;  %v19312_v22 = vld [vmem:[#allocation137_spill] sm:$0xff] }
 0x3bb   :  { %11936 = vmatmul.mubr.f32.gmra.mrb[40].mxu1 %v19266_v28  ;;  %12932 = vmatmul.mubr.f32.gmra.mrb[40].mxu0 %v19267_v16  ;;  %v19313_v28 = vld [vmem:[#allocation134_spill] sm:$0xff]  ;;  %v19314_v16 = vld [vmem:[#allocation139_spill] sm:$0xff] }
 0x3bc   :  { %11938 = vmatprep.mubr.f32.mxu1 %v19268_v6  ;;  %12934 = vmatprep.mubr.f32.mxu0 %v19269_v58  ;;  %v19315_v6 = vld [vmem:[#allocation136_spill] sm:$0xff]  ;;  %v19317_v58 = vld [vmem:[#allocation138_spill] sm:$0xff] }
 0x3bf   :  { %11939 = vmatmul.mubr.f32.gmra.mrb[42].mxu1 %v19270_v31  ;;  %12935 = vmatmul.mubr.f32.gmra.mrb[42].mxu0 %v19271_v10  ;;  %v19319_v31 = vld [vmem:[#allocation140_spill] sm:$0xff]  ;;  %v19320_v10 = vld [vmem:[#allocation145_spill] sm:$0xff] }
 0x3c0   :  { %11941 = vmatprep.mubr.f32.mxu1 %v19272_v50  ;;  %12937 = vmatprep.mubr.f32.mxu0 %v19273_v18  ;;  %v19321_v50 = vld [vmem:[#allocation142_spill] sm:$0xff]  ;;  %v19322_v18 = vld [vmem:[#allocation148_spill] sm:$0xff] }
 0x3c3   :  { %11942 = vmatmul.mubr.f32.gmra.mrb[44].mxu1 %v19274_v49  ;;  %12938 = vmatmul.mubr.f32.gmra.mrb[44].mxu0 %v19275_v25  ;;  %v19323_v49 = vld [vmem:[#allocation144_spill] sm:$0xff]  ;;  %v19324_v25 = vld [vmem:[#allocation151_spill] sm:$0xff] }
 0x3c4   :  { %11944 = vmatprep.mubr.f32.mxu1 %v19276_v33  ;;  %12940 = vmatprep.mubr.f32.mxu0 %v19277_v59  ;;  %v19325_v33 = vld [vmem:[#allocation146_spill] sm:$0xff]  ;;  %v19326_v59 = vld [vmem:[#allocation152_spill] sm:$0xff] }
 0x3c7   :  { %11945 = vmatmul.mubr.f32.gmra.mrb[46].mxu1 %v19278_v17  ;;  %12941 = vmatmul.mubr.f32.gmra.mrb[46].mxu0 %v19279_v41  ;;  %v19327_v17 = vld [vmem:[#allocation147_spill] sm:$0xff]  ;;  %v19328_v41 = vld [vmem:[#allocation153_spill] sm:$0xff] }
 0x3c8   :  { %11947 = vmatprep.mubr.f32.mxu1 %v19280_v43  ;;  %12943 = vmatprep.mubr.f32.mxu0 %v19281_v53  ;;  %v19329_v43 = vld [vmem:[#allocation149_spill] sm:$0xff]  ;;  %v19330_v53 = vld [vmem:[#allocation154_spill] sm:$0xff] }
 0x3cb   :  { %11948 = vmatmul.mubr.f32.gmra.mrb[48].mxu1 %v19282_v56  ;;  %12944 = vmatmul.mubr.f32.gmra.mrb[48].mxu0 %v19283_v1  ;;  %v19331_v56 = vld [vmem:[#allocation150_spill] sm:$0xff]  ;;  %v19332_v1 = vld [vmem:[#allocation157_spill] sm:$0xff] }
 0x3cc   :  { %11950 = vmatprep.mubr.f32.mxu1 %v19284_v24  ;;  %12946 = vmatprep.mubr.f32.mxu0 %v19285_v46  ;;  %v19333_v24 = vld [vmem:[#allocation155_spill] sm:$0xff] }
 0x3cd   :  { %v19334_v46 = vld [vmem:[#allocation159_spill] sm:$0xff] }
 0x3cf   :  { %11951 = vmatmul.mubr.f32.gmra.mrb[50].mxu1 %v19286_v61  ;;  %12947 = vmatmul.mubr.f32.gmra.mrb[50].mxu0 %v19287_v29  ;;  %v19335_v61 = vld [vmem:[#allocation156_spill] sm:$0xff]  ;;  %v19336_v29 = vld [vmem:[#allocation161_spill] sm:$0xff] }
 0x3d0   :  { %11953 = vmatprep.mubr.f32.mxu1 %v19288_v21  ;;  %12949 = vmatprep.mubr.f32.mxu0 %v19289_v40  ;;  %v19337_v21 = vld [vmem:[#allocation158_spill] sm:$0xff]  ;;  %v19338_v40 = vld [vmem:[#allocation163_spill] sm:$0xff] }
 0x3d3   :  { %11954 = vmatmul.mubr.f32.gmra.mrb[52].mxu1 %v19290_v0  ;;  %12950 = vmatmul.mubr.f32.gmra.mrb[52].mxu0 %v19291_v2  ;;  %v19339_v0 = vld [vmem:[#allocation160_spill] sm:$0xff]  ;;  %v19340_v2 = vld [vmem:[#allocation166_spill] sm:$0xff] }
 0x3d4   :  { %11956 = vmatprep.mubr.f32.mxu1 %v19292_v14  ;;  %12952 = vmatprep.mubr.f32.mxu0 %v19293_v36  ;;  %v19341_v14 = vld [vmem:[#allocation162_spill] sm:$0xff]  ;;  %v19342_v36 = vld [vmem:[#allocation168_spill] sm:$0xff] }
 0x3d7   :  { %11957 = vmatmul.mubr.f32.gmra.mrb[54].mxu1 %v19294_v13  ;;  %12953 = vmatmul.mubr.f32.gmra.mrb[54].mxu0 %v19295_v12  ;;  %v19343_v13 = vld [vmem:[#allocation164_spill] sm:$0xff]  ;;  %v19344_v12 = vld [vmem:[#allocation169_spill] sm:$0xff] }
 0x3d8   :  { %11959 = vmatprep.mubr.f32.mxu1 %v19296_v57  ;;  %12955 = vmatprep.mubr.f32.mxu0 %v19297_v32  ;;  %v19345_v57 = vld [vmem:[#allocation165_spill] sm:$0xff]  ;;  %v19346_v32 = vld [vmem:[#allocation171_spill] sm:$0xff] }
 0x3db   :  { %11960 = vmatmul.mubr.f32.gmra.mrb[56].mxu1 %v19298_v26  ;;  %12956 = vmatmul.mubr.f32.gmra.mrb[56].mxu0 %v19299_v44  ;;  %v19347_v26 = vld [vmem:[#allocation167_spill] sm:$0xff]  ;;  %v19348_v44 = vld [vmem:[#allocation173_spill] sm:$0xff] }
 0x3dc   :  { %11962 = vmatprep.mubr.f32.mxu1 %v19300_v51  ;;  %12958 = vmatprep.mubr.f32.mxu0 %v19301_v34  ;;  %v19349_v51 = vld [vmem:[#allocation170_spill] sm:$0xff]  ;;  %v19350_v34 = vld [vmem:[#allocation175_spill] sm:$0xff] }
 0x3df   :  { %11963 = vmatmul.mubr.f32.gmra.mrb[58].mxu1 %v19302_v15  ;;  %12959 = vmatmul.mubr.f32.gmra.mrb[58].mxu0 %v19303_v11  ;;  %v19351_v15 = vld [vmem:[#allocation172_spill] sm:$0xff]  ;;  %v19352_v11 = vld [vmem:[#allocation177_spill] sm:$0xff] }
 0x3e0   :  { %11965 = vmatprep.mubr.f32.mxu1 %v19304_v37  ;;  %12961 = vmatprep.mubr.f32.mxu0 %v19305_v5  ;;  %v19353_v37 = vld [vmem:[#allocation174_spill] sm:$0xff]  ;;  %v19354_v5 = vld [vmem:[#allocation179_spill] sm:$0xff] }
 0x3e3   :  { %11966 = vmatmul.mubr.f32.gmra.mrb[60].mxu1 %v19306_v38  ;;  %12962 = vmatmul.mubr.f32.gmra.mrb[60].mxu0 %v19097_v20  ;;  %v19316_v20 = vld [vmem:[#allocation141_spill] sm:$0xff]  ;;  %v19355_v38 = vld [vmem:[#allocation176_spill] sm:$0xff] }
 0x3e4   :  { %11968 = vmatprep.mubr.f32.mxu1 %v19307_v52  ;;  %12964 = vmatprep.mubr.f32.mxu0 %v19098_v54  ;;  %v19318_v54 = vld [vmem:[#allocation143_spill] sm:$0xff]  ;;  %v19356_v52 = vld [vmem:[#allocation181_spill] sm:$0xff] }
 0x3e7   :  { %11969 = vmatmul.mubr.f32.gmra.mrb[62].mxu1 %v19308_v60  ;;  %12965 = vmatmul.mubr.f32.gmra.mrb[62].mxu0 %v19309_v27  ;;  %v19357_v60 = vld [vmem:[#allocation178_spill] sm:$0xff]  ;;  %v19358_v27 = vld [vmem:[#allocation183_spill] sm:$0xff] }
 0x3e8   :  { %11971 = vmatprep.mubr.f32.mxu1 %v19310_v48  ;;  %12967 = vmatprep.mubr.f32.mxu0 %v19311_v19  ;;  %v19359_v48 = vld [vmem:[#allocation186_spill] sm:$0xff] }
 0x3e9   :  { %v19360_v19 = vld [vmem:[#allocation182_spill] sm:$0xff] }
 0x3eb   :  { %11972 = vmatmul.mubr.f32.gmra.mrb[64].mxu1 %v19312_v22  ;;  %12968 = vmatmul.mubr.f32.gmra.mrb[64].mxu0 %v19313_v28  ;;  %v19361_v22 = vld [vmem:[#allocation188_spill] sm:$0xff] }
 0x3ec   :  { %11974 = vmatprep.mubr.f32.mxu1 %v19314_v16  ;;  %12970 = vmatprep.mubr.f32.mxu0 %v19315_v6  ;;  %v19362_v28 = vld [vmem:[#allocation184_spill] sm:$0xff]  ;;  %v19363_v16 = vld [vmem:[#allocation189_spill] sm:$0xff] }
 0x3ed   :  { %v19364_v6 = vld [vmem:[#allocation185_spill] sm:$0xff] }
 0x3ef   :  { %11975 = vmatmul.mubr.f32.gmra.mrb[66].mxu1 %v19316_v20  ;;  %12971 = vmatmul.mubr.f32.gmra.mrb[66].mxu0 %v19317_v58  ;;  %v19365_v20 = vld [vmem:[#allocation192_spill] sm:$0xff]  ;;  %v19366_v58 = vld [vmem:[#allocation187_spill] sm:$0xff] }
 0x3f0   :  { %11977 = vmatprep.mubr.f32.mxu1 %v19318_v54  ;;  %12973 = vmatprep.mubr.f32.mxu0 %v19319_v31  ;;  %v19367_v54 = vld [vmem:[#allocation193_spill] sm:$0xff]  ;;  %v19368_v31 = vld [vmem:[#allocation190_spill] sm:$0xff] }
 0x3f3   :  { %11978 = vmatmul.mubr.f32.gmra.mrb[68].mxu1 %v19320_v10  ;;  %12974 = vmatmul.mubr.f32.gmra.mrb[68].mxu0 %v19321_v50  ;;  %v19370_v10 = vld [vmem:[#allocation191_spill] sm:$0xff]  ;;  %v19371_v50 = vld [vmem:[#allocation198_spill] sm:$0xff] }
 0x3f4   :  { %11980 = vmatprep.mubr.f32.mxu1 %v19322_v18  ;;  %12976 = vmatprep.mubr.f32.mxu0 %v19323_v49  ;;  %v19372_v18 = vld [vmem:[#allocation195_spill] sm:$0xff]  ;;  %v19373_v49 = vld [vmem:[#allocation200_spill] sm:$0xff] }
 0x3f7   :  { %11981 = vmatmul.mubr.f32.gmra.mrb[70].mxu1 %v19324_v25  ;;  %12977 = vmatmul.mubr.f32.gmra.mrb[70].mxu0 %v19325_v33  ;;  %v19374_v25 = vld [vmem:[#allocation196_spill] sm:$0xff]  ;;  %v19375_v33 = vld [vmem:[#allocation202_spill] sm:$0xff] }
 0x3f8   :  { %11983 = vmatprep.mubr.f32.mxu1 %v19326_v59  ;;  %12979 = vmatprep.mubr.f32.mxu0 %v19327_v17  ;;  %v19376_v59 = vld [vmem:[#allocation197_spill] sm:$0xff] }
 0x3f9   :  { %v19377_v17 = vld [vmem:[#allocation205_spill] sm:$0xff] }
 0x3fb   :  { %11984 = vmatmul.mubr.f32.gmra.mrb[72].mxu1 %v19328_v41  ;;  %12980 = vmatmul.mubr.f32.gmra.mrb[72].mxu0 %v19329_v43  ;;  %v19378_v41 = vld [vmem:[#allocation201_spill] sm:$0xff]  ;;  %v19379_v43 = vld [vmem:[#allocation206_spill] sm:$0xff] }
 0x3fc   :  { %11986 = vmatprep.mubr.f32.mxu1 %v19330_v53  ;;  %12982 = vmatprep.mubr.f32.mxu0 %v19331_v56  ;;  %v19380_v53 = vld [vmem:[#allocation203_spill] sm:$0xff] }
 0x3fd   :  { %v19381_v56 = vld [vmem:[#allocation207_spill] sm:$0xff] }
 0x3ff   :  { %11987 = vmatmul.mubr.f32.gmra.mrb[74].mxu1 %v19332_v1  ;;  %12983 = vmatmul.mubr.f32.gmra.mrb[74].mxu0 %v19333_v24  ;;  %v19382_v1 = vld [vmem:[#allocation204_spill] sm:$0xff]  ;;  %v19383_v24 = vld [vmem:[#allocation210_spill] sm:$0xff] }
 0x400   :  { %11989 = vmatprep.mubr.f32.mxu1 %v19334_v46  ;;  %12985 = vmatprep.mubr.f32.mxu0 %v19335_v61  ;;  %v19384_v46 = vld [vmem:[#allocation208_spill] sm:$0xff] }
 0x401   :  { %v19385_v61 = vld [vmem:[#allocation212_spill] sm:$0xff] }
 0x403   :  { %11990 = vmatmul.mubr.f32.gmra.mrb[76].mxu1 %v19336_v29  ;;  %12986 = vmatmul.mubr.f32.gmra.mrb[76].mxu0 %v19337_v21  ;;  %v19386_v29 = vld [vmem:[#allocation209_spill] sm:$0xff]  ;;  %v19387_v21 = vld [vmem:[#allocation215_spill] sm:$0xff] }
 0x404   :  { %11992 = vmatprep.mubr.f32.mxu1 %v19338_v40  ;;  %12988 = vmatprep.mubr.f32.mxu0 %v19339_v0  ;;  %v19388_v40 = vld [vmem:[#allocation211_spill] sm:$0xff]  ;;  %v19389_v0 = vld [vmem:[#allocation216_spill] sm:$0xff] }
 0x407   :  { %11993 = vmatmul.mubr.f32.gmra.mrb[78].mxu1 %v19340_v2  ;;  %12989 = vmatmul.mubr.f32.gmra.mrb[78].mxu0 %v19341_v14  ;;  %v19390_v2 = vld [vmem:[#allocation213_spill] sm:$0xff]  ;;  %v19391_v14 = vld [vmem:[#allocation218_spill] sm:$0xff] }
 0x408   :  { %11995 = vmatprep.mubr.f32.mxu1 %v19342_v36  ;;  %12991 = vmatprep.mubr.f32.mxu0 %v19343_v13  ;;  %v19392_v36 = vld [vmem:[#allocation214_spill] sm:$0xff]  ;;  %v17020_v13 = vld [vmem:[%s17887_s2] ss:$0 sm:$0xff] }
 0x40b   :  { %11996 = vmatmul.mubr.f32.gmra.mrb[80].mxu1 %v19344_v12  ;;  %12992 = vmatmul.mubr.f32.gmra.mrb[80].mxu0 %v19345_v57  ;;  %v19393_v12 = vld [vmem:[#allocation220_spill] sm:$0xff]  ;;  %v19394_v57 = vld [vmem:[#allocation217_spill] sm:$0xff] }
 0x40c   :  { %11998 = vmatprep.mubr.f32.mxu1 %v19346_v32  ;;  %12994 = vmatprep.mubr.f32.mxu0 %v19347_v26 }
 0x40f   :  { %11999 = vmatmul.mubr.f32.gmra.mrb[82].mxu1 %v19348_v44  ;;  %12995 = vmatmul.mubr.f32.gmra.mrb[82].mxu0 %v19349_v51 }
 0x410   :  { %12001 = vmatprep.mubr.f32.mxu1 %v19350_v34  ;;  %12997 = vmatprep.mubr.f32.mxu0 %v19351_v15  ;;  %v19395_v34 = vld [vmem:[#allocation222_spill] sm:$0xff] }
 0x413   :  { %12002 = vmatmul.mubr.f32.gmra.mrb[84].mxu1 %v19352_v11  ;;  %12998 = vmatmul.mubr.f32.gmra.mrb[84].mxu0 %v19353_v37  ;;  %v19396_v11 = vld [vmem:[#allocation219_spill] sm:$0xff] }
 0x414   :  { %12004 = vmatprep.mubr.f32.mxu1 %v19354_v5  ;;  %13000 = vmatprep.mubr.f32.mxu0 %v19355_v38  ;;  %v19397_v5 = vld [vmem:[#allocation225_spill] sm:$0xff] }
 0x415   :  { %v19398_v38 = vld [vmem:[#allocation221_spill] sm:$0xff] }
 0x417   :  { %12005 = vmatmul.mubr.f32.gmra.mrb[86].mxu1 %v19356_v52  ;;  %13001 = vmatmul.mubr.f32.gmra.mrb[86].mxu0 %v19357_v60 }
 0x418   :  { %12007 = vmatprep.mubr.f32.mxu1 %v19358_v27  ;;  %13003 = vmatprep.mubr.f32.mxu0 %v19124_v39  ;;  %v19369_v39 = vld [vmem:[#allocation194_spill] sm:$0xff] }
 0x41b   :  { %12008 = vmatmul.mubr.f32.gmra.mrb[88].mxu1 %v19359_v48  ;;  %13004 = vmatmul.mubr.f32.gmra.mrb[88].mxu0 %v19360_v19 }
 0x41c   :  { %12010 = vmatprep.mubr.f32.mxu1 %v19361_v22  ;;  %13006 = vmatprep.mubr.f32.mxu0 %v19362_v28  ;;  %v19399_v28 = vld [vmem:[#allocation226_spill] sm:$0xff] }
 0x41f   :  { %12011 = vmatmul.mubr.f32.gmra.mrb[90].mxu1 %v19363_v16  ;;  %13007 = vmatmul.mubr.f32.gmra.mrb[90].mxu0 %v19364_v6  ;;  %v19400_v6 = vld [vmem:[#allocation223_spill] sm:$0xff] }
 0x420   :  { %12013 = vmatprep.mubr.f32.mxu1 %v19365_v20  ;;  %13009 = vmatprep.mubr.f32.mxu0 %v19366_v58  ;;  %v19401_v58 = vld [vmem:[#allocation227_spill] sm:$0xff] }
 0x423   :  { %12014 = vmatmul.mubr.f32.gmra.mrb[92].mxu1 %v19367_v54  ;;  %13010 = vmatmul.mubr.f32.gmra.mrb[92].mxu0 %v19368_v31  ;;  %v19402_v54 = vld [vmem:[#allocation224_spill] sm:$0xff] }
 0x424   :  { %12016 = vmatprep.mubr.f32.mxu1 %v19369_v39  ;;  %13012 = vmatprep.mubr.f32.mxu0 %v19370_v10 }
 0x427   :  { %12017 = vmatmul.mubr.f32.gmra.mrb[94].mxu1 %v19371_v50  ;;  %13013 = vmatmul.mubr.f32.gmra.mrb[94].mxu0 %v19372_v18 }
 0x428   :  { %12019 = vmatprep.mubr.f32.mxu1 %v19373_v49  ;;  %13015 = vmatprep.mubr.f32.mxu0 %v19374_v25  ;;  %v19403_v25 = vld [vmem:[#allocation230_spill] sm:$0xff] }
 0x42b   :  { %12020 = vmatmul.mubr.f32.gmra.mrb[96].mxu1 %v19375_v33  ;;  %13016 = vmatmul.mubr.f32.gmra.mrb[96].mxu0 %v19376_v59  ;;  %v19404_v59 = vld [vmem:[#allocation228_spill] sm:$0xff] }
 0x42c   :  { %12022 = vmatprep.mubr.f32.mxu1 %v19377_v17  ;;  %13018 = vmatprep.mubr.f32.mxu0 %v19378_v41  ;;  %v19405_v41 = vld [vmem:[#allocation232_spill] sm:$0xff] }
 0x42f   :  { %12023 = vmatmul.mubr.f32.gmra.mrb[98].mxu1 %v19379_v43  ;;  %13019 = vmatmul.mubr.f32.gmra.mrb[98].mxu0 %v19380_v53 }
 0x430   :  { %12025 = vmatprep.mubr.f32.mxu1 %v19381_v56  ;;  %13021 = vmatprep.mubr.f32.mxu0 %v19382_v1 }
 0x433   :  { %12026 = vmatmul.mubr.f32.gmra.mrb[100].mxu1 %v19383_v24  ;;  %13022 = vmatmul.mubr.f32.gmra.mrb[100].mxu0 %v19384_v46 }
 0x434   :  { %12028 = vmatprep.mubr.f32.mxu1 %v19385_v61  ;;  %13024 = vmatprep.mubr.f32.mxu0 %v19386_v29  ;;  %v19406_v61 = vld [vmem:[#allocation235_spill] sm:$0xff] }
 0x437   :  { %12029 = vmatmul.mubr.f32.gmra.mrb[102].mxu1 %v19387_v21  ;;  %13025 = vmatmul.mubr.f32.gmra.mrb[102].mxu0 %v19388_v40  ;;  %v19407_v40 = vld [vmem:[#allocation236_spill] sm:$0xff] }
 0x438   :  { %12031 = vmatprep.mubr.f32.mxu1 %v19389_v0  ;;  %13027 = vmatprep.mubr.f32.mxu0 %v19390_v2  ;;  %v19408_v0 = vld [vmem:[#allocation233_spill] sm:$0xff] }
 0x43b   :  { %12032 = vmatmul.mubr.f32.gmra.mrb[104].mxu1 %v19391_v14  ;;  %13028 = vmatmul.mubr.f32.gmra.mrb[104].mxu0 %v19392_v36 }
 0x43c   :  { %12034 = vmatprep.mubr.f32.mxu1 %v19393_v12  ;;  %13030 = vmatprep.mubr.f32.mxu0 %v19394_v57 }
 0x43e   :  { %v11877_v32 = vpop.f32.mrb[0].mxu1  ;;  %v12873_v26 = vpop.f32.mrb[0].mxu0 }
 0x43f   :  { %v13363_v44 = vadd.f32 %v11877_v32, %v17020_v13  ;;  %v3792_v51 = vpop.f32.mrb[1].mxu1  ;;  %12035 = vmatmul.mubr.f32.gmra.mrb[106].mxu1 %v19395_v34  ;;  %v8266_v15 = vpop.f32.mrb[1].mxu0  ;;  %13031 = vmatmul.mubr.f32.gmra.mrb[106].mxu0 %v19396_v11  ;;  %v19409_v32 = vld [vmem:[#allocation238_spill] sm:$0xff] }
 0x440   :  { %v13365_v37 = vadd.f32 %v17020_v13, %v3792_v51  ;;  %12037 = vmatprep.mubr.f32.mxu1 %v19397_v5  ;;  %13033 = vmatprep.mubr.f32.mxu0 %v19398_v38  ;;  %v19411_v51 = vld [vmem:[#allocation240_spill] sm:$0xff] }
 0x441   :  { %v17030_v52 = vadd.f32 %v13363_v44, %v12873_v26  ;;  %v19410_v44 = vld [vmem:[#allocation234_spill] sm:$0xff] }
 0x442   :  { %v17032_v60 = vadd.f32 %v13365_v37, %v8266_v15  ;;  %v11880_v27 = vpop.f32.mrb[2].mxu1  ;;  %v12876_v48 = vpop.f32.mrb[2].mxu0 }
 0x443   :  { %v13367_v19 = vadd.f32 %v11880_v27, %v17020_v13  ;;  %v3806_v22 = vpop.f32.mrb[3].mxu1  ;;  %12038 = vmatmul.mubr.f32.gmra.mrb[108].mxu1 %v19399_v28  ;;  %v8278_v16 = vpop.f32.mrb[3].mxu0  ;;  %13034 = vmatmul.mubr.f32.gmra.mrb[108].mxu0 %v19400_v6  ;;  %v19412_v27 = vld [vmem:[#allocation242_spill] sm:$0xff] }
 0x444   :  { %v13369_v20 = vadd.f32 %v17020_v13, %v3806_v22  ;;  %12040 = vmatprep.mubr.f32.mxu1 %v19401_v58  ;;  %13036 = vmatprep.mubr.f32.mxu0 %v19402_v54  ;;  %v19413_v22 = vld [vmem:[#allocation245_spill] sm:$0xff]  ;;  %v19414_v54 = vld [vmem:[#allocation246_spill] sm:$0xff] }
 0x445   :  { %v17040_v31 = vadd.f32 %v13367_v19, %v12876_v48 }
 0x446   :  { %v17042_v39 = vadd.f32 %v13369_v20, %v8278_v16  ;;  %v11883_v10 = vpop.f32.mrb[4].mxu1  ;;  %v12879_v50 = vpop.f32.mrb[4].mxu0 }
 0x447   :  { %v13371_v18 = vadd.f32 %v11883_v10, %v17020_v13  ;;  %v3820_v49 = vpop.f32.mrb[5].mxu1  ;;  %12041 = vmatmul.mubr.f32.gmra.mrb[110].mxu1 %v19403_v25  ;;  %v8290_v33 = vpop.f32.mrb[5].mxu0  ;;  %13037 = vmatmul.mubr.f32.gmra.mrb[110].mxu0 %v19404_v59 }
 0x448   :  { %v13373_v17 = vadd.f32 %v17020_v13, %v3820_v49  ;;  %12043 = vmatprep.mubr.f32.mxu1 %v19405_v41  ;;  %13039 = vmatprep.mubr.f32.mxu0 %v19149_v8 }
 0x449   :  { %v17050_v43 = vadd.f32 %v13371_v18, %v12879_v50  ;;  %v19415_v50 = vld [vmem:[#allocation248_spill] sm:$0xff] }
 0x44a   :  { %v17052_v53 = vadd.f32 %v13373_v17, %v8290_v33  ;;  %v11886_v56 = vpop.f32.mrb[6].mxu1  ;;  %v12882_v1 = vpop.f32.mrb[6].mxu0  ;;  %v19416_v17 = vld [vmem:[#allocation252_spill] sm:$0xff] }
 0x44b   :  { %v13375_v24 = vadd.f32 %v11886_v56, %v17020_v13  ;;  %v3834_v46 = vpop.f32.mrb[7].mxu1  ;;  %12044 = vmatmul.mubr.f32.gmra.mrb[112].mxu1 %v19406_v61  ;;  %v8302_v29 = vpop.f32.mrb[7].mxu0  ;;  %13040 = vmatmul.mubr.f32.gmra.mrb[112].mxu0 %v19150_v7  ;;  %v19417_v56 = vld [vmem:[#allocation247_spill] sm:$0xff] }
 0x44c   :  { %v13377_v21 = vadd.f32 %v17020_v13, %v3834_v46  ;;  %12046 = vmatprep.mubr.f32.mxu1 %v19407_v40  ;;  %13042 = vmatprep.mubr.f32.mxu0 %v19408_v0  ;;  %v19420_v0 = vld [vmem:[#allocation256_spill] sm:$0xff] }
 0x44d   :  { %v17060_v8 = vadd.f32 %v13375_v24, %v12882_v1  ;;  %v19418_v1 = vld [vmem:[#allocation254_spill] sm:$0xff]  ;;  %v19419_v24 = vld [vmem:[#allocation251_spill] sm:$0xff] }
 0x44e   :  { %v17062_v2 = vadd.f32 %v13377_v21, %v8302_v29  ;;  %v11889_v14 = vpop.f32.mrb[8].mxu1  ;;  %v12885_v36 = vpop.f32.mrb[8].mxu0 }
 0x44f   :  { %v13379_v12 = vadd.f32 %v11889_v14, %v17020_v13  ;;  %v3848_v57 = vpop.f32.mrb[9].mxu1  ;;  %12047 = vmatmul.mubr.f32.gmra.mrb[114].mxu1 %v19409_v32  ;;  %v8314_v26 = vpop.f32.mrb[9].mxu0  ;;  %13043 = vmatmul.mubr.f32.gmra.mrb[114].mxu0 %v19410_v44  ;;  %v19423_v32 = vld [vmem:[#allocation255_spill] sm:$0xff] }
 0x450   :  { %v13381_v7 = vadd.f32 %v17020_v13, %v3848_v57  ;;  %12049 = vmatprep.mubr.f32.mxu1 %v19411_v51  ;;  %13045 = vmatprep.mubr.f32.mxu0 %v19153_v9  ;;  %v19422_v57 = vld [vmem:[#allocation258_spill] sm:$0xff] }
 0x451   :  { %v17070_v34 = vadd.f32 %v13379_v12, %v12885_v36  ;;  %v19421_v36 = vld [vmem:[#allocation253_spill] sm:$0xff] }
 0x452   :  { %v17072_v15 = vadd.f32 %v13381_v7, %v8314_v26  ;;  %v11892_v11 = vpop.f32.mrb[10].mxu1  ;;  %v12888_v37 = vpop.f32.mrb[10].mxu0 }
 0x453   :  { %v13383_v5 = vadd.f32 %v11892_v11, %v17020_v13  ;;  %v3862_v38 = vpop.f32.mrb[11].mxu1  ;;  %12050 = vmatmul.mubr.f32.gmra.mrb[116].mxu1 %v19412_v27  ;;  %v8326_v48 = vpop.f32.mrb[11].mxu0  ;;  %13046 = vmatmul.mubr.f32.gmra.mrb[116].mxu0 %v19154_v55  ;;  %v19425_v27 = vld [vmem:[#allocation257_spill] sm:$0xff] }
 0x454   :  { %v13385_v19 = vadd.f32 %v17020_v13, %v3862_v38  ;;  %12052 = vmatprep.mubr.f32.mxu1 %v19413_v22  ;;  %13048 = vmatprep.mubr.f32.mxu0 %v19155_v62  ;;  %v19427_v22 = vld [vmem:[#allocation259_spill] sm:$0xff] }
 0x455   :  { %v17080_v9 = vadd.f32 %v13383_v5, %v12888_v37  ;;  %v19424_v5 = vld [vmem:[#allocation260_spill] sm:$0xff] }
 0x456   :  { %v17082_v28 = vadd.f32 %v13385_v19, %v8326_v48  ;;  %v11895_v16 = vpop.f32.mrb[12].mxu1  ;;  %v12891_v6 = vpop.f32.mrb[12].mxu0  ;;  %v19426_v19 = vld [vmem:[#allocation262_spill] sm:$0xff] }
 0x457   :  { %v13387_v20 = vadd.f32 %v11895_v16, %v17020_v13  ;;  %v3876_v58 = vpop.f32.mrb[13].mxu1  ;;  %12053 = vmatmul.mubr.f32.gmra.mrb[118].mxu1 %v19414_v54  ;;  %v8338_v10 = vpop.f32.mrb[13].mxu0  ;;  %13049 = vmatmul.mubr.f32.gmra.mrb[118].mxu0 %v19156_v45 }
 0x458   :  { %v13389_v55 = vadd.f32 %v17020_v13, %v3876_v58  ;;  %12055 = vmatprep.mubr.f32.mxu1 %v19415_v50  ;;  %13051 = vmatprep.mubr.f32.mxu0 %v19157_v42 }
 0x459   :  { %v17090_v62 = vadd.f32 %v13387_v20, %v12891_v6 }
 0x45a   :  { %v17092_v18 = vadd.f32 %v13389_v55, %v8338_v10  ;;  %v11898_v49 = vpop.f32.mrb[14].mxu1  ;;  %v12894_v25 = vpop.f32.mrb[14].mxu0  ;;  %v19428_v55 = vld [vmem:[#allocation265_spill] sm:$0xff] }
 0x45b   :  { %v13391_v33 = vadd.f32 %v11898_v49, %v17020_v13  ;;  %v3890_v59 = vpop.f32.mrb[15].mxu1  ;;  %12056 = vmatmul.mubr.f32.gmra.mrb[120].mxu1 %v19416_v17  ;;  %v8350_v41 = vpop.f32.mrb[15].mxu0  ;;  %13052 = vmatmul.mubr.f32.gmra.mrb[120].mxu0 %v19417_v56  ;;  %v19429_v49 = vld [vmem:[#allocation261_spill] sm:$0xff] }
 0x45c   :  { %v13393_v45 = vadd.f32 %v17020_v13, %v3890_v59  ;;  %12058 = vmatprep.mubr.f32.mxu1 %v19418_v1  ;;  %13054 = vmatprep.mubr.f32.mxu0 %v19419_v24  ;;  %v19431_v59 = vld [vmem:[#allocation263_spill] sm:$0xff] }
 0x45d   :  { %v17100_v42 = vadd.f32 %v13391_v33, %v12894_v25  ;;  %v19430_v33 = vld [vmem:[#allocation267_spill] sm:$0xff] }
 0x45e   :  { %v17102_v46 = vadd.f32 %v13393_v45, %v8350_v41  ;;  %v11901_v61 = vpop.f32.mrb[16].mxu1  ;;  %v12897_v29 = vpop.f32.mrb[16].mxu0 }
 0x45f   :  { %v13395_v21 = vadd.f32 %v11901_v61, %v17020_v13  ;;  %v3904_v40 = vpop.f32.mrb[17].mxu1  ;;  %12059 = vmatmul.mubr.f32.gmra.mrb[122].mxu1 %v19420_v0  ;;  %v8362_v14 = vpop.f32.mrb[17].mxu0  ;;  %13055 = vmatmul.mubr.f32.gmra.mrb[122].mxu0 %v19421_v36  ;;  %v19432_v61 = vld [vmem:[#allocation268_spill] sm:$0xff]  ;;  %v19434_v0 = vld [vmem:[#allocation270_spill] sm:$0xff] }
 0x460   :  { %v13397_v12 = vadd.f32 %v17020_v13, %v3904_v40  ;;  %12061 = vmatprep.mubr.f32.mxu1 %v19422_v57  ;;  %13057 = vmatprep.mubr.f32.mxu0 %v19423_v32 }
 0x461   :  { %v17110_v26 = vadd.f32 %v13395_v21, %v12897_v29  ;;  %v19433_v21 = vld [vmem:[#allocation264_spill] sm:$0xff] }
 0x462   :  { %v17112_v44 = vadd.f32 %v13397_v12, %v8362_v14  ;;  %v11904_v7 = vpop.f32.mrb[18].mxu1  ;;  %v12900_v51 = vpop.f32.mrb[18].mxu0  ;;  %v19435_v14 = vld [vmem:[#allocation266_spill] sm:$0xff] }
 0x463   :  { %v13399_v11 = vadd.f32 %v11904_v7, %v17020_v13  ;;  %v3918_v37 = vpop.f32.mrb[19].mxu1  ;;  %12062 = vmatmul.mubr.f32.gmra.mrb[124].mxu1 %v19424_v5  ;;  %v8374_v38 = vpop.f32.mrb[19].mxu0  ;;  %13058 = vmatmul.mubr.f32.gmra.mrb[124].mxu0 %v19425_v27  ;;  %v19437_v5 = vld [vmem:[#allocation269_spill] sm:$0xff]  ;;  %v19438_v27 = vld [vmem:[#allocation274_spill] sm:$0xff] }
 0x464   :  { %v13401_v48 = vadd.f32 %v17020_v13, %v3918_v37  ;;  %12064 = vmatprep.mubr.f32.mxu1 %v19426_v19  ;;  %13060 = vmatprep.mubr.f32.mxu0 %v19427_v22 }
 0x465   :  { %v17120_v16 = vadd.f32 %v13399_v11, %v12900_v51  ;;  %v19436_v11 = vld [vmem:[#allocation272_spill] sm:$0xff] }
 0x466   :  { %v17122_v6 = vadd.f32 %v13401_v48, %v8374_v38  ;;  %v11907_v20 = vpop.f32.mrb[20].mxu1  ;;  %v12903_v58 = vpop.f32.mrb[20].mxu0  ;;  %v19439_v48 = vld [vmem:[#allocation271_spill] sm:$0xff] }
 0x467   :  { %v13403_v54 = vadd.f32 %v11907_v20, %v17020_v13  ;;  %v3932_v10 = vpop.f32.mrb[21].mxu1  ;;  %12065 = vmatmul.mubr.f32.gmra.mrb[126].mxu1 %v19428_v55  ;;  %v8386_v50 = vpop.f32.mrb[21].mxu0  ;;  %13061 = vmatmul.mubr.f32.gmra.mrb[126].mxu0 %v19429_v49  ;;  %v19440_v55 = vld [vmem:[#allocation276_spill] sm:$0xff]  ;;  %v19441_v49 = vld [vmem:[#allocation273_spill] sm:$0xff] }
 0x468   :  { %v13405_v25 = vadd.f32 %v17020_v13, %v3932_v10  ;;  %12067 = vmatprep.mubr.f32.mxu1 %v19430_v33  ;;  %13063 = vmatprep.mubr.f32.mxu0 %v19431_v59  ;;  %v19442_v33 = vld [vmem:[#allocation278_spill] sm:$0xff]  ;;  %v19443_v59 = vld [vmem:[#allocation275_spill] sm:$0xff] }
 0x469   :  { %v17130_v17 = vadd.f32 %v13403_v54, %v12903_v58 }
 0x46a   :  { %v17132_v41 = vadd.f32 %v13405_v25, %v8386_v50  ;;  %v11910_v56 = vpop.f32.mrb[22].mxu1  ;;  %v12906_v45 = vpop.f32.mrb[22].mxu0 }
 0x46b   :  { %v13407_v1 = vadd.f32 %v11910_v56, %v17020_v13  ;;  %v3946_v24 = vpop.f32.mrb[23].mxu1  ;;  %12068 = vmatmul.mubr.f32.gmra.mrb[128].mxu1 %v19432_v61  ;;  %v8398_v29 = vpop.f32.mrb[23].mxu0  ;;  %13064 = vmatmul.mubr.f32.gmra.mrb[128].mxu0 %v19433_v21  ;;  %v19444_v21 = vld [vmem:[#allocation280_spill] sm:$0xff] }
 0x46c   :  { %v13409_v40 = vadd.f32 %v17020_v13, %v3946_v24  ;;  %12070 = vmatprep.mubr.f32.mxu1 %v19434_v0  ;;  %13066 = vmatprep.mubr.f32.mxu0 %v19435_v14  ;;  %v19445_v0 = vld [vmem:[#allocation277_spill] sm:$0xff] }
 0x46d   :  { %v17140_v36 = vadd.f32 %v13407_v1, %v12906_v45 }
 0x46e   :  { %v17142_v12 = vadd.f32 %v13409_v40, %v8398_v29  ;;  %v11913_v57 = vpop.f32.mrb[24].mxu1  ;;  %v12909_v32 = vpop.f32.mrb[24].mxu0 }
 0x46f   :  { %v13411_v7 = vadd.f32 %v11913_v57, %v17020_v13  ;;  %v3960_v51 = vpop.f32.mrb[25].mxu1  ;;  %12071 = vmatmul.mubr.f32.gmra.mrb[130].mxu1 %v19436_v11  ;;  %v8410_v37 = vpop.f32.mrb[25].mxu0  ;;  %13067 = vmatmul.mubr.f32.gmra.mrb[130].mxu0 %v19437_v5  ;;  %v19446_v57 = vld [vmem:[#allocation282_spill] sm:$0xff] }
 0x470   :  { %v13413_v38 = vadd.f32 %v17020_v13, %v3960_v51  ;;  %12073 = vmatprep.mubr.f32.mxu1 %v19438_v27  ;;  %13069 = vmatprep.mubr.f32.mxu0 %v19439_v48  ;;  %v19448_v27 = vld [vmem:[#allocation285_spill] sm:$0xff] }
 0x471   :  { %v17150_v19 = vadd.f32 %v13411_v7, %v12909_v32  ;;  %v19447_v32 = vld [vmem:[#allocation279_spill] sm:$0xff] }
 0x472   :  { %v17152_v22 = vadd.f32 %v13413_v38, %v8410_v37  ;;  %v11916_v20 = vpop.f32.mrb[26].mxu1  ;;  %v12912_v58 = vpop.f32.mrb[26].mxu0 }
 0x473   :  { %v13415_v54 = vadd.f32 %v11916_v20, %v17020_v13  ;;  %v3974_v10 = vpop.f32.mrb[27].mxu1  ;;  %12074 = vmatmul.mubr.f32.gmra.mrb[132].mxu1 %v19440_v55  ;;  %v8422_v50 = vpop.f32.mrb[27].mxu0  ;;  %13070 = vmatmul.mubr.f32.gmra.mrb[132].mxu0 %v19441_v49  ;;  %v19449_v20 = vld [vmem:[#allocation281_spill] sm:$0xff] }
 0x474   :  { %v13417_v25 = vadd.f32 %v17020_v13, %v3974_v10  ;;  %12076 = vmatprep.mubr.f32.mxu1 %v19442_v33  ;;  %13072 = vmatprep.mubr.f32.mxu0 %v19443_v59  ;;  %v19451_v59 = vld [vmem:[#allocation288_spill] sm:$0xff] }
 0x475   :  { %v17160_v56 = vadd.f32 %v13415_v54, %v12912_v58  ;;  %v19450_v54 = vld [vmem:[#allocation287_spill] sm:$0xff] }
 0x476   :  { %v17162_v45 = vadd.f32 %v13417_v25, %v8422_v50  ;;  %v11919_v1 = vpop.f32.mrb[28].mxu1  ;;  %v12915_v24 = vpop.f32.mrb[28].mxu0 }
 0x477   :  { %v13419_v61 = vadd.f32 %v11919_v1, %v17020_v13  ;;  %v3988_v29 = vpop.f32.mrb[29].mxu1  ;;  %12077 = vmatmul.mubr.f32.gmra.mrb[134].mxu1 %v19444_v21  ;;  %v8434_v40 = vpop.f32.mrb[29].mxu0  ;;  %13073 = vmatmul.mubr.f32.gmra.mrb[134].mxu0 %v19445_v0  ;;  %v19454_v21 = vld [vmem:[#allocation286_spill] sm:$0xff] }
 0x478   :  { %v13421_v14 = vadd.f32 %v17020_v13, %v3988_v29  ;;  %12079 = vmatprep.mubr.f32.mxu1 %v19446_v57  ;;  %13075 = vmatprep.mubr.f32.mxu0 %v19447_v32  ;;  %v19453_v29 = vld [vmem:[#allocation290_spill] sm:$0xff] }
 0x479   :  { %v17170_v7 = vadd.f32 %v13419_v61, %v12915_v24  ;;  %v19452_v24 = vld [vmem:[#allocation284_spill] sm:$0xff] }
 0x47a   :  { %v17172_v51 = vadd.f32 %v13421_v14, %v8434_v40  ;;  %v11922_v11 = vpop.f32.mrb[30].mxu1  ;;  %v12918_v37 = vpop.f32.mrb[30].mxu0 }
 0x47b   :  { %v13423_v5 = vadd.f32 %v11922_v11, %v17020_v13  ;;  %v4002_v38 = vpop.f32.mrb[31].mxu1  ;;  %12080 = vmatmul.mubr.f32.gmra.mrb[136].mxu1 %v19448_v27  ;;  %v8446_v48 = vpop.f32.mrb[31].mxu0  ;;  %13076 = vmatmul.mubr.f32.gmra.mrb[136].mxu0 %v19449_v20  ;;  %v19455_v11 = vld [vmem:[#allocation292_spill] sm:$0xff]  ;;  %v19457_v27 = vld [vmem:[#allocation294_spill] sm:$0xff] }
 0x47c   :  { %v13425_v58 = vadd.f32 %v17020_v13, %v4002_v38  ;;  %12082 = vmatprep.mubr.f32.mxu1 %v19450_v54  ;;  %13078 = vmatprep.mubr.f32.mxu0 %v19170_v3 }
 0x47d   :  { %v17180_v10 = vadd.f32 %v13423_v5, %v12918_v37  ;;  %v19456_v5 = vld [vmem:[#allocation289_spill] sm:$0xff] }
 0x47e   :  { %v17182_v55 = vadd.f32 %v13425_v58, %v8446_v48  ;;  %v11925_v50 = vpop.f32.mrb[32].mxu1  ;;  %v12921_v49 = vpop.f32.mrb[32].mxu0  ;;  %v19458_v48 = vld [vmem:[#allocation291_spill] sm:$0xff] }
 0x47f   :  { %v13427_v25 = vadd.f32 %v11925_v50, %v17020_v13  ;;  %v4016_v33 = vpop.f32.mrb[33].mxu1  ;;  %12083 = vmatmul.mubr.f32.gmra.mrb[138].mxu1 %v19451_v59  ;;  %v8458_v1 = vpop.f32.mrb[33].mxu0  ;;  %13079 = vmatmul.mubr.f32.gmra.mrb[138].mxu0 %v19452_v24 }
 0x480   :  { %v13429_v61 = vadd.f32 %v17020_v13, %v4016_v33  ;;  %12085 = vmatprep.mubr.f32.mxu1 %v19453_v29  ;;  %13081 = vmatprep.mubr.f32.mxu0 %v19454_v21  ;;  %v19459_v33 = vld [vmem:[#allocation296_spill] sm:$0xff]  ;;  %v19462_v29 = vld [vmem:[#allocation295_spill] sm:$0xff] }
 0x481   :  { %v17190_v3 = vadd.f32 %v13427_v25, %v12921_v49 }
 0x482   :  { %v17192_v40 = vadd.f32 %v13429_v61, %v8458_v1  ;;  %v11928_v0 = vpop.f32.mrb[34].mxu1  ;;  %v12924_v14 = vpop.f32.mrb[34].mxu0  ;;  %v19460_v1 = vld [vmem:[#allocation293_spill] sm:$0xff]  ;;  %v19461_v61 = vld [vmem:[#allocation298_spill] sm:$0xff] }
 0x483   :  { %v13431_v57 = vadd.f32 %v11928_v0, %v17020_v13  ;;  %v4030_v32 = vpop.f32.mrb[35].mxu1  ;;  %12086 = vmatmul.mubr.f32.gmra.mrb[140].mxu1 %v19455_v11  ;;  %v8470_v37 = vpop.f32.mrb[35].mxu0  ;;  %13082 = vmatmul.mubr.f32.gmra.mrb[140].mxu0 %v19456_v5 }
 0x484   :  { %v13433_v38 = vadd.f32 %v17020_v13, %v4030_v32  ;;  %12088 = vmatprep.mubr.f32.mxu1 %v19457_v27  ;;  %13084 = vmatprep.mubr.f32.mxu0 %v19458_v48  ;;  %v19466_v48 = vld [vmem:[#allocation302_spill] sm:$0xff] }
 0x485   :  { %v17200_v20 = vadd.f32 %v13431_v57, %v12924_v14 }
 0x486   :  { %v17202_v58 = vadd.f32 %v13433_v38, %v8470_v37  ;;  %v11931_v54 = vpop.f32.mrb[36].mxu1  ;;  %v12927_v50 = vpop.f32.mrb[36].mxu0  ;;  %v19464_v37 = vld [vmem:[#allocation300_spill] sm:$0xff]  ;;  %v19465_v38 = vld [vmem:[#allocation297_spill] sm:$0xff] }
 0x487   :  { %v13435_v49 = vadd.f32 %v11931_v54, %v17020_v13  ;;  %v4044_v25 = vpop.f32.mrb[37].mxu1  ;;  %12089 = vmatmul.mubr.f32.gmra.mrb[142].mxu1 %v19459_v33  ;;  %v8482_v59 = vpop.f32.mrb[37].mxu0  ;;  %13085 = vmatmul.mubr.f32.gmra.mrb[142].mxu0 %v19460_v1  ;;  %v19467_v54 = vld [vmem:[#allocation299_spill] sm:$0xff] }
 0x488   :  { %v13437_v24 = vadd.f32 %v17020_v13, %v4044_v25  ;;  %12091 = vmatprep.mubr.f32.mxu1 %v19461_v61  ;;  %13087 = vmatprep.mubr.f32.mxu0 %v19462_v29  ;;  %v19471_v29 = vld [vmem:[#allocation301_spill] sm:$0xff] }
 0x489   :  { %v17210_v21 = vadd.f32 %v13435_v49, %v12927_v50 }
 0x48a   :  { %v17212_v0 = vadd.f32 %v13437_v24, %v8482_v59  ;;  %v11934_v14 = vpop.f32.mrb[38].mxu1  ;;  %v12930_v57 = vpop.f32.mrb[38].mxu0  ;;  %v19470_v24 = vld [vmem:[#allocation305_spill] sm:$0xff] }
 0x48b   :  { %v13439_v32 = vadd.f32 %v11934_v14, %v17020_v13  ;;  %v4058_v11 = vpop.f32.mrb[39].mxu1  ;;  %12092 = vmatmul.mubr.f32.gmra.mrb[144].mxu1 %v19464_v37  ;;  %v8494_v5 = vpop.f32.mrb[39].mxu0  ;;  %13088 = vmatmul.mubr.f32.gmra.mrb[144].mxu0 %v19465_v38  ;;  %v19473_v37 = vld [vmem:[#allocation303_spill] sm:$0xff] }
 0x48c   :  { %19463 = vst [vmem:[#allocation12_spill] sm:$0xff] %v17212_v0  ;;  %v13441_v27 = vadd.f32 %v17020_v13, %v4058_v11  ;;  %12094 = vmatprep.mubr.f32.mxu1 %v19466_v48  ;;  %13090 = vmatprep.mubr.f32.mxu0 %v19467_v54  ;;  %v19472_v11 = vld [vmem:[#allocation307_spill] sm:$0xff]  ;;  %v19476_v54 = vld [vmem:[#allocation308_spill] sm:$0xff] }
 0x48d   :  { %v17220_v50 = vadd.f32 %v13439_v32, %v12930_v57  ;;  %v19508_v0 = vld [vmem:[#allocation332_spill] sm:$0xff] }
 0x48e   :  { %v17222_v49 = vadd.f32 %v13441_v27, %v8494_v5  ;;  %v11937_v25 = vpop.f32.mrb[40].mxu1  ;;  %v12933_v33 = vpop.f32.mrb[40].mxu0 }
 0x48f   :  { %19468 = vst [vmem:[#allocation23_spill] sm:$0xff] %v17220_v50  ;;  %v13443_v59 = vadd.f32 %v11937_v25, %v17020_v13  ;;  %v4072_v1 = vpop.f32.mrb[41].mxu1  ;;  %12095 = vmatmul.mubr.f32.gmra.mrb[146].mxu1 %v19470_v24  ;;  %v8506_v61 = vpop.f32.mrb[41].mxu0  ;;  %13091 = vmatmul.mubr.f32.gmra.mrb[146].mxu0 %v19471_v29  ;;  %v19477_v24 = vld [vmem:[#allocation304_spill] sm:$0xff]  ;;  %v19478_v29 = vld [vmem:[#allocation310_spill] sm:$0xff]  ;;  %v9467_v50 = vmax.f32 %v17040_v31, 0.0 }
 0x490   :  { %19469 = vst [vmem:[#allocation24_spill] sm:$0xff] %v17222_v49  ;;  %v13445_v14 = vadd.f32 %v17020_v13, %v4072_v1  ;;  %12097 = vmatprep.mubr.f32.mxu1 %v19472_v11  ;;  %13093 = vmatprep.mubr.f32.mxu0 %v19473_v37  ;;  %v19479_v11 = vld [vmem:[#allocation306_spill] sm:$0xff] }
 0x491   :  { %v17230_v57 = vadd.f32 %v13443_v59, %v12933_v33 }
 0x492   :  { %v17232_v32 = vadd.f32 %v13445_v14, %v8506_v61  ;;  %v11940_v5 = vpop.f32.mrb[42].mxu1  ;;  %v12936_v38 = vpop.f32.mrb[42].mxu0 }
 0x493   :  { %19474 = vst [vmem:[#allocation13_spill] sm:$0xff] %v17230_v57  ;;  %v13447_v27 = vadd.f32 %v11940_v5, %v17020_v13  ;;  %v4086_v48 = vpop.f32.mrb[43].mxu1  ;;  %12098 = vmatmul.mubr.f32.gmra.mrb[148].mxu1 %v19476_v54  ;;  %v8518_v25 = vpop.f32.mrb[43].mxu0  ;;  %13094 = vmatmul.mubr.f32.gmra.mrb[148].mxu0 %v19477_v24  ;;  %v19483_v57 = vld [vmem:[#allocation309_spill] sm:$0xff]  ;;  %v19484_v24 = vld [vmem:[#allocation314_spill] sm:$0xff] }
 0x494   :  { %19475 = vst [vmem:[#allocation26_spill] sm:$0xff] %v17232_v32  ;;  %v13449_v1 = vadd.f32 %v17020_v13, %v4086_v48  ;;  %12100 = vmatprep.mubr.f32.mxu1 %v19478_v29  ;;  %13096 = vmatprep.mubr.f32.mxu0 %v19479_v11  ;;  %v19482_v32 = vld [vmem:[#allocation312_spill] sm:$0xff]  ;;  %v19485_v29 = vld [vmem:[#allocation311_spill] sm:$0xff] }
 0x495   :  { %v17240_v33 = vadd.f32 %v13447_v27, %v12936_v38 }
 0x496   :  { %v17242_v59 = vadd.f32 %v13449_v1, %v8518_v25  ;;  %v11943_v61 = vpop.f32.mrb[44].mxu1  ;;  %v12939_v14 = vpop.f32.mrb[44].mxu0 }
 0x497   :  { %19480 = vst [vmem:[#allocation27_spill] sm:$0xff] %v17240_v33  ;;  %v13451_v37 = vadd.f32 %v11943_v61, %v17020_v13  ;;  %v4100_v5 = vpop.f32.mrb[45].mxu1  ;;  %12101 = vmatmul.mubr.f32.gmra.mrb[150].mxu1 %v19482_v32  ;;  %v8530_v54 = vpop.f32.mrb[45].mxu0  ;;  %13097 = vmatmul.mubr.f32.gmra.mrb[150].mxu0 %v19483_v57  ;;  %v19489_v33 = vld [vmem:[#allocation313_spill] sm:$0xff] }
 0x498   :  { %19481 = vst [vmem:[#allocation16_spill] sm:$0xff] %v17242_v59  ;;  %v13453_v48 = vadd.f32 %v17020_v13, %v4100_v5  ;;  %12103 = vmatprep.mubr.f32.mxu1 %v19484_v24  ;;  %13099 = vmatprep.mubr.f32.mxu0 %v19485_v29  ;;  %v19488_v59 = vld [vmem:[#allocation316_spill] sm:$0xff]  ;;  %v19490_v5 = vld [vmem:[#allocation318_spill] sm:$0xff]  ;;  %v19491_v24 = vld [vmem:[#allocation315_spill] sm:$0xff] }
 0x499   :  { %v17250_v38 = vadd.f32 %v13451_v37, %v12939_v14 }
 0x49a   :  { %v17252_v27 = vadd.f32 %v13453_v48, %v8530_v54  ;;  %v11946_v25 = vpop.f32.mrb[46].mxu1  ;;  %v12942_v1 = vpop.f32.mrb[46].mxu0 }
 0x49b   :  { %19486 = vst [vmem:[#allocation32_spill] sm:$0xff] %v17250_v38  ;;  %v13455_v11 = vadd.f32 %v11946_v25, %v17020_v13  ;;  %v4114_v61 = vpop.f32.mrb[47].mxu1  ;;  %12104 = vmatmul.mubr.f32.gmra.mrb[152].mxu1 %v19488_v59  ;;  %v8542_v32 = vpop.f32.mrb[47].mxu0  ;;  %13100 = vmatmul.mubr.f32.gmra.mrb[152].mxu0 %v19489_v33  ;;  %v19495_v38 = vld [vmem:[#allocation317_spill] sm:$0xff] }
 0x49c   :  { %19487 = vst [vmem:[#allocation19_spill] sm:$0xff] %v17252_v27  ;;  %v13457_v57 = vadd.f32 %v17020_v13, %v4114_v61  ;;  %12106 = vmatprep.mubr.f32.mxu1 %v19490_v5  ;;  %13102 = vmatprep.mubr.f32.mxu0 %v19491_v24  ;;  %v19494_v27 = vld [vmem:[#allocation320_spill] sm:$0xff]  ;;  %v19496_v61 = vld [vmem:[#allocation322_spill] sm:$0xff]  ;;  %v19497_v5 = vld [vmem:[#allocation319_spill] sm:$0xff] }
 0x49d   :  { %v17260_v14 = vadd.f32 %v13455_v11, %v12942_v1 }
 0x49e   :  { %v17262_v37 = vadd.f32 %v13457_v57, %v8542_v32  ;;  %v11949_v54 = vpop.f32.mrb[48].mxu1  ;;  %v12945_v48 = vpop.f32.mrb[48].mxu0 }
 0x49f   :  { %19492 = vst [vmem:[#allocation34_spill] sm:$0xff] %v17260_v14  ;;  %v13459_v29 = vadd.f32 %v11949_v54, %v17020_v13  ;;  %v4128_v25 = vpop.f32.mrb[49].mxu1  ;;  %12107 = vmatmul.mubr.f32.gmra.mrb[154].mxu1 %v19494_v27  ;;  %v8554_v59 = vpop.f32.mrb[49].mxu0  ;;  %13103 = vmatmul.mubr.f32.gmra.mrb[154].mxu0 %v19495_v38  ;;  %v19501_v14 = vld [vmem:[#allocation321_spill] sm:$0xff] }
 0x4a0   :  { %19493 = vst [vmem:[#allocation36_spill] sm:$0xff] %v17262_v37  ;;  %v13461_v33 = vadd.f32 %v17020_v13, %v4128_v25  ;;  %12109 = vmatprep.mubr.f32.mxu1 %v19496_v61  ;;  %13105 = vmatprep.mubr.f32.mxu0 %v19497_v5  ;;  %v19500_v37 = vld [vmem:[#allocation325_spill] sm:$0xff]  ;;  %v19502_v25 = vld [vmem:[#allocation327_spill] sm:$0xff]  ;;  %v9465_v5 = vmax.f32 %v17030_v52, 0.0 }
 0x4a1   :  { %v17270_v1 = vadd.f32 %v13459_v29, %v12945_v48  ;;  %v19503_v61 = vld [vmem:[#allocation323_spill] sm:$0xff] }
 0x4a2   :  { %v17272_v11 = vadd.f32 %v13461_v33, %v8554_v59  ;;  %v11952_v32 = vpop.f32.mrb[50].mxu1  ;;  %v12948_v57 = vpop.f32.mrb[50].mxu0 }
 0x4a3   :  { %19498 = vst [vmem:[#allocation38_spill] sm:$0xff] %v17270_v1  ;;  %v13463_v24 = vadd.f32 %v11952_v32, %v17020_v13  ;;  %v4142_v54 = vpop.f32.mrb[51].mxu1  ;;  %12110 = vmatmul.mubr.f32.gmra.mrb[156].mxu1 %v19500_v37  ;;  %v8566_v27 = vpop.f32.mrb[51].mxu0  ;;  %13106 = vmatmul.mubr.f32.gmra.mrb[156].mxu0 %v19501_v14  ;;  %v19504_v37 = vld [vmem:[#allocation328_spill] sm:$0xff] }
 0x4a4   :  { %19499 = vst [vmem:[#allocation40_spill] sm:$0xff] %v17272_v11  ;;  %v13465_v38 = vadd.f32 %v17020_v13, %v4142_v54  ;;  %12112 = vmatprep.mubr.f32.mxu1 %v19502_v25  ;;  %13108 = vmatprep.mubr.f32.mxu0 %v19503_v61  ;;  %v19505_v14 = vld [vmem:[#allocation324_spill] sm:$0xff]  ;;  %v9464_v54 = vmax.f32 %v17032_v60, 0.0 }
 0x4a5   :  { %v13464_v48 = vadd.f32 %v13463_v24, %v12948_v57  ;;  %v19506_v57 = vld [vmem:[#allocation330_spill] sm:$0xff] }
 0x4a6   :  { %v13466_v29 = vadd.f32 %v13465_v38, %v8566_v27  ;;  %v11955_v59 = vpop.f32.mrb[52].mxu1  ;;  %v12951_v33 = vpop.f32.mrb[52].mxu0  ;;  %v19507_v24 = vld [vmem:[#allocation326_spill] sm:$0xff] }
 0x4a7   :  { %v9515_v11 = vmax.f32 %v13464_v48, 0.0  ;;  %v13467_v32 = vadd.f32 %v11955_v59, %v17020_v13  ;;  %v4156_v1 = vpop.f32.mrb[53].mxu1  ;;  %12113 = vmatmul.mubr.f32.gmra.mrb[158].mxu1 %v19504_v37  ;;  %v8578_v49 = vpop.f32.mrb[53].mxu0  ;;  %13109 = vmatmul.mubr.f32.gmra.mrb[158].mxu0 %v19505_v14 }
 0x4a8   :  { %v9514_v25 = vmax.f32 %v13466_v29, 0.0  ;;  %v13469_v61 = vadd.f32 %v17020_v13, %v4156_v1  ;;  %12115 = vmatprep.mubr.f32.mxu1 %v19506_v57  ;;  %13111 = vmatprep.mubr.f32.mxu0 %v19507_v24  ;;  %v19509_v57 = vld [vmem:[#allocation329_spill] sm:$0xff] }
 0x4a9   :  { %v17288_v27 = vmax.f32 %v9465_v5, %v9515_v11  ;;  %v13468_v52 = vadd.f32 %v13467_v32, %v12951_v33  ;;  %v9466_v11 = vmax.f32 %v17042_v39, 0.0  ;;  %v19510_v32 = vld [vmem:[#allocation334_spill] sm:$0xff] }
 0x4aa   :  { %v17290_v38 = vmax.f32 %v9464_v54, %v9514_v25  ;;  %v13470_v48 = vadd.f32 %v13469_v61, %v8578_v49  ;;  %v11958_v59 = vpop.f32.mrb[54].mxu1  ;;  %v12954_v37 = vpop.f32.mrb[54].mxu0  ;;  %v19511_v49 = vld [vmem:[#allocation331_spill] sm:$0xff] }
 0x4ab   :  { %v9517_v14 = vmax.f32 %v13468_v52, 0.0  ;;  %v13471_v60 = vadd.f32 %v11958_v59, %v17020_v13  ;;  %v4170_v29 = vpop.f32.mrb[55].mxu1  ;;  %12116 = vmatmul.mubr.f32.gmra.mrb[160].mxu1 %v19508_v0  ;;  %v8590_v1 = vpop.f32.mrb[55].mxu0  ;;  %13112 = vmatmul.mubr.f32.gmra.mrb[160].mxu0 %v19509_v57  ;;  %v9469_v52 = vmax.f32 %v17050_v43, 0.0  ;;  %v19512_v57 = vld [vmem:[#allocation336_spill] sm:$0xff] }
 0x4ac   :  { %v9516_v5 = vmax.f32 %v13470_v48, 0.0  ;;  %v13473_v33 = vadd.f32 %v17020_v13, %v4170_v29  ;;  %12118 = vmatprep.mubr.f32.mxu1 %v19510_v32  ;;  %13114 = vmatprep.mubr.f32.mxu0 %v19511_v49  ;;  %v19513_v32 = vld [vmem:[#allocation333_spill] sm:$0xff] }
 0x4ad   :  { %v17300_v54 = vmax.f32 %v9467_v50, %v9517_v14  ;;  %v13472_v31 = vadd.f32 %v13471_v60, %v12954_v37  ;;  %v9468_v50 = vmax.f32 %v17052_v53, 0.0  ;;  %v19514_v60 = vld [vmem:[#allocation338_spill] sm:$0xff] }
 0x4ae   :  { %v17302_v25 = vmax.f32 %v9466_v11, %v9516_v5  ;;  %v13474_v61 = vadd.f32 %v13473_v33, %v8590_v1  ;;  %v11961_v24 = vpop.f32.mrb[56].mxu1  ;;  %v12957_v0 = vpop.f32.mrb[56].mxu0  ;;  %v19515_v1 = vld [vmem:[#allocation335_spill] sm:$0xff] }
 0x4af   :  { %v9519_v59 = vmax.f32 %v13472_v31, 0.0  ;;  %v13475_v39 = vadd.f32 %v11961_v24, %v17020_v13  ;;  %v4184_v48 = vpop.f32.mrb[57].mxu1  ;;  %12119 = vmatmul.mubr.f32.gmra.mrb[162].mxu1 %v19512_v57  ;;  %v8602_v29 = vpop.f32.mrb[57].mxu0  ;;  %13115 = vmatmul.mubr.f32.gmra.mrb[162].mxu0 %v19513_v32  ;;  %v9471_v24 = vmax.f32 %v17060_v8, 0.0  ;;  %v19516_v32 = vld [vmem:[#allocation340_spill] sm:$0xff] }
 0x4b0   :  { %v9518_v14 = vmax.f32 %v13474_v61, 0.0  ;;  %v13477_v37 = vadd.f32 %v17020_v13, %v4184_v48  ;;  %12121 = vmatprep.mubr.f32.mxu1 %v19514_v60  ;;  %13117 = vmatprep.mubr.f32.mxu0 %v19515_v1  ;;  %v19517_v60 = vld [vmem:[#allocation337_spill] sm:$0xff] }
 0x4b1   :  { %v17312_v11 = vmax.f32 %v9469_v52, %v9519_v59  ;;  %v13476_v43 = vadd.f32 %v13475_v39, %v12957_v0  ;;  %v9470_v52 = vmax.f32 %v17062_v2, 0.0  ;;  %v19518_v39 = vld [vmem:[#allocation342_spill] sm:$0xff] }
 0x4b2   :  { %v17314_v5 = vmax.f32 %v9468_v50, %v9518_v14  ;;  %v13478_v33 = vadd.f32 %v13477_v37, %v8602_v29  ;;  %v11964_v49 = vpop.f32.mrb[58].mxu1  ;;  %v12960_v31 = vpop.f32.mrb[58].mxu0  ;;  %v19519_v29 = vld [vmem:[#allocation339_spill] sm:$0xff] }
 0x4b3   :  { %v9521_v57 = vmax.f32 %v13476_v43, 0.0  ;;  %v13479_v53 = vadd.f32 %v11964_v49, %v17020_v13  ;;  %v4198_v61 = vpop.f32.mrb[59].mxu1  ;;  %12122 = vmatmul.mubr.f32.gmra.mrb[164].mxu1 %v19516_v32  ;;  %v8614_v48 = vpop.f32.mrb[59].mxu0  ;;  %13118 = vmatmul.mubr.f32.gmra.mrb[164].mxu0 %v19517_v60  ;;  %v9473_v49 = vmax.f32 %v17070_v34, 0.0  ;;  %v19520_v60 = vld [vmem:[#allocation345_spill] sm:$0xff] }
 0x4b4   :  { %v9520_v59 = vmax.f32 %v13478_v33, 0.0  ;;  %v13481_v0 = vadd.f32 %v17020_v13, %v4198_v61  ;;  %12124 = vmatprep.mubr.f32.mxu1 %v19518_v39  ;;  %13120 = vmatprep.mubr.f32.mxu0 %v19519_v29  ;;  %v19521_v39 = vld [vmem:[#allocation341_spill] sm:$0xff] }
 0x4b5   :  { %v17324_v50 = vmax.f32 %v9471_v24, %v9521_v57  ;;  %v13480_v8 = vadd.f32 %v13479_v53, %v12960_v31  ;;  %v9472_v24 = vmax.f32 %v17072_v15, 0.0  ;;  %v19522_v53 = vld [vmem:[#allocation347_spill] sm:$0xff] }
 0x4b6   :  { %v17326_v14 = vmax.f32 %v9470_v52, %v9520_v59  ;;  %v13482_v37 = vadd.f32 %v13481_v0, %v8614_v48  ;;  %v11967_v1 = vpop.f32.mrb[60].mxu1  ;;  %v12963_v43 = vpop.f32.mrb[60].mxu0  ;;  %v19523_v48 = vld [vmem:[#allocation343_spill] sm:$0xff] }
 0x4b7   :  { %v9523_v32 = vmax.f32 %v13480_v8, 0.0  ;;  %v13483_v2 = vadd.f32 %v11967_v1, %v17020_v13  ;;  %v4212_v33 = vpop.f32.mrb[61].mxu1  ;;  %12125 = vmatmul.mubr.f32.gmra.mrb[166].mxu1 %v19520_v60  ;;  %v8626_v61 = vpop.f32.mrb[61].mxu0  ;;  %13121 = vmatmul.mubr.f32.gmra.mrb[166].mxu0 %v19521_v39  ;;  %v9475_v1 = vmax.f32 %v17080_v9, 0.0  ;;  %v19524_v39 = vld [vmem:[#allocation348_spill] sm:$0xff] }
 0x4b8   :  { %v9522_v57 = vmax.f32 %v13482_v37, 0.0  ;;  %v13485_v31 = vadd.f32 %v17020_v13, %v4212_v33  ;;  %12127 = vmatprep.mubr.f32.mxu1 %v19522_v53  ;;  %13123 = vmatprep.mubr.f32.mxu0 %v19523_v48  ;;  %v19525_v53 = vld [vmem:[#allocation344_spill] sm:$0xff] }
 0x4b9   :  { %v17336_v52 = vmax.f32 %v9473_v49, %v9523_v32  ;;  %v13484_v34 = vadd.f32 %v13483_v2, %v12963_v43  ;;  %v9474_v49 = vmax.f32 %v17082_v28, 0.0  ;;  %v19526_v2 = vld [vmem:[#allocation350_spill] sm:$0xff] }
 0x4ba   :  { %v17338_v59 = vmax.f32 %v9472_v24, %v9522_v57  ;;  %v13486_v0 = vadd.f32 %v13485_v31, %v8626_v61  ;;  %v11970_v29 = vpop.f32.mrb[62].mxu1  ;;  %v12966_v8 = vpop.f32.mrb[62].mxu0  ;;  %v19527_v61 = vld [vmem:[#allocation346_spill] sm:$0xff] }
 0x4bb   :  { %v9525_v60 = vmax.f32 %v13484_v34, 0.0  ;;  %v13487_v15 = vadd.f32 %v11970_v29, %v17020_v13  ;;  %v4226_v37 = vpop.f32.mrb[63].mxu1  ;;  %12128 = vmatmul.mubr.f32.gmra.mrb[168].mxu1 %v19524_v39  ;;  %v8638_v33 = vpop.f32.mrb[63].mxu0  ;;  %13124 = vmatmul.mubr.f32.gmra.mrb[168].mxu0 %v19525_v53  ;;  %v9477_v29 = vmax.f32 %v17090_v62, 0.0  ;;  %v19528_v53 = vld [vmem:[#allocation352_spill] sm:$0xff] }
 0x4bc   :  { %v9524_v32 = vmax.f32 %v13486_v0, 0.0  ;;  %v13489_v43 = vadd.f32 %v17020_v13, %v4226_v37  ;;  %12130 = vmatprep.mubr.f32.mxu1 %v19526_v2  ;;  %13126 = vmatprep.mubr.f32.mxu0 %v19527_v61  ;;  %v19529_v2 = vld [vmem:[#allocation349_spill] sm:$0xff] }
 0x4bd   :  { %v17348_v24 = vmax.f32 %v9475_v1, %v9525_v60  ;;  %v13488_v9 = vadd.f32 %v13487_v15, %v12966_v8  ;;  %v9476_v1 = vmax.f32 %v17092_v18, 0.0  ;;  %v19530_v15 = vld [vmem:[#allocation354_spill] sm:$0xff] }
 0x4be   :  { %v17350_v57 = vmax.f32 %v9474_v49, %v9524_v32  ;;  %v13490_v31 = vadd.f32 %v13489_v43, %v8638_v33  ;;  %v11973_v48 = vpop.f32.mrb[64].mxu1  ;;  %v12969_v34 = vpop.f32.mrb[64].mxu0  ;;  %v19531_v33 = vld [vmem:[#allocation351_spill] sm:$0xff] }
 0x4bf   :  { %v9527_v39 = vmax.f32 %v13488_v9, 0.0  ;;  %v13491_v28 = vadd.f32 %v11973_v48, %v17020_v13  ;;  %v4240_v0 = vpop.f32.mrb[65].mxu1  ;;  %12131 = vmatmul.mubr.f32.gmra.mrb[170].mxu1 %v19528_v53  ;;  %v8650_v37 = vpop.f32.mrb[65].mxu0  ;;  %13127 = vmatmul.mubr.f32.gmra.mrb[170].mxu0 %v19529_v2  ;;  %v9479_v48 = vmax.f32 %v17100_v42, 0.0  ;;  %v19532_v2 = vld [vmem:[#allocation356_spill] sm:$0xff] }
 0x4c0   :  { %v9526_v60 = vmax.f32 %v13490_v31, 0.0  ;;  %v13493_v8 = vadd.f32 %v17020_v13, %v4240_v0  ;;  %12133 = vmatprep.mubr.f32.mxu1 %v19530_v15  ;;  %13129 = vmatprep.mubr.f32.mxu0 %v19531_v33  ;;  %v19533_v15 = vld [vmem:[#allocation353_spill] sm:$0xff] }
 0x4c1   :  { %v17360_v49 = vmax.f32 %v9477_v29, %v9527_v39  ;;  %v13492_v62 = vadd.f32 %v13491_v28, %v12969_v34  ;;  %v9478_v29 = vmax.f32 %v17102_v46, 0.0  ;;  %v19534_v28 = vld [vmem:[#allocation358_spill] sm:$0xff] }
 0x4c2   :  { %v17362_v32 = vmax.f32 %v9476_v1, %v9526_v60  ;;  %v13494_v43 = vadd.f32 %v13493_v8, %v8650_v37  ;;  %v11976_v61 = vpop.f32.mrb[66].mxu1  ;;  %v12972_v9 = vpop.f32.mrb[66].mxu0  ;;  %v19535_v37 = vld [vmem:[#allocation355_spill] sm:$0xff] }
 0x4c3   :  { %v9529_v53 = vmax.f32 %v13492_v62, 0.0  ;;  %v13495_v18 = vadd.f32 %v11976_v61, %v17020_v13  ;;  %v4254_v31 = vpop.f32.mrb[67].mxu1  ;;  %12134 = vmatmul.mubr.f32.gmra.mrb[172].mxu1 %v19532_v2  ;;  %v8662_v0 = vpop.f32.mrb[67].mxu0  ;;  %13130 = vmatmul.mubr.f32.gmra.mrb[172].mxu0 %v19533_v15  ;;  %v9481_v61 = vmax.f32 %v17110_v26, 0.0  ;;  %v19536_v15 = vld [vmem:[#allocation360_spill] sm:$0xff] }
 0x4c4   :  { %v9528_v39 = vmax.f32 %v13494_v43, 0.0  ;;  %v13497_v34 = vadd.f32 %v17020_v13, %v4254_v31  ;;  %12136 = vmatprep.mubr.f32.mxu1 %v19534_v28  ;;  %13132 = vmatprep.mubr.f32.mxu0 %v19535_v37  ;;  %v19537_v28 = vld [vmem:[#allocation357_spill] sm:$0xff] }
 0x4c5   :  { %v17372_v1 = vmax.f32 %v9479_v48, %v9529_v53  ;;  %v13496_v42 = vadd.f32 %v13495_v18, %v12972_v9  ;;  %v9480_v48 = vmax.f32 %v17112_v44, 0.0  ;;  %v19538_v18 = vld [vmem:[#allocation362_spill] sm:$0xff] }
 0x4c6   :  { %v17374_v60 = vmax.f32 %v9478_v29, %v9528_v39  ;;  %v13498_v8 = vadd.f32 %v13497_v34, %v8662_v0  ;;  %v11979_v33 = vpop.f32.mrb[68].mxu1  ;;  %v12975_v62 = vpop.f32.mrb[68].mxu0  ;;  %v19539_v0 = vld [vmem:[#allocation359_spill] sm:$0xff] }
 0x4c7   :  { %v9531_v2 = vmax.f32 %v13496_v42, 0.0  ;;  %v13499_v46 = vadd.f32 %v11979_v33, %v17020_v13  ;;  %v4268_v43 = vpop.f32.mrb[69].mxu1  ;;  %12137 = vmatmul.mubr.f32.gmra.mrb[174].mxu1 %v19536_v15  ;;  %v8674_v31 = vpop.f32.mrb[69].mxu0  ;;  %13133 = vmatmul.mubr.f32.gmra.mrb[174].mxu0 %v19537_v28  ;;  %v9483_v33 = vmax.f32 %v17120_v16, 0.0  ;;  %v19540_v28 = vld [vmem:[#allocation365_spill] sm:$0xff] }
 0x4c8   :  { %v9530_v53 = vmax.f32 %v13498_v8, 0.0  ;;  %v13501_v9 = vadd.f32 %v17020_v13, %v4268_v43  ;;  %12139 = vmatprep.mubr.f32.mxu1 %v19538_v18  ;;  %13135 = vmatprep.mubr.f32.mxu0 %v19539_v0  ;;  %v19541_v18 = vld [vmem:[#allocation361_spill] sm:$0xff] }
 0x4c9   :  { %v17384_v29 = vmax.f32 %v9481_v61, %v9531_v2  ;;  %v13500_v26 = vadd.f32 %v13499_v46, %v12975_v62  ;;  %v9482_v61 = vmax.f32 %v17122_v6, 0.0  ;;  %v19542_v46 = vld [vmem:[#allocation367_spill] sm:$0xff] }
 0x4ca   :  { %v17386_v39 = vmax.f32 %v9480_v48, %v9530_v53  ;;  %v13502_v34 = vadd.f32 %v13501_v9, %v8674_v31  ;;  %v11982_v37 = vpop.f32.mrb[70].mxu1  ;;  %v12978_v42 = vpop.f32.mrb[70].mxu0  ;;  %v19543_v31 = vld [vmem:[#allocation363_spill] sm:$0xff] }
 0x4cb   :  { %v9533_v15 = vmax.f32 %v13500_v26, 0.0  ;;  %v13503_v44 = vadd.f32 %v11982_v37, %v17020_v13  ;;  %v4282_v8 = vpop.f32.mrb[71].mxu1  ;;  %12140 = vmatmul.mubr.f32.gmra.mrb[176].mxu1 %v19540_v28  ;;  %v8686_v43 = vpop.f32.mrb[71].mxu0  ;;  %13136 = vmatmul.mubr.f32.gmra.mrb[176].mxu0 %v19541_v18  ;;  %v9485_v37 = vmax.f32 %v17130_v17, 0.0  ;;  %v19544_v18 = vld [vmem:[#allocation368_spill] sm:$0xff] }
 0x4cc   :  { %v9532_v2 = vmax.f32 %v13502_v34, 0.0  ;;  %v13505_v62 = vadd.f32 %v17020_v13, %v4282_v8  ;;  %12142 = vmatprep.mubr.f32.mxu1 %v19542_v46  ;;  %13138 = vmatprep.mubr.f32.mxu0 %v19543_v31  ;;  %v19545_v46 = vld [vmem:[#allocation364_spill] sm:$0xff] }
 0x4cd   :  { %v17396_v48 = vmax.f32 %v9483_v33, %v9533_v15  ;;  %v13504_v16 = vadd.f32 %v13503_v44, %v12978_v42  ;;  %v9484_v33 = vmax.f32 %v17132_v41, 0.0  ;;  %v19546_v44 = vld [vmem:[#allocation370_spill] sm:$0xff]  ;;  %v17416_v41 = vld [vmem:[%s17887_s2] ss:$0 sm:$0xff] }
 0x4ce   :  { %v17398_v53 = vmax.f32 %v9482_v61, %v9532_v2  ;;  %v13506_v9 = vadd.f32 %v13505_v62, %v8686_v43  ;;  %v11985_v0 = vpop.f32.mrb[72].mxu1  ;;  %v12981_v26 = vpop.f32.mrb[72].mxu0  ;;  %v19547_v43 = vld [vmem:[#allocation366_spill] sm:$0xff] }
 0x4cf   :  { %v9535_v28 = vmax.f32 %v13504_v16, 0.0  ;;  %v13507_v6 = vadd.f32 %v11985_v0, %v17020_v13  ;;  %v4296_v34 = vpop.f32.mrb[73].mxu1  ;;  %12143 = vmatmul.mubr.f32.gmra.mrb[178].mxu1 %v19544_v18  ;;  %v8698_v8 = vpop.f32.mrb[73].mxu0  ;;  %13139 = vmatmul.mubr.f32.gmra.mrb[178].mxu0 %v19545_v46  ;;  %v9487_v0 = vmax.f32 %v17140_v36, 0.0  ;;  %v19552_v36 = vld [vmem:[#allocation374_spill] sm:$0xff]  ;;  %v19553_v46 = vld [vmem:[#allocation371_spill] sm:$0xff] }
 0x4d0   :  { %v9534_v15 = vmax.f32 %v13506_v9, 0.0  ;;  %v13509_v42 = vadd.f32 %v17020_v13, %v4296_v34  ;;  %12145 = vmatprep.mubr.f32.mxu1 %v19546_v44  ;;  %13141 = vmatprep.mubr.f32.mxu0 %v19547_v43  ;;  %v19550_v34 = vld [vmem:[#allocation372_spill] sm:$0xff] }
 0x4d1   :  { %v17408_v61 = vmax.f32 %v9485_v37, %v9535_v28  ;;  %v13508_v17 = vadd.f32 %v13507_v6, %v12981_v26  ;;  %v19551_v26 = vld [vmem:[#allocation369_spill] sm:$0xff]  ;;  %v9486_v28 = vmax.f32 %v17142_v12, 0.0 }
 0x4d2   :  { %v17410_v2 = vmax.f32 %v9484_v33, %v9534_v15  ;;  %v13510_v62 = vadd.f32 %v13509_v42, %v8698_v8  ;;  %v11988_v31 = vpop.f32.mrb[74].mxu1  ;;  %v12984_v16 = vpop.f32.mrb[74].mxu0 }
 0x4d3   :  { %19548 = vst [vmem:[#allocation41_spill] sm:$0xff] %v17408_v61  ;;  %v9537_v18 = vmax.f32 %v13508_v17, 0.0  ;;  %v13511_v13 = vadd.f32 %v17416_v41, %v11988_v31  ;;  %v4310_v9 = vpop.f32.mrb[75].mxu1  ;;  %12146 = vmatmul.mubr.f32.gmra.mrb[180].mxu1 %v19550_v34  ;;  %v8710_v37 = vpop.f32.mrb[75].mxu0  ;;  %13142 = vmatmul.mubr.f32.gmra.mrb[180].mxu0 %v19551_v26  ;;  %v9489_v31 = vmax.f32 %v17150_v19, 0.0  ;;  %v19556_v26 = vld [vmem:[#allocation376_spill] sm:$0xff] }
 0x4d4   :  { %19549 = vst [vmem:[#allocation43_spill] sm:$0xff] %v17410_v2  ;;  %v9536_v6 = vmax.f32 %v13510_v62, 0.0  ;;  %v13513_v8 = vadd.f32 %v17416_v41, %v4310_v9  ;;  %12148 = vmatprep.mubr.f32.mxu1 %v19552_v36  ;;  %13144 = vmatprep.mubr.f32.mxu0 %v19553_v46  ;;  %v19557_v36 = vld [vmem:[#allocation373_spill] sm:$0xff] }
 0x4d5   :  { %v17425_v33 = vmax.f32 %v9487_v0, %v9537_v18  ;;  %v13512_v15 = vadd.f32 %v13511_v13, %v12984_v16  ;;  %v9488_v0 = vmax.f32 %v17152_v22, 0.0  ;;  %v19558_v13 = vld [vmem:[#allocation378_spill] sm:$0xff] }
 0x4d6   :  { %v17427_v42 = vmax.f32 %v9486_v28, %v9536_v6  ;;  %v13514_v44 = vadd.f32 %v13513_v8, %v8710_v37  ;;  %v11991_v43 = vpop.f32.mrb[76].mxu1  ;;  %v12987_v17 = vpop.f32.mrb[76].mxu0  ;;  %v19559_v37 = vld [vmem:[#allocation375_spill] sm:$0xff] }
 0x4d7   :  { %19554 = vst [vmem:[#allocation47_spill] sm:$0xff] %v17425_v33  ;;  %v9539_v34 = vmax.f32 %v13512_v15, 0.0  ;;  %v13515_v12 = vadd.f32 %v17416_v41, %v11991_v43  ;;  %v4324_v62 = vpop.f32.mrb[77].mxu1  ;;  %12149 = vmatmul.mubr.f32.gmra.mrb[182].mxu1 %v19556_v26  ;;  %v8722_v9 = vpop.f32.mrb[77].mxu0  ;;  %13145 = vmatmul.mubr.f32.gmra.mrb[182].mxu0 %v19557_v36  ;;  %v9491_v43 = vmax.f32 %v17160_v56, 0.0  ;;  %v19562_v36 = vld [vmem:[#allocation380_spill] sm:$0xff] }
 0x4d8   :  { %19555 = vst [vmem:[#allocation48_spill] sm:$0xff] %v17427_v42  ;;  %v9538_v18 = vmax.f32 %v13514_v44, 0.0  ;;  %v13517_v16 = vadd.f32 %v17416_v41, %v4324_v62  ;;  %12151 = vmatprep.mubr.f32.mxu1 %v19558_v13  ;;  %13147 = vmatprep.mubr.f32.mxu0 %v19559_v37 }
 0x4d9   :  { %v17437_v28 = vmax.f32 %v9489_v31, %v9539_v34  ;;  %v13516_v19 = vadd.f32 %v13515_v12, %v12987_v17  ;;  %v9490_v31 = vmax.f32 %v17162_v45, 0.0  ;;  %v19563_v12 = vld [vmem:[#allocation382_spill] sm:$0xff] }
 0x4da   :  { %v17439_v6 = vmax.f32 %v9488_v0, %v9538_v18  ;;  %v13518_v8 = vadd.f32 %v13517_v16, %v8722_v9  ;;  %v11994_v46 = vpop.f32.mrb[78].mxu1  ;;  %v12990_v15 = vpop.f32.mrb[78].mxu0  ;;  %v19564_v9 = vld [vmem:[#allocation379_spill] sm:$0xff] }
 0x4db   :  { %19560 = vst [vmem:[#allocation49_spill] sm:$0xff] %v17437_v28  ;;  %v9541_v26 = vmax.f32 %v13516_v19, 0.0  ;;  %v13519_v22 = vadd.f32 %v17416_v41, %v11994_v46  ;;  %v4338_v44 = vpop.f32.mrb[79].mxu1  ;;  %12152 = vmatmul.mubr.f32.gmra.mrb[184].mxu1 %v19562_v36  ;;  %v8734_v62 = vpop.f32.mrb[79].mxu0  ;;  %13148 = vmatmul.mubr.f32.gmra.mrb[184].mxu0 %v19216_v47  ;;  %v9493_v19 = vmax.f32 %v17170_v7, 0.0  ;;  %v19567_v46 = vld [vmem:[#allocation385_spill] sm:$0xff] }
 0x4dc   :  { %19561 = vst [vmem:[#allocation51_spill] sm:$0xff] %v17439_v6  ;;  %v9540_v34 = vmax.f32 %v13518_v8, 0.0  ;;  %v13521_v17 = vadd.f32 %v17416_v41, %v4338_v44  ;;  %12154 = vmatprep.mubr.f32.mxu1 %v19563_v12  ;;  %13150 = vmatprep.mubr.f32.mxu0 %v19564_v9  ;;  %v19568_v36 = vld [vmem:[#allocation381_spill] sm:$0xff]  ;;  %v9495_v9 = vmax.f32 %v17180_v10, 0.0 }
 0x4dd   :  { %v17449_v0 = vmax.f32 %v9491_v43, %v9541_v26  ;;  %v13520_v56 = vadd.f32 %v13519_v22, %v12990_v15  ;;  %v9492_v43 = vmax.f32 %v17172_v51, 0.0  ;;  %v19569_v22 = vld [vmem:[#allocation387_spill] sm:$0xff] }
 0x4de   :  { %v17451_v18 = vmax.f32 %v9490_v31, %v9540_v34  ;;  %v13522_v16 = vadd.f32 %v13521_v17, %v8734_v62  ;;  %v11997_v13 = vpop.f32.mrb[80].mxu1  ;;  %v12993_v37 = vpop.f32.mrb[80].mxu0 }
 0x4df   :  { %19565 = vst [vmem:[#allocation53_spill] sm:$0xff] %v17449_v0  ;;  %v9543_v47 = vmax.f32 %v13520_v56, 0.0  ;;  %v13523_v45 = vadd.f32 %v17416_v41, %v11997_v13  ;;  %v4352_v8 = vpop.f32.mrb[81].mxu1  ;;  %12155 = vmatmul.mubr.f32.gmra.mrb[186].mxu1 %v19567_v46  ;;  %v8746_v44 = vpop.f32.mrb[81].mxu0  ;;  %13151 = vmatmul.mubr.f32.gmra.mrb[186].mxu0 %v19568_v36  ;;  %v19572_v13 = vld [vmem:[#allocation388_spill] sm:$0xff] }
 0x4e0   :  { %19566 = vst [vmem:[#allocation54_spill] sm:$0xff] %v17451_v18  ;;  %v9542_v26 = vmax.f32 %v13522_v16, 0.0  ;;  %v13525_v15 = vadd.f32 %v17416_v41, %v4352_v8  ;;  %12157 = vmatprep.mubr.f32.mxu1 %v19569_v22  ;;  %13153 = vmatprep.mubr.f32.mxu0 %v19219_v4  ;;  %v9494_v4 = vmax.f32 %v17182_v55, 0.0 }
 0x4e1   :  { %v17461_v62 = vmax.f32 %v9493_v19, %v9543_v47  ;;  %v13524_v7 = vadd.f32 %v13523_v45, %v12993_v37  ;;  %v19573_v47 = vld [vmem:[#allocation389_spill] sm:$0xff]  ;;  %v19574_v45 = vld [vmem:[#allocation386_spill] sm:$0xff] }
 0x4e2   :  { %v17463_v31 = vmax.f32 %v9492_v43, %v9542_v26  ;;  %v13526_v34 = vadd.f32 %v13525_v15, %v8746_v44  ;;  %v12000_v17 = vpop.f32.mrb[82].mxu1  ;;  %v12996_v12 = vpop.f32.mrb[82].mxu0  ;;  %v9497_v15 = vmax.f32 %v17190_v3, 0.0 }
 0x4e3   :  { %19570 = vst [vmem:[#allocation59_spill] sm:$0xff] %v17461_v62  ;;  %v9545_v56 = vmax.f32 %v13524_v7, 0.0  ;;  %v13527_v51 = vadd.f32 %v17416_v41, %v12000_v17  ;;  %v4366_v16 = vpop.f32.mrb[83].mxu1  ;;  %12158 = vmatmul.mubr.f32.gmra.mrb[188].mxu1 %v19572_v13  ;;  %v8758_v8 = vpop.f32.mrb[83].mxu0  ;;  %13154 = vmatmul.mubr.f32.gmra.mrb[188].mxu0 %v19220_v30  ;;  %v19577_v7 = vld [vmem:[#allocation391_spill] sm:$0xff]  ;;  %v9496_v17 = vmax.f32 %v17192_v40, 0.0 }
 0x4e4   :  { %19571 = vst [vmem:[#allocation60_spill] sm:$0xff] %v17463_v31  ;;  %v9544_v19 = vmax.f32 %v13526_v34, 0.0  ;;  %v13529_v37 = vadd.f32 %v17416_v41, %v4366_v16  ;;  %12160 = vmatprep.mubr.f32.mxu1 %v19573_v47  ;;  %13156 = vmatprep.mubr.f32.mxu0 %v19574_v45  ;;  %v19581_v47 = vld [vmem:[#allocation395_spill] sm:$0xff] }
 0x4e5   :  { %v17473_v46 = vmax.f32 %v9495_v9, %v9545_v56  ;;  %v13528_v10 = vadd.f32 %v13527_v51, %v12996_v12  ;;  %v19578_v56 = vld [vmem:[#allocation393_spill] sm:$0xff] }
 0x4e6   :  { %v17475_v44 = vmax.f32 %v9494_v4, %v9544_v19  ;;  %v13530_v36 = vadd.f32 %v13529_v37, %v8758_v8  ;;  %v12003_v43 = vpop.f32.mrb[84].mxu1  ;;  %v12999_v26 = vpop.f32.mrb[84].mxu0  ;;  %v9499_v19 = vmax.f32 %v17200_v20, 0.0 }
 0x4e7   :  { %19575 = vst [vmem:[#allocation62_spill] sm:$0xff] %v17473_v46  ;;  %v9547_v30 = vmax.f32 %v13528_v10, 0.0  ;;  %v13531_v55 = vadd.f32 %v17416_v41, %v12003_v43  ;;  %v4380_v22 = vpop.f32.mrb[85].mxu1  ;;  %12161 = vmatmul.mubr.f32.gmra.mrb[190].mxu1 %v19577_v7  ;;  %v8770_v34 = vpop.f32.mrb[85].mxu0  ;;  %13157 = vmatmul.mubr.f32.gmra.mrb[190].mxu0 %v16299_v63  ;;  %v19582_v43 = vld [vmem:[#allocation397_spill] sm:$0xff] }
 0x4e8   :  { %19576 = vst [vmem:[#allocation64_spill] sm:$0xff] %v17475_v44  ;;  %v9546_v9 = vmax.f32 %v13530_v36, 0.0  ;;  %v13533_v12 = vadd.f32 %v17416_v41, %v4380_v22  ;;  %12163 = vmatprep.mubr.f32.mxu1 %v19578_v56  ;;  %13159 = vmatprep.mubr.f32.mxu0 %v19222_v35  ;;  %v9498_v35 = vmax.f32 %v17202_v58, 0.0  ;;  %v19587_v56 = vld [vmem:[#allocation396_spill] sm:$0xff] }
 0x4e9   :  { %v17485_v51 = vmax.f32 %v9497_v15, %v9547_v30  ;;  %v13532_v3 = vadd.f32 %v13531_v55, %v12999_v26  ;;  %v19583_v26 = vld [vmem:[#allocation394_spill] sm:$0xff] }
 0x4ea   :  { %v17487_v16 = vmax.f32 %v9496_v17, %v9546_v9  ;;  %v13534_v13 = vadd.f32 %v13533_v12, %v8770_v34  ;;  %v12006_v8 = vpop.f32.mrb[86].mxu1  ;;  %v13002_v4 = vpop.f32.mrb[86].mxu0  ;;  %v9501_v34 = vmax.f32 %v17210_v21, 0.0  ;;  %v19586_v9 = vld [vmem:[#allocation399_spill] sm:$0xff] }
 0x4eb   :  { %19579 = vst [vmem:[#allocation65_spill] sm:$0xff] %v17485_v51  ;;  %v9549_v63 = vmax.f32 %v13532_v3, 0.0  ;;  %v13535_v40 = vadd.f32 %v17416_v41, %v12006_v8  ;;  %v4394_v37 = vpop.f32.mrb[87].mxu1  ;;  %12164 = vmatmul.mubr.f32.gmra.mrb[192].mxu1 %v19581_v47  ;;  %v8782_v45 = vpop.f32.mrb[87].mxu0  ;;  %13160 = vmatmul.mubr.f32.gmra.mrb[192].mxu0 %v19223_v23  ;;  %v19588_v3 = vld [vmem:[#allocation12_spill] sm:$0xff] }
 0x4ec   :  { %19580 = vst [vmem:[#allocation67_spill] sm:$0xff] %v17487_v16  ;;  %v9548_v10 = vmax.f32 %v13534_v13, 0.0  ;;  %v13537_v36 = vadd.f32 %v17416_v41, %v4394_v37  ;;  %12166 = vmatprep.mubr.f32.mxu1 %v19582_v43  ;;  %13162 = vmatprep.mubr.f32.mxu0 %v19583_v26  ;;  %v9500_v13 = vmax.f32 %v19588_v3, 0.0 }
 0x4ed   :  { %v17497_v15 = vmax.f32 %v9499_v19, %v9549_v63  ;;  %v13536_v20 = vadd.f32 %v13535_v40, %v13002_v4  ;;  %v19589_v19 = vld [vmem:[#allocation401_spill] sm:$0xff]  ;;  %v19590_v63 = vld [vmem:[#allocation398_spill] sm:$0xff] }
 0x4ee   :  { %v17499_v30 = vmax.f32 %v9498_v35, %v9548_v10  ;;  %v13538_v55 = vadd.f32 %v13537_v36, %v8782_v45  ;;  %v12009_v22 = vpop.f32.mrb[88].mxu1  ;;  %v13005_v7 = vpop.f32.mrb[88].mxu0  ;;  %v19593_v10 = vld [vmem:[#allocation23_spill] sm:$0xff] }
 0x4ef   :  { %19584 = vst [vmem:[#allocation70_spill] sm:$0xff] %v17497_v15  ;;  %v9551_v23 = vmax.f32 %v13536_v20, 0.0  ;;  %v13539_v58 = vadd.f32 %v17416_v41, %v12009_v22  ;;  %v4408_v17 = vpop.f32.mrb[89].mxu1  ;;  %12167 = vmatmul.mubr.f32.gmra.mrb[194].mxu1 %v19586_v9  ;;  %v8794_v12 = vpop.f32.mrb[89].mxu0  ;;  %13163 = vmatmul.mubr.f32.gmra.mrb[194].mxu0 %v19587_v56  ;;  %v9503_v36 = vmax.f32 %v19593_v10, 0.0  ;;  %v19596_v9 = vld [vmem:[#allocation24_spill] sm:$0xff] }
 0x4f0   :  { %19585 = vst [vmem:[#allocation72_spill] sm:$0xff] %v17499_v30  ;;  %v9550_v8 = vmax.f32 %v13538_v55, 0.0  ;;  %v13541_v4 = vadd.f32 %v17416_v41, %v4408_v17  ;;  %12169 = vmatprep.mubr.f32.mxu1 %v19589_v19  ;;  %13165 = vmatprep.mubr.f32.mxu0 %v19590_v63  ;;  %v19594_v55 = vld [vmem:[#allocation403_spill] sm:$0xff]  ;;  %v19595_v17 = vld [vmem:[#allocation400_spill] sm:$0xff]  ;;  %v19601_v63 = vld [vmem:[#allocation13_spill] sm:$0xff] }
 0x4f1   :  { %v17509_v40 = vmax.f32 %v9501_v34, %v9551_v23  ;;  %v13540_v21 = vadd.f32 %v13539_v58, %v13005_v7  ;;  %v9502_v34 = vmax.f32 %v19596_v9, 0.0  ;;  %v19597_v58 = vld [vmem:[#allocation405_spill] sm:$0xff]  ;;  %v19604_v9 = vld [vmem:[#allocation26_spill] sm:$0xff] }
 0x4f2   :  { %v17511_v37 = vmax.f32 %v9500_v13, %v9550_v8  ;;  %v13542_v47 = vadd.f32 %v13541_v4, %v8794_v12  ;;  %v12012_v45 = vpop.f32.mrb[90].mxu1  ;;  %v13008_v35 = vpop.f32.mrb[90].mxu0  ;;  %v19598_v12 = vld [vmem:[#allocation402_spill] sm:$0xff] }
 0x4f3   :  { %19591 = vst [vmem:[#allocation75_spill] sm:$0xff] %v17509_v40  ;;  %v9553_v43 = vmax.f32 %v13540_v21, 0.0  ;;  %v13543_v26 = vadd.f32 %v17416_v41, %v12012_v45  ;;  %v4422_v20 = vpop.f32.mrb[91].mxu1  ;;  %12170 = vmatmul.mubr.f32.gmra.mrb[196].mxu1 %v19594_v55  ;;  %v8806_v22 = vpop.f32.mrb[91].mxu0  ;;  %13166 = vmatmul.mubr.f32.gmra.mrb[196].mxu0 %v19595_v17  ;;  %v9505_v21 = vmax.f32 %v19601_v63, 0.0  ;;  %v19602_v55 = vld [vmem:[#allocation406_spill] sm:$0xff] }
 0x4f4   :  { %19592 = vst [vmem:[#allocation76_spill] sm:$0xff] %v17511_v37  ;;  %v9552_v23 = vmax.f32 %v13542_v47, 0.0  ;;  %v13545_v7 = vadd.f32 %v17416_v41, %v4422_v20  ;;  %12172 = vmatprep.mubr.f32.mxu1 %v19597_v58  ;;  %13168 = vmatprep.mubr.f32.mxu0 %v19598_v12  ;;  %v19603_v17 = vld [vmem:[#allocation404_spill] sm:$0xff]  ;;  %v19607_v12 = vld [vmem:[#allocation27_spill] sm:$0xff] }
 0x4f5   :  { %v17521_v56 = vmax.f32 %v9503_v36, %v9553_v43  ;;  %v13544_v3 = vadd.f32 %v13543_v26, %v13008_v35  ;;  %v9504_v36 = vmax.f32 %v19604_v9, 0.0 }
 0x4f6   :  { %v17523_v13 = vmax.f32 %v9502_v34, %v9552_v23  ;;  %v13546_v8 = vadd.f32 %v13545_v7, %v8806_v22  ;;  %v12015_v4 = vpop.f32.mrb[92].mxu1  ;;  %v13011_v19 = vpop.f32.mrb[92].mxu0 }
 0x4f7   :  { %19599 = vst [vmem:[#allocation78_spill] sm:$0xff] %v17521_v56  ;;  %v9555_v45 = vmax.f32 %v13544_v3, 0.0  ;;  %v13547_v10 = vadd.f32 %v17416_v41, %v12015_v4  ;;  %v4436_v47 = vpop.f32.mrb[93].mxu1  ;;  %12173 = vmatmul.mubr.f32.gmra.mrb[198].mxu1 %v19602_v55  ;;  %v8818_v20 = vpop.f32.mrb[93].mxu0  ;;  %13169 = vmatmul.mubr.f32.gmra.mrb[198].mxu0 %v19603_v17  ;;  %v9507_v3 = vmax.f32 %v19607_v12, 0.0 }
 0x4f8   :  { %19600 = vst [vmem:[#allocation80_spill] sm:$0xff] %v17523_v13  ;;  %v9554_v43 = vmax.f32 %v13546_v8, 0.0  ;;  %v13549_v35 = vadd.f32 %v17416_v41, %v4436_v47  ;;  %v19608_v13 = vld [vmem:[#allocation16_spill] sm:$0xff] }
 0x4f9   :  { %v17531_v26 = vmax.f32 %v9505_v21, %v9555_v45  ;;  %v13548_v22 = vadd.f32 %v13547_v10, %v13011_v19  ;;  %v9506_v9 = vmax.f32 %v19608_v13, 0.0 }
 0x4fa   :  { %v17533_v34 = vmax.f32 %v9504_v36, %v9554_v43  ;;  %v13550_v23 = vadd.f32 %v13549_v35, %v8818_v20  ;;  %v12018_v7 = vpop.f32.mrb[94].mxu1  ;;  %v13014_v58 = vpop.f32.mrb[94].mxu0  ;;  %v19611_v43 = vld [vmem:[#allocation32_spill] sm:$0xff] }
 0x4fb   :  { %19605 = vst [vmem:[#allocation81_spill] sm:$0xff] %v17531_v26  ;;  %v9557_v4 = vmax.f32 %v13548_v22, 0.0  ;;  %v13551_v63 = vadd.f32 %v17416_v41, %v12018_v7  ;;  %v4450_v55 = vpop.f32.mrb[95].mxu1  ;;  %v8830_v17 = vpop.f32.mrb[95].mxu0  ;;  %v9509_v35 = vmax.f32 %v19611_v43, 0.0  ;;  %v19612_v26 = vld [vmem:[#allocation19_spill] sm:$0xff] }
 0x4fc   :  { %19606 = vst [vmem:[#allocation84_spill] sm:$0xff] %v17533_v34  ;;  %v9556_v8 = vmax.f32 %v13550_v23, 0.0  ;;  %v13553_v47 = vadd.f32 %v17416_v41, %v4450_v55  ;;  %v9508_v13 = vmax.f32 %v19612_v26, 0.0 }
 0x4fd   :  { %v17539_v21 = vmax.f32 %v9507_v3, %v9557_v4  ;;  %v13552_v19 = vadd.f32 %v13551_v63, %v13014_v58 }
 0x4fe   :  { %v17541_v45 = vmax.f32 %v9506_v9, %v9556_v8  ;;  %v13554_v10 = vadd.f32 %v13553_v47, %v8830_v17  ;;  %v12021_v20 = vpop.f32.mrb[96].mxu1  ;;  %v13017_v36 = vpop.f32.mrb[96].mxu0  ;;  %v19615_v8 = vld [vmem:[#allocation34_spill] sm:$0xff] }
 0x4ff   :  { %19609 = vst [vmem:[#allocation125_spill] sm:$0xff] %v17539_v21  ;;  %v9559_v22 = vmax.f32 %v13552_v19, 0.0  ;;  %v13555_v7 = vadd.f32 %v17416_v41, %v12021_v20  ;;  %v4464_v12 = vpop.f32.mrb[97].mxu1  ;;  %v8842_v34 = vpop.f32.mrb[97].mxu0  ;;  %v9511_v47 = vmax.f32 %v19615_v8, 0.0  ;;  %v19616_v21 = vld [vmem:[#allocation36_spill] sm:$0xff] }
 0x500   :  { %19610 = vst [vmem:[#allocation128_spill] sm:$0xff] %v17541_v45  ;;  %v9558_v23 = vmax.f32 %v13554_v10, 0.0  ;;  %v13557_v55 = vadd.f32 %v17416_v41, %v4464_v12  ;;  %v9510_v26 = vmax.f32 %v19616_v21, 0.0 }
 0x501   :  { %v17547_v3 = vmax.f32 %v9509_v35, %v9559_v22  ;;  %v13556_v58 = vadd.f32 %v13555_v7, %v13017_v36 }
 0x502   :  { %v17549_v4 = vmax.f32 %v9508_v13, %v9558_v23  ;;  %v13558_v63 = vadd.f32 %v13557_v55, %v8842_v34  ;;  %v12024_v17 = vpop.f32.mrb[98].mxu1  ;;  %v13020_v9 = vpop.f32.mrb[98].mxu0  ;;  %v19619_v23 = vld [vmem:[#allocation38_spill] sm:$0xff] }
 0x503   :  { %19613 = vst [vmem:[#allocation199_spill] sm:$0xff] %v17547_v3  ;;  %v9561_v19 = vmax.f32 %v13556_v58, 0.0  ;;  %v13559_v20 = vadd.f32 %v17416_v41, %v12024_v17  ;;  %v4478_v43 = vpop.f32.mrb[99].mxu1  ;;  %v8854_v45 = vpop.f32.mrb[99].mxu0  ;;  %v9513_v55 = vmax.f32 %v19619_v23, 0.0  ;;  %v19620_v3 = vld [vmem:[#allocation40_spill] sm:$0xff] }
 0x504   :  { %19614 = vst [vmem:[#allocation180_spill] sm:$0xff] %v17549_v4  ;;  %v9560_v10 = vmax.f32 %v13558_v63, 0.0  ;;  %v13561_v12 = vadd.f32 %v17416_v41, %v4478_v43  ;;  %v9512_v21 = vmax.f32 %v19620_v3, 0.0 }
 0x505   :  { %v17555_v35 = vmax.f32 %v9511_v47, %v9561_v19  ;;  %v13560_v36 = vadd.f32 %v13559_v20, %v13020_v9 }
 0x506   :  { %v17557_v22 = vmax.f32 %v9510_v26, %v9560_v10  ;;  %v13562_v34 = vadd.f32 %v13561_v12, %v8854_v45  ;;  %v12027_v7 = vpop.f32.mrb[100].mxu1  ;;  %v13023_v13 = vpop.f32.mrb[100].mxu0 }
 0x507   :  { %19617 = vst [vmem:[#allocation249_spill] sm:$0xff] %v17555_v35  ;;  %v9563_v58 = vmax.f32 %v13560_v36, 0.0  ;;  %v13563_v17 = vadd.f32 %v17416_v41, %v12027_v7  ;;  %v4492_v8 = vpop.f32.mrb[101].mxu1  ;;  %v8866_v4 = vpop.f32.mrb[101].mxu0 }
 0x508   :  { %19618 = vst [vmem:[#allocation250_spill] sm:$0xff] %v17557_v22  ;;  %v9562_v63 = vmax.f32 %v13562_v34, 0.0  ;;  %v13565_v43 = vadd.f32 %v17416_v41, %v4492_v8 }
 0x509   :  { %v17563_v47 = vmax.f32 %v9513_v55, %v9563_v58  ;;  %v17565_v9 = vadd.f32 %v13563_v17, %v13023_v13 }
 0x50a   :  { %v17567_v19 = vmax.f32 %v9512_v21, %v9562_v63  ;;  %v17569_v45 = vadd.f32 %v13565_v43, %v8866_v4  ;;  %v12030_v20 = vpop.f32.mrb[102].mxu1  ;;  %v13026_v26 = vpop.f32.mrb[102].mxu0 }
 0x50b   :  { %19621 = vst [vmem:[#allocation229_spill] sm:$0xff] %v17563_v47  ;;  %v13567_v10 = vadd.f32 %v17416_v41, %v12030_v20  ;;  %v4506_v12 = vpop.f32.mrb[103].mxu1  ;;  %v8878_v36 = vpop.f32.mrb[103].mxu0  ;;  %v9565_v2 = vmax.f32 %v17565_v9, 0.0 }
 0x50c   :  { %19622 = vst [vmem:[#allocation231_spill] sm:$0xff] %v17567_v19  ;;  %v13569_v7 = vadd.f32 %v17416_v41, %v4506_v12 }
 0x50d   :  { %v17573_v3 = vadd.f32 %v13567_v10, %v13026_v26 }
 0x50e   :  { %v17575_v34 = vadd.f32 %v13569_v7, %v8878_v36  ;;  %v12033_v23 = vpop.f32.mrb[104].mxu1  ;;  %v13029_v55 = vpop.f32.mrb[104].mxu0 }
 0x50f   :  { %v13571_v13 = vadd.f32 %v17416_v41, %v12033_v23  ;;  %v4520_v58 = vpop.f32.mrb[105].mxu1  ;;  %v8890_v17 = vpop.f32.mrb[105].mxu0 }
 0x510   :  { %v13573_v4 = vadd.f32 %v17416_v41, %v4520_v58 }
 0x511   :  { %v17579_v8 = vadd.f32 %v13571_v13, %v13029_v55 }
 0x512   :  { %v17581_v21 = vadd.f32 %v13573_v4, %v8890_v17  ;;  %v12036_v63 = vpop.f32.mrb[106].mxu1  ;;  %v13032_v43 = vpop.f32.mrb[106].mxu0 }
 0x513   :  { %v13575_v20 = vadd.f32 %v17416_v41, %v12036_v63  ;;  %v4534_v26 = vpop.f32.mrb[107].mxu1  ;;  %v8902_v10 = vpop.f32.mrb[107].mxu0 }
 0x514   :  { %v13577_v12 = vadd.f32 %v17416_v41, %v4534_v26 }
 0x515   :  { %v17585_v36 = vadd.f32 %v13575_v20, %v13032_v43 }
 0x516   :  { %v17587_v7 = vadd.f32 %v13577_v12, %v8902_v10  ;;  %v12039_v23 = vpop.f32.mrb[108].mxu1  ;;  %v13035_v19 = vpop.f32.mrb[108].mxu0 }
 0x517   :  { %v13579_v58 = vadd.f32 %v17416_v41, %v12039_v23  ;;  %v4548_v55 = vpop.f32.mrb[109].mxu1  ;;  %v8914_v13 = vpop.f32.mrb[109].mxu0 }
 0x518   :  { %v13581_v17 = vadd.f32 %v17416_v41, %v4548_v55 }
 0x519   :  { %v17591_v4 = vadd.f32 %v13579_v58, %v13035_v19 }
 0x51a   :  { %v17593_v47 = vadd.f32 %v13581_v17, %v8914_v13  ;;  %v12042_v63 = vpop.f32.mrb[110].mxu1  ;;  %v13038_v22 = vpop.f32.mrb[110].mxu0 }
 0x51b   :  { %v13583_v26 = vadd.f32 %v17416_v41, %v12042_v63  ;;  %v4562_v43 = vpop.f32.mrb[111].mxu1  ;;  %v8926_v20 = vpop.f32.mrb[111].mxu0 }
 0x51c   :  { %v13585_v10 = vadd.f32 %v17416_v41, %v4562_v43 }
 0x51d   :  { %v17597_v12 = vadd.f32 %v13583_v26, %v13038_v22 }
 0x51e   :  { %v17599_v35 = vadd.f32 %v13585_v10, %v8926_v20  ;;  %v12045_v23 = vpop.f32.mrb[112].mxu1  ;;  %v13041_v56 = vpop.f32.mrb[112].mxu0 }
 0x51f   :  { %v13587_v55 = vadd.f32 %v17416_v41, %v12045_v23  ;;  %v4576_v19 = vpop.f32.mrb[113].mxu1  ;;  %v8938_v58 = vpop.f32.mrb[113].mxu0 }
 0x520   :  { %v13589_v13 = vadd.f32 %v17416_v41, %v4576_v19 }
 0x521   :  { %v17603_v17 = vadd.f32 %v13587_v55, %v13041_v56 }
 0x522   :  { %v17605_v37 = vadd.f32 %v13589_v13, %v8938_v58  ;;  %v12048_v63 = vpop.f32.mrb[114].mxu1  ;;  %v13044_v40 = vpop.f32.mrb[114].mxu0 }
 0x523   :  { %v13591_v43 = vadd.f32 %v17416_v41, %v12048_v63  ;;  %v4590_v22 = vpop.f32.mrb[115].mxu1  ;;  %v8950_v26 = vpop.f32.mrb[115].mxu0 }
 0x524   :  { %v13593_v20 = vadd.f32 %v17416_v41, %v4590_v22 }
 0x525   :  { %v17609_v10 = vadd.f32 %v13591_v43, %v13044_v40 }
 0x526   :  { %v17611_v30 = vadd.f32 %v13593_v20, %v8950_v26  ;;  %v12051_v23 = vpop.f32.mrb[116].mxu1  ;;  %v13047_v15 = vpop.f32.mrb[116].mxu0 }
 0x527   :  { %v13595_v19 = vadd.f32 %v17416_v41, %v12051_v23  ;;  %v4604_v56 = vpop.f32.mrb[117].mxu1  ;;  %v8962_v55 = vpop.f32.mrb[117].mxu0 }
 0x528   :  { %v13597_v58 = vadd.f32 %v17416_v41, %v4604_v56 }
 0x529   :  { %v17615_v13 = vadd.f32 %v13595_v19, %v13047_v15 }
 0x52a   :  { %v17617_v16 = vadd.f32 %v13597_v58, %v8962_v55  ;;  %v12054_v63 = vpop.f32.mrb[118].mxu1  ;;  %v13050_v51 = vpop.f32.mrb[118].mxu0 }
 0x52b   :  { %v13599_v22 = vadd.f32 %v17416_v41, %v12054_v63  ;;  %v4618_v40 = vpop.f32.mrb[119].mxu1  ;;  %v8974_v43 = vpop.f32.mrb[119].mxu0 }
 0x52c   :  { %v13601_v26 = vadd.f32 %v17416_v41, %v4618_v40 }
 0x52d   :  { %v17621_v20 = vadd.f32 %v13599_v22, %v13050_v51 }
 0x52e   :  { %v17623_v44 = vadd.f32 %v13601_v26, %v8974_v43  ;;  %v12057_v23 = vpop.f32.mrb[120].mxu1  ;;  %v13053_v46 = vpop.f32.mrb[120].mxu0 }
 0x52f   :  { %v13603_v56 = vadd.f32 %v17416_v41, %v12057_v23  ;;  %v4632_v15 = vpop.f32.mrb[121].mxu1  ;;  %v8986_v19 = vpop.f32.mrb[121].mxu0 }
 0x530   :  { %v13605_v55 = vadd.f32 %v17416_v41, %v4632_v15 }
 0x531   :  { %v17627_v58 = vadd.f32 %v13603_v56, %v13053_v46 }
 0x532   :  { %v17629_v31 = vadd.f32 %v13605_v55, %v8986_v19  ;;  %v12060_v63 = vpop.f32.mrb[122].mxu1  ;;  %v13056_v62 = vpop.f32.mrb[122].mxu0 }
 0x533   :  { %v13607_v40 = vadd.f32 %v17416_v41, %v12060_v63  ;;  %v4646_v51 = vpop.f32.mrb[123].mxu1  ;;  %v8998_v22 = vpop.f32.mrb[123].mxu0 }
 0x534   :  { %v13609_v43 = vadd.f32 %v17416_v41, %v4646_v51 }
 0x535   :  { %v17633_v26 = vadd.f32 %v13607_v40, %v13056_v62 }
 0x536   :  { %v17635_v18 = vadd.f32 %v13609_v43, %v8998_v22  ;;  %v12063_v23 = vpop.f32.mrb[124].mxu1  ;;  %v13059_v0 = vpop.f32.mrb[124].mxu0 }
 0x537   :  { %19623 = vst [vmem:[#allocation237_spill] sm:$0xff] %v17633_v26  ;;  %v13611_v15 = vadd.f32 %v17416_v41, %v12063_v23  ;;  %v4660_v46 = vpop.f32.mrb[125].mxu1  ;;  %v9010_v56 = vpop.f32.mrb[125].mxu0 }
 0x538   :  { %19624 = vst [vmem:[#allocation239_spill] sm:$0xff] %v17635_v18  ;;  %v13613_v19 = vadd.f32 %v17416_v41, %v4660_v46 }
 0x539   :  { %v17639_v55 = vadd.f32 %v13611_v15, %v13059_v0 }
 0x53a   :  { %v17641_v6 = vadd.f32 %v13613_v19, %v9010_v56  ;;  %v12066_v63 = vpop.f32.mrb[126].mxu1  ;;  %v13062_v28 = vpop.f32.mrb[126].mxu0 }
 0x53b   :  { %19625 = vst [vmem:[#allocation241_spill] sm:$0xff] %v17639_v55  ;;  %v13615_v51 = vadd.f32 %v17416_v41, %v12066_v63  ;;  %v4674_v62 = vpop.f32.mrb[127].mxu1  ;;  %v9022_v40 = vpop.f32.mrb[127].mxu0 }
 0x53c   :  { %19626 = vst [vmem:[#allocation243_spill] sm:$0xff] %v17641_v6  ;;  %v13617_v22 = vadd.f32 %v17416_v41, %v4674_v62 }
 0x53d   :  { %v17645_v43 = vadd.f32 %v13615_v51, %v13062_v28 }
 0x53e   :  { %v17647_v42 = vadd.f32 %v13617_v22, %v9022_v40  ;;  %v12069_v23 = vpop.f32.mrb[128].mxu1  ;;  %v13065_v33 = vpop.f32.mrb[128].mxu0 }
 0x53f   :  { %19627 = vst [vmem:[#allocation244_spill] sm:$0xff] %v17645_v43  ;;  %v13619_v46 = vadd.f32 %v17416_v41, %v12069_v23  ;;  %v4688_v0 = vpop.f32.mrb[129].mxu1  ;;  %v9034_v15 = vpop.f32.mrb[129].mxu0 }
 0x540   :  { %19628 = vst [vmem:[#allocation283_spill] sm:$0xff] %v17647_v42  ;;  %v13621_v56 = vadd.f32 %v17416_v41, %v4688_v0 }
 0x541   :  { %v17651_v19 = vadd.f32 %v13619_v46, %v13065_v33 }
 0x542   :  { %v17653_v6 = vadd.f32 %v13621_v56, %v9034_v15  ;;  %v12072_v63 = vpop.f32.mrb[130].mxu1  ;;  %v13068_v55 = vpop.f32.mrb[130].mxu0 }
 0x543   :  { %19629 = vst [vmem:[#allocation377_spill] sm:$0xff] %v17651_v19  ;;  %v13623_v62 = vadd.f32 %v17416_v41, %v12072_v63  ;;  %v4702_v28 = vpop.f32.mrb[131].mxu1  ;;  %v9046_v51 = vpop.f32.mrb[131].mxu0 }
 0x544   :  { %19630 = vst [vmem:[#allocation383_spill] sm:$0xff] %v17653_v6  ;;  %v13625_v40 = vadd.f32 %v17416_v41, %v4702_v28 }
 0x545   :  { %v17657_v22 = vadd.f32 %v13623_v62, %v13068_v55 }
 0x546   :  { %v17659_v42 = vadd.f32 %v13625_v40, %v9046_v51  ;;  %v12075_v23 = vpop.f32.mrb[132].mxu1  ;;  %v13071_v43 = vpop.f32.mrb[132].mxu0 }
 0x547   :  { %19631 = vst [vmem:[#allocation384_spill] sm:$0xff] %v17657_v22  ;;  %v13627_v0 = vadd.f32 %v17416_v41, %v12075_v23  ;;  %v4716_v33 = vpop.f32.mrb[133].mxu1  ;;  %v9058_v46 = vpop.f32.mrb[133].mxu0 }
 0x548   :  { %19632 = vst [vmem:[#allocation390_spill] sm:$0xff] %v17659_v42  ;;  %v13629_v15 = vadd.f32 %v17416_v41, %v4716_v33 }
 0x549   :  { %v17663_v56 = vadd.f32 %v13627_v0, %v13071_v43 }
 0x54a   :  { %v17665_v6 = vadd.f32 %v13629_v15, %v9058_v46  ;;  %v12078_v63 = vpop.f32.mrb[134].mxu1  ;;  %v13074_v19 = vpop.f32.mrb[134].mxu0 }
 0x54b   :  { %19633 = vst [vmem:[#allocation392_spill] sm:$0xff] %v17663_v56  ;;  %v13631_v28 = vadd.f32 %v17416_v41, %v12078_v63  ;;  %v4730_v55 = vpop.f32.mrb[135].mxu1  ;;  %v9070_v62 = vpop.f32.mrb[135].mxu0 }
 0x54c   :  { %19634 = vst [vmem:[#allocation11_spill] sm:$0xff] %v17665_v6  ;;  %v13633_v51 = vadd.f32 %v17416_v41, %v4730_v55 }
 0x54d   :  { %v17669_v40 = vadd.f32 %v13631_v28, %v13074_v19 }
 0x54e   :  { %v17671_v42 = vadd.f32 %v13633_v51, %v9070_v62  ;;  %v12081_v23 = vpop.f32.mrb[136].mxu1  ;;  %v13077_v22 = vpop.f32.mrb[136].mxu0 }
 0x54f   :  { %19635 = vst [vmem:[#allocation14_spill] sm:$0xff] %v17669_v40  ;;  %v13635_v33 = vadd.f32 %v17416_v41, %v12081_v23  ;;  %v4744_v43 = vpop.f32.mrb[137].mxu1  ;;  %v9082_v0 = vpop.f32.mrb[137].mxu0 }
 0x550   :  { %19636 = vst [vmem:[#allocation15_spill] sm:$0xff] %v17671_v42  ;;  %v13637_v46 = vadd.f32 %v17416_v41, %v4744_v43 }
 0x551   :  { %v17675_v15 = vadd.f32 %v13635_v33, %v13077_v22 }
 0x552   :  { %v17677_v6 = vadd.f32 %v13637_v46, %v9082_v0  ;;  %v12084_v63 = vpop.f32.mrb[138].mxu1  ;;  %v13080_v56 = vpop.f32.mrb[138].mxu0 }
 0x553   :  { %19637 = vst [vmem:[#allocation17_spill] sm:$0xff] %v17675_v15  ;;  %v13639_v55 = vadd.f32 %v17416_v41, %v12084_v63  ;;  %v4758_v19 = vpop.f32.mrb[139].mxu1  ;;  %v9094_v28 = vpop.f32.mrb[139].mxu0 }
 0x554   :  { %19638 = vst [vmem:[#allocation18_spill] sm:$0xff] %v17677_v6  ;;  %v13641_v62 = vadd.f32 %v17416_v41, %v4758_v19 }
 0x555   :  { %v17681_v51 = vadd.f32 %v13639_v55, %v13080_v56 }
 0x556   :  { %v17683_v42 = vadd.f32 %v13641_v62, %v9094_v28  ;;  %v12087_v23 = vpop.f32.mrb[140].mxu1  ;;  %v13083_v40 = vpop.f32.mrb[140].mxu0 }
 0x557   :  { %19639 = vst [vmem:[#allocation20_spill] sm:$0xff] %v17681_v51  ;;  %v13643_v43 = vadd.f32 %v17416_v41, %v12087_v23  ;;  %v4772_v22 = vpop.f32.mrb[141].mxu1  ;;  %v9106_v33 = vpop.f32.mrb[141].mxu0 }
 0x558   :  { %19640 = vst [vmem:[#allocation21_spill] sm:$0xff] %v17683_v42  ;;  %v13645_v0 = vadd.f32 %v17416_v41, %v4772_v22 }
 0x559   :  { %v17687_v46 = vadd.f32 %v13643_v43, %v13083_v40 }
 0x55a   :  { %v17689_v6 = vadd.f32 %v13645_v0, %v9106_v33  ;;  %v12090_v63 = vpop.f32.mrb[142].mxu1  ;;  %v13086_v15 = vpop.f32.mrb[142].mxu0 }
 0x55b   :  { %19641 = vst [vmem:[#allocation22_spill] sm:$0xff] %v17687_v46  ;;  %v13647_v19 = vadd.f32 %v17416_v41, %v12090_v63  ;;  %v4786_v56 = vpop.f32.mrb[143].mxu1  ;;  %v9118_v55 = vpop.f32.mrb[143].mxu0 }
 0x55c   :  { %19642 = vst [vmem:[#allocation25_spill] sm:$0xff] %v17689_v6  ;;  %v13649_v28 = vadd.f32 %v17416_v41, %v4786_v56 }
 0x55d   :  { %v17693_v62 = vadd.f32 %v13647_v19, %v13086_v15 }
 0x55e   :  { %v17695_v42 = vadd.f32 %v13649_v28, %v9118_v55  ;;  %v12093_v23 = vpop.f32.mrb[144].mxu1  ;;  %v13089_v51 = vpop.f32.mrb[144].mxu0 }
 0x55f   :  { %19643 = vst [vmem:[#allocation28_spill] sm:$0xff] %v17693_v62  ;;  %v13651_v22 = vadd.f32 %v17416_v41, %v12093_v23  ;;  %v4800_v40 = vpop.f32.mrb[145].mxu1  ;;  %v9130_v43 = vpop.f32.mrb[145].mxu0 }
 0x560   :  { %19644 = vst [vmem:[#allocation29_spill] sm:$0xff] %v17695_v42  ;;  %v13653_v33 = vadd.f32 %v17416_v41, %v4800_v40 }
 0x561   :  { %v17699_v0 = vadd.f32 %v13651_v22, %v13089_v51 }
 0x562   :  { %v17701_v6 = vadd.f32 %v13653_v33, %v9130_v43  ;;  %v12096_v63 = vpop.f32.mrb[146].mxu1  ;;  %v13092_v46 = vpop.f32.mrb[146].mxu0 }
 0x563   :  { %19645 = vst [vmem:[#allocation30_spill] sm:$0xff] %v17699_v0  ;;  %v13655_v56 = vadd.f32 %v17416_v41, %v12096_v63  ;;  %v4814_v15 = vpop.f32.mrb[147].mxu1  ;;  %v9142_v19 = vpop.f32.mrb[147].mxu0 }
 0x564   :  { %19646 = vst [vmem:[#allocation31_spill] sm:$0xff] %v17701_v6  ;;  %v13657_v55 = vadd.f32 %v17416_v41, %v4814_v15 }
 0x565   :  { %v17705_v28 = vadd.f32 %v13655_v56, %v13092_v46 }
 0x566   :  { %v17707_v42 = vadd.f32 %v13657_v55, %v9142_v19  ;;  %v12099_v23 = vpop.f32.mrb[148].mxu1  ;;  %v13095_v62 = vpop.f32.mrb[148].mxu0 }
 0x567   :  { %19647 = vst [vmem:[#allocation33_spill] sm:$0xff] %v17705_v28  ;;  %v13659_v40 = vadd.f32 %v17416_v41, %v12099_v23  ;;  %v4828_v51 = vpop.f32.mrb[149].mxu1  ;;  %v9154_v22 = vpop.f32.mrb[149].mxu0 }
 0x568   :  { %19648 = vst [vmem:[#allocation35_spill] sm:$0xff] %v17707_v42  ;;  %v13661_v43 = vadd.f32 %v17416_v41, %v4828_v51 }
 0x569   :  { %v17711_v33 = vadd.f32 %v13659_v40, %v13095_v62 }
 0x56a   :  { %v17713_v6 = vadd.f32 %v13661_v43, %v9154_v22  ;;  %v12102_v63 = vpop.f32.mrb[150].mxu1  ;;  %v13098_v0 = vpop.f32.mrb[150].mxu0  ;;  %v9564_v22 = vmax.f32 %v17569_v45, 0.0  ;;  %v9566_v45 = vmax.f32 %v17575_v34, 0.0 }
 0x56b   :  { %19649 = vst [vmem:[#allocation37_spill] sm:$0xff] %v17711_v33  ;;  %v13663_v15 = vadd.f32 %v17416_v41, %v12102_v63  ;;  %v4842_v46 = vpop.f32.mrb[151].mxu1  ;;  %v9166_v56 = vpop.f32.mrb[151].mxu0 }
 0x56c   :  { %19650 = vst [vmem:[#allocation39_spill] sm:$0xff] %v17713_v6  ;;  %v13665_v19 = vadd.f32 %v17416_v41, %v4842_v46 }
 0x56d   :  { %v13664_v55 = vadd.f32 %v13663_v15, %v13098_v0 }
 0x56e   :  { %v13666_v42 = vadd.f32 %v13665_v19, %v9166_v56  ;;  %v12105_v28 = vpop.f32.mrb[152].mxu1  ;;  %v13101_v23 = vpop.f32.mrb[152].mxu0  ;;  %v9567_v56 = vmax.f32 %v17573_v3, 0.0 }
 0x56f   :  { %v9615_v18 = vmax.f32 %v13664_v55, 0.0  ;;  %v13667_v62 = vadd.f32 %v17416_v41, %v12105_v28  ;;  %v4856_v40 = vpop.f32.mrb[153].mxu1  ;;  %v9178_v51 = vpop.f32.mrb[153].mxu0 }
 0x570   :  { %v9614_v43 = vmax.f32 %v13666_v42, 0.0  ;;  %v13669_v63 = vadd.f32 %v17416_v41, %v4856_v40 }
 0x571   :  { %v9715_v6 = vmax.f32 %v9565_v2, %v9615_v18  ;;  %v13668_v33 = vadd.f32 %v13667_v62, %v13101_v23 }
 0x572   :  { %v9714_v61 = vmax.f32 %v9564_v22, %v9614_v43  ;;  %v13670_v46 = vadd.f32 %v13669_v63, %v9178_v51  ;;  %v12108_v0 = vpop.f32.mrb[154].mxu1  ;;  %v13104_v15 = vpop.f32.mrb[154].mxu0 }
 0x573   :  { %v9765_v9 = vmax.f32 %v17288_v27, %v9715_v6  ;;  %v9617_v19 = vmax.f32 %v13668_v33, 0.0  ;;  %v13671_v28 = vadd.f32 %v17416_v41, %v12108_v0  ;;  %v4870_v55 = vpop.f32.mrb[155].mxu1  ;;  %v9190_v26 = vpop.f32.mrb[155].mxu0  ;;  %v9569_v6 = vmax.f32 %v17579_v8, 0.0 }
 0x574   :  { %v9764_v42 = vmax.f32 %v17290_v38, %v9714_v61  ;;  %v9616_v40 = vmax.f32 %v13670_v46, 0.0  ;;  %v13673_v2 = vadd.f32 %v17416_v41, %v4870_v55  ;;  %v9568_v61 = vmax.f32 %v17581_v21, 0.0 }
 0x575   :  { %9815 = vst [vmem:[#allocation7 + $0x8] sm:$0xff] %v9765_v9  ;;  %v9717_v18 = vmax.f32 %v9567_v56, %v9617_v19  ;;  %v13672_v23 = vadd.f32 %v13671_v28, %v13104_v15  ;;  %v9571_v19 = vmax.f32 %v17585_v36, 0.0 }
 0x576   :  { %9814 = vst [vmem:[#allocation7] sm:$0xff] %v9764_v42  ;;  %v9716_v62 = vmax.f32 %v9566_v45, %v9616_v40  ;;  %v13674_v3 = vadd.f32 %v13673_v2, %v9190_v26  ;;  %v12111_v51 = vpop.f32.mrb[156].mxu1  ;;  %v13107_v27 = vpop.f32.mrb[156].mxu0  ;;  %v9570_v42 = vmax.f32 %v17587_v7, 0.0 }
 0x577   :  { %v9767_v33 = vmax.f32 %v17300_v54, %v9717_v18  ;;  %v9619_v22 = vmax.f32 %v13672_v23, 0.0  ;;  %v13675_v34 = vadd.f32 %v17416_v41, %v12111_v51  ;;  %v4884_v43 = vpop.f32.mrb[157].mxu1  ;;  %v9202_v38 = vpop.f32.mrb[157].mxu0 }
 0x578   :  { %v9766_v63 = vmax.f32 %v17302_v25, %v9716_v62  ;;  %v9618_v46 = vmax.f32 %v13674_v3, 0.0  ;;  %v13677_v0 = vadd.f32 %v17416_v41, %v4884_v43 }
 0x579   :  { %9817 = vst [vmem:[#allocation7 + $0x18] sm:$0xff] %v9767_v33  ;;  %v9719_v26 = vmax.f32 %v9569_v6, %v9619_v22  ;;  %v13676_v15 = vadd.f32 %v13675_v34, %v13107_v27  ;;  %v9573_v27 = vmax.f32 %v17591_v4, 0.0  ;;  %v9572_v34 = vmax.f32 %v17593_v47, 0.0 }
 0x57a   :  { %9816 = vst [vmem:[#allocation7 + $0x10] sm:$0xff] %v9766_v63  ;;  %v9718_v56 = vmax.f32 %v9568_v61, %v9618_v46  ;;  %v13678_v8 = vadd.f32 %v13677_v0, %v9202_v38  ;;  %v12114_v9 = vpop.f32.mrb[158].mxu1  ;;  %v13110_v54 = vpop.f32.mrb[158].mxu0 }
 0x57b   :  { %v9769_v28 = vmax.f32 %v17312_v11, %v9719_v26  ;;  %v9621_v55 = vmax.f32 %v13676_v15, 0.0  ;;  %v13679_v21 = vadd.f32 %v17416_v41, %v12114_v9  ;;  %v4898_v45 = vpop.f32.mrb[159].mxu1  ;;  %v9214_v25 = vpop.f32.mrb[159].mxu0  ;;  %v9575_v15 = vmax.f32 %v17597_v12, 0.0 }
 0x57c   :  { %v9768_v40 = vmax.f32 %v17314_v5, %v9718_v56  ;;  %v9620_v2 = vmax.f32 %v13678_v8, 0.0  ;;  %v13681_v18 = vadd.f32 %v17416_v41, %v4898_v45 }
 0x57d   :  { %9819 = vst [vmem:[#allocation7 + $0x28] sm:$0xff] %v9769_v28  ;;  %v9721_v23 = vmax.f32 %v9571_v19, %v9621_v55  ;;  %v13680_v62 = vadd.f32 %v13679_v21, %v13110_v54  ;;  %v9574_v54 = vmax.f32 %v17599_v35, 0.0 }
 0x57e   :  { %9818 = vst [vmem:[#allocation7 + $0x20] sm:$0xff] %v9768_v40  ;;  %v9720_v3 = vmax.f32 %v9570_v42, %v9620_v2  ;;  %v13682_v36 = vadd.f32 %v13681_v18, %v9214_v25  ;;  %v12117_v51 = vpop.f32.mrb[160].mxu1  ;;  %v13113_v11 = vpop.f32.mrb[160].mxu0  ;;  %v9577_v40 = vmax.f32 %v17603_v17, 0.0 }
 0x57f   :  { %v9771_v6 = vmax.f32 %v17324_v50, %v9721_v23  ;;  %v9623_v33 = vmax.f32 %v13680_v62, 0.0  ;;  %v13683_v7 = vadd.f32 %v17416_v41, %v12117_v51  ;;  %v4912_v22 = vpop.f32.mrb[161].mxu1  ;;  %v9226_v5 = vpop.f32.mrb[161].mxu0  ;;  %v9576_v62 = vmax.f32 %v17605_v37, 0.0 }
 0x580   :  { %v9770_v43 = vmax.f32 %v17326_v14, %v9720_v3  ;;  %v9622_v38 = vmax.f32 %v13682_v36, 0.0  ;;  %v13685_v61 = vadd.f32 %v17416_v41, %v4912_v22  ;;  %v17750_v14 = vld [vmem:[%s17887_s2] ss:$0 sm:$0xff]  ;;  %s14654_s2 = smov [#allocation7]  }
 0x581   :  { %9821 = vst [vmem:[#allocation7 + $0x38] sm:$0xff] %v9771_v6  ;;  %v9723_v63 = vmax.f32 %v9573_v27, %v9623_v33  ;;  %v13684_v46 = vadd.f32 %v13683_v7, %v13113_v11  ;;  %v9579_v7 = vmax.f32 %v17609_v10, 0.0  ;;  %s9869_s15 = sshll.u32 %s14654_s2, 4  ;;  %s9870_s15 = int_to_ptr.vmem [resolvable:$true] %s9869_s15 }
 0x582   :  { %9820 = vst [vmem:[#allocation7 + $0x30] sm:$0xff] %v9770_v43  ;;  %v9722_v0 = vmax.f32 %v9572_v34, %v9622_v38  ;;  %v13686_v4 = vadd.f32 %v13685_v61, %v9226_v5  ;;  %v12120_v26 = vpop.f32.mrb[162].mxu1  ;;  %v13116_v50 = vpop.f32.mrb[162].mxu0  ;;  %v9578_v43 = vmax.f32 %v17611_v30, 0.0  ;;  %s14622_s16 = scalar_lea.vmem %s9870_s15, 6400  ;;  %p14627_p3 = scmp.lt.s32.totalorder %s9870_s15, %s9870_s15 }
 0x583   :  { %v9773_v56 = vmax.f32 %v17336_v52, %v9723_v63  ;;  %v9625_v8 = vmax.f32 %v13684_v46, 0.0  ;;  %v13687_v41 = vadd.f32 %v17750_v14, %v12120_v26  ;;  %v4926_v47 = vpop.f32.mrb[163].mxu1  ;;  %v9238_v9 = vpop.f32.mrb[163].mxu0  ;;  %p14623_p2 = scmp.ne.s32.totalorder %s9870_s15, %s14622_s16  ;;  %p14628_p4 = scmp.lt.s32.totalorder %s14622_s16, %s14622_s16 }
 0x584   :  { %v9772_v19 = vmax.f32 %v17338_v59, %v9722_v0  ;;  %v9624_v28 = vmax.f32 %v13686_v4, 0.0  ;;  %v13689_v55 = vadd.f32 %v17750_v14, %v4926_v47 }
 0x585   :  { %9823 = vst [vmem:[#allocation7 + $0x48] sm:$0xff] %v9773_v56  ;;  %v9725_v12 = vmax.f32 %v9575_v15, %v9625_v8  ;;  %v13688_v52 = vadd.f32 %v13687_v41, %v13116_v50  ;;  %v9581_v50 = vmax.f32 %v17615_v13, 0.0  ;;  %v9580_v41 = vmax.f32 %v17617_v16, 0.0  ;;  %p14629_p5 = por %p14628_p4, %p14627_p3 }
 0x586   :  { %9822 = vst [vmem:[#allocation7 + $0x40] sm:$0xff] %v9772_v19  ;;  %v9724_v21 = vmax.f32 %v9574_v54, %v9624_v28  ;;  %v13690_v45 = vadd.f32 %v13689_v55, %v9238_v9  ;;  %v12123_v25 = vpop.f32.mrb[164].mxu1  ;;  %v13119_v42 = vpop.f32.mrb[164].mxu0 }
 0x587   :  { %v9775_v2 = vmax.f32 %v17348_v24, %v9725_v12  ;;  %v9627_v18 = vmax.f32 %v13688_v52, 0.0  ;;  %v13691_v35 = vadd.f32 %v17750_v14, %v12123_v25  ;;  %v4940_v23 = vpop.f32.mrb[165].mxu1  ;;  %v9250_v59 = vpop.f32.mrb[165].mxu0  ;;  %v9583_v52 = vmax.f32 %v17621_v20, 0.0  ;;  %p14630_p6 = pnand %p14629_p5, %p14623_p2 }
 0x588   :  { %v9774_v3 = vmax.f32 %v17350_v57, %v9724_v21  ;;  %v9626_v36 = vmax.f32 %v13690_v45, 0.0  ;;  %v13693_v51 = vadd.f32 %v17750_v14, %v4940_v23 }
 0x589   :  { %9825 = vst [vmem:[#allocation7 + $0x58] sm:$0xff] %v9775_v2  ;;  %v9727_v11 = vmax.f32 %v9577_v40, %v9627_v18  ;;  %v13692_v27 = vadd.f32 %v13691_v35, %v13119_v42  ;;  %v9582_v42 = vmax.f32 %v17623_v44, 0.0 }
 0x58a   :  { %9824 = vst [vmem:[#allocation7 + $0x50] sm:$0xff] %v9774_v3  ;;  %v9726_v6 = vmax.f32 %v9576_v62, %v9626_v36  ;;  %v13694_v17 = vadd.f32 %v13693_v51, %v9250_v59  ;;  %v12126_v33 = vpop.f32.mrb[166].mxu1  ;;  %v13122_v24 = vpop.f32.mrb[166].mxu0  ;;  %v9585_v3 = vmax.f32 %v17627_v58, 0.0 }
 0x58b   :  { %v9777_v22 = vmax.f32 %v17360_v49, %v9727_v11  ;;  %v9629_v5 = vmax.f32 %v13692_v27, 0.0  ;;  %v13695_v37 = vadd.f32 %v17750_v14, %v12126_v33  ;;  %v4954_v34 = vpop.f32.mrb[167].mxu1  ;;  %v9262_v57 = vpop.f32.mrb[167].mxu0  ;;  %v9584_v27 = vmax.f32 %v17629_v31, 0.0 }
 0x58c   :  { %v9776_v38 = vmax.f32 %v17362_v32, %v9726_v6  ;;  %v9628_v61 = vmax.f32 %v13694_v17, 0.0  ;;  %v13697_v63 = vadd.f32 %v17750_v14, %v4954_v34 }
 0x58d   :  { %9827 = vst [vmem:[#allocation7 + $0x68] sm:$0xff] %v9777_v22  ;;  %v9729_v46 = vmax.f32 %v9579_v7, %v9629_v5  ;;  %v13696_v0 = vadd.f32 %v13695_v37, %v13122_v24  ;;  %v19651_v37 = vld [vmem:[#allocation237_spill] sm:$0xff] }
 0x58e   :  { %9826 = vst [vmem:[#allocation7 + $0x60] sm:$0xff] %v9776_v38  ;;  %v9728_v4 = vmax.f32 %v9578_v43, %v9628_v61  ;;  %v13698_v10 = vadd.f32 %v13697_v63, %v9262_v57  ;;  %v12129_v26 = vpop.f32.mrb[168].mxu1  ;;  %v13125_v49 = vpop.f32.mrb[168].mxu0  ;;  %v9587_v34 = vmax.f32 %v19651_v37, 0.0  ;;  %v19652_v57 = vld [vmem:[#allocation41_spill] sm:$0xff]  ;;  %v19653_v63 = vld [vmem:[#allocation239_spill] sm:$0xff] }
 0x58f   :  { %v9779_v15 = vmax.f32 %v17372_v1, %v9729_v46  ;;  %v9631_v56 = vmax.f32 %v13696_v0, 0.0  ;;  %v13699_v30 = vadd.f32 %v17750_v14, %v12129_v26  ;;  %v4968_v8 = vpop.f32.mrb[169].mxu1  ;;  %v9274_v32 = vpop.f32.mrb[169].mxu0  ;;  %v9586_v46 = vmax.f32 %v19653_v63, 0.0  ;;  %v19654_v0 = vld [vmem:[#allocation43_spill] sm:$0xff] }
 0x590   :  { %v9778_v47 = vmax.f32 %v17374_v60, %v9728_v4  ;;  %v9630_v9 = vmax.f32 %v13698_v10, 0.0  ;;  %v13701_v54 = vadd.f32 %v17750_v14, %v4968_v8 }
 0x591   :  { %9829 = vst [vmem:[#allocation7 + $0x78] sm:$0xff] %v9779_v15  ;;  %v9731_v19 = vmax.f32 %v9581_v50, %v9631_v56  ;;  %v13700_v28 = vadd.f32 %v13699_v30, %v13125_v49 }
 0x592   :  { %9828 = vst [vmem:[#allocation7 + $0x70] sm:$0xff] %v9778_v47  ;;  %v9730_v55 = vmax.f32 %v9580_v41, %v9630_v9  ;;  %v13702_v13 = vadd.f32 %v13701_v54, %v9274_v32  ;;  %v12132_v12 = vpop.f32.mrb[170].mxu1  ;;  %v13128_v1 = vpop.f32.mrb[170].mxu0  ;;  %v19655_v32 = vld [vmem:[#allocation241_spill] sm:$0xff]  ;;  %v19656_v47 = vld [vmem:[#allocation47_spill] sm:$0xff] }
 0x593   :  { %v9781_v21 = vmax.f32 %v17384_v29, %v9731_v19  ;;  %v9633_v45 = vmax.f32 %v13700_v28, 0.0  ;;  %v13703_v16 = vadd.f32 %v17750_v14, %v12132_v12  ;;  %v4982_v25 = vpop.f32.mrb[171].mxu1  ;;  %v9286_v60 = vpop.f32.mrb[171].mxu0  ;;  %v9589_v41 = vmax.f32 %v19655_v32, 0.0 }
 0x594   :  { %v9780_v40 = vmax.f32 %v17386_v39, %v9730_v55  ;;  %v9632_v2 = vmax.f32 %v13702_v13, 0.0  ;;  %v13705_v18 = vadd.f32 %v17750_v14, %v4982_v25  ;;  %v19657_v13 = vld [vmem:[#allocation243_spill] sm:$0xff] }
 0x595   :  { %9831 = vst [vmem:[#allocation7 + $0x88] sm:$0xff] %v9781_v21  ;;  %v9733_v35 = vmax.f32 %v9583_v52, %v9633_v45  ;;  %v13704_v23 = vadd.f32 %v13703_v16, %v13128_v1  ;;  %v9588_v12 = vmax.f32 %v19657_v13, 0.0  ;;  %v19658_v1 = vld [vmem:[#allocation48_spill] sm:$0xff] }
 0x596   :  { %9830 = vst [vmem:[#allocation7 + $0x80] sm:$0xff] %v9780_v40  ;;  %v9732_v59 = vmax.f32 %v9582_v42, %v9632_v2  ;;  %v13706_v20 = vadd.f32 %v13705_v18, %v9286_v60  ;;  %v12135_v62 = vpop.f32.mrb[172].mxu1  ;;  %v13131_v29 = vpop.f32.mrb[172].mxu0  ;;  %v19659_v18 = vld [vmem:[#allocation244_spill] sm:$0xff] }
 0x597   :  { %v9783_v36 = vmax.f32 %v17396_v48, %v9733_v35  ;;  %v9635_v51 = vmax.f32 %v13704_v23, 0.0  ;;  %v13707_v44 = vadd.f32 %v17750_v14, %v12135_v62  ;;  %v4996_v11 = vpop.f32.mrb[173].mxu1  ;;  %v9298_v39 = vpop.f32.mrb[173].mxu0  ;;  %v9591_v35 = vmax.f32 %v19659_v18, 0.0  ;;  %v19660_v23 = vld [vmem:[#allocation49_spill] sm:$0xff] }
 0x598   :  { %v9782_v6 = vmax.f32 %v17398_v53, %v9732_v59  ;;  %v9634_v17 = vmax.f32 %v13706_v20, 0.0  ;;  %v13709_v33 = vadd.f32 %v17750_v14, %v4996_v11 }
 0x599   :  { %9833 = vst [vmem:[#allocation7 + $0x98] sm:$0xff] %v9783_v36  ;;  %v9735_v24 = vmax.f32 %v9585_v3, %v9635_v51  ;;  %v13708_v7 = vadd.f32 %v13707_v44, %v13131_v29  ;;  %v19661_v36 = vld [vmem:[#allocation283_spill] sm:$0xff] }
 0x59a   :  { %9832 = vst [vmem:[#allocation7 + $0x90] sm:$0xff] %v9782_v6  ;;  %v9734_v22 = vmax.f32 %v9584_v27, %v9634_v17  ;;  %v13710_v58 = vadd.f32 %v13709_v33, %v9298_v39  ;;  %v12138_v5 = vpop.f32.mrb[174].mxu1  ;;  %v13134_v48 = vpop.f32.mrb[174].mxu0  ;;  %v9590_v51 = vmax.f32 %v19661_v36, 0.0  ;;  %v19662_v44 = vld [vmem:[#allocation51_spill] sm:$0xff] }
 0x59b   :  { %v9785_v43 = vmax.f32 %v19652_v57, %v9735_v24  ;;  %v9637_v38 = vmax.f32 %v13708_v7, 0.0  ;;  %v13711_v31 = vadd.f32 %v17750_v14, %v12138_v5  ;;  %v5010_v61 = vpop.f32.mrb[175].mxu1  ;;  %v9310_v53 = vpop.f32.mrb[175].mxu0 }
 0x59c   :  { %v9784_v4 = vmax.f32 %v19654_v0, %v9734_v22  ;;  %v9636_v10 = vmax.f32 %v13710_v58, 0.0  ;;  %v13713_v26 = vadd.f32 %v17750_v14, %v5010_v61  ;;  %v19663_v58 = vld [vmem:[#allocation377_spill] sm:$0xff] }
 0x59d   :  { %9835 = vst [vmem:[#allocation7 + $0xa8] sm:$0xff] %v9785_v43  ;;  %v9737_v49 = vmax.f32 %v9587_v34, %v9637_v38  ;;  %v13712_v50 = vadd.f32 %v13711_v31, %v13134_v48  ;;  %v9593_v5 = vmax.f32 %v19663_v58, 0.0  ;;  %v19664_v48 = vld [vmem:[#allocation53_spill] sm:$0xff]  ;;  %v19665_v31 = vld [vmem:[#allocation383_spill] sm:$0xff] }
 0x59e   :  { %9834 = vst [vmem:[#allocation7 + $0xa0] sm:$0xff] %v9784_v4  ;;  %v9736_v15 = vmax.f32 %v9586_v46, %v9636_v10  ;;  %v13714_v56 = vadd.f32 %v13713_v26, %v9310_v53  ;;  %v12141_v30 = vpop.f32.mrb[176].mxu1  ;;  %v13137_v8 = vpop.f32.mrb[176].mxu0  ;;  %v9592_v61 = vmax.f32 %v19665_v31, 0.0  ;;  %v19666_v53 = vld [vmem:[#allocation54_spill] sm:$0xff] }
 0x59f   :  { %v9787_v9 = vmax.f32 %v19656_v47, %v9737_v49  ;;  %v9639_v54 = vmax.f32 %v13712_v50, 0.0  ;;  %v13715_v19 = vadd.f32 %v17750_v14, %v12141_v30  ;;  %v5024_v28 = vpop.f32.mrb[177].mxu1  ;;  %v9322_v55 = vpop.f32.mrb[177].mxu0 }
 0x5a0   :  { %v9786_v52 = vmax.f32 %v19658_v1, %v9736_v15  ;;  %v9638_v21 = vmax.f32 %v13714_v56, 0.0  ;;  %v13717_v45 = vadd.f32 %v17750_v14, %v5024_v28  ;;  %v19667_v56 = vld [vmem:[#allocation384_spill] sm:$0xff] }
 0x5a1   :  { %9837 = vst [vmem:[#allocation7 + $0xb8] sm:$0xff] %v9787_v9  ;;  %v9739_v16 = vmax.f32 %v9589_v41, %v9639_v54  ;;  %v13716_v25 = vadd.f32 %v13715_v19, %v13137_v8  ;;  %v9595_v30 = vmax.f32 %v19667_v56, 0.0  ;;  %v19668_v8 = vld [vmem:[#allocation59_spill] sm:$0xff]  ;;  %v19669_v19 = vld [vmem:[#allocation390_spill] sm:$0xff] }
 0x5a2   :  { %9836 = vst [vmem:[#allocation7 + $0xb0] sm:$0xff] %v9786_v52  ;;  %v9738_v60 = vmax.f32 %v9588_v12, %v9638_v21  ;;  %v13718_v42 = vadd.f32 %v13717_v45, %v9322_v55  ;;  %v12144_v40 = vpop.f32.mrb[178].mxu1  ;;  %v13140_v2 = vpop.f32.mrb[178].mxu0  ;;  %v9594_v28 = vmax.f32 %v19669_v19, 0.0  ;;  %v19670_v55 = vld [vmem:[#allocation60_spill] sm:$0xff] }
 0x5a3   :  { %v9789_v59 = vmax.f32 %v19660_v23, %v9739_v16  ;;  %v9641_v20 = vmax.f32 %v13716_v25, 0.0  ;;  %v13719_v62 = vadd.f32 %v17750_v14, %v12144_v40  ;;  %v5038_v29 = vpop.f32.mrb[179].mxu1  ;;  %v9334_v3 = vpop.f32.mrb[179].mxu0 }
 0x5a4   :  { %v9788_v11 = vmax.f32 %v19662_v44, %v9738_v60  ;;  %v9640_v39 = vmax.f32 %v13718_v42, 0.0  ;;  %v13721_v27 = vadd.f32 %v17750_v14, %v5038_v29  ;;  %v19671_v42 = vld [vmem:[#allocation392_spill] sm:$0xff] }
 0x5a5   :  { %9839 = vst [vmem:[#allocation7 + $0xc8] sm:$0xff] %v9789_v59  ;;  %v9741_v6 = vmax.f32 %v9591_v35, %v9641_v20  ;;  %v13720_v17 = vadd.f32 %v13719_v62, %v13140_v2  ;;  %v9597_v40 = vmax.f32 %v19671_v42, 0.0  ;;  %v19672_v2 = vld [vmem:[#allocation62_spill] sm:$0xff]  ;;  %v19673_v62 = vld [vmem:[#allocation11_spill] sm:$0xff] }
 0x5a6   :  { %9838 = vst [vmem:[#allocation7 + $0xc0] sm:$0xff] %v9788_v11  ;;  %v9740_v33 = vmax.f32 %v9590_v51, %v9640_v39  ;;  %v13722_v24 = vadd.f32 %v13721_v27, %v9334_v3  ;;  %v12147_v7 = vpop.f32.mrb[180].mxu1  ;;  %v13143_v22 = vpop.f32.mrb[180].mxu0  ;;  %v9596_v29 = vmax.f32 %v19673_v62, 0.0  ;;  %v19674_v3 = vld [vmem:[#allocation64_spill] sm:$0xff] }
 0x5a7   :  { %v9791_v37 = vmax.f32 %v19664_v48, %v9741_v6  ;;  %v9643_v34 = vmax.f32 %v13720_v17, 0.0  ;;  %v13723_v57 = vadd.f32 %v17750_v14, %v12147_v7  ;;  %v5052_v43 = vpop.f32.mrb[181].mxu1  ;;  %v9346_v38 = vpop.f32.mrb[181].mxu0 }
 0x5a8   :  { %v9790_v63 = vmax.f32 %v19666_v53, %v9740_v33  ;;  %v9642_v46 = vmax.f32 %v13722_v24, 0.0  ;;  %v13725_v0 = vadd.f32 %v17750_v14, %v5052_v43  ;;  %v19675_v24 = vld [vmem:[#allocation14_spill] sm:$0xff] }
 0x5a9   :  { %9841 = vst [vmem:[#allocation7 + $0xd8] sm:$0xff] %v9791_v37  ;;  %v9743_v4 = vmax.f32 %v9593_v5, %v9643_v34  ;;  %v13724_v10 = vadd.f32 %v13723_v57, %v13143_v22  ;;  %v9599_v7 = vmax.f32 %v19675_v24, 0.0  ;;  %v19676_v22 = vld [vmem:[#allocation65_spill] sm:$0xff]  ;;  %v19677_v57 = vld [vmem:[#allocation15_spill] sm:$0xff] }
 0x5aa   :  { %9840 = vst [vmem:[#allocation7 + $0xd0] sm:$0xff] %v9790_v63  ;;  %v9742_v26 = vmax.f32 %v9592_v61, %v9642_v46  ;;  %v13726_v49 = vadd.f32 %v13725_v0, %v9346_v38  ;;  %v12150_v50 = vpop.f32.mrb[182].mxu1  ;;  %v13146_v15 = vpop.f32.mrb[182].mxu0  ;;  %v9598_v43 = vmax.f32 %v19677_v57, 0.0  ;;  %v19678_v38 = vld [vmem:[#allocation67_spill] sm:$0xff] }
 0x5ab   :  { %v9793_v32 = vmax.f32 %v19668_v8, %v9743_v4  ;;  %v9645_v41 = vmax.f32 %v13724_v10, 0.0  ;;  %v13727_v47 = vadd.f32 %v17750_v14, %v12150_v50  ;;  %v5066_v9 = vpop.f32.mrb[183].mxu1  ;;  %v9358_v54 = vpop.f32.mrb[183].mxu0 }
 0x5ac   :  { %v9792_v13 = vmax.f32 %v19670_v55, %v9742_v26  ;;  %v9644_v12 = vmax.f32 %v13726_v49, 0.0  ;;  %v13729_v1 = vadd.f32 %v17750_v14, %v5066_v9  ;;  %v19679_v49 = vld [vmem:[#allocation17_spill] sm:$0xff] }
 0x5ad   :  { %9843 = vst [vmem:[#allocation7 + $0xe8] sm:$0xff] %v9793_v32  ;;  %v9745_v52 = vmax.f32 %v9595_v30, %v9645_v41  ;;  %v13728_v21 = vadd.f32 %v13727_v47, %v13146_v15  ;;  %v9601_v50 = vmax.f32 %v19679_v49, 0.0  ;;  %v19680_v15 = vld [vmem:[#allocation70_spill] sm:$0xff] }
 0x5ae   :  { %9842 = vst [vmem:[#allocation7 + $0xe0] sm:$0xff] %v9792_v13  ;;  %v9744_v45 = vmax.f32 %v9594_v28, %v9644_v12  ;;  %v13730_v16 = vadd.f32 %v13729_v1, %v9358_v54  ;;  %v12153_v25 = vpop.f32.mrb[184].mxu1  ;;  %v13149_v60 = vpop.f32.mrb[184].mxu0  ;;  %v19681_v47 = vld [vmem:[#allocation18_spill] sm:$0xff]  ;;  %v19682_v54 = vld [vmem:[#allocation72_spill] sm:$0xff] }
 0x5af   :  { %v9795_v18 = vmax.f32 %v19672_v2, %v9745_v52  ;;  %v9647_v35 = vmax.f32 %v13728_v21, 0.0  ;;  %v13731_v23 = vadd.f32 %v17750_v14, %v12153_v25  ;;  %v5080_v59 = vpop.f32.mrb[185].mxu1  ;;  %v9370_v20 = vpop.f32.mrb[185].mxu0  ;;  %v9600_v9 = vmax.f32 %v19681_v47, 0.0 }
 0x5b0   :  { %v9794_v36 = vmax.f32 %v19674_v3, %v9744_v45  ;;  %v9646_v51 = vmax.f32 %v13730_v16, 0.0  ;;  %v13733_v44 = vadd.f32 %v17750_v14, %v5080_v59  ;;  %v19683_v16 = vld [vmem:[#allocation20_spill] sm:$0xff] }
 0x5b1   :  { %9845 = vst [vmem:[#allocation7 + $0xf8] sm:$0xff] %v9795_v18  ;;  %v9747_v11 = vmax.f32 %v9597_v40, %v9647_v35  ;;  %v13732_v39 = vadd.f32 %v13731_v23, %v13149_v60  ;;  %v9603_v25 = vmax.f32 %v19683_v16, 0.0  ;;  %v19684_v60 = vld [vmem:[#allocation75_spill] sm:$0xff]  ;;  %v19685_v23 = vld [vmem:[#allocation21_spill] sm:$0xff] }
 0x5b2   :  { %9844 = vst [vmem:[#allocation7 + $0xf0] sm:$0xff] %v9794_v36  ;;  %v9746_v27 = vmax.f32 %v9596_v29, %v9646_v51  ;;  %v13734_v6 = vadd.f32 %v13733_v44, %v9370_v20  ;;  %v12156_v17 = vpop.f32.mrb[186].mxu1  ;;  %v13152_v33 = vpop.f32.mrb[186].mxu0  ;;  %v9602_v59 = vmax.f32 %v19685_v23, 0.0  ;;  %v19686_v20 = vld [vmem:[#allocation76_spill] sm:$0xff] }
 0x5b3   :  { %v9797_v58 = vmax.f32 %v19676_v22, %v9747_v11  ;;  %v9649_v5 = vmax.f32 %v13732_v39, 0.0  ;;  %v13735_v48 = vadd.f32 %v17750_v14, %v12156_v17  ;;  %v5094_v37 = vpop.f32.mrb[187].mxu1  ;;  %v9382_v34 = vpop.f32.mrb[187].mxu0 }
 0x5b4   :  { %v9796_v31 = vmax.f32 %v19678_v38, %v9746_v27  ;;  %v9648_v61 = vmax.f32 %v13734_v6, 0.0  ;;  %v13737_v53 = vadd.f32 %v17750_v14, %v5094_v37  ;;  %v19687_v6 = vld [vmem:[#allocation22_spill] sm:$0xff] }
 0x5b5   :  { %9847 = vst [vmem:[#allocation7 + $0x108] sm:$0xff] %v9797_v58  ;;  %v9749_v63 = vmax.f32 %v9599_v7, %v9649_v5  ;;  %v13736_v46 = vadd.f32 %v13735_v48, %v13152_v33  ;;  %v9605_v17 = vmax.f32 %v19687_v6, 0.0  ;;  %v19688_v33 = vld [vmem:[#allocation78_spill] sm:$0xff]  ;;  %v19689_v48 = vld [vmem:[#allocation25_spill] sm:$0xff] }
 0x5b6   :  { %9846 = vst [vmem:[#allocation7 + $0x100] sm:$0xff] %v9796_v31  ;;  %v9748_v0 = vmax.f32 %v9598_v43, %v9648_v61  ;;  %v13738_v4 = vadd.f32 %v13737_v53, %v9382_v34  ;;  %v12159_v10 = vpop.f32.mrb[188].mxu1  ;;  %v13155_v26 = vpop.f32.mrb[188].mxu0  ;;  %v9604_v37 = vmax.f32 %v19689_v48, 0.0  ;;  %v19690_v34 = vld [vmem:[#allocation80_spill] sm:$0xff] }
 0x5b7   :  { %v9799_v56 = vmax.f32 %v19680_v15, %v9749_v63  ;;  %v9651_v30 = vmax.f32 %v13736_v46, 0.0  ;;  %v13739_v8 = vadd.f32 %v17750_v14, %v12159_v10  ;;  %v5108_v32 = vpop.f32.mrb[189].mxu1  ;;  %v9394_v41 = vpop.f32.mrb[189].mxu0 }
 0x5b8   :  { %v9798_v19 = vmax.f32 %v19682_v54, %v9748_v0  ;;  %v9650_v28 = vmax.f32 %v13738_v4, 0.0  ;;  %v13741_v55 = vadd.f32 %v17750_v14, %v5108_v32  ;;  %v19691_v4 = vld [vmem:[#allocation28_spill] sm:$0xff] }
 0x5b9   :  { %9849 = vst [vmem:[#allocation7 + $0x118] sm:$0xff] %v9799_v56  ;;  %v9751_v13 = vmax.f32 %v9601_v50, %v9651_v30  ;;  %v13740_v12 = vadd.f32 %v13739_v8, %v13155_v26  ;;  %v9607_v10 = vmax.f32 %v19691_v4, 0.0  ;;  %v19692_v26 = vld [vmem:[#allocation81_spill] sm:$0xff]  ;;  %v19705_v4 = vld [vmem:[#allocation39_spill] sm:$0xff] }
 0x5ba   :  { %9848 = vst [vmem:[#allocation7 + $0x110] sm:$0xff] %v9798_v19  ;;  %v9750_v1 = vmax.f32 %v9600_v9, %v9650_v28  ;;  %v13742_v52 = vadd.f32 %v13741_v55, %v9394_v41  ;;  %v12162_v21 = vpop.f32.mrb[190].mxu1  ;;  %v13158_v45 = vpop.f32.mrb[190].mxu0  ;;  %v19693_v8 = vld [vmem:[#allocation29_spill] sm:$0xff]  ;;  %v19694_v41 = vld [vmem:[#allocation84_spill] sm:$0xff] }
 0x5bb   :  { %v9801_v42 = vmax.f32 %v19684_v60, %v9751_v13  ;;  %v9653_v40 = vmax.f32 %v13740_v12, 0.0  ;;  %v13743_v2 = vadd.f32 %v17750_v14, %v12162_v21  ;;  %v5122_v18 = vpop.f32.mrb[191].mxu1  ;;  %v9406_v35 = vpop.f32.mrb[191].mxu0  ;;  %v9606_v32 = vmax.f32 %v19693_v8, 0.0  ;;  %v19708_v8 = vld [vmem:[#allocation231_spill] sm:$0xff] }
 0x5bc   :  { %v9800_v62 = vmax.f32 %v19686_v20, %v9750_v1  ;;  %v9652_v29 = vmax.f32 %v13742_v52, 0.0  ;;  %v13745_v3 = vadd.f32 %v17750_v14, %v5122_v18  ;;  %v19695_v52 = vld [vmem:[#allocation30_spill] sm:$0xff] }
 0x5bd   :  { %9851 = vst [vmem:[#allocation7 + $0x128] sm:$0xff] %v9801_v42  ;;  %v9753_v36 = vmax.f32 %v9603_v25, %v9653_v40  ;;  %v13744_v51 = vadd.f32 %v13743_v2, %v13158_v45  ;;  %v9609_v21 = vmax.f32 %v19695_v52, 0.0  ;;  %v19696_v45 = vld [vmem:[#allocation125_spill] sm:$0xff]  ;;  %v19697_v2 = vld [vmem:[#allocation31_spill] sm:$0xff] }
 0x5be   :  { %9850 = vst [vmem:[#allocation7 + $0x120] sm:$0xff] %v9800_v62  ;;  %v9752_v44 = vmax.f32 %v9602_v59, %v9652_v29  ;;  %v13746_v11 = vadd.f32 %v13745_v3, %v9406_v35  ;;  %v12165_v39 = vpop.f32.mrb[192].mxu1  ;;  %v13161_v27 = vpop.f32.mrb[192].mxu0  ;;  %v9608_v18 = vmax.f32 %v19697_v2, 0.0  ;;  %v19698_v35 = vld [vmem:[#allocation128_spill] sm:$0xff] }
 0x5bf   :  { %v9803_v24 = vmax.f32 %v19688_v33, %v9753_v36  ;;  %v9655_v7 = vmax.f32 %v13744_v51, 0.0  ;;  %v13747_v22 = vadd.f32 %v17750_v14, %v12165_v39  ;;  %v5136_v58 = vpop.f32.mrb[193].mxu1  ;;  %v9418_v5 = vpop.f32.mrb[193].mxu0 }
 0x5c0   :  { %v9802_v57 = vmax.f32 %v19690_v34, %v9752_v44  ;;  %v9654_v43 = vmax.f32 %v13746_v11, 0.0  ;;  %v13749_v38 = vadd.f32 %v17750_v14, %v5136_v58  ;;  %v19699_v11 = vld [vmem:[#allocation33_spill] sm:$0xff] }
 0x5c1   :  { %9853 = vst [vmem:[#allocation7 + $0x138] sm:$0xff] %v9803_v24  ;;  %v9755_v31 = vmax.f32 %v9605_v17, %v9655_v7  ;;  %v13748_v61 = vadd.f32 %v13747_v22, %v13161_v27  ;;  %v9611_v39 = vmax.f32 %v19699_v11, 0.0  ;;  %v19700_v27 = vld [vmem:[#allocation199_spill] sm:$0xff] }
 0x5c2   :  { %9852 = vst [vmem:[#allocation7 + $0x130] sm:$0xff] %v9802_v57  ;;  %v9754_v53 = vmax.f32 %v9604_v37, %v9654_v43  ;;  %v13750_v63 = vadd.f32 %v13749_v38, %v9418_v5  ;;  %v12168_v46 = vpop.f32.mrb[194].mxu1  ;;  %v13164_v0 = vpop.f32.mrb[194].mxu0  ;;  %v19701_v22 = vld [vmem:[#allocation35_spill] sm:$0xff]  ;;  %v19702_v5 = vld [vmem:[#allocation180_spill] sm:$0xff] }
 0x5c3   :  { %v9805_v49 = vmax.f32 %v19692_v26, %v9755_v31  ;;  %v9657_v50 = vmax.f32 %v13748_v61, 0.0  ;;  %v13751_v15 = vadd.f32 %v17750_v14, %v12168_v46  ;;  %v5150_v56 = vpop.f32.mrb[195].mxu1  ;;  %v9430_v30 = vpop.f32.mrb[195].mxu0  ;;  %v9610_v58 = vmax.f32 %v19701_v22, 0.0  ;;  %v19703_v61 = vld [vmem:[#allocation37_spill] sm:$0xff]  ;;  %v19706_v26 = vld [vmem:[#allocation250_spill] sm:$0xff] }
 0x5c4   :  { %v9804_v47 = vmax.f32 %v19694_v41, %v9754_v53  ;;  %v9656_v9 = vmax.f32 %v13750_v63, 0.0  ;;  %v13753_v54 = vadd.f32 %v17750_v14, %v5150_v56  ;;  %v9613_v53 = vmax.f32 %v19703_v61, 0.0  ;;  %v19704_v63 = vld [vmem:[#allocation249_spill] sm:$0xff] }
 0x5c5   :  { %9855 = vst [vmem:[#allocation7 + $0x148] sm:$0xff] %v9805_v49  ;;  %v9757_v19 = vmax.f32 %v9607_v10, %v9657_v50  ;;  %v13752_v28 = vadd.f32 %v13751_v15, %v13164_v0  ;;  %v9612_v10 = vmax.f32 %v19705_v4, 0.0  ;;  %v19707_v56 = vld [vmem:[#allocation229_spill] sm:$0xff] }
 0x5c6   :  { %9854 = vst [vmem:[#allocation7 + $0x140] sm:$0xff] %v9804_v47  ;;  %v9756_v55 = vmax.f32 %v9606_v32, %v9656_v9  ;;  %v13754_v13 = vadd.f32 %v13753_v54, %v9430_v30  ;;  %v12171_v12 = vpop.f32.mrb[196].mxu1  ;;  %v13167_v1 = vpop.f32.mrb[196].mxu0 }
 0x5c7   :  { %v9807_v16 = vmax.f32 %v19696_v45, %v9757_v19  ;;  %v9659_v25 = vmax.f32 %v13752_v28, 0.0  ;;  %v13755_v60 = vadd.f32 %v17750_v14, %v12171_v12  ;;  %v5164_v42 = vpop.f32.mrb[197].mxu1  ;;  %v9442_v40 = vpop.f32.mrb[197].mxu0 }
 0x5c8   :  { %v9806_v23 = vmax.f32 %v19698_v35, %v9756_v55  ;;  %v9658_v59 = vmax.f32 %v13754_v13, 0.0  ;;  %v13757_v20 = vadd.f32 %v17750_v14, %v5164_v42 }
 0x5c9   :  { %9857 = vst [vmem:[#allocation7 + $0x158] sm:$0xff] %v9807_v16  ;;  %v9759_v62 = vmax.f32 %v9609_v21, %v9659_v25  ;;  %v13756_v29 = vadd.f32 %v13755_v60, %v13167_v1 }
 0x5ca   :  { %9856 = vst [vmem:[#allocation7 + $0x150] sm:$0xff] %v9806_v23  ;;  %v9758_v3 = vmax.f32 %v9608_v18, %v9658_v59  ;;  %v13758_v36 = vadd.f32 %v13757_v20, %v9442_v40  ;;  %v12174_v51 = vpop.f32.mrb[198].mxu1  ;;  %v13170_v44 = vpop.f32.mrb[198].mxu0 }
 0x5cb   :  { %v9809_v6 = vmax.f32 %v19700_v27, %v9759_v62  ;;  %v9661_v17 = vmax.f32 %v13756_v29, 0.0  ;;  %v13759_v33 = vadd.f32 %v17750_v14, %v12174_v51  ;;  %v5178_v24 = vpop.f32.mrb[199].mxu1  ;;  %v9454_v7 = vpop.f32.mrb[199].mxu0 }
 0x5cc   :  { %v9808_v48 = vmax.f32 %v19702_v5, %v9758_v3  ;;  %v9660_v37 = vmax.f32 %v13758_v36, 0.0  ;;  %v13761_v34 = vadd.f32 %v17750_v14, %v5178_v24 }
 0x5cd   :  { %9859 = vst [vmem:[#allocation7 + $0x168] sm:$0xff] %v9809_v6  ;;  %v9761_v57 = vmax.f32 %v9611_v39, %v9661_v17  ;;  %v13760_v43 = vadd.f32 %v13759_v33, %v13170_v44 }
 0x5ce   :  { %9858 = vst [vmem:[#allocation7 + $0x160] sm:$0xff] %v9808_v48  ;;  %v9760_v38 = vmax.f32 %v9610_v58, %v9660_v37  ;;  %v13762_v31 = vadd.f32 %v13761_v34, %v9454_v7 }
 0x5cf   :  { %v9811_v46 = vmax.f32 %v19704_v63, %v9761_v57  ;;  %v9663_v0 = vmax.f32 %v13760_v43, 0.0 }
 0x5d0   :  { %v9810_v49 = vmax.f32 %v19706_v26, %v9760_v38  ;;  %v9662_v50 = vmax.f32 %v13762_v31, 0.0 }
 0x5d1   :  { %9861 = vst [vmem:[#allocation7 + $0x178] sm:$0xff] %v9811_v46  ;;  %v9763_v15 = vmax.f32 %v9613_v53, %v9663_v0 }
 0x5d2   :  { %9860 = vst [vmem:[#allocation7 + $0x170] sm:$0xff] %v9810_v49  ;;  %v9762_v14 = vmax.f32 %v9612_v10, %v9662_v50 }
 0x5d3   :  { %v9813_v30 = vmax.f32 %v19707_v56, %v9763_v15 }
 0x5d4   :  { %v9812_v32 = vmax.f32 %v19708_v8, %v9762_v14 }
 0x5d5   :  { %9863 = vst [vmem:[#allocation7 + $0x188] sm:$0xff] %v9813_v30 }
 0x5d6   :  { %9862 = vst [vmem:[#allocation7 + $0x180] sm:$0xff] %v9812_v32 }
 0x5d7   :  { %14633 = shalt.err (!%p14630_p6)
}
 0x5d8   :  { %s14634_s19 = scalar_lea.hbm %s17888_s3, 6400 }
 0x5d9   :  { %p14635_p7 = scmp.ne.s32.totalorder %s17888_s3, %s14634_s19  ;;  %p14638_p8 = scmp.lt.u32.totalorder %s14634_s19, %s17888_s3 }
 0x5db   :  { %p14640_p9 = pnand %p14638_p8, %p14635_p7 }
 0x5dd   :  { %14643 = shalt.err (!%p14640_p9)
}
 0x5de   :  { %9875 = dma.vmem_to_hbm [thread:$0]  %s9870_s15, 6400, %s17888_s3, [#allocation4], %s14651_s22, %s14651_s22, %s14652_s23  }
 0x5df   :  { %14648 = dma.done.wait [#allocation4], 6400  }
 0x5e0   :  { %14649 = vsyncadd [#allocation4], 4294960896 }
 0x5e1   :  { %9879 = vsyncpa [#allocation3], 1 }
 0x5e2   :  { %9880 = vsyncpa [#allocation6], 1 }
 0x5e3   :  { %9881 = vsyncpa [#allocation4], 1 }

</bundles_post_ra>
